<compile_context>
chip_gen: v7x
topology: tpu7x:2x2x1
jax: 0.10.0
libtpu: 0.0.40
codegen_flags: <defaults>
</compile_context>

<pallas_src>
import functools
import numpy as np

import jax
import jax.numpy as jnp
from jax import lax
from jax.experimental import pallas as pl
from jax.experimental.pallas import tpu as pltpu


# ----------------------------------------------------------------------------- hw knobs

def _vmem_limit_bytes():
    """Scoped-VMEM request: physical capacity minus 16 MiB headroom
    (v7x -> 48 MiB, v5e/v6e -> 112 MiB); conservative 48 MiB if the query fails."""
    try:
        cap = int(getattr(pltpu.get_tpu_info(), "vmem_capacity_bytes", 0))
        if cap > 0:
            return max(cap - (16 << 20), 32 << 20)
    except Exception:
        pass
    return 48 << 20


VMEM_LIMIT = _vmem_limit_bytes()
_BIG_VMEM = VMEM_LIMIT >= (80 << 20)
TC_CAP = 512 if _BIG_VMEM else 256      # conv input-channel tile
TCO_CAP = 512 if _BIG_VMEM else 256     # conv output-channel tile
TQ_CAP = 512 if _BIG_VMEM else 256      # OCR-head query-row tile
TL_CAP = 4096 if _BIG_VMEM else 2048    # gather L-chunk rows
COL_CAP = 8192 if _BIG_VMEM else 4096   # resize lane-column tile


# ----------------------------------------------------------------------------- helpers

def _round_up(x, m):
    return (x + m - 1) // m * m


def _tile(dim, cap):
    """Full dim if it fits (full-dim blocks are layout-exempt), else `cap`
    (a multiple of 128); returns (tile, padded_dim)."""
    if dim <= cap:
        return dim, dim
    return cap, _round_up(dim, cap)


def _divisor_tile(dim, cap, *, align, want_two):
    """Largest divisor of `dim` that is a multiple of `align`, <= cap and (when possible
    and requested) <= dim // 2 so at least 2 grid blocks exist (feeds both v7x cores).
    Falls back to the full dim (layout-exempt full block)."""
    limit = min(cap, dim // 2 if (want_two and dim >= 2 * align) else dim)
    best, t = 0, align
    while t <= limit:
        if dim % t == 0:
            best = t
        t += align
    return best if best else dim


def _pad2(a, rows, cols):
    r, c = a.shape
    if rows == r and cols == c:
        return a
    return jnp.pad(a, ((0, rows - r), (0, cols - c)))


def _row(a):
    return jnp.asarray(a, jnp.float32).reshape(1, -1)


def _const_spec(shape, index_map):
    """BlockSpec for a grid-invariant operand; single-buffered to save VMEM
    (the block index never changes, so double-buffering is pure waste)."""
    try:
        return pl.BlockSpec(shape, index_map, pipeline_mode=pl.Buffered(1))
    except (TypeError, AttributeError):   # older pallas without pipeline_mode
        return pl.BlockSpec(shape, index_map)


def fold_bn(gamma, beta, mean, var, conv_bias=None, eps=1e-5):
    """Fold eval-mode BatchNorm (and optional conv bias) into per-channel scale/bias."""
    s = gamma / jnp.sqrt(var + eps)
    b = beta - mean * s
    if conv_bias is not None:
        b = b + conv_bias * s
    return s, b


def bilinear_matrix(out_size, in_size):
    """Row-stochastic interpolation matrix == F.interpolate(bilinear, align_corners=False)."""
    scale = in_size / out_size
    dst = np.arange(out_size, dtype=np.float64)
    src = np.maximum((dst + 0.5) * scale - 0.5, 0.0)
    i0 = np.minimum(np.floor(src).astype(np.int64), in_size - 1)
    i1 = np.minimum(i0 + 1, in_size - 1)
    w1 = src - i0
    w0 = 1.0 - w1
    A = np.zeros((out_size, in_size), np.float32)
    rows = np.arange(out_size)
    A[rows, i0] += w0
    A[rows, i1] += w1
    return jnp.asarray(A)


# ----------------------------------------------------------------------------- 3x3 conv + BN + ReLU

def _conv3_taps(x_ref, w_ref, H, W):
    """Accumulate the 9 shifted taps of a 3x3 conv into a LOCAL f32 value (the caller
    does a single scratch read-modify-write per grid step). Inputs are bf16 MXU operands."""
    acc = None
    for dy in range(3):
        for dx in range(3):
            patch = x_ref[0, dy:dy + H, dx:dx + W, :]                       # (H, W, tC) bf16
            d = jnp.dot(patch.reshape(H * W, -1), w_ref[3 * dy + dx],
                        preferred_element_type=jnp.float32)
            acc = d if acc is None else acc + d
    return acc


def _conv3_kernel(x_ref, w_ref, s_ref, b_ref, o_ref, acc_ref, *, H, W, n_k):
    @pl.when(pl.program_id(2) == 0)
    def _():
        acc_ref[...] = jnp.zeros_like(acc_ref)

    acc_ref[...] += _conv3_taps(x_ref, w_ref, H, W)                         # one RMW / step

    @pl.when(pl.program_id(2) == n_k - 1)
    def _():
        y = jnp.maximum(acc_ref[...] * s_ref[...] + b_ref[...], 0.0)
        o_ref[0] = y.astype(o_ref.dtype)


def conv3x3_bn_relu(x, w, scale, bias):
    """x: (T, H, W, C) f32, w: (3, 3, C, Co) f32 -> relu(BN(conv3x3(x))) flattened to
    (T, H*W, Cop) bf16 (Cop lane-padded with zero channels only when Co is tiled)."""
    T, H, W, C = x.shape
    Co = w.shape[-1]
    tC, Cp = _tile(C, TC_CAP)
    tCo, Cop = _tile(Co, TCO_CAP)
    xp = jnp.pad(x.astype(jnp.bfloat16), ((0, 0), (1, 1), (1, 1), (0, Cp - C)))
    w9 = jnp.pad(w.reshape(9, C, Co), ((0, 0), (0, Cp - C), (0, Cop - Co))).astype(jnp.bfloat16)
    s2 = _pad2(_row(scale), 1, Cop)
    b2 = _pad2(_row(bias), 1, Cop)
    nC, nCo = Cp // tC, Cop // tCo
    return pl.pallas_call(
        functools.partial(_conv3_kernel, H=H, W=W, n_k=nC),
        out_shape=jax.ShapeDtypeStruct((T, H * W, Cop), jnp.bfloat16),
        grid=(T, nCo, nC),
        in_specs=[pl.BlockSpec((1, H + 2, W + 2, tC), lambda t, co, c: (t, 0, 0, c)),
                  pl.BlockSpec((9, tC, tCo), lambda t, co, c: (0, c, co)),
                  pl.BlockSpec((1, tCo), lambda t, co, c: (0, co)),
                  pl.BlockSpec((1, tCo), lambda t, co, c: (0, co))],
        out_specs=pl.BlockSpec((1, H * W, tCo), lambda t, co, c: (t, 0, co)),
        scratch_shapes=[pltpu.VMEM((H * W, tCo), jnp.float32)],
        compiler_params=pltpu.CompilerParams(
            dimension_semantics=("parallel", "parallel", "arbitrary"),
            vmem_limit_bytes=VMEM_LIMIT),
    )(xp, w9, s2, b2)


# ----------------------------------------------------------------------------- fused dsn branch
#   conv3x3 + BN + ReLU (+ Dropout2d eval identity) + 1x1 classifier — one kernel,
#   the (T, HW, Cm) feature map never hits HBM.

def _dsn_kernel(x_ref, w_ref, s_ref, b_ref, w2_ref, b2_ref, o_ref,
                accf_ref, accc_ref, *, H, W, n_co, n_c):
    co, c = pl.program_id(1), pl.program_id(2)

    @pl.when(c == 0)
    def _():
        accf_ref[...] = jnp.zeros_like(accf_ref)

    @pl.when(jnp.logical_and(co == 0, c == 0))
    def _():
        accc_ref[...] = jnp.zeros_like(accc_ref)

    accf_ref[...] += _conv3_taps(x_ref, w_ref, H, W)

    @pl.when(c == n_c - 1)
    def _():
        feat = jnp.maximum(accf_ref[...] * s_ref[...] + b_ref[...], 0.0)    # (HW, tCm)
        accc_ref[...] += jnp.dot(feat.astype(jnp.bfloat16), w2_ref[...],
                                 preferred_element_type=jnp.float32)

    @pl.when(jnp.logical_and(co == n_co - 1, c == n_c - 1))
    def _():
        o_ref[0] = (accc_ref[...] + b2_ref[...]).astype(o_ref.dtype)


def dsn_head(x, w, scale, bias, w2, b2):
    """x: (T, H, W, C4); w2: (Cm, KP) classifier with classes lane-padded to KP.
    Returns class logits (T, H*W, KP) bf16."""
    T, H, W, C = x.shape
    Cm = w.shape[-1]
    KP = w2.shape[-1]
    tC, Cp = _tile(C, TC_CAP)
    tCm, Cmp = _tile(Cm, TCO_CAP)
    xp = jnp.pad(x.astype(jnp.bfloat16), ((0, 0), (1, 1), (1, 1), (0, Cp - C)))
    w9 = jnp.pad(w.reshape(9, C, Cm), ((0, 0), (0, Cp - C), (0, Cmp - Cm))).astype(jnp.bfloat16)
    sbn = _pad2(_row(scale), 1, Cmp)
    bbn = _pad2(_row(bias), 1, Cmp)
    w2p = jnp.pad(w2, ((0, Cmp - Cm), (0, 0))).astype(jnp.bfloat16)
    b2r = _row(b2)
    nC, nCm = Cp // tC, Cmp // tCm
    return pl.pallas_call(
        functools.partial(_dsn_kernel, H=H, W=W, n_co=nCm, n_c=nC),
        out_shape=jax.ShapeDtypeStruct((T, H * W, KP), jnp.bfloat16),
        grid=(T, nCm, nC),
        in_specs=[pl.BlockSpec((1, H + 2, W + 2, tC), lambda t, co, c: (t, 0, 0, c)),
                  pl.BlockSpec((9, tC, tCm), lambda t, co, c: (0, c, co)),
                  pl.BlockSpec((1, tCm), lambda t, co, c: (0, co)),
                  pl.BlockSpec((1, tCm), lambda t, co, c: (0, co)),
                  pl.BlockSpec((tCm, KP), lambda t, co, c: (co, 0)),
                  _const_spec((1, KP), lambda t, co, c: (0, 0))],
        out_specs=pl.BlockSpec((1, H * W, KP), lambda t, co, c: (t, 0, 0)),
        scratch_shapes=[pltpu.VMEM((H * W, tCm), jnp.float32),
                        pltpu.VMEM((H * W, KP), jnp.float32)],
        compiler_params=pltpu.CompilerParams(
            dimension_semantics=("parallel", "arbitrary", "arbitrary"),
            vmem_limit_bytes=VMEM_LIMIT),
    )(xp, w9, sbn, bbn, w2p, b2r)


# ----------------------------------------------------------------------------- fused gather + object key/value
#   SpatialTemporalGather (streaming softmax over time*space, per sample) fused with
#   f_object (fo1->fo2) and f_down. Probs/context never hit HBM; the frame reindex
#   (batch = frame*n + sample) is folded into the index_map (no host transposes).

def _gather_kv_kernel(p_ref, f_ref, w1, s1, b1, w2, s2, b2, wd, sd, bd,
                      k_ref, v_ref, acc_ref, m_ref, l_ref, *, n_frames, n_lt):
    f32, bf = jnp.float32, jnp.bfloat16
    fr, lt = pl.program_id(1), pl.program_id(2)

    @pl.when(jnp.logical_and(fr == 0, lt == 0))
    def _():
        m_ref[...] = jnp.full(m_ref.shape, -1e30, f32)
        l_ref[...] = jnp.zeros_like(l_ref)
        acc_ref[...] = jnp.zeros_like(acc_ref)

    # classes on sublanes: (KP, tL) logits; online softmax over the L axis.
    logits = p_ref[0].astype(f32).T                                         # (KP, tL)
    m_prev = m_ref[...]                                                     # (KP, 1)
    m_new = jnp.maximum(m_prev, jnp.max(logits, axis=1, keepdims=True))
    alpha = jnp.exp(m_prev - m_new)
    p = jnp.exp(logits - m_new)                                             # (KP, tL)
    l_ref[...] = alpha * l_ref[...] + jnp.sum(p, axis=1, keepdims=True)
    acc_ref[...] = acc_ref[...] * alpha + jnp.dot(p.astype(bf), f_ref[0],
                                                  preferred_element_type=f32)
    m_ref[...] = m_new

    @pl.when(jnp.logical_and(fr == n_frames - 1, lt == n_lt - 1))
    def _():
        ctx = (acc_ref[...] * pl.reciprocal(l_ref[...], approx=True)).astype(bf)   # (KP, Cmp)
        # f_object: two 1x1 conv + BN + ReLU -> key
        h = jnp.dot(ctx, w1[...], preferred_element_type=f32)
        h = jnp.maximum(h * s1[...] + b1[...], 0.0)
        key = jnp.dot(h.astype(bf), w2[...], preferred_element_type=f32)
        key = jnp.maximum(key * s2[...] + b2[...], 0.0)
        # f_down: 1x1 conv + BN + ReLU -> value
        val = jnp.dot(ctx, wd[...], preferred_element_type=f32)
        val = jnp.maximum(val * sd[...] + bd[...], 0.0)
        k_ref[0] = key.astype(k_ref.dtype)
        v_ref[0] = val.astype(v_ref.dtype)


def gather_object_kv(feats, probs, w1, s1, b1, w2, s2, b2, wd, sd, bd, *, clip_num, n):
    """feats: (T, HW, Cmp) bf16, probs: (T, HW, KP) bf16 logits, T=(clip_num+1)*n.
    Returns (key, value): each (n, KP, Ck) bf16."""
    T, HW, Cmp = feats.shape
    KP = probs.shape[-1]
    Ck = w1.shape[-1]
    F = clip_num + 1
    assert T == F * n
    tL = _divisor_tile(HW, TL_CAP, align=8, want_two=False)
    nLt = HW // tL
    params = [w1, _row(s1), _row(b1), w2, _row(s2), _row(b2), wd, _row(sd), _row(bd)]
    pspecs = [_const_spec(p.shape, lambda i, f, l: (0, 0)) for p in params]
    return pl.pallas_call(
        functools.partial(_gather_kv_kernel, n_frames=F, n_lt=nLt),
        out_shape=(jax.ShapeDtypeStruct((n, KP, Ck), jnp.bfloat16),
                   jax.ShapeDtypeStruct((n, KP, Ck), jnp.bfloat16)),
        grid=(n, F, nLt),
        in_specs=[pl.BlockSpec((1, tL, KP), lambda i, f, l: (f * n + i, l, 0)),
                  pl.BlockSpec((1, tL, Cmp), lambda i, f, l: (f * n + i, l, 0))] + pspecs,
        out_specs=(pl.BlockSpec((1, KP, Ck), lambda i, f, l: (i, 0, 0)),
                   pl.BlockSpec((1, KP, Ck), lambda i, f, l: (i, 0, 0))),
        scratch_shapes=[pltpu.VMEM((KP, Cmp), jnp.float32),
                        pltpu.VMEM((KP, 1), jnp.float32),
                        pltpu.VMEM((KP, 1), jnp.float32)],
        compiler_params=pltpu.CompilerParams(
            dimension_semantics=("parallel", "arbitrary", "arbitrary"),
            vmem_limit_bytes=VMEM_LIMIT),
    )(probs, feats, *params)


# ----------------------------------------------------------------------------- fused OCR head
#   f_pixel (2x 1x1 conv-bn-relu) -> attention (masked softmax over padded classes)
#   -> f_up -> concat-free fuse (two accumulating matmuls) -> classifier head.

def _ocr_head_kernel(x_ref, k_ref, v_ref,
                     wp1, sp1, bp1, wp2, sp2, bp2,
                     wup, sup, bup, woa, wob, so, bo, wh, bh,
                     o_ref, *, n_valid, scale):
    f32, bf = jnp.float32, jnp.bfloat16
    xb = x_ref[0]                                                           # (tq, Cmp) bf16
    # f_pixel
    q = jnp.dot(xb, wp1[...], preferred_element_type=f32)
    q = jnp.maximum(q * sp1[...] + bp1[...], 0.0)
    q = jnp.dot(q.astype(bf), wp2[...], preferred_element_type=f32)
    q = jnp.maximum(q * sp2[...] + bp2[...], 0.0)                           # (tq, Ck)
    # attention: sim = Q @ K^T * key_channels**-0.5 ; padded classes masked to -inf
    sim = lax.dot_general(q.astype(bf), k_ref[0], (((1,), (1,)), ((), ())),
                          preferred_element_type=f32) * scale               # (tq, KP)
    mask = lax.broadcasted_iota(jnp.int32, sim.shape, 1) < n_valid
    sim = jnp.where(mask, sim, -1e30)
    p = jnp.exp(sim - jnp.max(sim, axis=-1, keepdims=True))
    p = p * pl.reciprocal(jnp.sum(p, axis=-1, keepdims=True), approx=True)
    ctx = jnp.dot(p.astype(bf), v_ref[0], preferred_element_type=f32)       # (tq, Ck)
    # f_up
    up = jnp.dot(ctx.astype(bf), wup[...], preferred_element_type=f32)
    up = jnp.maximum(up * sup[...] + bup[...], 0.0)                         # (tq, Cm)
    # fuse: conv1x1(cat([up, x])) == up @ W_top + x @ W_bot, then BN + ReLU
    fuse = (jnp.dot(up.astype(bf), woa[...], preferred_element_type=f32)
            + jnp.dot(xb, wob[...], preferred_element_type=f32))
    ocr = jnp.maximum(fuse * so[...] + bo[...], 0.0)                        # (tq, Cm)
    # classifier head (lane-padded classes; padded columns have zero weight/bias)
    o_ref[0] = (jnp.dot(ocr.astype(bf), wh[...], preferred_element_type=f32)
                + bh[...]).astype(o_ref.dtype)


def ocr_head(out_tmp, key3, val3,
             wp1, sp1, bp1, wp2, sp2, bp2, wup, sup, bup,
             woa, wob, so, bo, wh, bh,
             *, clip_num, n, n_classes, key_channels):
    """Reads the current frame rows of out_tmp directly via its index_map (no host slice).
    Returns logits (n, HW, KP) bf16."""
    T, HW, Cmp = out_tmp.shape
    _, KP, Ck = key3.shape
    tq = _divisor_tile(HW, TQ_CAP, align=8, want_two=True)
    params = [wp1, _row(sp1), _row(bp1), wp2, _row(sp2), _row(bp2),
              wup, _row(sup), _row(bup), woa, wob, _row(so), _row(bo), wh, _row(bh)]
    pspecs = [_const_spec(p.shape, lambda i, j: (0, 0)) for p in params]
    return pl.pallas_call(
        functools.partial(_ocr_head_kernel, n_valid=n_classes,
                          scale=float(key_channels) ** -0.5),
        out_shape=jax.ShapeDtypeStruct((n, HW, KP), jnp.bfloat16),
        grid=(n, HW // tq),
        in_specs=[pl.BlockSpec((1, tq, Cmp), lambda i, j: (clip_num * n + i, j, 0)),
                  pl.BlockSpec((1, KP, Ck), lambda i, j: (i, 0, 0)),
                  pl.BlockSpec((1, KP, Ck), lambda i, j: (i, 0, 0))] + pspecs,
        out_specs=pl.BlockSpec((1, tq, KP), lambda i, j: (i, j, 0)),
        compiler_params=pltpu.CompilerParams(
            dimension_semantics=("parallel", "parallel"),
            vmem_limit_bytes=VMEM_LIMIT),
    )(out_tmp, key3, val3, *params)


# ----------------------------------------------------------------------------- bilinear resize + final softmax

def _hres_kernel(a_ref, x_ref, o_ref):
    o_ref[0] = jnp.dot(a_ref[...], x_ref[0],
                       preferred_element_type=jnp.float32).astype(o_ref.dtype)


def _wres_softmax_kernel(a_ref, x_ref, o_ref, *, tb, n_valid):
    out_w = a_ref.shape[0]
    kp = x_ref.shape[2]
    mask = lax.broadcasted_iota(jnp.int32, (out_w, kp), 1) < n_valid        # hoisted
    a = a_ref[...]
    for t in range(tb):
        y = jnp.dot(a, x_ref[t], preferred_element_type=jnp.float32)        # (out_w, KP)
        y = jnp.where(mask, y, -1e30)
        e = jnp.exp(y - jnp.max(y, axis=-1, keepdims=True))
        o_ref[t] = e / jnp.sum(e, axis=-1, keepdims=True)                   # exact: final probs


def bilinear_resize_softmax(logits, H, W, out_h, out_w, n_valid):
    """logits: (n, H*W, KP) bf16 -> bilinear (align_corners=False) resize to (out_h, out_w)
    fused with the masked class softmax. Returns (n, out_h, out_w, KP) f32 probabilities
    (padded classes get exactly 0)."""
    n, HW, KP = logits.shape
    assert HW == H * W
    Ah = bilinear_matrix(out_h, H).astype(jnp.bfloat16)
    Aw = bilinear_matrix(out_w, W).astype(jnp.bfloat16)
    WC = W * KP
    tcol = _divisor_tile(WC, COL_CAP, align=128, want_two=True)
    x2 = logits.reshape(n, H, WC)                       # free: classes already lane-padded
    yh = pl.pallas_call(
        _hres_kernel,
        out_shape=jax.ShapeDtypeStruct((n, out_h, WC), jnp.bfloat16),
        grid=(n, WC // tcol),
        in_specs=[_const_spec((out_h, H), lambda i, j: (0, 0)),
                  pl.BlockSpec((1, H, tcol), lambda i, j: (i, 0, j))],
        out_specs=pl.BlockSpec((1, out_h, tcol), lambda i, j: (i, 0, j)),
        compiler_params=pltpu.CompilerParams(
            dimension_semantics=("parallel", "parallel"),
            vmem_limit_bytes=VMEM_LIMIT),
    )(Ah, x2)
    M2 = n * out_h
    yh = yh.reshape(M2, W, KP)                          # free
    TB = 8 if M2 % 8 == 0 else 1
    probs = pl.pallas_call(
        functools.partial(_wres_softmax_kernel, tb=TB, n_valid=n_valid),
        out_shape=jax.ShapeDtypeStruct((M2, out_w, KP), jnp.float32),
        grid=(M2 // TB,),
        in_specs=[_const_spec((out_w, W), lambda i: (0, 0)),
                  pl.BlockSpec((TB, W, KP), lambda i: (i, 0, 0))],
        out_specs=pl.BlockSpec((TB, out_w, KP), lambda i: (i, 0, 0)),
        compiler_params=pltpu.CompilerParams(
            dimension_semantics=("parallel",),
            vmem_limit_bytes=VMEM_LIMIT),
    )(Aw, yh)
    return probs.reshape(n, out_h, out_w, KP)


# ----------------------------------------------------------------------------- parameters

def init_params(key, C4, C5, Cm, Ck, K):
    keys = iter(jax.random.split(key, 64))

    def nrm(shape, s=0.05):
        return s * jax.random.normal(next(keys), shape, jnp.float32)

    def bn(c):
        return dict(gamma=1.0 + nrm((c,), 0.1), beta=nrm((c,), 0.1),
                    mean=nrm((c,), 0.1), var=1.0 + jnp.abs(nrm((c,), 0.1)))

    p = {}
    # conv_3x3: Conv(C5->Cm, 3x3) + BN + ReLU (weights HWIO)
    p['conv3_w'] = nrm((3, 3, C5, Cm)); p['conv3_b'] = nrm((Cm,)); p['conv3_bn'] = bn(Cm)
    # dsn_head: Conv(C4->Cm, 3x3)+BN+ReLU+Dropout, Conv(Cm->K, 1x1, bias)
    p['dsn1_w'] = nrm((3, 3, C4, Cm)); p['dsn1_b'] = nrm((Cm,)); p['dsn1_bn'] = bn(Cm)
    p['dsn2_w'] = nrm((Cm, K)); p['dsn2_b'] = nrm((K,))
    # SpatialOCR / ObjectAttentionBlock 1x1 convs (+BN+ReLU)
    for name, (ci, co) in dict(fp1=(Cm, Ck), fp2=(Ck, Ck), fo1=(Cm, Ck), fo2=(Ck, Ck),
                               fdown=(Cm, Ck), fup=(Ck, Cm)).items():
        p[name + '_w'] = nrm((ci, co)); p[name + '_b'] = nrm((co,)); p[name + '_bn'] = bn(co)
    # fuse conv: Conv(2*Cm->Cm, 1x1, bias=False) + BN + ReLU + Dropout
    p['ocr_w'] = nrm((2 * Cm, Cm)); p['ocr_bn'] = bn(Cm)
    # head: Conv(Cm->K, 1x1, bias=True)
    p['head_w'] = nrm((Cm, K)); p['head_b'] = nrm((K,))
    return p


# ----------------------------------------------------------------------------- forward

def clip_ocr_forward(params, feat4, feat5, *, clip_num, n, seg_size):
    """Inference path of ClipOCRNet.forward (segSize given). feat4/feat5 are the encoder's
    last two feature maps, NHWC, batch = (clip_num + 1) * n with the current image last."""
    T, H, W, _ = feat5.shape
    Cm = params['conv3_w'].shape[-1]
    Ck = params['fp1_w'].shape[-1]
    K = params['head_w'].shape[-1]
    assert T == (clip_num + 1) * n
    KP = _round_up(K, 128)                    # lane-dense class dim (padded, masked)
    bf16 = jnp.bfloat16

    def sb(name):
        return fold_bn(**params[name + '_bn'], conv_bias=params[name + '_b'])

    # ---- conv_3x3(feat5): 3x3 conv + BN + ReLU -> (T, HW, Cmp) bf16
    s3, b3 = sb('conv3')
    out_tmp = conv3x3_bn_relu(feat5, params['conv3_w'], s3, b3)
    Cmp = out_tmp.shape[-1]

    def padrows(wmat):                        # zero-pad Cm -> Cmp input rows (no-op usually)
        return wmat if Cmp == Cm else jnp.pad(wmat, ((0, Cmp - Cm), (0, 0)))

    # ---- dsn_head(feat4): conv3x3+BN+ReLU (+Dropout2d eval id) + 1x1 classifier, fused
    sd, bd = sb('dsn1')
    w_dsn2 = jnp.pad(params['dsn2_w'], ((0, 0), (0, KP - K)))
    b_dsn2 = jnp.pad(params['dsn2_b'], (0, KP - K))
    x_dsn = dsn_head(feat4, params['dsn1_w'], sd, bd, w_dsn2, b_dsn2)     # (T, HW, KP)

    # ---- spatial-temporal gather (streaming softmax over time*space) + object key/value
    s_fo1, b_fo1 = sb('fo1'); s_fo2, b_fo2 = sb('fo2'); s_fd, b_fd = sb('fdown')
    key3, val3 = gather_object_kv(
        out_tmp, x_dsn,
        padrows(params['fo1_w']).astype(bf16), s_fo1, b_fo1,
        params['fo2_w'].astype(bf16), s_fo2, b_fo2,
        padrows(params['fdown_w']).astype(bf16), s_fd, b_fd,
        clip_num=clip_num, n=n)                                            # (n, KP, Ck) x2

    # ---- fused OCR head on the current frame only (clipocr_all=False -> xs[-1])
    s_fp1, b_fp1 = sb('fp1'); s_fp2, b_fp2 = sb('fp2'); s_fu, b_fu = sb('fup')
    s_o, b_o = fold_bn(**params['ocr_bn'])
    w_head = jnp.pad(params['head_w'], ((0, 0), (0, KP - K)))
    b_head = jnp.pad(params['head_b'], (0, KP - K))
    logits = ocr_head(
        out_tmp, key3, val3,
        padrows(params['fp1_w']).astype(bf16), s_fp1, b_fp1,
        params['fp2_w'].astype(bf16), s_fp2, b_fp2,
        params['fup_w'].astype(bf16), s_fu, b_fu,
        params['ocr_w'][:Cm].astype(bf16), padrows(params['ocr_w'][Cm:]).astype(bf16),
        s_o, b_o,
        w_head.astype(bf16), b_head,
        clip_num=clip_num, n=n, n_classes=K, key_channels=Ck)              # (n, HW, KP)

    # ---- bilinear upsample (align_corners=False) + masked class softmax, fused
    prob = bilinear_resize_softmax(logits, H, W, seg_size[0], seg_size[1], K)
    return prob[..., :K].transpose(0, 3, 1, 2)                             # NCHW (torch layout)


# ----------------------------------------------------------------------------- main

if __name__ == "__main__":
    # small, module-consistent shapes (channels scaled down from 1024/2048/512/256)
    CLIP_NUM, N = 2, 1                  # 2 clip frames + 1 current image, batch-per-frame = 1
    T = (CLIP_NUM + 1) * N
    H = W = 8
    C4, C5 = 32, 64                     # stand-ins for in_channels = [1024, 2048]
    CM, CK, NUM_CLASSES = 32, 16, 8     # stand-ins for 512 / 256 / num_class
    SEG = (16, 16)

    key = jax.random.PRNGKey(0)
    k_p, k_f4, k_f5 = jax.random.split(key, 3)
    params = init_params(k_p, C4, C5, CM, CK, NUM_CLASSES)
    feat4 = jax.random.normal(k_f4, (T, H, W, C4), jnp.float32)   # encoder feature map [-2]
    feat5 = jax.random.normal(k_f5, (T, H, W, C5), jnp.float32)   # encoder feature map [-1]

    fwd = jax.jit(functools.partial(clip_ocr_forward, clip_num=CLIP_NUM, n=N, seg_size=SEG))
    out = fwd(params, feat4, feat5)
    out = jax.block_until_ready(out)

    assert out.shape == (N, NUM_CLASSES, SEG[0], SEG[1])
    assert bool(jnp.all(jnp.isfinite(out)))
    # probabilities should sum to ~1 over the class dim
    assert bool(jnp.all(jnp.abs(jnp.sum(out, axis=1) - 1.0) < 1e-3))
    print("KERNEL_OK")
</pallas_src>

<mosaic_0001>
module attributes {stable_mosaic.version = 11 : i64} {
  func.func @_conv3_kernel(%arg0: i32, %arg1: i32, %arg2: i32, %arg3: memref<1x10x10x64xbf16, #tpu.memory_space<vmem>>, %arg4: memref<9x64x32xbf16, #tpu.memory_space<vmem>>, %arg5: memref<1x32xf32, #tpu.memory_space<vmem>>, %arg6: memref<1x32xf32, #tpu.memory_space<vmem>>, %arg7: memref<1x64x32xbf16, #tpu.memory_space<vmem>>, %arg8: memref<64x32xf32, #tpu.memory_space<vmem>>) attributes {dimension_semantics = [#tpu.dimension_semantics<parallel>, #tpu.dimension_semantics<parallel>, #tpu.dimension_semantics<arbitrary>], iteration_bounds = array<i64: 3, 1, 1>, scalar_prefetch = 0 : i64, scratch_operands = 1 : i64, tpu.core_type = #tpu.core_type<tc>, window_params = [{transform_indices = @transform_0, window_bounds = array<i64: 1, 10, 10, 64>}, {transform_indices = @transform_1, window_bounds = array<i64: 9, 64, 32>}, {transform_indices = @transform_2, window_bounds = array<i64: 1, 32>}, {transform_indices = @transform_3, window_bounds = array<i64: 1, 32>}, {transform_indices = @transform_4, window_bounds = array<i64: 1, 64, 32>}]} {
    %c0_i32 = arith.constant 0 : i32
    %0 = arith.cmpi eq, %arg2, %c0_i32 : i32
    %1 = arith.extui %0 : i1 to i32
    %c0_i32_0 = arith.constant 0 : i32
    %2 = arith.cmpi ne, %1, %c0_i32_0 : i32
    scf.if %2 {
      %cst_69 = arith.constant 0.000000e+00 : f32
      %71 = vector.broadcast %cst_69 : f32 to vector<64x32xf32>
      %c0_70 = arith.constant 0 : index
      %c0_71 = arith.constant 0 : index
      %72 = vector.load %arg8[%c0_70, %c0_71] : memref<64x32xf32, #tpu.memory_space<vmem>>, vector<64x32xf32>
      tpu.vector_store %arg8[%c0_70, %c0_71], %71 {strides = array<i32>} : memref<64x32xf32, #tpu.memory_space<vmem>>, vector<64x32xf32>,
    } else {
    }
    %c0 = arith.constant 0 : index
    %c0_1 = arith.constant 0 : index
    %3 = vector.load %arg8[%c0, %c0_1] : memref<64x32xf32, #tpu.memory_space<vmem>>, vector<64x32xf32>
    %c0_2 = arith.constant 0 : index
    %c0_3 = arith.constant 0 : index
    %c0_4 = arith.constant 0 : index
    %c0_5 = arith.constant 0 : index
    %4 = vector.load %arg3[%c0_2, %c0_3, %c0_4, %c0_5] : memref<1x10x10x64xbf16, #tpu.memory_space<vmem>>, vector<1x8x8x64xbf16>
    %5 = vector.shape_cast %4 : vector<1x8x8x64xbf16> to vector<8x8x64xbf16>
    %6 = vector.shape_cast %5 : vector<8x8x64xbf16> to vector<64x64xbf16>
    %c0_6 = arith.constant 0 : index
    %c0_7 = arith.constant 0 : index
    %c0_8 = arith.constant 0 : index
    %7 = vector.load %arg4[%c0_6, %c0_7, %c0_8] : memref<9x64x32xbf16, #tpu.memory_space<vmem>>, vector<1x64x32xbf16>
    %8 = vector.shape_cast %7 : vector<1x64x32xbf16> to vector<64x32xbf16>
    %cst = arith.constant dense<0.000000e+00> : vector<64x32xf32>
    %9 = tpu.matmul %6, %8, %cst {dimension_numbers = #tpu.dot_dimension_numbers<[1], [0], [0], [1], [0, 0, 1, 1], [], []>} : vector<64x64xbf16>, vector<64x32xbf16>, vector<64x32xf32> -> vector<64x32xf32>
    %c0_9 = arith.constant 0 : index
    %c0_10 = arith.constant 0 : index
    %c1 = arith.constant 1 : index
    %c0_11 = arith.constant 0 : index
    %10 = vector.load %arg3[%c0_9, %c0_10, %c1, %c0_11] : memref<1x10x10x64xbf16, #tpu.memory_space<vmem>>, vector<1x8x8x64xbf16>
    %11 = vector.shape_cast %10 : vector<1x8x8x64xbf16> to vector<8x8x64xbf16>
    %12 = vector.shape_cast %11 : vector<8x8x64xbf16> to vector<64x64xbf16>
    %c1_12 = arith.constant 1 : index
    %c0_13 = arith.constant 0 : index
    %c0_14 = arith.constant 0 : index
    %13 = vector.load %arg4[%c1_12, %c0_13, %c0_14] : memref<9x64x32xbf16, #tpu.memory_space<vmem>>, vector<1x64x32xbf16>
    %14 = vector.shape_cast %13 : vector<1x64x32xbf16> to vector<64x32xbf16>
    %cst_15 = arith.constant dense<0.000000e+00> : vector<64x32xf32>
    %15 = tpu.matmul %12, %14, %cst_15 {dimension_numbers = #tpu.dot_dimension_numbers<[1], [0], [0], [1], [0, 0, 1, 1], [], []>} : vector<64x64xbf16>, vector<64x32xbf16>, vector<64x32xf32> -> vector<64x32xf32>
    %16 = arith.addf %9, %15 : vector<64x32xf32>
    %c0_16 = arith.constant 0 : index
    %c0_17 = arith.constant 0 : index
    %c2 = arith.constant 2 : index
    %c0_18 = arith.constant 0 : index
    %17 = vector.load %arg3[%c0_16, %c0_17, %c2, %c0_18] : memref<1x10x10x64xbf16, #tpu.memory_space<vmem>>, vector<1x8x8x64xbf16>
    %18 = vector.shape_cast %17 : vector<1x8x8x64xbf16> to vector<8x8x64xbf16>
    %19 = vector.shape_cast %18 : vector<8x8x64xbf16> to vector<64x64xbf16>
    %c2_19 = arith.constant 2 : index
    %c0_20 = arith.constant 0 : index
    %c0_21 = arith.constant 0 : index
    %20 = vector.load %arg4[%c2_19, %c0_20, %c0_21] : memref<9x64x32xbf16, #tpu.memory_space<vmem>>, vector<1x64x32xbf16>
    %21 = vector.shape_cast %20 : vector<1x64x32xbf16> to vector<64x32xbf16>
    %cst_22 = arith.constant dense<0.000000e+00> : vector<64x32xf32>
    %22 = tpu.matmul %19, %21, %cst_22 {dimension_numbers = #tpu.dot_dimension_numbers<[1], [0], [0], [1], [0, 0, 1, 1], [], []>} : vector<64x64xbf16>, vector<64x32xbf16>, vector<64x32xf32> -> vector<64x32xf32>
    %23 = arith.addf %16, %22 : vector<64x32xf32>
    %c0_23 = arith.constant 0 : index
    %c1_24 = arith.constant 1 : index
    %c0_25 = arith.constant 0 : index
    %c0_26 = arith.constant 0 : index
    %24 = vector.load %arg3[%c0_23, %c1_24, %c0_25, %c0_26] : memref<1x10x10x64xbf16, #tpu.memory_space<vmem>>, vector<1x8x8x64xbf16>
    %25 = vector.shape_cast %24 : vector<1x8x8x64xbf16> to vector<8x8x64xbf16>
    %26 = vector.shape_cast %25 : vector<8x8x64xbf16> to vector<64x64xbf16>
    %c3 = arith.constant 3 : index
    %c0_27 = arith.constant 0 : index
    %c0_28 = arith.constant 0 : index
    %27 = vector.load %arg4[%c3, %c0_27, %c0_28] : memref<9x64x32xbf16, #tpu.memory_space<vmem>>, vector<1x64x32xbf16>
    %28 = vector.shape_cast %27 : vector<1x64x32xbf16> to vector<64x32xbf16>
    %cst_29 = arith.constant dense<0.000000e+00> : vector<64x32xf32>
    %29 = tpu.matmul %26, %28, %cst_29 {dimension_numbers = #tpu.dot_dimension_numbers<[1], [0], [0], [1], [0, 0, 1, 1], [], []>} : vector<64x64xbf16>, vector<64x32xbf16>, vector<64x32xf32> -> vector<64x32xf32>
    %30 = arith.addf %23, %29 : vector<64x32xf32>
    %c0_30 = arith.constant 0 : index
    %c1_31 = arith.constant 1 : index
    %c1_32 = arith.constant 1 : index
    %c0_33 = arith.constant 0 : index
    %31 = vector.load %arg3[%c0_30, %c1_31, %c1_32, %c0_33] : memref<1x10x10x64xbf16, #tpu.memory_space<vmem>>, vector<1x8x8x64xbf16>
    %32 = vector.shape_cast %31 : vector<1x8x8x64xbf16> to vector<8x8x64xbf16>
    %33 = vector.shape_cast %32 : vector<8x8x64xbf16> to vector<64x64xbf16>
    %c4 = arith.constant 4 : index
    %c0_34 = arith.constant 0 : index
    %c0_35 = arith.constant 0 : index
    %34 = vector.load %arg4[%c4, %c0_34, %c0_35] : memref<9x64x32xbf16, #tpu.memory_space<vmem>>, vector<1x64x32xbf16>
    %35 = vector.shape_cast %34 : vector<1x64x32xbf16> to vector<64x32xbf16>
    %cst_36 = arith.constant dense<0.000000e+00> : vector<64x32xf32>
    %36 = tpu.matmul %33, %35, %cst_36 {dimension_numbers = #tpu.dot_dimension_numbers<[1], [0], [0], [1], [0, 0, 1, 1], [], []>} : vector<64x64xbf16>, vector<64x32xbf16>, vector<64x32xf32> -> vector<64x32xf32>
    %37 = arith.addf %30, %36 : vector<64x32xf32>
    %c0_37 = arith.constant 0 : index
    %c1_38 = arith.constant 1 : index
    %c2_39 = arith.constant 2 : index
    %c0_40 = arith.constant 0 : index
    %38 = vector.load %arg3[%c0_37, %c1_38, %c2_39, %c0_40] : memref<1x10x10x64xbf16, #tpu.memory_space<vmem>>, vector<1x8x8x64xbf16>
    %39 = vector.shape_cast %38 : vector<1x8x8x64xbf16> to vector<8x8x64xbf16>
    %40 = vector.shape_cast %39 : vector<8x8x64xbf16> to vector<64x64xbf16>
    %c5 = arith.constant 5 : index
    %c0_41 = arith.constant 0 : index
    %c0_42 = arith.constant 0 : index
    %41 = vector.load %arg4[%c5, %c0_41, %c0_42] : memref<9x64x32xbf16, #tpu.memory_space<vmem>>, vector<1x64x32xbf16>
    %42 = vector.shape_cast %41 : vector<1x64x32xbf16> to vector<64x32xbf16>
    %cst_43 = arith.constant dense<0.000000e+00> : vector<64x32xf32>
    %43 = tpu.matmul %40, %42, %cst_43 {dimension_numbers = #tpu.dot_dimension_numbers<[1], [0], [0], [1], [0, 0, 1, 1], [], []>} : vector<64x64xbf16>, vector<64x32xbf16>, vector<64x32xf32> -> vector<64x32xf32>
    %44 = arith.addf %37, %43 : vector<64x32xf32>
    %c0_44 = arith.constant 0 : index
    %c2_45 = arith.constant 2 : index
    %c0_46 = arith.constant 0 : index
    %c0_47 = arith.constant 0 : index
    %45 = vector.load %arg3[%c0_44, %c2_45, %c0_46, %c0_47] : memref<1x10x10x64xbf16, #tpu.memory_space<vmem>>, vector<1x8x8x64xbf16>
    %46 = vector.shape_cast %45 : vector<1x8x8x64xbf16> to vector<8x8x64xbf16>
    %47 = vector.shape_cast %46 : vector<8x8x64xbf16> to vector<64x64xbf16>
    %c6 = arith.constant 6 : index
    %c0_48 = arith.constant 0 : index
    %c0_49 = arith.constant 0 : index
    %48 = vector.load %arg4[%c6, %c0_48, %c0_49] : memref<9x64x32xbf16, #tpu.memory_space<vmem>>, vector<1x64x32xbf16>
    %49 = vector.shape_cast %48 : vector<1x64x32xbf16> to vector<64x32xbf16>
    %cst_50 = arith.constant dense<0.000000e+00> : vector<64x32xf32>
    %50 = tpu.matmul %47, %49, %cst_50 {dimension_numbers = #tpu.dot_dimension_numbers<[1], [0], [0], [1], [0, 0, 1, 1], [], []>} : vector<64x64xbf16>, vector<64x32xbf16>, vector<64x32xf32> -> vector<64x32xf32>
    %51 = arith.addf %44, %50 : vector<64x32xf32>
    %c0_51 = arith.constant 0 : index
    %c2_52 = arith.constant 2 : index
    %c1_53 = arith.constant 1 : index
    %c0_54 = arith.constant 0 : index
    %52 = vector.load %arg3[%c0_51, %c2_52, %c1_53, %c0_54] : memref<1x10x10x64xbf16, #tpu.memory_space<vmem>>, vector<1x8x8x64xbf16>
    %53 = vector.shape_cast %52 : vector<1x8x8x64xbf16> to vector<8x8x64xbf16>
    %54 = vector.shape_cast %53 : vector<8x8x64xbf16> to vector<64x64xbf16>
    %c7 = arith.constant 7 : index
    %c0_55 = arith.constant 0 : index
    %c0_56 = arith.constant 0 : index
    %55 = vector.load %arg4[%c7, %c0_55, %c0_56] : memref<9x64x32xbf16, #tpu.memory_space<vmem>>, vector<1x64x32xbf16>
    %56 = vector.shape_cast %55 : vector<1x64x32xbf16> to vector<64x32xbf16>
    %cst_57 = arith.constant dense<0.000000e+00> : vector<64x32xf32>
    %57 = tpu.matmul %54, %56, %cst_57 {dimension_numbers = #tpu.dot_dimension_numbers<[1], [0], [0], [1], [0, 0, 1, 1], [], []>} : vector<64x64xbf16>, vector<64x32xbf16>, vector<64x32xf32> -> vector<64x32xf32>
    %58 = arith.addf %51, %57 : vector<64x32xf32>
    %c0_58 = arith.constant 0 : index
    %c2_59 = arith.constant 2 : index
    %c2_60 = arith.constant 2 : index
    %c0_61 = arith.constant 0 : index
    %59 = vector.load %arg3[%c0_58, %c2_59, %c2_60, %c0_61] : memref<1x10x10x64xbf16, #tpu.memory_space<vmem>>, vector<1x8x8x64xbf16>
    %60 = vector.shape_cast %59 : vector<1x8x8x64xbf16> to vector<8x8x64xbf16>
    %61 = vector.shape_cast %60 : vector<8x8x64xbf16> to vector<64x64xbf16>
    %c8 = arith.constant 8 : index
    %c0_62 = arith.constant 0 : index
    %c0_63 = arith.constant 0 : index
    %62 = vector.load %arg4[%c8, %c0_62, %c0_63] : memref<9x64x32xbf16, #tpu.memory_space<vmem>>, vector<1x64x32xbf16>
    %63 = vector.shape_cast %62 : vector<1x64x32xbf16> to vector<64x32xbf16>
    %cst_64 = arith.constant dense<0.000000e+00> : vector<64x32xf32>
    %64 = tpu.matmul %61, %63, %cst_64 {dimension_numbers = #tpu.dot_dimension_numbers<[1], [0], [0], [1], [0, 0, 1, 1], [], []>} : vector<64x64xbf16>, vector<64x32xbf16>, vector<64x32xf32> -> vector<64x32xf32>
    %65 = arith.addf %58, %64 : vector<64x32xf32>
    %66 = arith.addf %3, %65 : vector<64x32xf32>
    %c0_65 = arith.constant 0 : index
    %c0_66 = arith.constant 0 : index
    %67 = vector.load %arg8[%c0_65, %c0_66] : memref<64x32xf32, #tpu.memory_space<vmem>>, vector<64x32xf32>
    tpu.vector_store %arg8[%c0_65, %c0_66], %66 {strides = array<i32>} : memref<64x32xf32, #tpu.memory_space<vmem>>, vector<64x32xf32>,
    %c0_i32_67 = arith.constant 0 : i32
    %68 = arith.cmpi eq, %arg2, %c0_i32_67 : i32
    %69 = arith.extui %68 : i1 to i32
    %c0_i32_68 = arith.constant 0 : i32
    %70 = arith.cmpi ne, %69, %c0_i32_68 : i32
    scf.if %70 {
      %c0_69 = arith.constant 0 : index
      %c0_70 = arith.constant 0 : index
      %71 = vector.load %arg8[%c0_69, %c0_70] : memref<64x32xf32, #tpu.memory_space<vmem>>, vector<64x32xf32>
      %c0_71 = arith.constant 0 : index
      %c0_72 = arith.constant 0 : index
      %72 = vector.load %arg5[%c0_71, %c0_72] : memref<1x32xf32, #tpu.memory_space<vmem>>, vector<1x32xf32>
      %73 = vector.broadcast %72 : vector<1x32xf32> to vector<64x32xf32>
      %74 = arith.mulf %71, %73 : vector<64x32xf32>
      %c0_73 = arith.constant 0 : index
      %c0_74 = arith.constant 0 : index
      %75 = vector.load %arg6[%c0_73, %c0_74] : memref<1x32xf32, #tpu.memory_space<vmem>>, vector<1x32xf32>
      %76 = vector.broadcast %75 : vector<1x32xf32> to vector<64x32xf32>
      %77 = arith.addf %74, %76 : vector<64x32xf32>
      %cst_75 = arith.constant 0.000000e+00 : f32
      %78 = vector.broadcast %cst_75 : f32 to vector<64x32xf32>
      %79 = arith.maximumf %77, %78 : vector<64x32xf32>
      %80 = arith.truncf %79 : vector<64x32xf32> to vector<64x32xbf16>
      %c0_76 = arith.constant 0 : index
      %c0_77 = arith.constant 0 : index
      %c0_78 = arith.constant 0 : index
      %81 = vector.load %arg7[%c0_76, %c0_77, %c0_78] : memref<1x64x32xbf16, #tpu.memory_space<vmem>>, vector<1x64x32xbf16>
      %82 = vector.shape_cast %81 : vector<1x64x32xbf16> to vector<64x32xbf16>
      %83 = vector.shape_cast %80 : vector<64x32xbf16> to vector<1x64x32xbf16>
      tpu.vector_store %arg7[%c0_76, %c0_77, %c0_78], %83 {strides = array<i32>} : memref<1x64x32xbf16, #tpu.memory_space<vmem>>, vector<1x64x32xbf16>,
    } else {
    }
    return
  }
  func.func @transform_0(%arg0: i32, %arg1: i32, %arg2: i32) -> (i32, i32, i32, i32) {
    %c0_i32 = arith.constant 0 : i32
    %c0_i32_0 = arith.constant 0 : i32
    %c0_i32_1 = arith.constant 0 : i32
    return %arg0, %c0_i32, %c0_i32_0, %arg2 : i32, i32, i32, i32
  }
  func.func @transform_1(%arg0: i32, %arg1: i32, %arg2: i32) -> (i32, i32, i32) {
    %c0_i32 = arith.constant 0 : i32
    %c0_i32_0 = arith.constant 0 : i32
    return %c0_i32, %arg2, %arg1 : i32, i32, i32
  }
  func.func @transform_2(%arg0: i32, %arg1: i32, %arg2: i32) -> (i32, i32) {
    %c0_i32 = arith.constant 0 : i32
    %c0_i32_0 = arith.constant 0 : i32
    return %c0_i32, %arg1 : i32, i32
  }
  func.func @transform_3(%arg0: i32, %arg1: i32, %arg2: i32) -> (i32, i32) {
    %c0_i32 = arith.constant 0 : i32
    %c0_i32_0 = arith.constant 0 : i32
    return %c0_i32, %arg1 : i32, i32
  }
  func.func @transform_4(%arg0: i32, %arg1: i32, %arg2: i32) -> (i32, i32, i32) {
    %c0_i32 = arith.constant 0 : i32
    %c0_i32_0 = arith.constant 0 : i32
    return %arg0, %c0_i32, %arg1 : i32, i32, i32
  }
}

module attributes {stable_mosaic.version = 11 : i64} {
  func.func @_gather_kv_kernel(%arg0: i32, %arg1: i32, %arg2: i32, %arg3: memref<1x64x128xbf16, #tpu.memory_space<vmem>>, %arg4: memref<1x64x32xbf16, #tpu.memory_space<vmem>>, %arg5: memref<32x16xbf16, #tpu.memory_space<vmem>>, %arg6: memref<1x16xf32, #tpu.memory_space<vmem>>, %arg7: memref<1x16xf32, #tpu.memory_space<vmem>>, %arg8: memref<16x16xbf16, #tpu.memory_space<vmem>>, %arg9: memref<1x16xf32, #tpu.memory_space<vmem>>, %arg10: memref<1x16xf32, #tpu.memory_space<vmem>>, %arg11: memref<32x16xbf16, #tpu.memory_space<vmem>>, %arg12: memref<1x16xf32, #tpu.memory_space<vmem>>, %arg13: memref<1x16xf32, #tpu.memory_space<vmem>>, %arg14: memref<1x128x16xbf16, #tpu.memory_space<vmem>>, %arg15: memref<1x128x16xbf16, #tpu.memory_space<vmem>>, %arg16: memref<128x32xf32, #tpu.memory_space<vmem>>, %arg17: memref<128x1xf32, #tpu.memory_space<vmem>>, %arg18: memref<128x1xf32, #tpu.memory_space<vmem>>) attributes {dimension_semantics = [#tpu.dimension_semantics<parallel>, #tpu.dimension_semantics<arbitrary>, #tpu.dimension_semantics<arbitrary>], iteration_bounds = array<i64: 1, 3, 1>, scalar_prefetch = 0 : i64, scratch_operands = 3 : i64, tpu.core_type = #tpu.core_type<tc>, window_params = [{transform_indices = @transform_0, window_bounds = array<i64: 1, 64, 128>}, {transform_indices = @transform_1, window_bounds = array<i64: 1, 64, 32>}, {pipeline_mode = #tpu.pipeline_mode<synchronous>, transform_indices = @transform_2, window_bounds = array<i64: 32, 16>}, {pipeline_mode = #tpu.pipeline_mode<synchronous>, transform_indices = @transform_3, window_bounds = array<i64: 1, 16>}, {pipeline_mode = #tpu.pipeline_mode<synchronous>, transform_indices = @transform_4, window_bounds = array<i64: 1, 16>}, {pipeline_mode = #tpu.pipeline_mode<synchronous>, transform_indices = @transform_5, window_bounds = array<i64: 16, 16>}, {pipeline_mode = #tpu.pipeline_mode<synchronous>, transform_indices = @transform_6, window_bounds = array<i64: 1, 16>}, {pipeline_mode = #tpu.pipeline_mode<synchronous>, transform_indices = @transform_7, window_bounds = array<i64: 1, 16>}, {pipeline_mode = #tpu.pipeline_mode<synchronous>, transform_indices = @transform_8, window_bounds = array<i64: 32, 16>}, {pipeline_mode = #tpu.pipeline_mode<synchronous>, transform_indices = @transform_9, window_bounds = array<i64: 1, 16>}, {pipeline_mode = #tpu.pipeline_mode<synchronous>, transform_indices = @transform_10, window_bounds = array<i64: 1, 16>}, {transform_indices = @transform_11, window_bounds = array<i64: 1, 128, 16>}, {transform_indices = @transform_12, window_bounds = array<i64: 1, 128, 16>}]} {
    %c0_i32 = arith.constant 0 : i32
    %0 = arith.cmpi eq, %arg1, %c0_i32 : i32
    %c0_i32_0 = arith.constant 0 : i32
    %1 = arith.cmpi eq, %arg2, %c0_i32_0 : i32
    %2 = arith.andi %0, %1 : i1
    %3 = arith.extui %2 : i1 to i32
    %c0_i32_1 = arith.constant 0 : i32
    %4 = arith.cmpi ne, %3, %c0_i32_1 : i32
    scf.if %4 {
      %cst_23 = arith.constant -1.000000e+30 : f32
      %39 = vector.broadcast %cst_23 : f32 to vector<128x1xf32>
      %c0_24 = arith.constant 0 : index
      %c0_25 = arith.constant 0 : index
      %40 = vector.load %arg17[%c0_24, %c0_25] : memref<128x1xf32, #tpu.memory_space<vmem>>, vector<128x1xf32>
      tpu.vector_store %arg17[%c0_24, %c0_25], %39 {strides = array<i32>} : memref<128x1xf32, #tpu.memory_space<vmem>>, vector<128x1xf32>,
      %cst_26 = arith.constant 0.000000e+00 : f32
      %41 = vector.broadcast %cst_26 : f32 to vector<128x1xf32>
      %c0_27 = arith.constant 0 : index
      %c0_28 = arith.constant 0 : index
      %42 = vector.load %arg18[%c0_27, %c0_28] : memref<128x1xf32, #tpu.memory_space<vmem>>, vector<128x1xf32>
      tpu.vector_store %arg18[%c0_27, %c0_28], %41 {strides = array<i32>} : memref<128x1xf32, #tpu.memory_space<vmem>>, vector<128x1xf32>,
      %cst_29 = arith.constant 0.000000e+00 : f32
      %43 = vector.broadcast %cst_29 : f32 to vector<128x32xf32>
      %c0_30 = arith.constant 0 : index
      %c0_31 = arith.constant 0 : index
      %44 = vector.load %arg16[%c0_30, %c0_31] : memref<128x32xf32, #tpu.memory_space<vmem>>, vector<128x32xf32>
      tpu.vector_store %arg16[%c0_30, %c0_31], %43 {strides = array<i32>} : memref<128x32xf32, #tpu.memory_space<vmem>>, vector<128x32xf32>,
    } else {
    }
    %c0 = arith.constant 0 : index
    %c0_2 = arith.constant 0 : index
    %c0_3 = arith.constant 0 : index
    %5 = vector.load %arg3[%c0, %c0_2, %c0_3] : memref<1x64x128xbf16, #tpu.memory_space<vmem>>, vector<1x64x128xbf16>
    %6 = vector.shape_cast %5 : vector<1x64x128xbf16> to vector<64x128xbf16>
    %7 = arith.extf %6 : vector<64x128xbf16> to vector<64x128xf32>
    %8 = tpu.transpose %7, [1, 0] : vector<64x128xf32> -> vector<128x64xf32>
    %c0_4 = arith.constant 0 : index
    %c0_5 = arith.constant 0 : index
    %9 = vector.load %arg17[%c0_4, %c0_5] : memref<128x1xf32, #tpu.memory_space<vmem>>, vector<128x1xf32>
    %cst = arith.constant dense<0xFF800000> : vector<128xf32>
    %10 = vector.multi_reduction <maximumf>, %8, %cst [1] : vector<128x64xf32> to vector<128xf32>
    %11 = vector.shape_cast %10 : vector<128xf32> to vector<128x1xf32>
    %12 = arith.maximumf %9, %11 : vector<128x1xf32>
    %13 = arith.subf %9, %12 : vector<128x1xf32>
    %14 = math.exp %13 : vector<128x1xf32>
    %15 = vector.broadcast %12 : vector<128x1xf32> to vector<128x64xf32>
    %16 = arith.subf %8, %15 : vector<128x64xf32>
    %17 = math.exp %16 : vector<128x64xf32>
    %c0_6 = arith.constant 0 : index
    %c0_7 = arith.constant 0 : index
    %18 = vector.load %arg18[%c0_6, %c0_7] : memref<128x1xf32, #tpu.memory_space<vmem>>, vector<128x1xf32>
    %19 = arith.mulf %14, %18 : vector<128x1xf32>
    %cst_8 = arith.constant dense<0.000000e+00> : vector<128xf32>
    %20 = vector.multi_reduction <add>, %17, %cst_8 [1] : vector<128x64xf32> to vector<128xf32>
    %21 = vector.shape_cast %20 : vector<128xf32> to vector<128x1xf32>
    %22 = arith.addf %19, %21 : vector<128x1xf32>
    %c0_9 = arith.constant 0 : index
    %c0_10 = arith.constant 0 : index
    %23 = vector.load %arg18[%c0_9, %c0_10] : memref<128x1xf32, #tpu.memory_space<vmem>>, vector<128x1xf32>
    tpu.vector_store %arg18[%c0_9, %c0_10], %22 {strides = array<i32>} : memref<128x1xf32, #tpu.memory_space<vmem>>, vector<128x1xf32>,
    %c0_11 = arith.constant 0 : index
    %c0_12 = arith.constant 0 : index
    %24 = vector.load %arg16[%c0_11, %c0_12] : memref<128x32xf32, #tpu.memory_space<vmem>>, vector<128x32xf32>
    %25 = vector.broadcast %14 : vector<128x1xf32> to vector<128x32xf32>
    %26 = arith.mulf %24, %25 : vector<128x32xf32>
    %27 = arith.truncf %17 : vector<128x64xf32> to vector<128x64xbf16>
    %c0_13 = arith.constant 0 : index
    %c0_14 = arith.constant 0 : index
    %c0_15 = arith.constant 0 : index
    %28 = vector.load %arg4[%c0_13, %c0_14, %c0_15] : memref<1x64x32xbf16, #tpu.memory_space<vmem>>, vector<1x64x32xbf16>
    %29 = vector.shape_cast %28 : vector<1x64x32xbf16> to vector<64x32xbf16>
    %cst_16 = arith.constant dense<0.000000e+00> : vector<128x32xf32>
    %30 = tpu.matmul %27, %29, %cst_16 {dimension_numbers = #tpu.dot_dimension_numbers<[1], [0], [0], [1], [0, 0, 1, 1], [], []>} : vector<128x64xbf16>, vector<64x32xbf16>, vector<128x32xf32> -> vector<128x32xf32>
    %31 = arith.addf %26, %30 : vector<128x32xf32>
    %c0_17 = arith.constant 0 : index
    %c0_18 = arith.constant 0 : index
    %32 = vector.load %arg16[%c0_17, %c0_18] : memref<128x32xf32, #tpu.memory_space<vmem>>, vector<128x32xf32>
    tpu.vector_store %arg16[%c0_17, %c0_18], %31 {strides = array<i32>} : memref<128x32xf32, #tpu.memory_space<vmem>>, vector<128x32xf32>,
    %c0_19 = arith.constant 0 : index
    %c0_20 = arith.constant 0 : index
    %33 = vector.load %arg17[%c0_19, %c0_20] : memref<128x1xf32, #tpu.memory_space<vmem>>, vector<128x1xf32>
    tpu.vector_store %arg17[%c0_19, %c0_20], %12 {strides = array<i32>} : memref<128x1xf32, #tpu.memory_space<vmem>>, vector<128x1xf32>,
    %c2_i32 = arith.constant 2 : i32
    %34 = arith.cmpi eq, %arg1, %c2_i32 : i32
    %c0_i32_21 = arith.constant 0 : i32
    %35 = arith.cmpi eq, %arg2, %c0_i32_21 : i32
    %36 = arith.andi %34, %35 : i1
    %37 = arith.extui %36 : i1 to i32
    %c0_i32_22 = arith.constant 0 : i32
    %38 = arith.cmpi ne, %37, %c0_i32_22 : i32
    scf.if %38 {
      %c0_23 = arith.constant 0 : index
      %c0_24 = arith.constant 0 : index
      %39 = vector.load %arg16[%c0_23, %c0_24] : memref<128x32xf32, #tpu.memory_space<vmem>>, vector<128x32xf32>
      %c0_25 = arith.constant 0 : index
      %c0_26 = arith.constant 0 : index
      %40 = vector.load %arg18[%c0_25, %c0_26] : memref<128x1xf32, #tpu.memory_space<vmem>>, vector<128x1xf32>
      %41 = tpu.reciprocal %40 {approx = true} : vector<128x1xf32> -> vector<128x1xf32>
      %42 = vector.broadcast %41 : vector<128x1xf32> to vector<128x32xf32>
      %43 = arith.mulf %39, %42 : vector<128x32xf32>
      %44 = arith.truncf %43 : vector<128x32xf32> to vector<128x32xbf16>
      %c0_27 = arith.constant 0 : index
      %c0_28 = arith.constant 0 : index
      %45 = vector.load %arg5[%c0_27, %c0_28] : memref<32x16xbf16, #tpu.memory_space<vmem>>, vector<32x16xbf16>
      %cst_29 = arith.constant dense<0.000000e+00> : vector<128x16xf32>
      %46 = tpu.matmul %44, %45, %cst_29 {dimension_numbers = #tpu.dot_dimension_numbers<[1], [0], [0], [1], [0, 0, 1, 1], [], []>} : vector<128x32xbf16>, vector<32x16xbf16>, vector<128x16xf32> -> vector<128x16xf32>
      %c0_30 = arith.constant 0 : index
      %c0_31 = arith.constant 0 : index
      %47 = vector.load %arg6[%c0_30, %c0_31] : memref<1x16xf32, #tpu.memory_space<vmem>>, vector<1x16xf32>
      %48 = vector.broadcast %47 : vector<1x16xf32> to vector<128x16xf32>
      %49 = arith.mulf %46, %48 : vector<128x16xf32>
      %c0_32 = arith.constant 0 : index
      %c0_33 = arith.constant 0 : index
      %50 = vector.load %arg7[%c0_32, %c0_33] : memref<1x16xf32, #tpu.memory_space<vmem>>, vector<1x16xf32>
      %51 = vector.broadcast %50 : vector<1x16xf32> to vector<128x16xf32>
      %52 = arith.addf %49, %51 : vector<128x16xf32>
      %cst_34 = arith.constant 0.000000e+00 : f32
      %53 = vector.broadcast %cst_34 : f32 to vector<128x16xf32>
      %54 = arith.maximumf %52, %53 : vector<128x16xf32>
      %55 = arith.truncf %54 : vector<128x16xf32> to vector<128x16xbf16>
      %c0_35 = arith.constant 0 : index
      %c0_36 = arith.constant 0 : index
      %56 = vector.load %arg8[%c0_35, %c0_36] : memref<16x16xbf16, #tpu.memory_space<vmem>>, vector<16x16xbf16>
      %cst_37 = arith.constant dense<0.000000e+00> : vector<128x16xf32>
      %57 = tpu.matmul %55, %56, %cst_37 {dimension_numbers = #tpu.dot_dimension_numbers<[1], [0], [0], [1], [0, 0, 1, 1], [], []>} : vector<128x16xbf16>, vector<16x16xbf16>, vector<128x16xf32> -> vector<128x16xf32>
      %c0_38 = arith.constant 0 : index
      %c0_39 = arith.constant 0 : index
      %58 = vector.load %arg9[%c0_38, %c0_39] : memref<1x16xf32, #tpu.memory_space<vmem>>, vector<1x16xf32>
      %59 = vector.broadcast %58 : vector<1x16xf32> to vector<128x16xf32>
      %60 = arith.mulf %57, %59 : vector<128x16xf32>
      %c0_40 = arith.constant 0 : index
      %c0_41 = arith.constant 0 : index
      %61 = vector.load %arg10[%c0_40, %c0_41] : memref<1x16xf32, #tpu.memory_space<vmem>>, vector<1x16xf32>
      %62 = vector.broadcast %61 : vector<1x16xf32> to vector<128x16xf32>
      %63 = arith.addf %60, %62 : vector<128x16xf32>
      %cst_42 = arith.constant 0.000000e+00 : f32
      %64 = vector.broadcast %cst_42 : f32 to vector<128x16xf32>
      %65 = arith.maximumf %63, %64 : vector<128x16xf32>
      %c0_43 = arith.constant 0 : index
      %c0_44 = arith.constant 0 : index
      %66 = vector.load %arg11[%c0_43, %c0_44] : memref<32x16xbf16, #tpu.memory_space<vmem>>, vector<32x16xbf16>
      %cst_45 = arith.constant dense<0.000000e+00> : vector<128x16xf32>
      %67 = tpu.matmul %44, %66, %cst_45 {dimension_numbers = #tpu.dot_dimension_numbers<[1], [0], [0], [1], [0, 0, 1, 1], [], []>} : vector<128x32xbf16>, vector<32x16xbf16>, vector<128x16xf32> -> vector<128x16xf32>
      %c0_46 = arith.constant 0 : index
      %c0_47 = arith.constant 0 : index
      %68 = vector.load %arg12[%c0_46, %c0_47] : memref<1x16xf32, #tpu.memory_space<vmem>>, vector<1x16xf32>
      %69 = vector.broadcast %68 : vector<1x16xf32> to vector<128x16xf32>
      %70 = arith.mulf %67, %69 : vector<128x16xf32>
      %c0_48 = arith.constant 0 : index
      %c0_49 = arith.constant 0 : index
      %71 = vector.load %arg13[%c0_48, %c0_49] : memref<1x16xf32, #tpu.memory_space<vmem>>, vector<1x16xf32>
      %72 = vector.broadcast %71 : vector<1x16xf32> to vector<128x16xf32>
      %73 = arith.addf %70, %72 : vector<128x16xf32>
      %cst_50 = arith.constant 0.000000e+00 : f32
      %74 = vector.broadcast %cst_50 : f32 to vector<128x16xf32>
      %75 = arith.maximumf %73, %74 : vector<128x16xf32>
      %76 = arith.truncf %65 : vector<128x16xf32> to vector<128x16xbf16>
      %c0_51 = arith.constant 0 : index
      %c0_52 = arith.constant 0 : index
      %c0_53 = arith.constant 0 : index
      %77 = vector.load %arg14[%c0_51, %c0_52, %c0_53] : memref<1x128x16xbf16, #tpu.memory_space<vmem>>, vector<1x128x16xbf16>
      %78 = vector.shape_cast %77 : vector<1x128x16xbf16> to vector<128x16xbf16>
      %79 = vector.shape_cast %76 : vector<128x16xbf16> to vector<1x128x16xbf16>
      tpu.vector_store %arg14[%c0_51, %c0_52, %c0_53], %79 {strides = array<i32>} : memref<1x128x16xbf16, #tpu.memory_space<vmem>>, vector<1x128x16xbf16>,
      %80 = arith.truncf %75 : vector<128x16xf32> to vector<128x16xbf16>
      %c0_54 = arith.constant 0 : index
      %c0_55 = arith.constant 0 : index
      %c0_56 = arith.constant 0 : index
      %81 = vector.load %arg15[%c0_54, %c0_55, %c0_56] : memref<1x128x16xbf16, #tpu.memory_space<vmem>>, vector<1x128x16xbf16>
      %82 = vector.shape_cast %81 : vector<1x128x16xbf16> to vector<128x16xbf16>
      %83 = vector.shape_cast %80 : vector<128x16xbf16> to vector<1x128x16xbf16>
      tpu.vector_store %arg15[%c0_54, %c0_55, %c0_56], %83 {strides = array<i32>} : memref<1x128x16xbf16, #tpu.memory_space<vmem>>, vector<1x128x16xbf16>,
    } else {
    }
    return
  }
  func.func @transform_0(%arg0: i32, %arg1: i32, %arg2: i32) -> (i32, i32, i32) {
    %c1_i32 = arith.constant 1 : i32
    %0 = arith.muli %arg1, %c1_i32 : i32
    %1 = arith.addi %0, %arg0 : i32
    %c0_i32 = arith.constant 0 : i32
    %c0_i32_0 = arith.constant 0 : i32
    return %1, %arg2, %c0_i32 : i32, i32, i32
  }
  func.func @transform_1(%arg0: i32, %arg1: i32, %arg2: i32) -> (i32, i32, i32) {
    %c1_i32 = arith.constant 1 : i32
    %0 = arith.muli %arg1, %c1_i32 : i32
    %1 = arith.addi %0, %arg0 : i32
    %c0_i32 = arith.constant 0 : i32
    %c0_i32_0 = arith.constant 0 : i32
    return %1, %arg2, %c0_i32 : i32, i32, i32
  }
  func.func @transform_2(%arg0: i32, %arg1: i32, %arg2: i32) -> (i32, i32) {
    %c0_i32 = arith.constant 0 : i32
    %c0_i32_0 = arith.constant 0 : i32
    %c0_i32_1 = arith.constant 0 : i32
    return %c0_i32, %c0_i32_0 : i32, i32
  }
  func.func @transform_3(%arg0: i32, %arg1: i32, %arg2: i32) -> (i32, i32) {
    %c0_i32 = arith.constant 0 : i32
    %c0_i32_0 = arith.constant 0 : i32
    %c0_i32_1 = arith.constant 0 : i32
    return %c0_i32, %c0_i32_0 : i32, i32
  }
  func.func @transform_4(%arg0: i32, %arg1: i32, %arg2: i32) -> (i32, i32) {
    %c0_i32 = arith.constant 0 : i32
    %c0_i32_0 = arith.constant 0 : i32
    %c0_i32_1 = arith.constant 0 : i32
    return %c0_i32, %c0_i32_0 : i32, i32
  }
  func.func @transform_5(%arg0: i32, %arg1: i32, %arg2: i32) -> (i32, i32) {
    %c0_i32 = arith.constant 0 : i32
    %c0_i32_0 = arith.constant 0 : i32
    %c0_i32_1 = arith.constant 0 : i32
    return %c0_i32, %c0_i32_0 : i32, i32
  }
  func.func @transform_6(%arg0: i32, %arg1: i32, %arg2: i32) -> (i32, i32) {
    %c0_i32 = arith.constant 0 : i32
    %c0_i32_0 = arith.constant 0 : i32
    %c0_i32_1 = arith.constant 0 : i32
    return %c0_i32, %c0_i32_0 : i32, i32
  }
  func.func @transform_7(%arg0: i32, %arg1: i32, %arg2: i32) -> (i32, i32) {
    %c0_i32 = arith.constant 0 : i32
    %c0_i32_0 = arith.constant 0 : i32
    %c0_i32_1 = arith.constant 0 : i32
    return %c0_i32, %c0_i32_0 : i32, i32
  }
  func.func @transform_8(%arg0: i32, %arg1: i32, %arg2: i32) -> (i32, i32) {
    %c0_i32 = arith.constant 0 : i32
    %c0_i32_0 = arith.constant 0 : i32
    %c0_i32_1 = arith.constant 0 : i32
    return %c0_i32, %c0_i32_0 : i32, i32
  }
  func.func @transform_9(%arg0: i32, %arg1: i32, %arg2: i32) -> (i32, i32) {
    %c0_i32 = arith.constant 0 : i32
    %c0_i32_0 = arith.constant 0 : i32
    %c0_i32_1 = arith.constant 0 : i32
    return %c0_i32, %c0_i32_0 : i32, i32
  }
  func.func @transform_10(%arg0: i32, %arg1: i32, %arg2: i32) -> (i32, i32) {
    %c0_i32 = arith.constant 0 : i32
    %c0_i32_0 = arith.constant 0 : i32
    %c0_i32_1 = arith.constant 0 : i32
    return %c0_i32, %c0_i32_0 : i32, i32
  }
  func.func @transform_11(%arg0: i32, %arg1: i32, %arg2: i32) -> (i32, i32, i32) {
    %c0_i32 = arith.constant 0 : i32
    %c0_i32_0 = arith.constant 0 : i32
    %c0_i32_1 = arith.constant 0 : i32
    return %arg0, %c0_i32, %c0_i32_0 : i32, i32, i32
  }
  func.func @transform_12(%arg0: i32, %arg1: i32, %arg2: i32) -> (i32, i32, i32) {
    %c0_i32 = arith.constant 0 : i32
    %c0_i32_0 = arith.constant 0 : i32
    %c0_i32_1 = arith.constant 0 : i32
    return %arg0, %c0_i32, %c0_i32_0 : i32, i32, i32
  }
}

module attributes {stable_mosaic.version = 11 : i64} {
  func.func @_dsn_kernel(%arg0: i32, %arg1: i32, %arg2: i32, %arg3: memref<1x10x10x32xbf16, #tpu.memory_space<vmem>>, %arg4: memref<9x32x32xbf16, #tpu.memory_space<vmem>>, %arg5: memref<1x32xf32, #tpu.memory_space<vmem>>, %arg6: memref<1x32xf32, #tpu.memory_space<vmem>>, %arg7: memref<32x128xbf16, #tpu.memory_space<vmem>>, %arg8: memref<1x128xf32, #tpu.memory_space<vmem>>, %arg9: memref<1x64x128xbf16, #tpu.memory_space<vmem>>, %arg10: memref<64x32xf32, #tpu.memory_space<vmem>>, %arg11: memref<64x128xf32, #tpu.memory_space<vmem>>) attributes {dimension_semantics = [#tpu.dimension_semantics<parallel>, #tpu.dimension_semantics<arbitrary>, #tpu.dimension_semantics<arbitrary>], iteration_bounds = array<i64: 3, 1, 1>, scalar_prefetch = 0 : i64, scratch_operands = 2 : i64, tpu.core_type = #tpu.core_type<tc>, window_params = [{transform_indices = @transform_0, window_bounds = array<i64: 1, 10, 10, 32>}, {transform_indices = @transform_1, window_bounds = array<i64: 9, 32, 32>}, {transform_indices = @transform_2, window_bounds = array<i64: 1, 32>}, {transform_indices = @transform_3, window_bounds = array<i64: 1, 32>}, {transform_indices = @transform_4, window_bounds = array<i64: 32, 128>}, {pipeline_mode = #tpu.pipeline_mode<synchronous>, transform_indices = @transform_5, window_bounds = array<i64: 1, 128>}, {transform_indices = @transform_6, window_bounds = array<i64: 1, 64, 128>}]} {
    %c0_i32 = arith.constant 0 : i32
    %0 = arith.cmpi eq, %arg2, %c0_i32 : i32
    %1 = arith.extui %0 : i1 to i32
    %c0_i32_0 = arith.constant 0 : i32
    %2 = arith.cmpi ne, %1, %c0_i32_0 : i32
    scf.if %2 {
      %cst_75 = arith.constant 0.000000e+00 : f32
      %81 = vector.broadcast %cst_75 : f32 to vector<64x32xf32>
      %c0_76 = arith.constant 0 : index
      %c0_77 = arith.constant 0 : index
      %82 = vector.load %arg10[%c0_76, %c0_77] : memref<64x32xf32, #tpu.memory_space<vmem>>, vector<64x32xf32>
      tpu.vector_store %arg10[%c0_76, %c0_77], %81 {strides = array<i32>} : memref<64x32xf32, #tpu.memory_space<vmem>>, vector<64x32xf32>,
    } else {
    }
    %c0_i32_1 = arith.constant 0 : i32
    %3 = arith.cmpi eq, %arg1, %c0_i32_1 : i32
    %c0_i32_2 = arith.constant 0 : i32
    %4 = arith.cmpi eq, %arg2, %c0_i32_2 : i32
    %5 = arith.andi %3, %4 : i1
    %6 = arith.extui %5 : i1 to i32
    %c0_i32_3 = arith.constant 0 : i32
    %7 = arith.cmpi ne, %6, %c0_i32_3 : i32
    scf.if %7 {
      %cst_75 = arith.constant 0.000000e+00 : f32
      %81 = vector.broadcast %cst_75 : f32 to vector<64x128xf32>
      %c0_76 = arith.constant 0 : index
      %c0_77 = arith.constant 0 : index
      %82 = vector.load %arg11[%c0_76, %c0_77] : memref<64x128xf32, #tpu.memory_space<vmem>>, vector<64x128xf32>
      tpu.vector_store %arg11[%c0_76, %c0_77], %81 {strides = array<i32>} : memref<64x128xf32, #tpu.memory_space<vmem>>, vector<64x128xf32>,
    } else {
    }
    %c0 = arith.constant 0 : index
    %c0_4 = arith.constant 0 : index
    %8 = vector.load %arg10[%c0, %c0_4] : memref<64x32xf32, #tpu.memory_space<vmem>>, vector<64x32xf32>
    %c0_5 = arith.constant 0 : index
    %c0_6 = arith.constant 0 : index
    %c0_7 = arith.constant 0 : index
    %c0_8 = arith.constant 0 : index
    %9 = vector.load %arg3[%c0_5, %c0_6, %c0_7, %c0_8] : memref<1x10x10x32xbf16, #tpu.memory_space<vmem>>, vector<1x8x8x32xbf16>
    %10 = vector.shape_cast %9 : vector<1x8x8x32xbf16> to vector<8x8x32xbf16>
    %11 = vector.shape_cast %10 : vector<8x8x32xbf16> to vector<64x32xbf16>
    %c0_9 = arith.constant 0 : index
    %c0_10 = arith.constant 0 : index
    %c0_11 = arith.constant 0 : index
    %12 = vector.load %arg4[%c0_9, %c0_10, %c0_11] : memref<9x32x32xbf16, #tpu.memory_space<vmem>>, vector<1x32x32xbf16>
    %13 = vector.shape_cast %12 : vector<1x32x32xbf16> to vector<32x32xbf16>
    %cst = arith.constant dense<0.000000e+00> : vector<64x32xf32>
    %14 = tpu.matmul %11, %13, %cst {dimension_numbers = #tpu.dot_dimension_numbers<[1], [0], [0], [1], [0, 0, 1, 1], [], []>} : vector<64x32xbf16>, vector<32x32xbf16>, vector<64x32xf32> -> vector<64x32xf32>
    %c0_12 = arith.constant 0 : index
    %c0_13 = arith.constant 0 : index
    %c1 = arith.constant 1 : index
    %c0_14 = arith.constant 0 : index
    %15 = vector.load %arg3[%c0_12, %c0_13, %c1, %c0_14] : memref<1x10x10x32xbf16, #tpu.memory_space<vmem>>, vector<1x8x8x32xbf16>
    %16 = vector.shape_cast %15 : vector<1x8x8x32xbf16> to vector<8x8x32xbf16>
    %17 = vector.shape_cast %16 : vector<8x8x32xbf16> to vector<64x32xbf16>
    %c1_15 = arith.constant 1 : index
    %c0_16 = arith.constant 0 : index
    %c0_17 = arith.constant 0 : index
    %18 = vector.load %arg4[%c1_15, %c0_16, %c0_17] : memref<9x32x32xbf16, #tpu.memory_space<vmem>>, vector<1x32x32xbf16>
    %19 = vector.shape_cast %18 : vector<1x32x32xbf16> to vector<32x32xbf16>
    %cst_18 = arith.constant dense<0.000000e+00> : vector<64x32xf32>
    %20 = tpu.matmul %17, %19, %cst_18 {dimension_numbers = #tpu.dot_dimension_numbers<[1], [0], [0], [1], [0, 0, 1, 1], [], []>} : vector<64x32xbf16>, vector<32x32xbf16>, vector<64x32xf32> -> vector<64x32xf32>
    %21 = arith.addf %14, %20 : vector<64x32xf32>
    %c0_19 = arith.constant 0 : index
    %c0_20 = arith.constant 0 : index
    %c2 = arith.constant 2 : index
    %c0_21 = arith.constant 0 : index
    %22 = vector.load %arg3[%c0_19, %c0_20, %c2, %c0_21] : memref<1x10x10x32xbf16, #tpu.memory_space<vmem>>, vector<1x8x8x32xbf16>
    %23 = vector.shape_cast %22 : vector<1x8x8x32xbf16> to vector<8x8x32xbf16>
    %24 = vector.shape_cast %23 : vector<8x8x32xbf16> to vector<64x32xbf16>
    %c2_22 = arith.constant 2 : index
    %c0_23 = arith.constant 0 : index
    %c0_24 = arith.constant 0 : index
    %25 = vector.load %arg4[%c2_22, %c0_23, %c0_24] : memref<9x32x32xbf16, #tpu.memory_space<vmem>>, vector<1x32x32xbf16>
    %26 = vector.shape_cast %25 : vector<1x32x32xbf16> to vector<32x32xbf16>
    %cst_25 = arith.constant dense<0.000000e+00> : vector<64x32xf32>
    %27 = tpu.matmul %24, %26, %cst_25 {dimension_numbers = #tpu.dot_dimension_numbers<[1], [0], [0], [1], [0, 0, 1, 1], [], []>} : vector<64x32xbf16>, vector<32x32xbf16>, vector<64x32xf32> -> vector<64x32xf32>
    %28 = arith.addf %21, %27 : vector<64x32xf32>
    %c0_26 = arith.constant 0 : index
    %c1_27 = arith.constant 1 : index
    %c0_28 = arith.constant 0 : index
    %c0_29 = arith.constant 0 : index
    %29 = vector.load %arg3[%c0_26, %c1_27, %c0_28, %c0_29] : memref<1x10x10x32xbf16, #tpu.memory_space<vmem>>, vector<1x8x8x32xbf16>
    %30 = vector.shape_cast %29 : vector<1x8x8x32xbf16> to vector<8x8x32xbf16>
    %31 = vector.shape_cast %30 : vector<8x8x32xbf16> to vector<64x32xbf16>
    %c3 = arith.constant 3 : index
    %c0_30 = arith.constant 0 : index
    %c0_31 = arith.constant 0 : index
    %32 = vector.load %arg4[%c3, %c0_30, %c0_31] : memref<9x32x32xbf16, #tpu.memory_space<vmem>>, vector<1x32x32xbf16>
    %33 = vector.shape_cast %32 : vector<1x32x32xbf16> to vector<32x32xbf16>
    %cst_32 = arith.constant dense<0.000000e+00> : vector<64x32xf32>
    %34 = tpu.matmul %31, %33, %cst_32 {dimension_numbers = #tpu.dot_dimension_numbers<[1], [0], [0], [1], [0, 0, 1, 1], [], []>} : vector<64x32xbf16>, vector<32x32xbf16>, vector<64x32xf32> -> vector<64x32xf32>
    %35 = arith.addf %28, %34 : vector<64x32xf32>
    %c0_33 = arith.constant 0 : index
    %c1_34 = arith.constant 1 : index
    %c1_35 = arith.constant 1 : index
    %c0_36 = arith.constant 0 : index
    %36 = vector.load %arg3[%c0_33, %c1_34, %c1_35, %c0_36] : memref<1x10x10x32xbf16, #tpu.memory_space<vmem>>, vector<1x8x8x32xbf16>
    %37 = vector.shape_cast %36 : vector<1x8x8x32xbf16> to vector<8x8x32xbf16>
    %38 = vector.shape_cast %37 : vector<8x8x32xbf16> to vector<64x32xbf16>
    %c4 = arith.constant 4 : index
    %c0_37 = arith.constant 0 : index
    %c0_38 = arith.constant 0 : index
    %39 = vector.load %arg4[%c4, %c0_37, %c0_38] : memref<9x32x32xbf16, #tpu.memory_space<vmem>>, vector<1x32x32xbf16>
    %40 = vector.shape_cast %39 : vector<1x32x32xbf16> to vector<32x32xbf16>
    %cst_39 = arith.constant dense<0.000000e+00> : vector<64x32xf32>
    %41 = tpu.matmul %38, %40, %cst_39 {dimension_numbers = #tpu.dot_dimension_numbers<[1], [0], [0], [1], [0, 0, 1, 1], [], []>} : vector<64x32xbf16>, vector<32x32xbf16>, vector<64x32xf32> -> vector<64x32xf32>
    %42 = arith.addf %35, %41 : vector<64x32xf32>
    %c0_40 = arith.constant 0 : index
    %c1_41 = arith.constant 1 : index
    %c2_42 = arith.constant 2 : index
    %c0_43 = arith.constant 0 : index
    %43 = vector.load %arg3[%c0_40, %c1_41, %c2_42, %c0_43] : memref<1x10x10x32xbf16, #tpu.memory_space<vmem>>, vector<1x8x8x32xbf16>
    %44 = vector.shape_cast %43 : vector<1x8x8x32xbf16> to vector<8x8x32xbf16>
    %45 = vector.shape_cast %44 : vector<8x8x32xbf16> to vector<64x32xbf16>
    %c5 = arith.constant 5 : index
    %c0_44 = arith.constant 0 : index
    %c0_45 = arith.constant 0 : index
    %46 = vector.load %arg4[%c5, %c0_44, %c0_45] : memref<9x32x32xbf16, #tpu.memory_space<vmem>>, vector<1x32x32xbf16>
    %47 = vector.shape_cast %46 : vector<1x32x32xbf16> to vector<32x32xbf16>
    %cst_46 = arith.constant dense<0.000000e+00> : vector<64x32xf32>
    %48 = tpu.matmul %45, %47, %cst_46 {dimension_numbers = #tpu.dot_dimension_numbers<[1], [0], [0], [1], [0, 0, 1, 1], [], []>} : vector<64x32xbf16>, vector<32x32xbf16>, vector<64x32xf32> -> vector<64x32xf32>
    %49 = arith.addf %42, %48 : vector<64x32xf32>
    %c0_47 = arith.constant 0 : index
    %c2_48 = arith.constant 2 : index
    %c0_49 = arith.constant 0 : index
    %c0_50 = arith.constant 0 : index
    %50 = vector.load %arg3[%c0_47, %c2_48, %c0_49, %c0_50] : memref<1x10x10x32xbf16, #tpu.memory_space<vmem>>, vector<1x8x8x32xbf16>
    %51 = vector.shape_cast %50 : vector<1x8x8x32xbf16> to vector<8x8x32xbf16>
    %52 = vector.shape_cast %51 : vector<8x8x32xbf16> to vector<64x32xbf16>
    %c6 = arith.constant 6 : index
    %c0_51 = arith.constant 0 : index
    %c0_52 = arith.constant 0 : index
    %53 = vector.load %arg4[%c6, %c0_51, %c0_52] : memref<9x32x32xbf16, #tpu.memory_space<vmem>>, vector<1x32x32xbf16>
    %54 = vector.shape_cast %53 : vector<1x32x32xbf16> to vector<32x32xbf16>
    %cst_53 = arith.constant dense<0.000000e+00> : vector<64x32xf32>
    %55 = tpu.matmul %52, %54, %cst_53 {dimension_numbers = #tpu.dot_dimension_numbers<[1], [0], [0], [1], [0, 0, 1, 1], [], []>} : vector<64x32xbf16>, vector<32x32xbf16>, vector<64x32xf32> -> vector<64x32xf32>
    %56 = arith.addf %49, %55 : vector<64x32xf32>
    %c0_54 = arith.constant 0 : index
    %c2_55 = arith.constant 2 : index
    %c1_56 = arith.constant 1 : index
    %c0_57 = arith.constant 0 : index
    %57 = vector.load %arg3[%c0_54, %c2_55, %c1_56, %c0_57] : memref<1x10x10x32xbf16, #tpu.memory_space<vmem>>, vector<1x8x8x32xbf16>
    %58 = vector.shape_cast %57 : vector<1x8x8x32xbf16> to vector<8x8x32xbf16>
    %59 = vector.shape_cast %58 : vector<8x8x32xbf16> to vector<64x32xbf16>
    %c7 = arith.constant 7 : index
    %c0_58 = arith.constant 0 : index
    %c0_59 = arith.constant 0 : index
    %60 = vector.load %arg4[%c7, %c0_58, %c0_59] : memref<9x32x32xbf16, #tpu.memory_space<vmem>>, vector<1x32x32xbf16>
    %61 = vector.shape_cast %60 : vector<1x32x32xbf16> to vector<32x32xbf16>
    %cst_60 = arith.constant dense<0.000000e+00> : vector<64x32xf32>
    %62 = tpu.matmul %59, %61, %cst_60 {dimension_numbers = #tpu.dot_dimension_numbers<[1], [0], [0], [1], [0, 0, 1, 1], [], []>} : vector<64x32xbf16>, vector<32x32xbf16>, vector<64x32xf32> -> vector<64x32xf32>
    %63 = arith.addf %56, %62 : vector<64x32xf32>
    %c0_61 = arith.constant 0 : index
    %c2_62 = arith.constant 2 : index
    %c2_63 = arith.constant 2 : index
    %c0_64 = arith.constant 0 : index
    %64 = vector.load %arg3[%c0_61, %c2_62, %c2_63, %c0_64] : memref<1x10x10x32xbf16, #tpu.memory_space<vmem>>, vector<1x8x8x32xbf16>
    %65 = vector.shape_cast %64 : vector<1x8x8x32xbf16> to vector<8x8x32xbf16>
    %66 = vector.shape_cast %65 : vector<8x8x32xbf16> to vector<64x32xbf16>
    %c8 = arith.constant 8 : index
    %c0_65 = arith.constant 0 : index
    %c0_66 = arith.constant 0 : index
    %67 = vector.load %arg4[%c8, %c0_65, %c0_66] : memref<9x32x32xbf16, #tpu.memory_space<vmem>>, vector<1x32x32xbf16>
    %68 = vector.shape_cast %67 : vector<1x32x32xbf16> to vector<32x32xbf16>
    %cst_67 = arith.constant dense<0.000000e+00> : vector<64x32xf32>
    %69 = tpu.matmul %66, %68, %cst_67 {dimension_numbers = #tpu.dot_dimension_numbers<[1], [0], [0], [1], [0, 0, 1, 1], [], []>} : vector<64x32xbf16>, vector<32x32xbf16>, vector<64x32xf32> -> vector<64x32xf32>
    %70 = arith.addf %63, %69 : vector<64x32xf32>
    %71 = arith.addf %8, %70 : vector<64x32xf32>
    %c0_68 = arith.constant 0 : index
    %c0_69 = arith.constant 0 : index
    %72 = vector.load %arg10[%c0_68, %c0_69] : memref<64x32xf32, #tpu.memory_space<vmem>>, vector<64x32xf32>
    tpu.vector_store %arg10[%c0_68, %c0_69], %71 {strides = array<i32>} : memref<64x32xf32, #tpu.memory_space<vmem>>, vector<64x32xf32>,
    %c0_i32_70 = arith.constant 0 : i32
    %73 = arith.cmpi eq, %arg2, %c0_i32_70 : i32
    %74 = arith.extui %73 : i1 to i32
    %c0_i32_71 = arith.constant 0 : i32
    %75 = arith.cmpi ne, %74, %c0_i32_71 : i32
    scf.if %75 {
      %c0_75 = arith.constant 0 : index
      %c0_76 = arith.constant 0 : index
      %81 = vector.load %arg10[%c0_75, %c0_76] : memref<64x32xf32, #tpu.memory_space<vmem>>, vector<64x32xf32>
      %c0_77 = arith.constant 0 : index
      %c0_78 = arith.constant 0 : index
      %82 = vector.load %arg5[%c0_77, %c0_78] : memref<1x32xf32, #tpu.memory_space<vmem>>, vector<1x32xf32>
      %83 = vector.broadcast %82 : vector<1x32xf32> to vector<64x32xf32>
      %84 = arith.mulf %81, %83 : vector<64x32xf32>
      %c0_79 = arith.constant 0 : index
      %c0_80 = arith.constant 0 : index
      %85 = vector.load %arg6[%c0_79, %c0_80] : memref<1x32xf32, #tpu.memory_space<vmem>>, vector<1x32xf32>
      %86 = vector.broadcast %85 : vector<1x32xf32> to vector<64x32xf32>
      %87 = arith.addf %84, %86 : vector<64x32xf32>
      %cst_81 = arith.constant 0.000000e+00 : f32
      %88 = vector.broadcast %cst_81 : f32 to vector<64x32xf32>
      %89 = arith.maximumf %87, %88 : vector<64x32xf32>
      %c0_82 = arith.constant 0 : index
      %c0_83 = arith.constant 0 : index
      %90 = vector.load %arg11[%c0_82, %c0_83] : memref<64x128xf32, #tpu.memory_space<vmem>>, vector<64x128xf32>
      %91 = arith.truncf %89 : vector<64x32xf32> to vector<64x32xbf16>
      %c0_84 = arith.constant 0 : index
      %c0_85 = arith.constant 0 : index
      %92 = vector.load %arg7[%c0_84, %c0_85] : memref<32x128xbf16, #tpu.memory_space<vmem>>, vector<32x128xbf16>
      %cst_86 = arith.constant dense<0.000000e+00> : vector<64x128xf32>
      %93 = tpu.matmul %91, %92, %cst_86 {dimension_numbers = #tpu.dot_dimension_numbers<[1], [0], [0], [1], [0, 0, 1, 1], [], []>} : vector<64x32xbf16>, vector<32x128xbf16>, vector<64x128xf32> -> vector<64x128xf32>
      %94 = arith.addf %90, %93 : vector<64x128xf32>
      %c0_87 = arith.constant 0 : index
      %c0_88 = arith.constant 0 : index
      %95 = vector.load %arg11[%c0_87, %c0_88] : memref<64x128xf32, #tpu.memory_space<vmem>>, vector<64x128xf32>
      tpu.vector_store %arg11[%c0_87, %c0_88], %94 {strides = array<i32>} : memref<64x128xf32, #tpu.memory_space<vmem>>, vector<64x128xf32>,
    } else {
    }
    %c0_i32_72 = arith.constant 0 : i32
    %76 = arith.cmpi eq, %arg1, %c0_i32_72 : i32
    %c0_i32_73 = arith.constant 0 : i32
    %77 = arith.cmpi eq, %arg2, %c0_i32_73 : i32
    %78 = arith.andi %76, %77 : i1
    %79 = arith.extui %78 : i1 to i32
    %c0_i32_74 = arith.constant 0 : i32
    %80 = arith.cmpi ne, %79, %c0_i32_74 : i32
    scf.if %80 {
      %c0_75 = arith.constant 0 : index
      %c0_76 = arith.constant 0 : index
      %81 = vector.load %arg11[%c0_75, %c0_76] : memref<64x128xf32, #tpu.memory_space<vmem>>, vector<64x128xf32>
      %c0_77 = arith.constant 0 : index
      %c0_78 = arith.constant 0 : index
      %82 = vector.load %arg8[%c0_77, %c0_78] : memref<1x128xf32, #tpu.memory_space<vmem>>, vector<1x128xf32>
      %83 = vector.broadcast %82 : vector<1x128xf32> to vector<64x128xf32>
      %84 = arith.addf %81, %83 : vector<64x128xf32>
      %85 = arith.truncf %84 : vector<64x128xf32> to vector<64x128xbf16>
      %c0_79 = arith.constant 0 : index
      %c0_80 = arith.constant 0 : index
      %c0_81 = arith.constant 0 : index
      %86 = vector.load %arg9[%c0_79, %c0_80, %c0_81] : memref<1x64x128xbf16, #tpu.memory_space<vmem>>, vector<1x64x128xbf16>
      %87 = vector.shape_cast %86 : vector<1x64x128xbf16> to vector<64x128xbf16>
      %88 = vector.shape_cast %85 : vector<64x128xbf16> to vector<1x64x128xbf16>
      tpu.vector_store %arg9[%c0_79, %c0_80, %c0_81], %88 {strides = array<i32>} : memref<1x64x128xbf16, #tpu.memory_space<vmem>>, vector<1x64x128xbf16>,
    } else {
    }
    return
  }
  func.func @transform_0(%arg0: i32, %arg1: i32, %arg2: i32) -> (i32, i32, i32, i32) {
    %c0_i32 = arith.constant 0 : i32
    %c0_i32_0 = arith.constant 0 : i32
    %c0_i32_1 = arith.constant 0 : i32
    return %arg0, %c0_i32, %c0_i32_0, %arg2 : i32, i32, i32, i32
  }
  func.func @transform_1(%arg0: i32, %arg1: i32, %arg2: i32) -> (i32, i32, i32) {
    %c0_i32 = arith.constant 0 : i32
    %c0_i32_0 = arith.constant 0 : i32
    return %c0_i32, %arg2, %arg1 : i32, i32, i32
  }
  func.func @transform_2(%arg0: i32, %arg1: i32, %arg2: i32) -> (i32, i32) {
    %c0_i32 = arith.constant 0 : i32
    %c0_i32_0 = arith.constant 0 : i32
    return %c0_i32, %arg1 : i32, i32
  }
  func.func @transform_3(%arg0: i32, %arg1: i32, %arg2: i32) -> (i32, i32) {
    %c0_i32 = arith.constant 0 : i32
    %c0_i32_0 = arith.constant 0 : i32
    return %c0_i32, %arg1 : i32, i32
  }
  func.func @transform_4(%arg0: i32, %arg1: i32, %arg2: i32) -> (i32, i32) {
    %c0_i32 = arith.constant 0 : i32
    %c0_i32_0 = arith.constant 0 : i32
    return %arg1, %c0_i32 : i32, i32
  }
  func.func @transform_5(%arg0: i32, %arg1: i32, %arg2: i32) -> (i32, i32) {
    %c0_i32 = arith.constant 0 : i32
    %c0_i32_0 = arith.constant 0 : i32
    %c0_i32_1 = arith.constant 0 : i32
    return %c0_i32, %c0_i32_0 : i32, i32
  }
  func.func @transform_6(%arg0: i32, %arg1: i32, %arg2: i32) -> (i32, i32, i32) {
    %c0_i32 = arith.constant 0 : i32
    %c0_i32_0 = arith.constant 0 : i32
    %c0_i32_1 = arith.constant 0 : i32
    return %arg0, %c0_i32, %c0_i32_0 : i32, i32, i32
  }
}

module attributes {stable_mosaic.version = 11 : i64} {
  func.func @_ocr_head_kernel(%arg0: i32, %arg1: i32, %arg2: memref<1x32x32xbf16, #tpu.memory_space<vmem>>, %arg3: memref<1x128x16xbf16, #tpu.memory_space<vmem>>, %arg4: memref<1x128x16xbf16, #tpu.memory_space<vmem>>, %arg5: memref<32x16xbf16, #tpu.memory_space<vmem>>, %arg6: memref<1x16xf32, #tpu.memory_space<vmem>>, %arg7: memref<1x16xf32, #tpu.memory_space<vmem>>, %arg8: memref<16x16xbf16, #tpu.memory_space<vmem>>, %arg9: memref<1x16xf32, #tpu.memory_space<vmem>>, %arg10: memref<1x16xf32, #tpu.memory_space<vmem>>, %arg11: memref<16x32xbf16, #tpu.memory_space<vmem>>, %arg12: memref<1x32xf32, #tpu.memory_space<vmem>>, %arg13: memref<1x32xf32, #tpu.memory_space<vmem>>, %arg14: memref<32x32xbf16, #tpu.memory_space<vmem>>, %arg15: memref<32x32xbf16, #tpu.memory_space<vmem>>, %arg16: memref<1x32xf32, #tpu.memory_space<vmem>>, %arg17: memref<1x32xf32, #tpu.memory_space<vmem>>, %arg18: memref<32x128xbf16, #tpu.memory_space<vmem>>, %arg19: memref<1x128xf32, #tpu.memory_space<vmem>>, %arg20: memref<1x32x128xbf16, #tpu.memory_space<vmem>>) attributes {dimension_semantics = [#tpu.dimension_semantics<parallel>, #tpu.dimension_semantics<parallel>], iteration_bounds = array<i64: 1, 2>, scalar_prefetch = 0 : i64, scratch_operands = 0 : i64, tpu.core_type = #tpu.core_type<tc>, window_params = [{transform_indices = @transform_0, window_bounds = array<i64: 1, 32, 32>}, {transform_indices = @transform_1, window_bounds = array<i64: 1, 128, 16>}, {transform_indices = @transform_2, window_bounds = array<i64: 1, 128, 16>}, {pipeline_mode = #tpu.pipeline_mode<synchronous>, transform_indices = @transform_3, window_bounds = array<i64: 32, 16>}, {pipeline_mode = #tpu.pipeline_mode<synchronous>, transform_indices = @transform_4, window_bounds = array<i64: 1, 16>}, {pipeline_mode = #tpu.pipeline_mode<synchronous>, transform_indices = @transform_5, window_bounds = array<i64: 1, 16>}, {pipeline_mode = #tpu.pipeline_mode<synchronous>, transform_indices = @transform_6, window_bounds = array<i64: 16, 16>}, {pipeline_mode = #tpu.pipeline_mode<synchronous>, transform_indices = @transform_7, window_bounds = array<i64: 1, 16>}, {pipeline_mode = #tpu.pipeline_mode<synchronous>, transform_indices = @transform_8, window_bounds = array<i64: 1, 16>}, {pipeline_mode = #tpu.pipeline_mode<synchronous>, transform_indices = @transform_9, window_bounds = array<i64: 16, 32>}, {pipeline_mode = #tpu.pipeline_mode<synchronous>, transform_indices = @transform_10, window_bounds = array<i64: 1, 32>}, {pipeline_mode = #tpu.pipeline_mode<synchronous>, transform_indices = @transform_11, window_bounds = array<i64: 1, 32>}, {pipeline_mode = #tpu.pipeline_mode<synchronous>, transform_indices = @transform_12, window_bounds = array<i64: 32, 32>}, {pipeline_mode = #tpu.pipeline_mode<synchronous>, transform_indices = @transform_13, window_bounds = array<i64: 32, 32>}, {pipeline_mode = #tpu.pipeline_mode<synchronous>, transform_indices = @transform_14, window_bounds = array<i64: 1, 32>}, {pipeline_mode = #tpu.pipeline_mode<synchronous>, transform_indices = @transform_15, window_bounds = array<i64: 1, 32>}, {pipeline_mode = #tpu.pipeline_mode<synchronous>, transform_indices = @transform_16, window_bounds = array<i64: 32, 128>}, {pipeline_mode = #tpu.pipeline_mode<synchronous>, transform_indices = @transform_17, window_bounds = array<i64: 1, 128>}, {transform_indices = @transform_18, window_bounds = array<i64: 1, 32, 128>}]} {
    %c0 = arith.constant 0 : index
    %c0_0 = arith.constant 0 : index
    %c0_1 = arith.constant 0 : index
    %0 = vector.load %arg2[%c0, %c0_0, %c0_1] : memref<1x32x32xbf16, #tpu.memory_space<vmem>>, vector<1x32x32xbf16>
    %1 = vector.shape_cast %0 : vector<1x32x32xbf16> to vector<32x32xbf16>
    %c0_2 = arith.constant 0 : index
    %c0_3 = arith.constant 0 : index
    %2 = vector.load %arg5[%c0_2, %c0_3] : memref<32x16xbf16, #tpu.memory_space<vmem>>, vector<32x16xbf16>
    %cst = arith.constant dense<0.000000e+00> : vector<32x16xf32>
    %3 = tpu.matmul %1, %2, %cst {dimension_numbers = #tpu.dot_dimension_numbers<[1], [0], [0], [1], [0, 0, 1, 1], [], []>} : vector<32x32xbf16>, vector<32x16xbf16>, vector<32x16xf32> -> vector<32x16xf32>
    %c0_4 = arith.constant 0 : index
    %c0_5 = arith.constant 0 : index
    %4 = vector.load %arg6[%c0_4, %c0_5] : memref<1x16xf32, #tpu.memory_space<vmem>>, vector<1x16xf32>
    %5 = vector.broadcast %4 : vector<1x16xf32> to vector<32x16xf32>
    %6 = arith.mulf %3, %5 : vector<32x16xf32>
    %c0_6 = arith.constant 0 : index
    %c0_7 = arith.constant 0 : index
    %7 = vector.load %arg7[%c0_6, %c0_7] : memref<1x16xf32, #tpu.memory_space<vmem>>, vector<1x16xf32>
    %8 = vector.broadcast %7 : vector<1x16xf32> to vector<32x16xf32>
    %9 = arith.addf %6, %8 : vector<32x16xf32>
    %cst_8 = arith.constant 0.000000e+00 : f32
    %10 = vector.broadcast %cst_8 : f32 to vector<32x16xf32>
    %11 = arith.maximumf %9, %10 : vector<32x16xf32>
    %12 = arith.truncf %11 : vector<32x16xf32> to vector<32x16xbf16>
    %c0_9 = arith.constant 0 : index
    %c0_10 = arith.constant 0 : index
    %13 = vector.load %arg8[%c0_9, %c0_10] : memref<16x16xbf16, #tpu.memory_space<vmem>>, vector<16x16xbf16>
    %cst_11 = arith.constant dense<0.000000e+00> : vector<32x16xf32>
    %14 = tpu.matmul %12, %13, %cst_11 {dimension_numbers = #tpu.dot_dimension_numbers<[1], [0], [0], [1], [0, 0, 1, 1], [], []>} : vector<32x16xbf16>, vector<16x16xbf16>, vector<32x16xf32> -> vector<32x16xf32>
    %c0_12 = arith.constant 0 : index
    %c0_13 = arith.constant 0 : index
    %15 = vector.load %arg9[%c0_12, %c0_13] : memref<1x16xf32, #tpu.memory_space<vmem>>, vector<1x16xf32>
    %16 = vector.broadcast %15 : vector<1x16xf32> to vector<32x16xf32>
    %17 = arith.mulf %14, %16 : vector<32x16xf32>
    %c0_14 = arith.constant 0 : index
    %c0_15 = arith.constant 0 : index
    %18 = vector.load %arg10[%c0_14, %c0_15] : memref<1x16xf32, #tpu.memory_space<vmem>>, vector<1x16xf32>
    %19 = vector.broadcast %18 : vector<1x16xf32> to vector<32x16xf32>
    %20 = arith.addf %17, %19 : vector<32x16xf32>
    %cst_16 = arith.constant 0.000000e+00 : f32
    %21 = vector.broadcast %cst_16 : f32 to vector<32x16xf32>
    %22 = arith.maximumf %20, %21 : vector<32x16xf32>
    %23 = arith.truncf %22 : vector<32x16xf32> to vector<32x16xbf16>
    %c0_17 = arith.constant 0 : index
    %c0_18 = arith.constant 0 : index
    %c0_19 = arith.constant 0 : index
    %24 = vector.load %arg3[%c0_17, %c0_18, %c0_19] : memref<1x128x16xbf16, #tpu.memory_space<vmem>>, vector<1x128x16xbf16>
    %25 = vector.shape_cast %24 : vector<1x128x16xbf16> to vector<128x16xbf16>
    %cst_20 = arith.constant dense<0.000000e+00> : vector<32x128xf32>
    %26 = tpu.matmul %23, %25, %cst_20 {dimension_numbers = #tpu.dot_dimension_numbers<[1], [1], [0], [0], [0, 0, 1, 0], [], []>} : vector<32x16xbf16>, vector<128x16xbf16>, vector<32x128xf32> -> vector<32x128xf32>
    %cst_21 = arith.constant 2.500000e-01 : f32
    %27 = vector.broadcast %cst_21 : f32 to vector<32x128xf32>
    %28 = arith.mulf %26, %27 : vector<32x128xf32>
    %29 = tpu.iota {dimensions = array<i32: 1>} : vector<32x128xi32>
    %c8_i32 = arith.constant 8 : i32
    %30 = vector.broadcast %c8_i32 : i32 to vector<32x128xi32>
    %31 = arith.cmpi slt, %29, %30 : vector<32x128xi32>
    %cst_22 = arith.constant -1.000000e+30 : f32
    %32 = vector.broadcast %cst_22 : f32 to vector<32x128xf32>
    %33 = arith.select %31, %28, %32 : vector<32x128xi1>, vector<32x128xf32>
    %cst_23 = arith.constant dense<0xFF800000> : vector<32xf32>
    %34 = vector.multi_reduction <maximumf>, %33, %cst_23 [1] : vector<32x128xf32> to vector<32xf32>
    %35 = vector.shape_cast %34 : vector<32xf32> to vector<32x1xf32>
    %36 = vector.broadcast %35 : vector<32x1xf32> to vector<32x128xf32>
    %37 = arith.subf %33, %36 : vector<32x128xf32>
    %38 = math.exp %37 : vector<32x128xf32>
    %cst_24 = arith.constant dense<0.000000e+00> : vector<32xf32>
    %39 = vector.multi_reduction <add>, %38, %cst_24 [1] : vector<32x128xf32> to vector<32xf32>
    %40 = vector.shape_cast %39 : vector<32xf32> to vector<32x1xf32>
    %41 = tpu.reciprocal %40 {approx = true} : vector<32x1xf32> -> vector<32x1xf32>
    %42 = vector.broadcast %41 : vector<32x1xf32> to vector<32x128xf32>
    %43 = arith.mulf %38, %42 : vector<32x128xf32>
    %44 = arith.truncf %43 : vector<32x128xf32> to vector<32x128xbf16>
    %c0_25 = arith.constant 0 : index
    %c0_26 = arith.constant 0 : index
    %c0_27 = arith.constant 0 : index
    %45 = vector.load %arg4[%c0_25, %c0_26, %c0_27] : memref<1x128x16xbf16, #tpu.memory_space<vmem>>, vector<1x128x16xbf16>
    %46 = vector.shape_cast %45 : vector<1x128x16xbf16> to vector<128x16xbf16>
    %cst_28 = arith.constant dense<0.000000e+00> : vector<32x16xf32>
    %47 = tpu.matmul %44, %46, %cst_28 {dimension_numbers = #tpu.dot_dimension_numbers<[1], [0], [0], [1], [0, 0, 1, 1], [], []>} : vector<32x128xbf16>, vector<128x16xbf16>, vector<32x16xf32> -> vector<32x16xf32>
    %48 = arith.truncf %47 : vector<32x16xf32> to vector<32x16xbf16>
    %c0_29 = arith.constant 0 : index
    %c0_30 = arith.constant 0 : index
    %49 = vector.load %arg11[%c0_29, %c0_30] : memref<16x32xbf16, #tpu.memory_space<vmem>>, vector<16x32xbf16>
    %cst_31 = arith.constant dense<0.000000e+00> : vector<32x32xf32>
    %50 = tpu.matmul %48, %49, %cst_31 {dimension_numbers = #tpu.dot_dimension_numbers<[1], [0], [0], [1], [0, 0, 1, 1], [], []>} : vector<32x16xbf16>, vector<16x32xbf16>, vector<32x32xf32> -> vector<32x32xf32>
    %c0_32 = arith.constant 0 : index
    %c0_33 = arith.constant 0 : index
    %51 = vector.load %arg12[%c0_32, %c0_33] : memref<1x32xf32, #tpu.memory_space<vmem>>, vector<1x32xf32>
    %52 = vector.broadcast %51 : vector<1x32xf32> to vector<32x32xf32>
    %53 = arith.mulf %50, %52 : vector<32x32xf32>
    %c0_34 = arith.constant 0 : index
    %c0_35 = arith.constant 0 : index
    %54 = vector.load %arg13[%c0_34, %c0_35] : memref<1x32xf32, #tpu.memory_space<vmem>>, vector<1x32xf32>
    %55 = vector.broadcast %54 : vector<1x32xf32> to vector<32x32xf32>
    %56 = arith.addf %53, %55 : vector<32x32xf32>
    %cst_36 = arith.constant 0.000000e+00 : f32
    %57 = vector.broadcast %cst_36 : f32 to vector<32x32xf32>
    %58 = arith.maximumf %56, %57 : vector<32x32xf32>
    %59 = arith.truncf %58 : vector<32x32xf32> to vector<32x32xbf16>
    %c0_37 = arith.constant 0 : index
    %c0_38 = arith.constant 0 : index
    %60 = vector.load %arg14[%c0_37, %c0_38] : memref<32x32xbf16, #tpu.memory_space<vmem>>, vector<32x32xbf16>
    %cst_39 = arith.constant dense<0.000000e+00> : vector<32x32xf32>
    %61 = tpu.matmul %59, %60, %cst_39 {dimension_numbers = #tpu.dot_dimension_numbers<[1], [0], [0], [1], [0, 0, 1, 1], [], []>} : vector<32x32xbf16>, vector<32x32xbf16>, vector<32x32xf32> -> vector<32x32xf32>
    %c0_40 = arith.constant 0 : index
    %c0_41 = arith.constant 0 : index
    %62 = vector.load %arg15[%c0_40, %c0_41] : memref<32x32xbf16, #tpu.memory_space<vmem>>, vector<32x32xbf16>
    %cst_42 = arith.constant dense<0.000000e+00> : vector<32x32xf32>
    %63 = tpu.matmul %1, %62, %cst_42 {dimension_numbers = #tpu.dot_dimension_numbers<[1], [0], [0], [1], [0, 0, 1, 1], [], []>} : vector<32x32xbf16>, vector<32x32xbf16>, vector<32x32xf32> -> vector<32x32xf32>
    %64 = arith.addf %61, %63 : vector<32x32xf32>
    %c0_43 = arith.constant 0 : index
    %c0_44 = arith.constant 0 : index
    %65 = vector.load %arg16[%c0_43, %c0_44] : memref<1x32xf32, #tpu.memory_space<vmem>>, vector<1x32xf32>
    %66 = vector.broadcast %65 : vector<1x32xf32> to vector<32x32xf32>
    %67 = arith.mulf %64, %66 : vector<32x32xf32>
    %c0_45 = arith.constant 0 : index
    %c0_46 = arith.constant 0 : index
    %68 = vector.load %arg17[%c0_45, %c0_46] : memref<1x32xf32, #tpu.memory_space<vmem>>, vector<1x32xf32>
    %69 = vector.broadcast %68 : vector<1x32xf32> to vector<32x32xf32>
    %70 = arith.addf %67, %69 : vector<32x32xf32>
    %cst_47 = arith.constant 0.000000e+00 : f32
    %71 = vector.broadcast %cst_47 : f32 to vector<32x32xf32>
    %72 = arith.maximumf %70, %71 : vector<32x32xf32>
    %73 = arith.truncf %72 : vector<32x32xf32> to vector<32x32xbf16>
    %c0_48 = arith.constant 0 : index
    %c0_49 = arith.constant 0 : index
    %74 = vector.load %arg18[%c0_48, %c0_49] : memref<32x128xbf16, #tpu.memory_space<vmem>>, vector<32x128xbf16>
    %cst_50 = arith.constant dense<0.000000e+00> : vector<32x128xf32>
    %75 = tpu.matmul %73, %74, %cst_50 {dimension_numbers = #tpu.dot_dimension_numbers<[1], [0], [0], [1], [0, 0, 1, 1], [], []>} : vector<32x32xbf16>, vector<32x128xbf16>, vector<32x128xf32> -> vector<32x128xf32>
    %c0_51 = arith.constant 0 : index
    %c0_52 = arith.constant 0 : index
    %76 = vector.load %arg19[%c0_51, %c0_52] : memref<1x128xf32, #tpu.memory_space<vmem>>, vector<1x128xf32>
    %77 = vector.broadcast %76 : vector<1x128xf32> to vector<32x128xf32>
    %78 = arith.addf %75, %77 : vector<32x128xf32>
    %79 = arith.truncf %78 : vector<32x128xf32> to vector<32x128xbf16>
    %c0_53 = arith.constant 0 : index
    %c0_54 = arith.constant 0 : index
    %c0_55 = arith.constant 0 : index
    %80 = vector.load %arg20[%c0_53, %c0_54, %c0_55] : memref<1x32x128xbf16, #tpu.memory_space<vmem>>, vector<1x32x128xbf16>
    %81 = vector.shape_cast %80 : vector<1x32x128xbf16> to vector<32x128xbf16>
    %82 = vector.shape_cast %79 : vector<32x128xbf16> to vector<1x32x128xbf16>
    tpu.vector_store %arg20[%c0_53, %c0_54, %c0_55], %82 {strides = array<i32>} : memref<1x32x128xbf16, #tpu.memory_space<vmem>>, vector<1x32x128xbf16>,
    return
  }
  func.func @transform_0(%arg0: i32, %arg1: i32) -> (i32, i32, i32) {
    %c2_i32 = arith.constant 2 : i32
    %0 = arith.addi %c2_i32, %arg0 : i32
    %c0_i32 = arith.constant 0 : i32
    %c0_i32_0 = arith.constant 0 : i32
    return %0, %arg1, %c0_i32 : i32, i32, i32
  }
  func.func @transform_1(%arg0: i32, %arg1: i32) -> (i32, i32, i32) {
    %c0_i32 = arith.constant 0 : i32
    %c0_i32_0 = arith.constant 0 : i32
    %c0_i32_1 = arith.constant 0 : i32
    return %arg0, %c0_i32, %c0_i32_0 : i32, i32, i32
  }
  func.func @transform_2(%arg0: i32, %arg1: i32) -> (i32, i32, i32) {
    %c0_i32 = arith.constant 0 : i32
    %c0_i32_0 = arith.constant 0 : i32
    %c0_i32_1 = arith.constant 0 : i32
    return %arg0, %c0_i32, %c0_i32_0 : i32, i32, i32
  }
  func.func @transform_3(%arg0: i32, %arg1: i32) -> (i32, i32) {
    %c0_i32 = arith.constant 0 : i32
    %c0_i32_0 = arith.constant 0 : i32
    %c0_i32_1 = arith.constant 0 : i32
    return %c0_i32, %c0_i32_0 : i32, i32
  }
  func.func @transform_4(%arg0: i32, %arg1: i32) -> (i32, i32) {
    %c0_i32 = arith.constant 0 : i32
    %c0_i32_0 = arith.constant 0 : i32
    %c0_i32_1 = arith.constant 0 : i32
    return %c0_i32, %c0_i32_0 : i32, i32
  }
  func.func @transform_5(%arg0: i32, %arg1: i32) -> (i32, i32) {
    %c0_i32 = arith.constant 0 : i32
    %c0_i32_0 = arith.constant 0 : i32
    %c0_i32_1 = arith.constant 0 : i32
    return %c0_i32, %c0_i32_0 : i32, i32
  }
  func.func @transform_6(%arg0: i32, %arg1: i32) -> (i32, i32) {
    %c0_i32 = arith.constant 0 : i32
    %c0_i32_0 = arith.constant 0 : i32
    %c0_i32_1 = arith.constant 0 : i32
    return %c0_i32, %c0_i32_0 : i32, i32
  }
  func.func @transform_7(%arg0: i32, %arg1: i32) -> (i32, i32) {
    %c0_i32 = arith.constant 0 : i32
    %c0_i32_0 = arith.constant 0 : i32
    %c0_i32_1 = arith.constant 0 : i32
    return %c0_i32, %c0_i32_0 : i32, i32
  }
  func.func @transform_8(%arg0: i32, %arg1: i32) -> (i32, i32) {
    %c0_i32 = arith.constant 0 : i32
    %c0_i32_0 = arith.constant 0 : i32
    %c0_i32_1 = arith.constant 0 : i32
    return %c0_i32, %c0_i32_0 : i32, i32
  }
  func.func @transform_9(%arg0: i32, %arg1: i32) -> (i32, i32) {
    %c0_i32 = arith.constant 0 : i32
    %c0_i32_0 = arith.constant 0 : i32
    %c0_i32_1 = arith.constant 0 : i32
    return %c0_i32, %c0_i32_0 : i32, i32
  }
  func.func @transform_10(%arg0: i32, %arg1: i32) -> (i32, i32) {
    %c0_i32 = arith.constant 0 : i32
    %c0_i32_0 = arith.constant 0 : i32
    %c0_i32_1 = arith.constant 0 : i32
    return %c0_i32, %c0_i32_0 : i32, i32
  }
  func.func @transform_11(%arg0: i32, %arg1: i32) -> (i32, i32) {
    %c0_i32 = arith.constant 0 : i32
    %c0_i32_0 = arith.constant 0 : i32
    %c0_i32_1 = arith.constant 0 : i32
    return %c0_i32, %c0_i32_0 : i32, i32
  }
  func.func @transform_12(%arg0: i32, %arg1: i32) -> (i32, i32) {
    %c0_i32 = arith.constant 0 : i32
    %c0_i32_0 = arith.constant 0 : i32
    %c0_i32_1 = arith.constant 0 : i32
    return %c0_i32, %c0_i32_0 : i32, i32
  }
  func.func @transform_13(%arg0: i32, %arg1: i32) -> (i32, i32) {
    %c0_i32 = arith.constant 0 : i32
    %c0_i32_0 = arith.constant 0 : i32
    %c0_i32_1 = arith.constant 0 : i32
    return %c0_i32, %c0_i32_0 : i32, i32
  }
  func.func @transform_14(%arg0: i32, %arg1: i32) -> (i32, i32) {
    %c0_i32 = arith.constant 0 : i32
    %c0_i32_0 = arith.constant 0 : i32
    %c0_i32_1 = arith.constant 0 : i32
    return %c0_i32, %c0_i32_0 : i32, i32
  }
  func.func @transform_15(%arg0: i32, %arg1: i32) -> (i32, i32) {
    %c0_i32 = arith.constant 0 : i32
    %c0_i32_0 = arith.constant 0 : i32
    %c0_i32_1 = arith.constant 0 : i32
    return %c0_i32, %c0_i32_0 : i32, i32
  }
  func.func @transform_16(%arg0: i32, %arg1: i32) -> (i32, i32) {
    %c0_i32 = arith.constant 0 : i32
    %c0_i32_0 = arith.constant 0 : i32
    %c0_i32_1 = arith.constant 0 : i32
    return %c0_i32, %c0_i32_0 : i32, i32
  }
  func.func @transform_17(%arg0: i32, %arg1: i32) -> (i32, i32) {
    %c0_i32 = arith.constant 0 : i32
    %c0_i32_0 = arith.constant 0 : i32
    %c0_i32_1 = arith.constant 0 : i32
    return %c0_i32, %c0_i32_0 : i32, i32
  }
  func.func @transform_18(%arg0: i32, %arg1: i32) -> (i32, i32, i32) {
    %c0_i32 = arith.constant 0 : i32
    %c0_i32_0 = arith.constant 0 : i32
    return %arg0, %arg1, %c0_i32 : i32, i32, i32
  }
}

module attributes {stable_mosaic.version = 11 : i64} {
  func.func @_hres_kernel(%arg0: i32, %arg1: i32, %arg2: memref<16x8xbf16, #tpu.memory_space<vmem>>, %arg3: memref<1x8x512xbf16, #tpu.memory_space<vmem>>, %arg4: memref<1x16x512xbf16, #tpu.memory_space<vmem>>) attributes {dimension_semantics = [#tpu.dimension_semantics<parallel>, #tpu.dimension_semantics<parallel>], iteration_bounds = array<i64: 1, 2>, scalar_prefetch = 0 : i64, scratch_operands = 0 : i64, tpu.core_type = #tpu.core_type<tc>, window_params = [{pipeline_mode = #tpu.pipeline_mode<synchronous>, transform_indices = @transform_0, window_bounds = array<i64: 16, 8>}, {transform_indices = @transform_1, window_bounds = array<i64: 1, 8, 512>}, {transform_indices = @transform_2, window_bounds = array<i64: 1, 16, 512>}]} {
    %c0 = arith.constant 0 : index
    %c0_0 = arith.constant 0 : index
    %0 = vector.load %arg2[%c0, %c0_0] : memref<16x8xbf16, #tpu.memory_space<vmem>>, vector<16x8xbf16>
    %c0_1 = arith.constant 0 : index
    %c0_2 = arith.constant 0 : index
    %c0_3 = arith.constant 0 : index
    %1 = vector.load %arg3[%c0_1, %c0_2, %c0_3] : memref<1x8x512xbf16, #tpu.memory_space<vmem>>, vector<1x8x512xbf16>
    %2 = vector.shape_cast %1 : vector<1x8x512xbf16> to vector<8x512xbf16>
    %cst = arith.constant dense<0.000000e+00> : vector<16x512xf32>
    %3 = tpu.matmul %0, %2, %cst {dimension_numbers = #tpu.dot_dimension_numbers<[1], [0], [0], [1], [0, 0, 1, 1], [], []>} : vector<16x8xbf16>, vector<8x512xbf16>, vector<16x512xf32> -> vector<16x512xf32>
    %4 = arith.truncf %3 : vector<16x512xf32> to vector<16x512xbf16>
    %c0_4 = arith.constant 0 : index
    %c0_5 = arith.constant 0 : index
    %c0_6 = arith.constant 0 : index
    %5 = vector.load %arg4[%c0_4, %c0_5, %c0_6] : memref<1x16x512xbf16, #tpu.memory_space<vmem>>, vector<1x16x512xbf16>
    %6 = vector.shape_cast %5 : vector<1x16x512xbf16> to vector<16x512xbf16>
    %7 = vector.shape_cast %4 : vector<16x512xbf16> to vector<1x16x512xbf16>
    tpu.vector_store %arg4[%c0_4, %c0_5, %c0_6], %7 {strides = array<i32>} : memref<1x16x512xbf16, #tpu.memory_space<vmem>>, vector<1x16x512xbf16>,
    return
  }
  func.func @transform_0(%arg0: i32, %arg1: i32) -> (i32, i32) {
    %c0_i32 = arith.constant 0 : i32
    %c0_i32_0 = arith.constant 0 : i32
    %c0_i32_1 = arith.constant 0 : i32
    return %c0_i32, %c0_i32_0 : i32, i32
  }
  func.func @transform_1(%arg0: i32, %arg1: i32) -> (i32, i32, i32) {
    %c0_i32 = arith.constant 0 : i32
    %c0_i32_0 = arith.constant 0 : i32
    return %arg0, %c0_i32, %arg1 : i32, i32, i32
  }
  func.func @transform_2(%arg0: i32, %arg1: i32) -> (i32, i32, i32) {
    %c0_i32 = arith.constant 0 : i32
    %c0_i32_0 = arith.constant 0 : i32
    return %arg0, %c0_i32, %arg1 : i32, i32, i32
  }
}

module attributes {stable_mosaic.version = 11 : i64} {
  func.func @_wres_softmax_kernel(%arg0: i32, %arg1: memref<16x8xbf16, #tpu.memory_space<vmem>>, %arg2: memref<8x8x128xbf16, #tpu.memory_space<vmem>>, %arg3: memref<8x16x128xf32, #tpu.memory_space<vmem>>) attributes {dimension_semantics = [#tpu.dimension_semantics<parallel>], iteration_bounds = array<i64: 2>, scalar_prefetch = 0 : i64, scratch_operands = 0 : i64, tpu.core_type = #tpu.core_type<tc>, window_params = [{pipeline_mode = #tpu.pipeline_mode<synchronous>, transform_indices = @transform_0, window_bounds = array<i64: 16, 8>}, {transform_indices = @transform_1, window_bounds = array<i64: 8, 8, 128>}, {transform_indices = @transform_2, window_bounds = array<i64: 8, 16, 128>}]} {
    %0 = tpu.iota {dimensions = array<i32: 1>} : vector<16x128xi32>
    %c8_i32 = arith.constant 8 : i32
    %1 = vector.broadcast %c8_i32 : i32 to vector<16x128xi32>
    %2 = arith.cmpi slt, %0, %1 : vector<16x128xi32>
    %c0 = arith.constant 0 : index
    %c0_0 = arith.constant 0 : index
    %3 = vector.load %arg1[%c0, %c0_0] : memref<16x8xbf16, #tpu.memory_space<vmem>>, vector<16x8xbf16>
    %c0_1 = arith.constant 0 : index
    %c0_2 = arith.constant 0 : index
    %c0_3 = arith.constant 0 : index
    %4 = vector.load %arg2[%c0_1, %c0_2, %c0_3] : memref<8x8x128xbf16, #tpu.memory_space<vmem>>, vector<1x8x128xbf16>
    %5 = vector.shape_cast %4 : vector<1x8x128xbf16> to vector<8x128xbf16>
    %cst = arith.constant dense<0.000000e+00> : vector<16x128xf32>
    %6 = tpu.matmul %3, %5, %cst {dimension_numbers = #tpu.dot_dimension_numbers<[1], [0], [0], [1], [0, 0, 1, 1], [], []>} : vector<16x8xbf16>, vector<8x128xbf16>, vector<16x128xf32> -> vector<16x128xf32>
    %cst_4 = arith.constant -1.000000e+30 : f32
    %7 = vector.broadcast %cst_4 : f32 to vector<16x128xf32>
    %8 = arith.select %2, %6, %7 : vector<16x128xi1>, vector<16x128xf32>
    %cst_5 = arith.constant dense<0xFF800000> : vector<16xf32>
    %9 = vector.multi_reduction <maximumf>, %8, %cst_5 [1] : vector<16x128xf32> to vector<16xf32>
    %10 = vector.shape_cast %9 : vector<16xf32> to vector<16x1xf32>
    %11 = vector.broadcast %10 : vector<16x1xf32> to vector<16x128xf32>
    %12 = arith.subf %8, %11 : vector<16x128xf32>
    %13 = math.exp %12 : vector<16x128xf32>
    %cst_6 = arith.constant dense<0.000000e+00> : vector<16xf32>
    %14 = vector.multi_reduction <add>, %13, %cst_6 [1] : vector<16x128xf32> to vector<16xf32>
    %15 = vector.shape_cast %14 : vector<16xf32> to vector<16x1xf32>
    %16 = vector.broadcast %15 : vector<16x1xf32> to vector<16x128xf32>
    %17 = arith.divf %13, %16 : vector<16x128xf32>
    %c0_7 = arith.constant 0 : index
    %c0_8 = arith.constant 0 : index
    %c0_9 = arith.constant 0 : index
    %18 = vector.load %arg3[%c0_7, %c0_8, %c0_9] : memref<8x16x128xf32, #tpu.memory_space<vmem>>, vector<1x16x128xf32>
    %19 = vector.shape_cast %18 : vector<1x16x128xf32> to vector<16x128xf32>
    %20 = vector.shape_cast %17 : vector<16x128xf32> to vector<1x16x128xf32>
    tpu.vector_store %arg3[%c0_7, %c0_8, %c0_9], %20 {strides = array<i32>} : memref<8x16x128xf32, #tpu.memory_space<vmem>>, vector<1x16x128xf32>,
    %c1 = arith.constant 1 : index
    %c0_10 = arith.constant 0 : index
    %c0_11 = arith.constant 0 : index
    %21 = vector.load %arg2[%c1, %c0_10, %c0_11] : memref<8x8x128xbf16, #tpu.memory_space<vmem>>, vector<1x8x128xbf16>
    %22 = vector.shape_cast %21 : vector<1x8x128xbf16> to vector<8x128xbf16>
    %cst_12 = arith.constant dense<0.000000e+00> : vector<16x128xf32>
    %23 = tpu.matmul %3, %22, %cst_12 {dimension_numbers = #tpu.dot_dimension_numbers<[1], [0], [0], [1], [0, 0, 1, 1], [], []>} : vector<16x8xbf16>, vector<8x128xbf16>, vector<16x128xf32> -> vector<16x128xf32>
    %cst_13 = arith.constant -1.000000e+30 : f32
    %24 = vector.broadcast %cst_13 : f32 to vector<16x128xf32>
    %25 = arith.select %2, %23, %24 : vector<16x128xi1>, vector<16x128xf32>
    %cst_14 = arith.constant dense<0xFF800000> : vector<16xf32>
    %26 = vector.multi_reduction <maximumf>, %25, %cst_14 [1] : vector<16x128xf32> to vector<16xf32>
    %27 = vector.shape_cast %26 : vector<16xf32> to vector<16x1xf32>
    %28 = vector.broadcast %27 : vector<16x1xf32> to vector<16x128xf32>
    %29 = arith.subf %25, %28 : vector<16x128xf32>
    %30 = math.exp %29 : vector<16x128xf32>
    %cst_15 = arith.constant dense<0.000000e+00> : vector<16xf32>
    %31 = vector.multi_reduction <add>, %30, %cst_15 [1] : vector<16x128xf32> to vector<16xf32>
    %32 = vector.shape_cast %31 : vector<16xf32> to vector<16x1xf32>
    %33 = vector.broadcast %32 : vector<16x1xf32> to vector<16x128xf32>
    %34 = arith.divf %30, %33 : vector<16x128xf32>
    %c1_16 = arith.constant 1 : index
    %c0_17 = arith.constant 0 : index
    %c0_18 = arith.constant 0 : index
    %35 = vector.load %arg3[%c1_16, %c0_17, %c0_18] : memref<8x16x128xf32, #tpu.memory_space<vmem>>, vector<1x16x128xf32>
    %36 = vector.shape_cast %35 : vector<1x16x128xf32> to vector<16x128xf32>
    %37 = vector.shape_cast %34 : vector<16x128xf32> to vector<1x16x128xf32>
    tpu.vector_store %arg3[%c1_16, %c0_17, %c0_18], %37 {strides = array<i32>} : memref<8x16x128xf32, #tpu.memory_space<vmem>>, vector<1x16x128xf32>,
    %c2 = arith.constant 2 : index
    %c0_19 = arith.constant 0 : index
    %c0_20 = arith.constant 0 : index
    %38 = vector.load %arg2[%c2, %c0_19, %c0_20] : memref<8x8x128xbf16, #tpu.memory_space<vmem>>, vector<1x8x128xbf16>
    %39 = vector.shape_cast %38 : vector<1x8x128xbf16> to vector<8x128xbf16>
    %cst_21 = arith.constant dense<0.000000e+00> : vector<16x128xf32>
    %40 = tpu.matmul %3, %39, %cst_21 {dimension_numbers = #tpu.dot_dimension_numbers<[1], [0], [0], [1], [0, 0, 1, 1], [], []>} : vector<16x8xbf16>, vector<8x128xbf16>, vector<16x128xf32> -> vector<16x128xf32>
    %cst_22 = arith.constant -1.000000e+30 : f32
    %41 = vector.broadcast %cst_22 : f32 to vector<16x128xf32>
    %42 = arith.select %2, %40, %41 : vector<16x128xi1>, vector<16x128xf32>
    %cst_23 = arith.constant dense<0xFF800000> : vector<16xf32>
    %43 = vector.multi_reduction <maximumf>, %42, %cst_23 [1] : vector<16x128xf32> to vector<16xf32>
    %44 = vector.shape_cast %43 : vector<16xf32> to vector<16x1xf32>
    %45 = vector.broadcast %44 : vector<16x1xf32> to vector<16x128xf32>
    %46 = arith.subf %42, %45 : vector<16x128xf32>
    %47 = math.exp %46 : vector<16x128xf32>
    %cst_24 = arith.constant dense<0.000000e+00> : vector<16xf32>
    %48 = vector.multi_reduction <add>, %47, %cst_24 [1] : vector<16x128xf32> to vector<16xf32>
    %49 = vector.shape_cast %48 : vector<16xf32> to vector<16x1xf32>
    %50 = vector.broadcast %49 : vector<16x1xf32> to vector<16x128xf32>
    %51 = arith.divf %47, %50 : vector<16x128xf32>
    %c2_25 = arith.constant 2 : index
    %c0_26 = arith.constant 0 : index
    %c0_27 = arith.constant 0 : index
    %52 = vector.load %arg3[%c2_25, %c0_26, %c0_27] : memref<8x16x128xf32, #tpu.memory_space<vmem>>, vector<1x16x128xf32>
    %53 = vector.shape_cast %52 : vector<1x16x128xf32> to vector<16x128xf32>
    %54 = vector.shape_cast %51 : vector<16x128xf32> to vector<1x16x128xf32>
    tpu.vector_store %arg3[%c2_25, %c0_26, %c0_27], %54 {strides = array<i32>} : memref<8x16x128xf32, #tpu.memory_space<vmem>>, vector<1x16x128xf32>,
    %c3 = arith.constant 3 : index
    %c0_28 = arith.constant 0 : index
    %c0_29 = arith.constant 0 : index
    %55 = vector.load %arg2[%c3, %c0_28, %c0_29] : memref<8x8x128xbf16, #tpu.memory_space<vmem>>, vector<1x8x128xbf16>
    %56 = vector.shape_cast %55 : vector<1x8x128xbf16> to vector<8x128xbf16>
    %cst_30 = arith.constant dense<0.000000e+00> : vector<16x128xf32>
    %57 = tpu.matmul %3, %56, %cst_30 {dimension_numbers = #tpu.dot_dimension_numbers<[1], [0], [0], [1], [0, 0, 1, 1], [], []>} : vector<16x8xbf16>, vector<8x128xbf16>, vector<16x128xf32> -> vector<16x128xf32>
    %cst_31 = arith.constant -1.000000e+30 : f32
    %58 = vector.broadcast %cst_31 : f32 to vector<16x128xf32>
    %59 = arith.select %2, %57, %58 : vector<16x128xi1>, vector<16x128xf32>
    %cst_32 = arith.constant dense<0xFF800000> : vector<16xf32>
    %60 = vector.multi_reduction <maximumf>, %59, %cst_32 [1] : vector<16x128xf32> to vector<16xf32>
    %61 = vector.shape_cast %60 : vector<16xf32> to vector<16x1xf32>
    %62 = vector.broadcast %61 : vector<16x1xf32> to vector<16x128xf32>
    %63 = arith.subf %59, %62 : vector<16x128xf32>
    %64 = math.exp %63 : vector<16x128xf32>
    %cst_33 = arith.constant dense<0.000000e+00> : vector<16xf32>
    %65 = vector.multi_reduction <add>, %64, %cst_33 [1] : vector<16x128xf32> to vector<16xf32>
    %66 = vector.shape_cast %65 : vector<16xf32> to vector<16x1xf32>
    %67 = vector.broadcast %66 : vector<16x1xf32> to vector<16x128xf32>
    %68 = arith.divf %64, %67 : vector<16x128xf32>
    %c3_34 = arith.constant 3 : index
    %c0_35 = arith.constant 0 : index
    %c0_36 = arith.constant 0 : index
    %69 = vector.load %arg3[%c3_34, %c0_35, %c0_36] : memref<8x16x128xf32, #tpu.memory_space<vmem>>, vector<1x16x128xf32>
    %70 = vector.shape_cast %69 : vector<1x16x128xf32> to vector<16x128xf32>
    %71 = vector.shape_cast %68 : vector<16x128xf32> to vector<1x16x128xf32>
    tpu.vector_store %arg3[%c3_34, %c0_35, %c0_36], %71 {strides = array<i32>} : memref<8x16x128xf32, #tpu.memory_space<vmem>>, vector<1x16x128xf32>,
    %c4 = arith.constant 4 : index
    %c0_37 = arith.constant 0 : index
    %c0_38 = arith.constant 0 : index
    %72 = vector.load %arg2[%c4, %c0_37, %c0_38] : memref<8x8x128xbf16, #tpu.memory_space<vmem>>, vector<1x8x128xbf16>
    %73 = vector.shape_cast %72 : vector<1x8x128xbf16> to vector<8x128xbf16>
    %cst_39 = arith.constant dense<0.000000e+00> : vector<16x128xf32>
    %74 = tpu.matmul %3, %73, %cst_39 {dimension_numbers = #tpu.dot_dimension_numbers<[1], [0], [0], [1], [0, 0, 1, 1], [], []>} : vector<16x8xbf16>, vector<8x128xbf16>, vector<16x128xf32> -> vector<16x128xf32>
    %cst_40 = arith.constant -1.000000e+30 : f32
    %75 = vector.broadcast %cst_40 : f32 to vector<16x128xf32>
    %76 = arith.select %2, %74, %75 : vector<16x128xi1>, vector<16x128xf32>
    %cst_41 = arith.constant dense<0xFF800000> : vector<16xf32>
    %77 = vector.multi_reduction <maximumf>, %76, %cst_41 [1] : vector<16x128xf32> to vector<16xf32>
    %78 = vector.shape_cast %77 : vector<16xf32> to vector<16x1xf32>
    %79 = vector.broadcast %78 : vector<16x1xf32> to vector<16x128xf32>
    %80 = arith.subf %76, %79 : vector<16x128xf32>
    %81 = math.exp %80 : vector<16x128xf32>
    %cst_42 = arith.constant dense<0.000000e+00> : vector<16xf32>
    %82 = vector.multi_reduction <add>, %81, %cst_42 [1] : vector<16x128xf32> to vector<16xf32>
    %83 = vector.shape_cast %82 : vector<16xf32> to vector<16x1xf32>
    %84 = vector.broadcast %83 : vector<16x1xf32> to vector<16x128xf32>
    %85 = arith.divf %81, %84 : vector<16x128xf32>
    %c4_43 = arith.constant 4 : index
    %c0_44 = arith.constant 0 : index
    %c0_45 = arith.constant 0 : index
    %86 = vector.load %arg3[%c4_43, %c0_44, %c0_45] : memref<8x16x128xf32, #tpu.memory_space<vmem>>, vector<1x16x128xf32>
    %87 = vector.shape_cast %86 : vector<1x16x128xf32> to vector<16x128xf32>
    %88 = vector.shape_cast %85 : vector<16x128xf32> to vector<1x16x128xf32>
    tpu.vector_store %arg3[%c4_43, %c0_44, %c0_45], %88 {strides = array<i32>} : memref<8x16x128xf32, #tpu.memory_space<vmem>>, vector<1x16x128xf32>,
    %c5 = arith.constant 5 : index
    %c0_46 = arith.constant 0 : index
    %c0_47 = arith.constant 0 : index
    %89 = vector.load %arg2[%c5, %c0_46, %c0_47] : memref<8x8x128xbf16, #tpu.memory_space<vmem>>, vector<1x8x128xbf16>
    %90 = vector.shape_cast %89 : vector<1x8x128xbf16> to vector<8x128xbf16>
    %cst_48 = arith.constant dense<0.000000e+00> : vector<16x128xf32>
    %91 = tpu.matmul %3, %90, %cst_48 {dimension_numbers = #tpu.dot_dimension_numbers<[1], [0], [0], [1], [0, 0, 1, 1], [], []>} : vector<16x8xbf16>, vector<8x128xbf16>, vector<16x128xf32> -> vector<16x128xf32>
    %cst_49 = arith.constant -1.000000e+30 : f32
    %92 = vector.broadcast %cst_49 : f32 to vector<16x128xf32>
    %93 = arith.select %2, %91, %92 : vector<16x128xi1>, vector<16x128xf32>
    %cst_50 = arith.constant dense<0xFF800000> : vector<16xf32>
    %94 = vector.multi_reduction <maximumf>, %93, %cst_50 [1] : vector<16x128xf32> to vector<16xf32>
    %95 = vector.shape_cast %94 : vector<16xf32> to vector<16x1xf32>
    %96 = vector.broadcast %95 : vector<16x1xf32> to vector<16x128xf32>
    %97 = arith.subf %93, %96 : vector<16x128xf32>
    %98 = math.exp %97 : vector<16x128xf32>
    %cst_51 = arith.constant dense<0.000000e+00> : vector<16xf32>
    %99 = vector.multi_reduction <add>, %98, %cst_51 [1] : vector<16x128xf32> to vector<16xf32>
    %100 = vector.shape_cast %99 : vector<16xf32> to vector<16x1xf32>
    %101 = vector.broadcast %100 : vector<16x1xf32> to vector<16x128xf32>
    %102 = arith.divf %98, %101 : vector<16x128xf32>
    %c5_52 = arith.constant 5 : index
    %c0_53 = arith.constant 0 : index
    %c0_54 = arith.constant 0 : index
    %103 = vector.load %arg3[%c5_52, %c0_53, %c0_54] : memref<8x16x128xf32, #tpu.memory_space<vmem>>, vector<1x16x128xf32>
    %104 = vector.shape_cast %103 : vector<1x16x128xf32> to vector<16x128xf32>
    %105 = vector.shape_cast %102 : vector<16x128xf32> to vector<1x16x128xf32>
    tpu.vector_store %arg3[%c5_52, %c0_53, %c0_54], %105 {strides = array<i32>} : memref<8x16x128xf32, #tpu.memory_space<vmem>>, vector<1x16x128xf32>,
    %c6 = arith.constant 6 : index
    %c0_55 = arith.constant 0 : index
    %c0_56 = arith.constant 0 : index
    %106 = vector.load %arg2[%c6, %c0_55, %c0_56] : memref<8x8x128xbf16, #tpu.memory_space<vmem>>, vector<1x8x128xbf16>
    %107 = vector.shape_cast %106 : vector<1x8x128xbf16> to vector<8x128xbf16>
    %cst_57 = arith.constant dense<0.000000e+00> : vector<16x128xf32>
    %108 = tpu.matmul %3, %107, %cst_57 {dimension_numbers = #tpu.dot_dimension_numbers<[1], [0], [0], [1], [0, 0, 1, 1], [], []>} : vector<16x8xbf16>, vector<8x128xbf16>, vector<16x128xf32> -> vector<16x128xf32>
    %cst_58 = arith.constant -1.000000e+30 : f32
    %109 = vector.broadcast %cst_58 : f32 to vector<16x128xf32>
    %110 = arith.select %2, %108, %109 : vector<16x128xi1>, vector<16x128xf32>
    %cst_59 = arith.constant dense<0xFF800000> : vector<16xf32>
    %111 = vector.multi_reduction <maximumf>, %110, %cst_59 [1] : vector<16x128xf32> to vector<16xf32>
    %112 = vector.shape_cast %111 : vector<16xf32> to vector<16x1xf32>
    %113 = vector.broadcast %112 : vector<16x1xf32> to vector<16x128xf32>
    %114 = arith.subf %110, %113 : vector<16x128xf32>
    %115 = math.exp %114 : vector<16x128xf32>
    %cst_60 = arith.constant dense<0.000000e+00> : vector<16xf32>
    %116 = vector.multi_reduction <add>, %115, %cst_60 [1] : vector<16x128xf32> to vector<16xf32>
    %117 = vector.shape_cast %116 : vector<16xf32> to vector<16x1xf32>
    %118 = vector.broadcast %117 : vector<16x1xf32> to vector<16x128xf32>
    %119 = arith.divf %115, %118 : vector<16x128xf32>
    %c6_61 = arith.constant 6 : index
    %c0_62 = arith.constant 0 : index
    %c0_63 = arith.constant 0 : index
    %120 = vector.load %arg3[%c6_61, %c0_62, %c0_63] : memref<8x16x128xf32, #tpu.memory_space<vmem>>, vector<1x16x128xf32>
    %121 = vector.shape_cast %120 : vector<1x16x128xf32> to vector<16x128xf32>
    %122 = vector.shape_cast %119 : vector<16x128xf32> to vector<1x16x128xf32>
    tpu.vector_store %arg3[%c6_61, %c0_62, %c0_63], %122 {strides = array<i32>} : memref<8x16x128xf32, #tpu.memory_space<vmem>>, vector<1x16x128xf32>,
    %c7 = arith.constant 7 : index
    %c0_64 = arith.constant 0 : index
    %c0_65 = arith.constant 0 : index
    %123 = vector.load %arg2[%c7, %c0_64, %c0_65] : memref<8x8x128xbf16, #tpu.memory_space<vmem>>, vector<1x8x128xbf16>
    %124 = vector.shape_cast %123 : vector<1x8x128xbf16> to vector<8x128xbf16>
    %cst_66 = arith.constant dense<0.000000e+00> : vector<16x128xf32>
    %125 = tpu.matmul %3, %124, %cst_66 {dimension_numbers = #tpu.dot_dimension_numbers<[1], [0], [0], [1], [0, 0, 1, 1], [], []>} : vector<16x8xbf16>, vector<8x128xbf16>, vector<16x128xf32> -> vector<16x128xf32>
    %cst_67 = arith.constant -1.000000e+30 : f32
    %126 = vector.broadcast %cst_67 : f32 to vector<16x128xf32>
    %127 = arith.select %2, %125, %126 : vector<16x128xi1>, vector<16x128xf32>
    %cst_68 = arith.constant dense<0xFF800000> : vector<16xf32>
    %128 = vector.multi_reduction <maximumf>, %127, %cst_68 [1] : vector<16x128xf32> to vector<16xf32>
    %129 = vector.shape_cast %128 : vector<16xf32> to vector<16x1xf32>
    %130 = vector.broadcast %129 : vector<16x1xf32> to vector<16x128xf32>
    %131 = arith.subf %127, %130 : vector<16x128xf32>
    %132 = math.exp %131 : vector<16x128xf32>
    %cst_69 = arith.constant dense<0.000000e+00> : vector<16xf32>
    %133 = vector.multi_reduction <add>, %132, %cst_69 [1] : vector<16x128xf32> to vector<16xf32>
    %134 = vector.shape_cast %133 : vector<16xf32> to vector<16x1xf32>
    %135 = vector.broadcast %134 : vector<16x1xf32> to vector<16x128xf32>
    %136 = arith.divf %132, %135 : vector<16x128xf32>
    %c7_70 = arith.constant 7 : index
    %c0_71 = arith.constant 0 : index
    %c0_72 = arith.constant 0 : index
    %137 = vector.load %arg3[%c7_70, %c0_71, %c0_72] : memref<8x16x128xf32, #tpu.memory_space<vmem>>, vector<1x16x128xf32>
    %138 = vector.shape_cast %137 : vector<1x16x128xf32> to vector<16x128xf32>
    %139 = vector.shape_cast %136 : vector<16x128xf32> to vector<1x16x128xf32>
    tpu.vector_store %arg3[%c7_70, %c0_71, %c0_72], %139 {strides = array<i32>} : memref<8x16x128xf32, #tpu.memory_space<vmem>>, vector<1x16x128xf32>,
    return
  }
  func.func @transform_0(%arg0: i32) -> (i32, i32) {
    %c0_i32 = arith.constant 0 : i32
    %c0_i32_0 = arith.constant 0 : i32
    %c0_i32_1 = arith.constant 0 : i32
    return %c0_i32, %c0_i32_0 : i32, i32
  }
  func.func @transform_1(%arg0: i32) -> (i32, i32, i32) {
    %c0_i32 = arith.constant 0 : i32
    %c0_i32_0 = arith.constant 0 : i32
    %c0_i32_1 = arith.constant 0 : i32
    return %arg0, %c0_i32, %c0_i32_0 : i32, i32, i32
  }
  func.func @transform_2(%arg0: i32) -> (i32, i32, i32) {
    %c0_i32 = arith.constant 0 : i32
    %c0_i32_0 = arith.constant 0 : i32
    %c0_i32_1 = arith.constant 0 : i32
    return %arg0, %c0_i32, %c0_i32_0 : i32, i32, i32
  }
}

</mosaic_0001>

<bundles_post_ra>
// kernel: clip_ocr_forward.9
= control target key start
LH: loop header
LB: loop body
LE: loop exit
PB: predicated region body
PF: predicated region fallthrough
CT: control target
= control target key end

     0   :  { %s2048_s27 = smov 0   ;;  %s2050_s28 = smov 0   ;;  %s2231_s0 = inlined_call_operand.vmem [shape: bf16[3,64,32], index: 0, kind: input, shape index: {}]   ;;  %s2232_s1 = inlined_call_operand.vmem [shape: bf16[1,128,16], index: 1, kind: input, shape index: {}]   ;;  %s2233_s2 = inlined_call_operand.vmem [shape: bf16[1,128,16], index: 2, kind: input, shape index: {}]   ;;  %s2234_s3 = inlined_call_operand.vmem [shape: bf16[32,16], index: 3, kind: input, shape index: {}]   ;;  %s2235_s4 = inlined_call_operand.vmem [shape: f32[1,16], index: 4, kind: input, shape index: {}]   ;;  %s2236_s5 = inlined_call_operand.vmem [shape: f32[1,16], index: 5, kind: input, shape index: {}]   ;;  %s2237_s6 = inlined_call_operand.vmem [shape: bf16[16,16], index: 6, kind: input, shape index: {}]   ;;  %s2238_s7 = inlined_call_operand.vmem [shape: f32[1,16], index: 7, kind: input, shape index: {}]   ;;  %s2239_s8 = inlined_call_operand.vmem [shape: f32[1,16], index: 8, kind: input, shape index: {}]   ;;  %s2240_s9 = inlined_call_operand.vmem [shape: bf16[16,32], index: 9, kind: input, shape index: {}]   ;;  %s2241_s10 = inlined_call_operand.vmem [shape: f32[1,32], index: 10, kind: input, shape index: {}]   ;;  %s2242_s11 = inlined_call_operand.vmem [shape: f32[1,32], index: 11, kind: input, shape index: {}]   ;;  %s2243_s12 = inlined_call_operand.vmem [shape: bf16[32,32], index: 12, kind: input, shape index: {}]   ;;  %s2244_s13 = inlined_call_operand.vmem [shape: bf16[32,32], index: 13, kind: input, shape index: {}]   ;;  %s2245_s14 = inlined_call_operand.vmem [shape: f32[1,32], index: 14, kind: input, shape index: {}]   ;;  %s2246_s15 = inlined_call_operand.vmem [shape: f32[1,32], index: 15, kind: input, shape index: {}]   ;;  %s2247_s16 = inlined_call_operand.vmem [shape: bf16[32,128], index: 16, kind: input, shape index: {}]   ;;  %s2248_s17 = inlined_call_operand.vmem [shape: f32[1,128], index: 17, kind: input, shape index: {}]   ;;  %s2249_s18 = inlined_call_operand.vmem [shape: bf16[1,64,128], index: 18, kind: output, shape index: {}]  }
   0x1   :  { %2252 = sst [smem:[#allocation2_spill]] %s2231_s0  ;;  %s2052_s29 = smov 0  }
   0x2   :  { %2253 = sst [smem:[#allocation3_spill]] %s2232_s1 }
   0x3   :  { %2254 = sst [smem:[#allocation4_spill]] %s2233_s2 }
   0x4 LB: > { %s37_s30 = sadd.s32 1, %s1947_s28  ;;  %p1644_p0 = scmp.ge.s32.totalorder %s1951_s29, 1  ;;  %s1951_s29 = sphi %s2052_s29, %s28_s29   ;;  %s1947_s28 = sphi %s2050_s28, %s2259_s28   ;;  %s1943_s27 = sphi %s2048_s27, %s2258_s27  }
   0x5   : > { %p38_p1 = scmp.ge.s32.totalorder %s37_s30, 2  ;;  %p557_p2 = scmp.lt.s32.totalorder %s1951_s29, 3 }
   0x7   : > { %s2261_s30 = smov (%p38_p1, %s37_s30), 0  ;;  %p558_p3 = pnand %p1644_p0, %p557_p2 }
   0x8   : > { %v1885_v0 = vld [vmem:[%s2234_s3] sm:$0xff] (!%p558_p3)   ;;  %s1645_s1 = sshll.u32 (!%p558_p3), %s1943_s27, 2  ;;  %v1886_v1 = vld [vmem:[%s2234_s3 + $0x8] sm:$0xff] (!%p558_p3)   ;;  %vm693_vm0 = vcmask (!%p558_p3), 261120   ;;  %s2255_s25 = sld [smem:[#allocation2_spill]] (!%p558_p3)  ;;  %vm785_vm1 = vcmask (!%p558_p3), 130048   ;;  %v1008_v61 = vlaneseq (!%p558_p3) }
   0x9   : > { %561 = sbr.rel (%p558_p3) target bundleno = 1894 (0x766), region = 92  ;;  %p634_p4 = scmp.lt.s32.totalorder (!%p558_p3), %s1645_s1, 7  ;;  %1765 = vmatprep.subr.bf16.mxu0 (!%p558_p3), %v1885_v0  ;;  %v1889_v4 = vld [vmem:[%s2237_s6] sm:$0xff] (!%p558_p3)  }
   0xa   : > { %1766 = vmatpush3.bf16.msra.mxu0 (!%p558_p3), %v1885_v0  ;;  %1773 = vmatprep.subr.bf16.mxu1 (!%p558_p3), %v1889_v4  ;;  %s2256_s21 = sld [smem:[#allocation3_spill]] (!%p558_p3)  ;;  %v1655_v6 = vld [vmem:[%s2235_s4] ss:$0 sm:$0xff] (!%p558_p3)  ;;  %v1009_v62 = vand.u32 (!%p558_p3), 127, %v1008_v61  ;;  %s2257_s0 = sld [smem:[#allocation4_spill]] (!%p558_p3)  ;;  %v1910_v61 = vld [vmem:[%s2243_s12 + $0x8] sm:$0xff] (!%p558_p3)  }
   0xb   : > { %1767 = vmatprep.subr.bf16.mxu0 (!%p558_p3), %v1886_v1  ;;  %1774 = vmatpush3.bf16.msra.mxu1 (!%p558_p3), %v1889_v4  ;;  %v1656_v8 = vld [vmem:[%s2236_s5] ss:$0 sm:$0xff] (!%p558_p3) }
   0xc   : > { %v1660_v41 = vld [vmem:[%s2238_s7] ss:$0 sm:$0xff] (!%p558_p3)  ;;  %vm1010_vm2 = vcmp.lt.s32.totalorder (!%p558_p3), %v1009_v62, 8 }
   0xd   : > { %v1661_v43 = vld [vmem:[%s2239_s8] ss:$0 sm:$0xff] (!%p558_p3) }
   0xe   : > { %1768 = vmatpush3.bf16.msra.mxu0 (!%p558_p3), %v1886_v1 }
  0x10   : > { %s2263_s1 = smov (!%p634_p4, %s1645_s1), 7  ;;  %v1890_v5 = vld [vmem:[%s2256_s21] sm:$0xff]   ;;  %v1891_v27 = vld [vmem:[%s2256_s21 + $0x8] sm:$0xff]   ;;  %v1892_v29 = vld [vmem:[%s2256_s21 + $0x10] sm:$0xff]  }
  0x11   : > { %s1706_s22 = sshll.u32 %s2263_s1, 2  ;;  %1853 = vmatprep.subr.msk.bf16.mxu1 %vm785_vm1, %v1890_v5  ;;  %v932_v26 = vsel %vm785_vm1, %v1890_v5, 0  ;;  %v935_v28 = vsel %vm785_vm1, %v1891_v27, 0  ;;  %v938_v30 = vsel %vm785_vm1, %v1892_v29, 0  ;;  %v1893_v31 = vld [vmem:[%s2256_s21 + $0x18] sm:$0xff]   ;;  %v1894_v33 = vld [vmem:[%s2256_s21 + $0x20] sm:$0xff]  }
  0x12   : > { %s1707_s2 = sadd.s32 64, %s1706_s22  ;;  %v941_v32 = vsel %vm785_vm1, %v1893_v31, 0  ;;  %v944_v34 = vsel %vm785_vm1, %v1894_v33, 0  ;;  %v1895_v35 = vld [vmem:[%s2256_s21 + $0x28] sm:$0xff]   ;;  %v1896_v37 = vld [vmem:[%s2256_s21 + $0x30] sm:$0xff]   ;;  %v1897_v39 = vld [vmem:[%s2256_s21 + $0x38] sm:$0xff]   ;;  %s660_s19 = scalar_lea.vmem %s2249_s18, %s1706_s22 }
  0x13   : > { %s639_s26 = scalar_lea.vmem %s2255_s25, %s1707_s2  ;;  %v947_v36 = vsel %vm785_vm1, %v1895_v35, 0  ;;  %v950_v38 = vsel %vm785_vm1, %v1896_v37, 0  ;;  %v953_v40 = vsel %vm785_vm1, %v1897_v39, 0 }
  0x14   : > { %v2080_v2 = vld [vmem:[%s639_s26] sm:$0xff]   ;;  %v2082_v3 = vld [vmem:[%s639_s26 + $0x8] sm:$0xff]  }
  0x15   : > { %1769 = vmatprep.mubr.msk.bf16.mxu0 %vm693_vm0, %v2080_v2 }
  0x16   : > { %1770 = vmatmul.mubr.msk.bf16.vlgmr.msra.gmra.mrb[0].mxu0 %vm693_vm0, %v2082_v3 }
  0xe9   : > { %v1771_v7 = vpop.f32.mrb[0].mxu0 }
  0xea   : > { %v758_v9 = vmul.f32 %v1771_v7, %v1655_v6  ;;  %v734_v10 = vpop.f32.mrb[1].mxu0 }
  0xeb   : > { %v756_v11 = vmul.f32 %v1655_v6, %v734_v10  ;;  %v1772_v12 = vpop.f32.mrb[2].mxu0 }
  0xec   : > { %v769_v13 = vadd.f32 %v1656_v8, %v758_v9  ;;  %v759_v14 = vmul.f32 %v1772_v12, %v1655_v6  ;;  %v737_v15 = vpop.f32.mrb[3].mxu0 }
  0xed   : > { %v767_v16 = vadd.f32 %v1656_v8, %v756_v11  ;;  %v757_v17 = vmul.f32 %v1655_v6, %v737_v15  ;;  %v1900_v15 = vld [vmem:[%s2257_s0 + $0x10] sm:$0xff]  }
  0xee   : > { %v770_v18 = vadd.f32 %v1656_v8, %v759_v14  ;;  %v773_v20 = vmax.f32 %v769_v13, 0.0  ;;  %v1898_v13 = vld [vmem:[%s2257_s0] sm:$0xff]   ;;  %v1899_v14 = vld [vmem:[%s2257_s0 + $0x8] sm:$0xff]  }
  0xef   : > { %v768_v19 = vadd.f32 %v1656_v8, %v757_v17  ;;  %v771_v22 = vmax.f32 %v767_v16, 0.0  ;;  %1799 = vmatprep.subr.bf16.mxu0 %v1898_v13 }
  0xf0   : > { %v774_v21 = vmax.f32 %v770_v18, 0.0  ;;  %1800 = vmatpush3.bf16.msra.mxu0 %v1898_v13 }
  0xf1   : > { %v772_v23 = vmax.f32 %v768_v19, 0.0  ;;  %1801 = vmatprep.subr.bf16.mxu0 %v1899_v14 }
  0xf2   : > { %v776_v24 = vpack.c.bf16 %v774_v21, %v773_v20 }
  0xf3   : > { %v775_v25 = vpack.c.bf16 %v772_v23, %v771_v22 }
  0xf4   : > { %1802 = vmatpush3.bf16.msra.mxu0 %v1899_v14 }
  0xf5   : > { %1775 = vmatprep.mubr.msk.bf16.mxu1 %vm785_vm1, %v775_v25  ;;  %1803 = vmatprep.subr.bf16.mxu0 %v1900_v15 }
  0xf6   : > { %1776 = vmatmul.mubr.msk.bf16.vlgmr.msra.gmra.mrb[0].mxu1 %vm785_vm1, %v776_v24 }
  0xf7   : > { %1780 = vmatpush3.bf16.xpose.msra.mxu1 %v932_v26 }
  0xf8   : > { %1854 = vmatprep.subr.msk.bf16.mxu1 %vm785_vm1, %v1891_v27  ;;  %1804 = vmatpush3.bf16.msra.mxu0 %v1900_v15 }
  0xff   : > { %1782 = vmatpush3.bf16.xpose.msra.mxu1 %v935_v28 }
 0x100   : > { %1855 = vmatprep.subr.msk.bf16.mxu1 %vm785_vm1, %v1892_v29 }
 0x107   : > { %1784 = vmatpush3.bf16.xpose.msra.mxu1 %v938_v30 }
 0x108   : > { %1856 = vmatprep.subr.msk.bf16.mxu1 %vm785_vm1, %v1893_v31 }
 0x10f   : > { %1786 = vmatpush3.bf16.xpose.msra.mxu1 %v941_v32  ;;  %v1901_v32 = vld [vmem:[%s2257_s0 + $0x18] sm:$0xff]  }
 0x110   : > { %1857 = vmatprep.subr.msk.bf16.mxu1 %vm785_vm1, %v1894_v33  ;;  %1805 = vmatprep.subr.bf16.mxu0 %v1901_v32  ;;  %v1902_v33 = vld [vmem:[%s2257_s0 + $0x20] sm:$0xff]  }
 0x111   : > { %1806 = vmatpush3.bf16.msra.mxu0 %v1901_v32 }
 0x112   : > { %1807 = vmatprep.subr.bf16.mxu0 %v1902_v33 }
 0x115   : > { %1808 = vmatpush3.bf16.msra.mxu0 %v1902_v33 }
 0x117   : > { %1788 = vmatpush3.bf16.xpose.msra.mxu1 %v944_v34  ;;  %v1903_v34 = vld [vmem:[%s2257_s0 + $0x28] sm:$0xff]  }
 0x118   : > { %1858 = vmatprep.subr.msk.bf16.mxu1 %vm785_vm1, %v1895_v35  ;;  %v1904_v35 = vld [vmem:[%s2257_s0 + $0x30] sm:$0xff]   ;;  %1809 = vmatprep.subr.bf16.mxu0 %v1903_v34 }
 0x119   : > { %1810 = vmatpush3.bf16.msra.mxu0 %v1903_v34 }
 0x11a   : > { %1811 = vmatprep.subr.bf16.mxu0 %v1904_v35 }
 0x11d   : > { %1812 = vmatpush3.bf16.msra.mxu0 %v1904_v35 }
 0x11f   : > { %1790 = vmatpush3.bf16.xpose.msra.mxu1 %v947_v36  ;;  %v1905_v36 = vld [vmem:[%s2257_s0 + $0x38] sm:$0xff]  }
 0x120   : > { %1859 = vmatprep.subr.msk.bf16.mxu1 %vm785_vm1, %v1896_v37  ;;  %1813 = vmatprep.subr.bf16.mxu0 %v1905_v36  ;;  %v1906_v37 = vld [vmem:[%s2240_s9] sm:$0xff]  }
 0x121   : > { %1814 = vmatpush3.bf16.msra.mxu0 %v1905_v36 }
 0x122   : > { %1819 = vmatprep.subr.bf16.mxu0 %v1906_v37 }
 0x127   : > { %1792 = vmatpush3.bf16.xpose.msra.mxu1 %v950_v38 }
 0x128   : > { %1860 = vmatprep.subr.msk.bf16.mxu1 %vm785_vm1, %v1897_v39 }
 0x12f   : > { %1794 = vmatpush3.bf16.xpose.msra.mxu1 %v953_v40 }
 0x1c9   : > { %v1777_v42 = vpop.f32.mrb[0].mxu1 }
 0x1ca   : > { %v850_v44 = vmul.f32 %v1777_v42, %v1660_v41  ;;  %v826_v45 = vpop.f32.mrb[1].mxu1 }
 0x1cb   : > { %v848_v46 = vmul.f32 %v1660_v41, %v826_v45  ;;  %v1778_v47 = vpop.f32.mrb[2].mxu1 }
 0x1cc   : > { %v861_v48 = vadd.f32 %v1661_v43, %v850_v44  ;;  %v851_v49 = vmul.f32 %v1778_v47, %v1660_v41  ;;  %v829_v50 = vpop.f32.mrb[3].mxu1 }
 0x1cd   : > { %v859_v51 = vadd.f32 %v1661_v43, %v848_v46  ;;  %v849_v52 = vmul.f32 %v1660_v41, %v829_v50 }
 0x1ce   : > { %v862_v53 = vadd.f32 %v1661_v43, %v851_v49  ;;  %v865_v55 = vmax.f32 %v861_v48, 0.0 }
 0x1cf   : > { %v860_v54 = vadd.f32 %v1661_v43, %v849_v52  ;;  %v863_v57 = vmax.f32 %v859_v51, 0.0  ;;  %v1907_v52 = vld [vmem:[%s2244_s13] sm:$0xff]  }
 0x1d0   : > { %v866_v56 = vmax.f32 %v862_v53, 0.0 }
 0x1d1   : > { %v864_v58 = vmax.f32 %v860_v54, 0.0 }
 0x1d2   : > { %v868_v59 = vpack.c.bf16 %v866_v56, %v865_v55 }
 0x1d3   : > { %v867_v60 = vpack.c.bf16 %v864_v58, %v863_v57 }
 0x1d5   : > { %1795 = vmatprep.mubr.msk.bf16.mxu1 %vm785_vm1, %v867_v60  ;;  %v1909_v60 = vld [vmem:[%s2243_s12] sm:$0xff]  }
 0x1d6   : > { %1796 = vmatmul.mubr.msk.bf16.vlgmr.msra.gmra.mrb[4].mxu1 %vm785_vm1, %v868_v59  ;;  %v1908_v59 = vld [vmem:[%s2244_s13 + $0x8] sm:$0xff]  }
 0x2a9   : > { %v1797_v63 = vpop.f32.mrb[4].mxu1 }
 0x2aa   : > { %v1006_v0 = vmul.f32 0.25, %v1797_v63  ;;  %v989_v1 = vpop.f32.mrb[5].mxu1 }
 0x2ab   : > { %v1004_v4 = vmul.f32 0.25, %v989_v1  ;;  %v1798_v5 = vpop.f32.mrb[6].mxu1 }
 0x2ac   : > { %v1007_v6 = vmul.f32 0.25, %v1798_v5  ;;  %v992_v7 = vpop.f32.mrb[7].mxu1  ;;  %v1013_v8 = vsel %vm1010_vm2, %v1006_v0, -1e+30 }
 0x2ad   : > { %v1005_v9 = vmul.f32 0.25, %v992_v7  ;;  %1019 = vmax.xlane.f32.xlu1 %v1013_v8  ;;  %v1011_v10 = vsel %vm1010_vm2, %v1004_v4, -1e+30 }
 0x2ae   : > { %1015 = vmax.xlane.f32.xlu0 %v1011_v10  ;;  %v1014_v11 = vsel %vm1010_vm2, %v1007_v6, -1e+30 }
 0x2af   : > { %v1012_v12 = vsel %vm1010_vm2, %v1005_v9, -1e+30 }
 0x2b1   : > { %1021 = vmax.xlane.f32.xlu1 %v1014_v11 }
 0x2b2   : > { %1017 = vmax.xlane.f32.xlu0 %v1012_v12 }
 0x33a   : > { %v1020_v16 = vpop.xlane.xlu1 %1019 }
 0x33b   : > { %v1025_v17 = vsub.f32 %v1013_v8, %v1020_v16  ;;  %v1016_v18 = vpop.xlane.xlu0 %1015 }
 0x33c   : > { %v1023_v19 = vsub.f32 %v1011_v10, %v1016_v18  ;;  %v1911_v18 = vld [vmem:[%s2247_s16] sm:$0xff]  }
 0x33d   : > { %v1031_v22 = vmul.f32 1.442695, %v1025_v17 }
 0x33e   : > { %v1027_v20 = vmul.f32 1.442695, %v1023_v19  ;;  %v1022_v21 = vpop.xlane.xlu1 %1021  ;;  %v1912_v19 = vld [vmem:[%s2247_s16 + $0x8] sm:$0xff]  }
 0x33f   : > { %v1018_v23 = vpop.xlane.xlu0 %1017  ;;  %v1026_v24 = vsub.f32 %v1014_v11, %v1022_v21 }
 0x340   : > { %1913 = vpow2.f32 %v1027_v20  ;;  %v1024_v25 = vsub.f32 %v1012_v12, %v1018_v23  ;;  %v1693_v20 = vld [vmem:[%s2245_s14] ss:$0 sm:$0xff] }
 0x341   : > { %1915 = vpow2.f32 %v1031_v22  ;;  %v1033_v27 = vmul.f32 1.442695, %v1026_v24  ;;  %v1694_v22 = vld [vmem:[%s2246_s15] ss:$0 sm:$0xff] }
 0x342   : > { %v1029_v26 = vmul.f32 1.442695, %v1024_v25 }
 0x344   : > { %1917 = vpow2.f32 %v1029_v26 }
 0x345   : > { %1919 = vpow2.f32 %v1033_v27 }
 0x34a   : > { %v1914_v28 = vpop.eup %1913 }
 0x34b   : > { %1035 = vadd.xlane.f32.xlu0 %v1914_v28  ;;  %v1916_v29 = vpop.eup %1915 }
 0x34e   : > { %v1918_v30 = vpop.eup %1917 }
 0x34f   : > { %1039 = vadd.xlane.f32.xlu0 %v1916_v29  ;;  %1037 = vadd.xlane.f32.xlu1 %v1918_v30  ;;  %v1920_v31 = vpop.eup %1919 }
 0x353   : > { %1041 = vadd.xlane.f32.xlu1 %v1920_v31 }
 0x3d8   : > { %v1036_v38 = vpop.xlane.xlu0 %1035 }
 0x3d9   : > { %1921 = vrcp.f32 %v1036_v38 }
 0x3dc   : > { %v1038_v39 = vpop.xlane.xlu1 %1037  ;;  %v1040_v40 = vpop.xlane.xlu0 %1039 }
 0x3dd   : > { %1923 = vrcp.f32 %v1038_v39 }
 0x3de   : > { %1925 = vrcp.f32 %v1040_v40 }
 0x3e0   : > { %v1042_v41 = vpop.xlane.xlu1 %1041 }
 0x3e1   : > { %1927 = vrcp.f32 %v1042_v41  ;;  %v1695_v41 = vld [vmem:[%s2248_s17] ss:$0 sm:$0xff] }
 0x3e3   : > { %v1922_v42 = vpop.eup %1921 }
 0x3e4   : > { %v1047_v44 = vmul.f32 %v1922_v42, %v1914_v28 }
 0x3e7   : > { %v1924_v43 = vpop.eup %1923 }
 0x3e8   : > { %v1048_v45 = vmul.f32 %v1924_v43, %v1918_v30  ;;  %v1926_v46 = vpop.eup %1925 }
 0x3e9   : > { %v1049_v49 = vmul.f32 %v1926_v46, %v1916_v29 }
 0x3ea   : > { %v1051_v47 = vpack.c.bf16 %v1048_v45, %v1047_v44 }
 0x3eb   : > { %v1928_v48 = vpop.eup %1927 }
 0x3ec   : > { %1815 = vmatprep.mubr.bf16.mxu0 %v1051_v47  ;;  %v1050_v50 = vmul.f32 %v1928_v48, %v1920_v31 }
 0x3ee   : > { %v1052_v51 = vpack.c.bf16 %v1050_v50, %v1049_v49 }
 0x3f0   : > { %1816 = vmatmul.mubr.bf16.vlgmr.msra.gmra.mrb[4].mxu0 %v1052_v51 }
 0x3f1   : > { %1820 = vmatpush3.bf16.msra.mxu0 %v1906_v37 }
 0x3f2   : > { %1825 = vmatprep.subr.bf16.mxu0 %v1907_v52 }
 0x4c3   : > { %v1817_v53 = vpop.f32.mrb[4].mxu0 }
 0x4c4   : > { %v1151_v54 = vpop.f32.mrb[5].mxu0 }
 0x4c5   : > { %v1818_v55 = vpop.f32.mrb[6].mxu0 }
 0x4c6   : > { %v1167_v56 = vpack.c.bf16 %v1818_v55, %v1817_v53  ;;  %v1154_v57 = vpop.f32.mrb[7].mxu0 }
 0x4c7   : > { %v1166_v58 = vpack.c.bf16 %v1154_v57, %v1151_v54 }
 0x4c9   : > { %1821 = vmatprep.mubr.msk.bf16.mxu0 %vm785_vm1, %v1166_v58 }
 0x4ca   : > { %1822 = vmatmul.mubr.msk.bf16.vlgmr.msra.gmra.mrb[8].mxu0 %vm785_vm1, %v1167_v56 }
 0x4cb   : > { %1826 = vmatpush3.bf16.msra.mxu0 %v1907_v52  ;;  %1829 = vmatprep.mubr.msk.bf16.mxu0 %vm693_vm0, %v2080_v2  ;;  %v1683_v2 = vld [vmem:[%s2241_s10] ss:$0 sm:$0xff] }
 0x4cc   : > { %1827 = vmatprep.subr.bf16.mxu0 %v1908_v59 }
 0x4cf   : > { %1828 = vmatpush3.bf16.msra.mxu0 %v1908_v59 }
 0x4d0   : > { %1833 = vmatprep.subr.bf16.mxu0 %v1909_v60 }
 0x4d2   : > { %1830 = vmatmul.mubr.msk.bf16.vlgmr.msra.gmra.mrb[12].mxu0 %vm693_vm0, %v2082_v3  ;;  %v1684_v3 = vld [vmem:[%s2242_s11] ss:$0 sm:$0xff] }
 0x4d3   : > { %1834 = vmatpush3.bf16.msra.mxu0 %v1909_v60 }
 0x4d4   : > { %1835 = vmatprep.subr.bf16.mxu0 %v1910_v61 }
 0x4d7   : > { %1836 = vmatpush3.bf16.msra.mxu0 %v1910_v61 }
 0x4d8   : > { %1841 = vmatprep.subr.bf16.mxu0 %v1911_v18 }
 0x59d   : > { %v1823_v62 = vpop.f32.mrb[8].mxu0 }
 0x59e   : > { %v1240_v63 = vmul.f32 %v1823_v62, %v1683_v2  ;;  %v1216_v0 = vpop.f32.mrb[9].mxu0 }
 0x59f   : > { %v1238_v1 = vmul.f32 %v1683_v2, %v1216_v0  ;;  %v1824_v4 = vpop.f32.mrb[10].mxu0 }
 0x5a0   : > { %v1251_v5 = vadd.f32 %v1684_v3, %v1240_v63  ;;  %v1241_v6 = vmul.f32 %v1824_v4, %v1683_v2  ;;  %v1219_v7 = vpop.f32.mrb[11].mxu0 }
 0x5a1   : > { %v1249_v8 = vadd.f32 %v1684_v3, %v1238_v1  ;;  %v1239_v9 = vmul.f32 %v1683_v2, %v1219_v7 }
 0x5a2   : > { %v1252_v10 = vadd.f32 %v1684_v3, %v1241_v6  ;;  %v1255_v12 = vmax.f32 %v1251_v5, 0.0 }
 0x5a3   : > { %v1250_v11 = vadd.f32 %v1684_v3, %v1239_v9  ;;  %v1253_v14 = vmax.f32 %v1249_v8, 0.0 }
 0x5a4   : > { %v1256_v13 = vmax.f32 %v1252_v10, 0.0 }
 0x5a5   : > { %v1254_v15 = vmax.f32 %v1250_v11, 0.0 }
 0x5a6   : > { %v1258_v16 = vpack.c.bf16 %v1256_v13, %v1255_v12 }
 0x5a7   : > { %v1257_v17 = vpack.c.bf16 %v1254_v15, %v1253_v14 }
 0x5a9   : > { %1837 = vmatprep.mubr.msk.bf16.mxu0 %vm693_vm0, %v1257_v17 }
 0x5aa   : > { %1838 = vmatmul.mubr.msk.bf16.vlgmr.msra.gmra.mrb[12].mxu0 %vm693_vm0, %v1258_v16 }
 0x5ab   : > { %1842 = vmatpush3.bf16.msra.mxu0 %v1911_v18 }
 0x5ac   : > { %1843 = vmatprep.subr.bf16.mxu0 %v1912_v19 }
 0x5af   : > { %1844 = vmatpush3.bf16.msra.mxu0 %v1912_v19 }
 0x67d   : > { %v1839_v21 = vpop.f32.mrb[12].mxu0 }
 0x67e   : > { %v1404_v23 = vmul.f32 %v1839_v21, %v1693_v20  ;;  %v1380_v24 = vpop.f32.mrb[13].mxu0 }
 0x67f   : > { %v1402_v25 = vmul.f32 %v1693_v20, %v1380_v24  ;;  %v1840_v26 = vpop.f32.mrb[14].mxu0 }
 0x680   : > { %v1415_v27 = vadd.f32 %v1694_v22, %v1404_v23  ;;  %v1405_v28 = vmul.f32 %v1840_v26, %v1693_v20  ;;  %v1383_v29 = vpop.f32.mrb[15].mxu0 }
 0x681   : > { %v1413_v30 = vadd.f32 %v1694_v22, %v1402_v25  ;;  %v1403_v31 = vmul.f32 %v1693_v20, %v1383_v29 }
 0x682   : > { %v1416_v32 = vadd.f32 %v1694_v22, %v1405_v28  ;;  %v1419_v34 = vmax.f32 %v1415_v27, 0.0 }
 0x683   : > { %v1414_v33 = vadd.f32 %v1694_v22, %v1403_v31  ;;  %v1417_v36 = vmax.f32 %v1413_v30, 0.0 }
 0x684   : > { %v1420_v35 = vmax.f32 %v1416_v32, 0.0 }
 0x685   : > { %v1418_v37 = vmax.f32 %v1414_v33, 0.0 }
 0x686   : > { %v1422_v38 = vpack.c.bf16 %v1420_v35, %v1419_v34 }
 0x687   : > { %v1421_v39 = vpack.c.bf16 %v1418_v37, %v1417_v36 }
 0x689   : > { %1845 = vmatprep.mubr.msk.bf16.mxu0 %vm693_vm0, %v1421_v39 }
 0x68a   : > { %1846 = vmatmul.mubr.msk.bf16.vlgmr.msra.gmra.mrb[16].mxu0 %vm693_vm0, %v1422_v38 }
 0x75d   : > { %v1847_v40 = vpop.f32.mrb[16].mxu0 }
 0x75e   : > { %v1486_v42 = vpop.f32.mrb[17].mxu0  ;;  %v1495_v44 = vadd.f32 %v1847_v40, %v1695_v41 }
 0x75f   : > { %v1848_v43 = vpop.f32.mrb[18].mxu0  ;;  %v1487_v47 = vadd.f32 %v1695_v41, %v1486_v42 }
 0x760   : > { %v1498_v45 = vadd.f32 %v1848_v43, %v1695_v41  ;;  %v1489_v46 = vpop.f32.mrb[19].mxu0 }
 0x761   : > { %v1490_v48 = vadd.f32 %v1695_v41, %v1489_v46 }
 0x762   : > { %v1720_v49 = vpack.c.bf16 %v1498_v45, %v1495_v44 }
 0x763   : > { %v1715_v50 = vpack.c.bf16 %v1490_v48, %v1487_v47 }
 0x764   : > { %1722 = vst [vmem:[%s660_s19 + $0x8] sm:$0xff] %v1720_v49  }
 0x765   : > { %1716 = vst [vmem:[%s660_s19] sm:$0xff] %v1715_v50  }
 0x766 PF: > { %s28_s29 = sadd.s32 1, %s1951_s29   ;;  %s2258_s27 = smov %s1947_s28 }
 0x767   : > { %p25_p5 = scmp.ge.s32.totalorder %s28_s29, 4   ;;  %s2259_s28 = smov %s2261_s30 }
 0x769   :  { %27 = sbr.rel (!%p25_p5) target bundleno = 4 (0x4), region = 128 }

// kernel: clip_ocr_forward.8
= control target key start
LH: loop header
LB: loop body
LE: loop exit
PB: predicated region body
PF: predicated region fallthrough
CT: control target
= control target key end

     0   :  { %s2831_s21 = smov 0   ;;  %s2833_s22 = smov 0   ;;  %s3593_s0 = inlined_call_operand.vmem [shape: bf16[3,64,128], index: 0, kind: input, shape index: {}]   ;;  %s3594_s1 = inlined_call_operand.vmem [shape: bf16[3,64,32], index: 1, kind: input, shape index: {}]   ;;  %s3595_s2 = inlined_call_operand.vmem [shape: bf16[32,16], index: 2, kind: input, shape index: {}]   ;;  %s3596_s3 = inlined_call_operand.vmem [shape: f32[1,16], index: 3, kind: input, shape index: {}]   ;;  %s3597_s4 = inlined_call_operand.vmem [shape: f32[1,16], index: 4, kind: input, shape index: {}]   ;;  %s3598_s5 = inlined_call_operand.vmem [shape: bf16[16,16], index: 5, kind: input, shape index: {}]   ;;  %s3599_s6 = inlined_call_operand.vmem [shape: f32[1,16], index: 6, kind: input, shape index: {}]   ;;  %s3600_s7 = inlined_call_operand.vmem [shape: f32[1,16], index: 7, kind: input, shape index: {}]   ;;  %s3601_s8 = inlined_call_operand.vmem [shape: bf16[32,16], index: 8, kind: input, shape index: {}]   ;;  %s3602_s9 = inlined_call_operand.vmem [shape: f32[1,16], index: 9, kind: input, shape index: {}]   ;;  %s3603_s10 = inlined_call_operand.vmem [shape: f32[1,16], index: 10, kind: input, shape index: {}]   ;;  %s3604_s11 = inlined_call_operand.vmem [shape: bf16[1,128,16], index: 11, kind: output, shape index: {0}]   ;;  %s3605_s12 = inlined_call_operand.vmem [shape: bf16[1,128,16], index: 12, kind: output, shape index: {1}]  }
   0x1   :  { %s2835_s23 = smov 0  }
   0x2 LB: > { %s38_s24 = sadd.s32 1, %s2756_s22  ;;  %p2322_p0 = scmp.ge.s32.totalorder %s2760_s23, 1  ;;  %s2760_s23 = sphi %s2835_s23, %s23_s23   ;;  %s2756_s22 = sphi %s2833_s22, %s3607_s22   ;;  %s2752_s21 = sphi %s2831_s21, %s3606_s21  }
   0x3   : > { %p40_p1 = scmp.ge.s32.totalorder %s38_s24, 3  ;;  %p416_p2 = scmp.lt.s32.totalorder %s2760_s23, 4 }
   0x5   : > { %s3609_s24 = smov (%p40_p1, %s38_s24), 0  ;;  %p417_p3 = pnand %p2322_p0, %p416_p2 }
   0x6   : > { %p480_p4 = scmp.lt.s32.totalorder (!%p417_p3), %s2752_s21, 2  ;;  %p513_p5 = scmp.eq.s32.totalorder (!%p417_p3), %s2752_s21, 0 }
   0x7   : > { %420 = sbr.rel (%p417_p3) target bundleno = 1339 (0x53b), region = 64 }
   0xe   : > { %s481_s25 = scalar_select %p480_p4, %s2752_s21, 2 }
   0xf   : > { %518 = sbr.rel (!%p513_p5) target bundleno = 40 (0x28), region = 68  ;;  %vm519_vm0 = vcmask (%p513_p5), 7168   ;;  %vm552_vm1 = vcmask (%p513_p5), 261120   ;;  %v2762_v0 = vmov (%p513_p5), -1e+30   ;;  %v2763_v1 = vmov (%p513_p5), 0.0  }
  0x10   : > { %s2412_s26 = sshll.u32 %s481_s25, 5  ;;  %520 = vst.msk [vmem:[#allocation3] sm:$0xff] (%p513_p5), %vm519_vm0, %v2762_v0  ;;  %521 = vst.msk [vmem:[#allocation3 + $0x8] sm:$0xff] (%p513_p5), %vm519_vm0, %v2762_v0 }
  0x11   : > { %s2857_s29 = scalar_lea.vmem %s3593_s0, %s2412_s26  ;;  %s2862_s14 = scalar_lea.vmem %s3594_s1, %s2412_s26  ;;  %522 = vst.msk [vmem:[#allocation3 + $0x10] sm:$0xff] (%p513_p5), %vm519_vm0, %v2762_v0  ;;  %523 = vst.msk [vmem:[#allocation3 + $0x18] sm:$0xff] (%p513_p5), %vm519_vm0, %v2762_v0 }
  0x12   : > { %524 = vst.msk [vmem:[#allocation3 + $0x20] sm:$0xff] (%p513_p5), %vm519_vm0, %v2762_v0  ;;  %525 = vst.msk [vmem:[#allocation3 + $0x28] sm:$0xff] (%p513_p5), %vm519_vm0, %v2762_v0 }
  0x13   : > { %526 = vst.msk [vmem:[#allocation3 + $0x30] sm:$0xff] (%p513_p5), %vm519_vm0, %v2762_v0  ;;  %527 = vst.msk [vmem:[#allocation3 + $0x38] sm:$0xff] (%p513_p5), %vm519_vm0, %v2762_v0 }
  0x14   : > { %528 = vst.msk [vmem:[#allocation3 + $0x40] sm:$0xff] (%p513_p5), %vm519_vm0, %v2762_v0  ;;  %529 = vst.msk [vmem:[#allocation3 + $0x48] sm:$0xff] (%p513_p5), %vm519_vm0, %v2762_v0 }
  0x15   : > { %530 = vst.msk [vmem:[#allocation3 + $0x50] sm:$0xff] (%p513_p5), %vm519_vm0, %v2762_v0  ;;  %531 = vst.msk [vmem:[#allocation3 + $0x58] sm:$0xff] (%p513_p5), %vm519_vm0, %v2762_v0 }
  0x16   : > { %532 = vst.msk [vmem:[#allocation3 + $0x60] sm:$0xff] %vm519_vm0, %v2762_v0  ;;  %533 = vst.msk [vmem:[#allocation3 + $0x68] sm:$0xff] %vm519_vm0, %v2762_v0 }
  0x17   : > { %534 = vst.msk [vmem:[#allocation3 + $0x70] sm:$0xff] %vm519_vm0, %v2762_v0  ;;  %535 = vst.msk [vmem:[#allocation3 + $0x78] sm:$0xff] %vm519_vm0, %v2762_v0 }
  0x18   : > { %536 = vst.msk [vmem:[#allocation4] sm:$0xff] %vm519_vm0, %v2763_v1  ;;  %537 = vst.msk [vmem:[#allocation4 + $0x8] sm:$0xff] %vm519_vm0, %v2763_v1 }
  0x19   : > { %538 = vst.msk [vmem:[#allocation4 + $0x10] sm:$0xff] %vm519_vm0, %v2763_v1  ;;  %539 = vst.msk [vmem:[#allocation4 + $0x18] sm:$0xff] %vm519_vm0, %v2763_v1 }
  0x1a   : > { %540 = vst.msk [vmem:[#allocation4 + $0x20] sm:$0xff] %vm519_vm0, %v2763_v1  ;;  %541 = vst.msk [vmem:[#allocation4 + $0x28] sm:$0xff] %vm519_vm0, %v2763_v1 }
  0x1b   : > { %542 = vst.msk [vmem:[#allocation4 + $0x30] sm:$0xff] %vm519_vm0, %v2763_v1  ;;  %543 = vst.msk [vmem:[#allocation4 + $0x38] sm:$0xff] %vm519_vm0, %v2763_v1 }
  0x1c   : > { %544 = vst.msk [vmem:[#allocation4 + $0x40] sm:$0xff] %vm519_vm0, %v2763_v1  ;;  %545 = vst.msk [vmem:[#allocation4 + $0x48] sm:$0xff] %vm519_vm0, %v2763_v1 }
  0x1d   : > { %546 = vst.msk [vmem:[#allocation4 + $0x50] sm:$0xff] %vm519_vm0, %v2763_v1  ;;  %547 = vst.msk [vmem:[#allocation4 + $0x58] sm:$0xff] %vm519_vm0, %v2763_v1 }
  0x1e   : > { %548 = vst.msk [vmem:[#allocation4 + $0x60] sm:$0xff] %vm519_vm0, %v2763_v1  ;;  %549 = vst.msk [vmem:[#allocation4 + $0x68] sm:$0xff] %vm519_vm0, %v2763_v1 }
  0x1f   : > { %550 = vst.msk [vmem:[#allocation4 + $0x70] sm:$0xff] %vm519_vm0, %v2763_v1  ;;  %551 = vst.msk [vmem:[#allocation4 + $0x78] sm:$0xff] %vm519_vm0, %v2763_v1 }
  0x20   : > { %553 = vst.msk [vmem:[#allocation2] sm:$0xff] %vm552_vm1, %v2763_v1  ;;  %554 = vst.msk [vmem:[#allocation2 + $0x8] sm:$0xff] %vm552_vm1, %v2763_v1 }
  0x21   : > { %555 = vst.msk [vmem:[#allocation2 + $0x10] sm:$0xff] %vm552_vm1, %v2763_v1  ;;  %556 = vst.msk [vmem:[#allocation2 + $0x18] sm:$0xff] %vm552_vm1, %v2763_v1 }
  0x22   : > { %557 = vst.msk [vmem:[#allocation2 + $0x20] sm:$0xff] %vm552_vm1, %v2763_v1  ;;  %558 = vst.msk [vmem:[#allocation2 + $0x28] sm:$0xff] %vm552_vm1, %v2763_v1 }
  0x23   : > { %559 = vst.msk [vmem:[#allocation2 + $0x30] sm:$0xff] %vm552_vm1, %v2763_v1  ;;  %560 = vst.msk [vmem:[#allocation2 + $0x38] sm:$0xff] %vm552_vm1, %v2763_v1 }
  0x24   : > { %561 = vst.msk [vmem:[#allocation2 + $0x40] sm:$0xff] %vm552_vm1, %v2763_v1  ;;  %562 = vst.msk [vmem:[#allocation2 + $0x48] sm:$0xff] %vm552_vm1, %v2763_v1 }
  0x25   : > { %563 = vst.msk [vmem:[#allocation2 + $0x50] sm:$0xff] %vm552_vm1, %v2763_v1  ;;  %564 = vst.msk [vmem:[#allocation2 + $0x58] sm:$0xff] %vm552_vm1, %v2763_v1 }
  0x26   : > { %565 = vst.msk [vmem:[#allocation2 + $0x60] sm:$0xff] %vm552_vm1, %v2763_v1  ;;  %566 = vst.msk [vmem:[#allocation2 + $0x68] sm:$0xff] %vm552_vm1, %v2763_v1 }
  0x27   : > { %567 = vst.msk [vmem:[#allocation2 + $0x70] sm:$0xff] %vm552_vm1, %v2763_v1  ;;  %568 = vst.msk [vmem:[#allocation2 + $0x78] sm:$0xff] %vm552_vm1, %v2763_v1 }
  0x28 PF: > { %v2449_v2 = vld [vmem:[%s2857_s29] sm:$0xff]   ;;  %v2464_v5 = vld [vmem:[%s2857_s29 + $0x8] sm:$0xff]   ;;  %v2465_v8 = vld [vmem:[%s2857_s29 + $0x10] sm:$0xff]   ;;  %vm633_vm2 = vcmask 523264   ;;  %v2764_v24 = vmov 0   ;;  %vm970_vm3 = vcmask 7168  }
  0x29   : > { %v2450_v3 = vunpack.c.l.bf16 %v2449_v2  ;;  %v2451_v4 = vunpack.c.h.bf16 %v2449_v2  ;;  %v2454_v6 = vunpack.c.l.bf16 %v2464_v5  ;;  %v2455_v7 = vunpack.c.h.bf16 %v2464_v5  ;;  %v2466_v11 = vld [vmem:[%s2857_s29 + $0x18] sm:$0xff]   ;;  %2629 = vset.pattern.permute.xlu1 %v2764_v24  ;;  %v617_v47 = vld [vmem:[#allocation3] sm:$0xff]  ;;  %v2980_v50 = vld [vmem:[#allocation3 + $0x8] sm:$0xff]  ;;  %p1309_p6 = scmp.eq.s32.totalorder %s2752_s21, 2 }
  0x2a   : > { %v2458_v9 = vunpack.c.l.bf16 %v2465_v8  ;;  %v2459_v10 = vunpack.c.h.bf16 %v2465_v8  ;;  %v2462_v12 = vunpack.c.l.bf16 %v2466_v11  ;;  %v2463_v13 = vunpack.c.h.bf16 %v2466_v11  ;;  %v2986_v53 = vld [vmem:[#allocation3 + $0x10] sm:$0xff]  ;;  %v620_v57 = vld [vmem:[#allocation3 + $0x18] sm:$0xff]  ;;  %v2631_v62 = vld [vmem:[%s2862_s14] sm:$0xff]  }
  0x2b   : > { %585 = vxpose.xlu0.b32.start [1/8] (short) %v2450_v3, 128  ;;  %v2997_v61 = vld [vmem:[#allocation3 + $0x20] sm:$0xff]  ;;  %2508 = vmatprep.subr.bf16.mxu0 %v2631_v62  ;;  %v622_v3 = vld [vmem:[#allocation3 + $0x28] sm:$0xff]  ;;  %v2633_v8 = vld [vmem:[%s2862_s14 + $0x10] sm:$0xff]   ;;  %vm1276_vm4 = vcmask 261120   ;;  %vm1681_vm5 = vcmask (%p1309_p6), 130048   ;;  %vm2104_vm6 = vcmask (%p1309_p6), 125952  }
  0x2c   : > { %2590 = vmatprep.subr.bf16.mxu1 %v2631_v62  ;;  %2509 = vmatpush3.bf16.msra.mxu0 %v2631_v62 }
  0x2d   : > { %2594 = vmatpush3.bf16.msra.mxu1 %v2631_v62 }
  0x2f   : > { %586 = vxpose.xlu0.b32.cont [2/8] (short) %v2451_v4, 128  ;;  %v2632_v4 = vld [vmem:[%s2862_s14 + $0x8] sm:$0xff]  }
  0x30   : > { %2510 = vmatprep.subr.bf16.mxu0 %v2632_v4  ;;  %2591 = vmatprep.subr.bf16.mxu1 %v2632_v4 }
  0x31   : > { %2511 = vmatpush3.bf16.msra.mxu0 %v2632_v4  ;;  %2595 = vmatpush3.bf16.msra.mxu1 %v2632_v4 }
  0x32   : > { %2512 = vmatprep.subr.bf16.mxu0 %v2633_v8  ;;  %2592 = vmatprep.subr.bf16.mxu1 %v2633_v8 }
  0x33   : > { %587 = vxpose.xlu0.b32.cont [3/8] (short) %v2454_v6, 128 }
  0x35   : > { %2513 = vmatpush3.bf16.msra.mxu0 %v2633_v8  ;;  %2596 = vmatpush3.bf16.msra.mxu1 %v2633_v8  ;;  %v3058_v8 = vld [vmem:[#allocation3 + $0x70] sm:$0xff] }
  0x37   : > { %588 = vxpose.xlu0.b32.cont [4/8] (short) %v2455_v7, 128  ;;  %v3008_v7 = vld [vmem:[#allocation3 + $0x30] sm:$0xff] }
  0x3b   : > { %589 = vxpose.xlu0.b32.cont [5/8] (short) %v2458_v9, 128 }
  0x3f   : > { %590 = vxpose.xlu0.b32.cont [6/8] (short) %v2459_v10, 128 }
  0x43   : > { %591 = vxpose.xlu0.b32.cont [7/8] (short) %v2462_v12, 128 }
  0x47   : > { %592 = vxpose.xlu0.b32.end [8/8] (short) %v2463_v13, 128 }
  0x70   : > { %2630 = vset.pattern.permute.xlu0 %v2764_v24  ;;  %v3024_v24 = vld [vmem:[#allocation3 + $0x40] sm:$0xff] }
  0xab   : > { %v2916_v14 = vpop.trf.xlu0 }
  0xac   : > { %v634_v15 = vsel %vm633_vm2, %v2916_v14, -inf }
  0xad   : > { %635 = vmax.xlane.f32.xlu1 %v634_v15  ;;  %v624_v15 = vld [vmem:[#allocation3 + $0x38] sm:$0xff] }
  0xaf   : > { %v2920_v16 = vpop.trf.xlu0 }
  0xb0   : > { %v637_v17 = vsel %vm633_vm2, %v2920_v16, -inf }
  0xb1   : > { %638 = vmax.xlane.f32.xlu1 %v637_v17  ;;  %v2634_v17 = vld [vmem:[%s2862_s14 + $0x18] sm:$0xff]  }
  0xb2   : > { %2514 = vmatprep.subr.bf16.mxu0 %v2634_v17  ;;  %2593 = vmatprep.subr.bf16.mxu1 %v2634_v17 }
  0xb3   : > { %v2924_v18 = vpop.trf.xlu0  ;;  %2515 = vmatpush3.bf16.msra.mxu0 %v2634_v17  ;;  %2597 = vmatpush3.bf16.msra.mxu1 %v2634_v17 }
  0xb4   : > { %v640_v19 = vsel %vm633_vm2, %v2924_v18, -inf }
  0xb5   : > { %641 = vmax.xlane.f32.xlu1 %v640_v19 }
  0xb7   : > { %v2928_v20 = vpop.trf.xlu0 }
  0xb8   : > { %v643_v21 = vsel %vm633_vm2, %v2928_v20, -inf }
  0xb9   : > { %644 = vmax.xlane.f32.xlu1 %v643_v21 }
  0xbb   : > { %v2932_v22 = vpop.trf.xlu0 }
  0xbc   : > { %v646_v23 = vsel %vm633_vm2, %v2932_v22, -inf }
  0xbd   : > { %647 = vmax.xlane.f32.xlu0 %v646_v23 }
  0xbf   : > { %v2936_v25 = vpop.trf.xlu0 }
  0xc0   : > { %v649_v26 = vsel %vm633_vm2, %v2936_v25, -inf }
  0xc1   : > { %650 = vmax.xlane.f32.xlu1 %v649_v26 }
  0xc3   : > { %v2940_v27 = vpop.trf.xlu0 }
  0xc4   : > { %v652_v28 = vsel %vm633_vm2, %v2940_v27, -inf }
  0xc5   : > { %653 = vmax.xlane.f32.xlu1 %v652_v28 }
  0xc7   : > { %v2944_v29 = vpop.trf.xlu0 }
  0xc8   : > { %v655_v30 = vsel %vm633_vm2, %v2944_v29, -inf }
  0xc9   : > { %656 = vmax.xlane.f32.xlu1 %v655_v30 }
  0xcb   : > { %v2948_v31 = vpop.trf.xlu0 }
  0xcc   : > { %v658_v32 = vsel %vm633_vm2, %v2948_v31, -inf }
  0xcd   : > { %659 = vmax.xlane.f32.xlu1 %v658_v32 }
  0xcf   : > { %v2952_v33 = vpop.trf.xlu0 }
  0xd0   : > { %v661_v34 = vsel %vm633_vm2, %v2952_v33, -inf }
  0xd1   : > { %662 = vmax.xlane.f32.xlu1 %v661_v34  ;;  %v626_v34 = vld [vmem:[#allocation3 + $0x48] sm:$0xff] }
  0xd3   : > { %v2956_v35 = vpop.trf.xlu0 }
  0xd4   : > { %v664_v36 = vsel %vm633_vm2, %v2956_v35, -inf }
  0xd5   : > { %665 = vmax.xlane.f32.xlu1 %v664_v36 }
  0xd7   : > { %v2960_v37 = vpop.trf.xlu0 }
  0xd8   : > { %v667_v38 = vsel %vm633_vm2, %v2960_v37, -inf }
  0xd9   : > { %668 = vmax.xlane.f32.xlu1 %v667_v38 }
  0xdb   : > { %v2964_v39 = vpop.trf.xlu0 }
  0xdc   : > { %v670_v40 = vsel %vm633_vm2, %v2964_v39, -inf }
  0xdd   : > { %671 = vmax.xlane.f32.xlu1 %v670_v40 }
  0xdf   : > { %v2968_v41 = vpop.trf.xlu0 }
  0xe0   : > { %v673_v42 = vsel %vm633_vm2, %v2968_v41, -inf }
  0xe1   : > { %674 = vmax.xlane.f32.xlu1 %v673_v42  ;;  %v3037_v42 = vld [vmem:[#allocation3 + $0x50] sm:$0xff] }
  0xe3   : > { %v2972_v43 = vpop.trf.xlu0 }
  0xe4   : > { %v676_v44 = vsel %vm633_vm2, %v2972_v43, -inf }
  0xe5   : > { %677 = vmax.xlane.f32.xlu1 %v676_v44 }
  0xe7   : > { %v2976_v45 = vpop.trf.xlu0 }
  0xe8   : > { %v679_v46 = vsel %vm633_vm2, %v2976_v45, -inf }
  0xe9   : > { %680 = vmax.xlane.f32.xlu1 %v679_v46 }
 0x13a   : > { %v636_v48 = vpop.xlane.xlu1 %635 }
 0x13b   : > { %v682_v49 = vmax.f32 %v617_v47, %v636_v48 }
 0x13d   : > { %1293 = vst.msk [vmem:[#allocation3] sm:$0xff] %vm970_vm3, %v682_v49  ;;  %748 = vperm.xlu1 %2629, %v682_v49   ;;  %v698_v54 = vsub.f32 %v617_v47, %v682_v49  ;;  %v628_v49 = vld [vmem:[#allocation3 + $0x58] sm:$0xff] }
 0x13e   : > { %v639_v51 = vpop.xlane.xlu1 %638 }
 0x13f   : > { %v2984_v52 = vmax.f32 %v2980_v50, %v639_v51  ;;  %v714_v58 = vmul.f32 1.442695, %v698_v54 }
 0x141   : > { %1294 = vst.msk [vmem:[#allocation3 + $0x8] sm:$0xff] %vm970_vm3, %v2984_v52  ;;  %753 = vperm.xlu1 %2629, %v2984_v52   ;;  %2635 = vpow2.f32 %v714_v58 }
 0x142   : > { %v642_v55 = vpop.xlane.xlu1 %641 }
 0x143   : > { %v2992_v56 = vmax.f32 %v2986_v53, %v642_v55 }
 0x145   : > { %1295 = vst.msk [vmem:[#allocation3 + $0x10] sm:$0xff] %vm970_vm3, %v2992_v56  ;;  %758 = vperm.xlu1 %2629, %v2992_v56  }
 0x146   : > { %v645_v59 = vpop.xlane.xlu1 %644 }
 0x147   : > { %v685_v60 = vmax.f32 %v620_v57, %v645_v59  ;;  %v699_v59 = vsub.f32 %v2980_v50, %v2984_v52 }
 0x149   : > { %v701_v63 = vsub.f32 %v620_v57, %v685_v60  ;;  %1296 = vst.msk [vmem:[#allocation3 + $0x18] sm:$0xff] %vm970_vm3, %v685_v60  ;;  %763 = vperm.xlu1 %2629, %v685_v60   ;;  %v629_v57 = vld [vmem:[#allocation3 + $0x60] sm:$0xff] }
 0x14a   : > { %v648_v0 = vpop.xlane.xlu0 %647 }
 0x14b   : > { %v720_v1 = vmul.f32 1.442695, %v701_v63  ;;  %v3002_v2 = vmax.f32 %v2997_v61, %v648_v0  ;;  %v3015_v13 = vpop.eup %2635  ;;  %v630_v0 = vld [vmem:[#allocation3 + $0x68] sm:$0xff] }
 0x14d   : > { %2637 = vpow2.f32 %v720_v1  ;;  %1297 = vst.msk [vmem:[#allocation3 + $0x20] sm:$0xff] %vm970_vm3, %v3002_v2  ;;  %768 = vperm.xlu1 %2629, %v3002_v2   ;;  %v716_v1 = vmul.f32 1.442695, %v699_v59 }
 0x14e   : > { %v651_v5 = vpop.xlane.xlu1 %650 }
 0x14f   : > { %v687_v6 = vmax.f32 %v622_v3, %v651_v5 }
 0x151   : > { %v703_v9 = vsub.f32 %v622_v3, %v687_v6  ;;  %1298 = vst.msk [vmem:[#allocation3 + $0x28] sm:$0xff] %vm970_vm3, %v687_v6  ;;  %773 = vperm.xlu0 %2630, %v687_v6   ;;  %v700_v3 = vsub.f32 %v2986_v53, %v2992_v56  ;;  %v3066_v56 = vld [vmem:[#allocation3 + $0x78] sm:$0xff] }
 0x152   : > { %v654_v10 = vpop.xlane.xlu1 %653 }
 0x153   : > { %v724_v11 = vmul.f32 1.442695, %v703_v9  ;;  %v3013_v12 = vmax.f32 %v3008_v7, %v654_v10  ;;  %v718_v52 = vmul.f32 1.442695, %v700_v3  ;;  %v702_v9 = vsub.f32 %v2997_v61, %v3002_v2 }
 0x155   : > { %2639 = vpow2.f32 %v724_v11  ;;  %1299 = vst.msk [vmem:[#allocation3 + $0x30] sm:$0xff] %vm970_vm3, %v3013_v12  ;;  %1005 = vperm.xlu0 %2630, %v3015_v13   ;;  %778 = vperm.xlu1 %2629, %v3013_v12   ;;  %v722_v17 = vmul.f32 1.442695, %v702_v9  ;;  %v704_v61 = vsub.f32 %v3008_v7, %v3013_v12 }
 0x156   : > { %v657_v19 = vpop.xlane.xlu1 %656 }
 0x157   : > { %v3022_v21 = vpop.eup %2637  ;;  %v689_v23 = vmax.f32 %v624_v15, %v657_v19 }
 0x159   : > { %v705_v26 = vsub.f32 %v624_v15, %v689_v23  ;;  %1300 = vst.msk [vmem:[#allocation3 + $0x38] sm:$0xff] %vm970_vm3, %v689_v23  ;;  %1020 = vperm.xlu0 %2630, %v3022_v21   ;;  %783 = vperm.xlu1 %2629, %v689_v23  }
 0x15a   : > { %v660_v28 = vpop.xlane.xlu1 %659 }
 0x15b   : > { %v728_v30 = vmul.f32 1.442695, %v705_v26  ;;  %v3029_v32 = vmax.f32 %v3024_v24, %v660_v28  ;;  %v726_v28 = vmul.f32 1.442695, %v704_v61 }
 0x15d   : > { %2641 = vpow2.f32 %v728_v30  ;;  %1301 = vst.msk [vmem:[#allocation3 + $0x40] sm:$0xff] %vm970_vm3, %v3029_v32  ;;  %788 = vperm.xlu1 %2629, %v3029_v32   ;;  %v706_v7 = vsub.f32 %v3024_v24, %v3029_v32 }
 0x15e   : > { %v663_v36 = vpop.xlane.xlu1 %662 }
 0x15f   : > { %v3034_v38 = vpop.eup %2639  ;;  %v691_v40 = vmax.f32 %v626_v34, %v663_v36  ;;  %v730_v30 = vmul.f32 1.442695, %v706_v7 }
 0x160   : > { %1030 = vperm.xlu0 %2630, %v3034_v38  }
 0x161   : > { %v707_v44 = vsub.f32 %v626_v34, %v691_v40  ;;  %1302 = vst.msk [vmem:[#allocation3 + $0x48] sm:$0xff] %vm970_vm3, %v691_v40  ;;  %793 = vperm.xlu1 %2629, %v691_v40  }
 0x162   : > { %v666_v46 = vpop.xlane.xlu1 %665 }
 0x163   : > { %v732_v47 = vmul.f32 1.442695, %v707_v44  ;;  %v3041_v48 = vmax.f32 %v3037_v42, %v666_v46 }
 0x165   : > { %2643 = vpow2.f32 %v732_v47  ;;  %1303 = vst.msk [vmem:[#allocation3 + $0x50] sm:$0xff] %vm970_vm3, %v3041_v48  ;;  %798 = vperm.xlu1 %2629, %v3041_v48   ;;  %v708_v34 = vsub.f32 %v3037_v42, %v3041_v48 }
 0x166   : > { %v669_v51 = vpop.xlane.xlu1 %668 }
 0x167   : > { %v3046_v54 = vpop.eup %2641  ;;  %v693_v55 = vmax.f32 %v628_v49, %v669_v51  ;;  %v734_v44 = vmul.f32 1.442695, %v708_v34 }
 0x168   : > { %1040 = vperm.xlu0 %2630, %v3046_v54  }
 0x169   : > { %v709_v58 = vsub.f32 %v628_v49, %v693_v55  ;;  %1304 = vst.msk [vmem:[#allocation3 + $0x58] sm:$0xff] %vm970_vm3, %v693_v55  ;;  %803 = vperm.xlu1 %2629, %v693_v55  }
 0x16a   : > { %v672_v60 = vpop.xlane.xlu1 %671 }
 0x16b   : > { %v736_v62 = vmul.f32 1.442695, %v709_v58  ;;  %v694_v63 = vmax.f32 %v629_v57, %v672_v60 }
 0x16d   : > { %2645 = vpow2.f32 %v736_v62  ;;  %1305 = vst.msk [vmem:[#allocation3 + $0x60] sm:$0xff] %vm970_vm3, %v694_v63  ;;  %808 = vperm.xlu1 %2629, %v694_v63   ;;  %v710_v24 = vsub.f32 %v629_v57, %v694_v63 }
 0x16e   : > { %v675_v4 = vpop.xlane.xlu1 %674  ;;  %2647 = vpow2.f32 %v716_v1 }
 0x16f   : > { %v3055_v5 = vpop.eup %2643  ;;  %v695_v6 = vmax.f32 %v630_v0, %v675_v4  ;;  %v738_v46 = vmul.f32 1.442695, %v710_v24 }
 0x170   : > { %1050 = vperm.xlu0 %2630, %v3055_v5  }
 0x171   : > { %v711_v50 = vsub.f32 %v630_v0, %v695_v6  ;;  %1306 = vst.msk [vmem:[#allocation3 + $0x68] sm:$0xff] %vm970_vm3, %v695_v6  ;;  %813 = vperm.xlu1 %2629, %v695_v6  }
 0x172   : > { %v678_v10 = vpop.xlane.xlu1 %677 }
 0x173   : > { %v740_v11 = vmul.f32 1.442695, %v711_v50  ;;  %v3064_v53 = vmax.f32 %v3058_v8, %v678_v10 }
 0x175   : > { %2649 = vpow2.f32 %v740_v11  ;;  %v712_v15 = vsub.f32 %v3058_v8, %v3064_v53  ;;  %1307 = vst.msk [vmem:[#allocation3 + $0x70] sm:$0xff] %vm970_vm3, %v3064_v53  ;;  %818 = vperm.xlu1 %2629, %v3064_v53  }
 0x176   : > { %2651 = vpow2.f32 %v718_v52  ;;  %v681_v2 = vpop.xlane.xlu1 %680 }
 0x177   : > { %v3075_v19 = vpop.eup %2645  ;;  %v3078_v23 = vmax.f32 %v3066_v56, %v681_v2  ;;  %2653 = vpow2.f32 %v722_v17 }
 0x178   : > { %1060 = vperm.xlu0 %2630, %v3075_v19   ;;  %v3088_v12 = vpop.eup %2647  ;;  %2655 = vpow2.f32 %v726_v28 }
 0x179   : > { %v713_v26 = vsub.f32 %v3066_v56, %v3078_v23  ;;  %1308 = vst.msk [vmem:[#allocation3 + $0x78] sm:$0xff] %vm970_vm3, %v3078_v23  ;;  %823 = vperm.xlu1 %2629, %v3078_v23   ;;  %2657 = vpow2.f32 %v730_v30 }
 0x17a   : > { %2659 = vpow2.f32 %v734_v44 }
 0x17b   : > { %2661 = vpow2.f32 %v738_v46 }
 0x17d   : > { %1010 = vperm.xlu1 %2629, %v3088_v12  }
 0x17f   : > { %v3093_v36 = vpop.eup %2649 }
 0x180   : > { %v3095_v40 = vpop.eup %2651  ;;  %1070 = vperm.xlu0 %2630, %v3093_v36  }
 0x181   : > { %1015 = vperm.xlu1 %2629, %v3095_v40   ;;  %v3099_v32 = vpop.eup %2653 }
 0x182   : > { %v3102_v47 = vpop.eup %2655 }
 0x183   : > { %v3105_v42 = vpop.eup %2657 }
 0x184   : > { %v3108_v48 = vpop.eup %2659 }
 0x185   : > { %1025 = vperm.xlu1 %2629, %v3099_v32   ;;  %v3111_v49 = vpop.eup %2661 }
 0x189   : > { %1035 = vperm.xlu1 %2629, %v3102_v47  }
 0x18d   : > { %1045 = vperm.xlu1 %2629, %v3105_v42  }
 0x191   : > { %1055 = vperm.xlu1 %2629, %v3108_v48  }
 0x195   : > { %1065 = vperm.xlu1 %2629, %v3111_v49  }
 0x1bc   : > { %v749_v51 = vpop.permute.xlu1 %748 }
 0x1bd   : > { %v826_v55 = vsub.f32 %v2916_v14, %v749_v51 }
 0x1bf   : > { %v842_v57 = vmul.f32 1.442695, %v826_v55 }
 0x1c0   : > { %v754_v58 = vpop.permute.xlu1 %753 }
 0x1c1   : > { %2663 = vpow2.f32 %v842_v57  ;;  %v827_v59 = vsub.f32 %v2920_v16, %v754_v58 }
 0x1c3   : > { %v844_v60 = vmul.f32 1.442695, %v827_v59 }
 0x1c4   : > { %v759_v62 = vpop.permute.xlu1 %758 }
 0x1c5   : > { %2665 = vpow2.f32 %v844_v60  ;;  %v828_v63 = vsub.f32 %v2924_v18, %v759_v62 }
 0x1c7   : > { %v846_v0 = vmul.f32 1.442695, %v828_v63 }
 0x1c8   : > { %v764_v1 = vpop.permute.xlu1 %763 }
 0x1c9   : > { %2667 = vpow2.f32 %v846_v0  ;;  %v829_v3 = vsub.f32 %v2928_v20, %v764_v1 }
 0x1cb   : > { %v2664_v4 = vpop.eup %2663  ;;  %v848_v6 = vmul.f32 1.442695, %v829_v3 }
 0x1cc   : > { %v769_v50 = vpop.permute.xlu1 %768  ;;  %v906_v14 = vsel %vm633_vm2, %v2664_v4, 0.0 }
 0x1cd   : > { %2669 = vpow2.f32 %v848_v6  ;;  %v830_v52 = vsub.f32 %v2932_v22, %v769_v50  ;;  %907 = vadd.xlane.f32.xlu1 %v906_v14 }
 0x1cf   : > { %v2666_v16 = vpop.eup %2665  ;;  %v850_v9 = vmul.f32 1.442695, %v830_v52 }
 0x1d0   : > { %v774_v10 = vpop.permute.xlu0 %773  ;;  %v909_v11 = vsel %vm633_vm2, %v2666_v16, 0.0  ;;  %v1099_v18 = vpack.c.bf16 %v2666_v16, %v2664_v4 }
 0x1d1   : > { %2671 = vpow2.f32 %v850_v9  ;;  %v831_v17 = vsub.f32 %v2936_v25, %v774_v10  ;;  %910 = vadd.xlane.f32.xlu0 %v909_v11 }
 0x1d2   : > { %2516 = vmatprep.mubr.msk.bf16.mxu0 %vm633_vm2, %v1099_v18 }
 0x1d3   : > { %v2668_v20 = vpop.eup %2667  ;;  %v852_v61 = vmul.f32 1.442695, %v831_v17 }
 0x1d4   : > { %v779_v2 = vpop.permute.xlu1 %778  ;;  %v912_v28 = vsel %vm633_vm2, %v2668_v20, 0.0  ;;  %v3172_v53 = vpop.permute.xlu0 %1005 }
 0x1d5   : > { %2673 = vpow2.f32 %v852_v61  ;;  %v832_v22 = vsub.f32 %v2940_v27, %v779_v2  ;;  %913 = vadd.xlane.f32.xlu1 %v912_v28 }
 0x1d7   : > { %v2670_v7 = vpop.eup %2669  ;;  %v854_v30 = vmul.f32 1.442695, %v832_v22 }
 0x1d8   : > { %v784_v34 = vpop.permute.xlu1 %783  ;;  %v915_v44 = vsel %vm633_vm2, %v2670_v7, 0.0  ;;  %v1100_v24 = vpack.c.bf16 %v2670_v7, %v2668_v20 }
 0x1d9   : > { %2675 = vpow2.f32 %v854_v30  ;;  %v833_v25 = vsub.f32 %v2944_v29, %v784_v34  ;;  %916 = vadd.xlane.f32.xlu1 %v915_v44 }
 0x1da   : > { %2517 = vmatmul.mubr.msk.bf16.vlgmr.msra.gmra.mrb[0].mxu0 %vm633_vm2, %v1100_v24 }
 0x1db   : > { %v2672_v46 = vpop.eup %2671  ;;  %v856_v51 = vmul.f32 1.442695, %v833_v25 }
 0x1dc   : > { %v789_v55 = vpop.permute.xlu1 %788  ;;  %v918_v57 = vsel %vm633_vm2, %v2672_v46, 0.0 }
 0x1dd   : > { %2677 = vpow2.f32 %v856_v51  ;;  %v834_v27 = vsub.f32 %v2948_v31, %v789_v55  ;;  %919 = vadd.xlane.f32.xlu1 %v918_v57 }
 0x1df   : > { %v2674_v58 = vpop.eup %2673  ;;  %v858_v59 = vmul.f32 1.442695, %v834_v27 }
 0x1e0   : > { %v794_v60 = vpop.permute.xlu1 %793  ;;  %v921_v62 = vsel %vm633_vm2, %v2674_v58, 0.0  ;;  %v1101_v63 = vpack.c.bf16 %v2674_v58, %v2672_v46 }
 0x1e1   : > { %2679 = vpow2.f32 %v858_v59  ;;  %v835_v29 = vsub.f32 %v2952_v33, %v794_v60  ;;  %922 = vadd.xlane.f32.xlu1 %v921_v62 }
 0x1e2   : > { %2520 = vmatprep.mubr.msk.bf16.mxu0 %vm633_vm2, %v1101_v63 }
 0x1e3   : > { %v2676_v0 = vpop.eup %2675  ;;  %v860_v1 = vmul.f32 1.442695, %v835_v29 }
 0x1e4   : > { %v799_v3 = vpop.permute.xlu1 %798  ;;  %v924_v4 = vsel %vm633_vm2, %v2676_v0, 0.0 }
 0x1e5   : > { %2681 = vpow2.f32 %v860_v1  ;;  %v836_v31 = vsub.f32 %v2956_v35, %v799_v3  ;;  %925 = vadd.xlane.f32.xlu0 %v924_v4  ;;  %v744_v1 = vmul.f32 1.442695, %v713_v26 }
 0x1e7   : > { %v2678_v6 = vpop.eup %2677  ;;  %v862_v50 = vmul.f32 1.442695, %v836_v31 }
 0x1e8   : > { %v804_v14 = vpop.permute.xlu1 %803  ;;  %v927_v52 = vsel %vm633_vm2, %v2678_v6, 0.0  ;;  %v1102_v16 = vpack.c.bf16 %v2678_v6, %v2676_v0  ;;  %v742_v0 = vmul.f32 1.442695, %v712_v15  ;;  %v3176_v15 = vpop.permute.xlu0 %1020 }
 0x1e9   : > { %2683 = vpow2.f32 %v862_v50  ;;  %v837_v33 = vsub.f32 %v2960_v37, %v804_v14  ;;  %928 = vadd.xlane.f32.xlu1 %v927_v52 }
 0x1ea   : > { %2521 = vmatmul.mubr.msk.bf16.gmra.mrb[4].mxu0 %vm633_vm2, %v1102_v16 }
 0x1eb   : > { %v2680_v9 = vpop.eup %2679  ;;  %v864_v10 = vmul.f32 1.442695, %v837_v33 }
 0x1ec   : > { %v809_v11 = vpop.permute.xlu1 %808  ;;  %v930_v18 = vsel %vm633_vm2, %v2680_v9, 0.0  ;;  %v3178_v23 = vpop.permute.xlu0 %1030 }
 0x1ed   : > { %2685 = vpow2.f32 %v864_v10  ;;  %v838_v35 = vsub.f32 %v2964_v39, %v809_v11  ;;  %931 = vadd.xlane.f32.xlu0 %v930_v18 }
 0x1ef   : > { %v2682_v17 = vpop.eup %2681  ;;  %v866_v20 = vmul.f32 1.442695, %v838_v35  ;;  %v875_v35 = vld [vmem:[#allocation4 + $0x8] sm:$0xff] }
 0x1f0   : > { %v814_v61 = vpop.permute.xlu1 %813  ;;  %v933_v2 = vsel %vm633_vm2, %v2682_v17, 0.0  ;;  %v1103_v28 = vpack.c.bf16 %v2682_v17, %v2680_v9  ;;  %v3182_v50 = vpop.permute.xlu0 %1040  ;;  %v874_v9 = vld [vmem:[#allocation4] sm:$0xff] }
 0x1f1   : > { %2687 = vpow2.f32 %v866_v20  ;;  %v839_v37 = vsub.f32 %v2968_v41, %v814_v61  ;;  %934 = vadd.xlane.f32.xlu1 %v933_v2  ;;  %v890_v10 = vmul.f32 %v3015_v13, %v874_v9  ;;  %v891_v20 = vmul.f32 %v3088_v12, %v875_v35  ;;  %v876_v2 = vld [vmem:[#allocation4 + $0x10] sm:$0xff] }
 0x1f2   : > { %2524 = vmatprep.mubr.msk.bf16.mxu1 %vm633_vm2, %v1103_v28 }
 0x1f3   : > { %v2684_v22 = vpop.eup %2683  ;;  %v868_v7 = vmul.f32 1.442695, %v839_v37  ;;  %v892_v37 = vmul.f32 %v3095_v40, %v876_v2  ;;  %v887_v2 = vld [vmem:[#allocation4 + $0x68] sm:$0xff] }
 0x1f4   : > { %v819_v30 = vpop.permute.xlu1 %818  ;;  %v936_v34 = vsel %vm633_vm2, %v2684_v22, 0.0  ;;  %v3186_v52 = vpop.permute.xlu0 %1050 }
 0x1f5   : > { %2689 = vpow2.f32 %v868_v7  ;;  %v840_v39 = vsub.f32 %v2972_v43, %v819_v30  ;;  %937 = vadd.xlane.f32.xlu0 %v936_v34  ;;  %v877_v7 = vld [vmem:[#allocation4 + $0x18] sm:$0xff] }
 0x1f6   : > { %v893_v13 = vmul.f32 %v3022_v21, %v877_v7 }
 0x1f7   : > { %v2686_v44 = vpop.eup %2685  ;;  %v870_v24 = vmul.f32 1.442695, %v840_v39  ;;  %v878_v39 = vld [vmem:[#allocation4 + $0x20] sm:$0xff] }
 0x1f8   : > { %v824_v25 = vpop.permute.xlu1 %823  ;;  %v939_v46 = vsel %vm633_vm2, %v2686_v44, 0.0  ;;  %v1104_v51 = vpack.c.bf16 %v2686_v44, %v2684_v22  ;;  %v3188_v16 = vpop.permute.xlu0 %1060  ;;  %v894_v12 = vmul.f32 %v3099_v32, %v878_v39 }
 0x1f9   : > { %2691 = vpow2.f32 %v870_v24  ;;  %v841_v41 = vsub.f32 %v2976_v45, %v824_v25  ;;  %940 = vadd.xlane.f32.xlu1 %v939_v46  ;;  %v879_v25 = vld [vmem:[#allocation4 + $0x28] sm:$0xff] }
 0x1fa   : > { %2525 = vmatmul.mubr.msk.bf16.vlgmr.msra.gmra.mrb[0].mxu1 %vm633_vm2, %v1104_v51  ;;  %v895_v40 = vmul.f32 %v3034_v38, %v879_v25  ;;  %v988_v25 = vld [vmem:[#allocation2 + $0x8] sm:$0xff] }
 0x1fb   : > { %v2688_v55 = vpop.eup %2687  ;;  %v872_v57 = vmul.f32 1.442695, %v841_v41  ;;  %v880_v41 = vld [vmem:[#allocation4 + $0x30] sm:$0xff] }
 0x1fc   : > { %v942_v27 = vsel %vm633_vm2, %v2688_v55, 0.0  ;;  %v3166_v31 = vpop.permute.xlu1 %1010  ;;  %v896_v21 = vmul.f32 %v3102_v47, %v880_v41 }
 0x1fd   : > { %2693 = vpow2.f32 %v872_v57  ;;  %943 = vadd.xlane.f32.xlu0 %v942_v27  ;;  %v881_v27 = vld [vmem:[#allocation4 + $0x38] sm:$0xff] }
 0x1fe   : > { %2695 = vpow2.f32 %v742_v0  ;;  %v897_v32 = vmul.f32 %v3046_v54, %v881_v27  ;;  %v884_v0 = vld [vmem:[#allocation4 + $0x50] sm:$0xff] }
 0x1ff   : > { %v2690_v43 = vpop.eup %2689  ;;  %2697 = vpow2.f32 %v744_v1  ;;  %v3193_v11 = vpop.permute.xlu0 %1070  ;;  %v900_v54 = vmul.f32 %v3108_v48, %v884_v0  ;;  %v903_v48 = vmul.f32 %v3093_v36, %v887_v2  ;;  %v987_v36 = vld [vmem:[#allocation2] sm:$0xff] }
 0x200   : > { %v945_v58 = vsel %vm633_vm2, %v2690_v43, 0.0  ;;  %v1105_v59 = vpack.c.bf16 %v2690_v43, %v2688_v55  ;;  %v3168_v6 = vpop.permute.xlu1 %1015 }
 0x201   : > { %946 = vadd.xlane.f32.xlu1 %v945_v58 }
 0x202   : > { %2528 = vmatprep.mubr.msk.bf16.mxu1 %vm633_vm2, %v1105_v59  ;;  %v882_v59 = vld [vmem:[#allocation4 + $0x40] sm:$0xff] }
 0x203   : > { %v2692_v60 = vpop.eup %2691  ;;  %v898_v38 = vmul.f32 %v3105_v42, %v882_v59 }
 0x204   : > { %v948_v62 = vsel %vm633_vm2, %v2692_v60, 0.0  ;;  %v3170_v8 = vpop.permute.xlu1 %1025 }
 0x205   : > { %949 = vadd.xlane.f32.xlu0 %v948_v62 }
 0x207   : > { %v2694_v45 = vpop.eup %2693 }
 0x208   : > { %v951_v63 = vsel %vm633_vm2, %v2694_v45, 0.0  ;;  %v1106_v29 = vpack.c.bf16 %v2694_v45, %v2692_v60  ;;  %v3160_v3 = vpop.eup %2695  ;;  %v3174_v56 = vpop.permute.xlu1 %1035  ;;  %v883_v45 = vld [vmem:[#allocation4 + $0x48] sm:$0xff] }
 0x209   : > { %952 = vadd.xlane.f32.xlu1 %v951_v63  ;;  %v3162_v4 = vpop.eup %2697  ;;  %v899_v47 = vmul.f32 %v3055_v5, %v883_v45 }
 0x20a   : > { %2529 = vmatmul.mubr.msk.bf16.gmra.mrb[4].mxu1 %vm633_vm2, %v1106_v29 }
 0x20c   : > { %v3180_v26 = vpop.permute.xlu1 %1045 }
 0x210   : > { %v3184_v14 = vpop.permute.xlu1 %1055 }
 0x214   : > { %v3190_v33 = vpop.permute.xlu1 %1065 }
 0x21a   : > { %1075 = vperm.xlu1 %2629, %v3160_v3  }
 0x21b   : > { %1080 = vperm.xlu0 %2630, %v3162_v4  }
 0x25a   : > { %v908_v18 = vpop.xlane.xlu1 %907 }
 0x25b   : > { %v954_v17 = vadd.f32 %v908_v18, %v890_v10  ;;  %v885_v10 = vld [vmem:[#allocation4 + $0x58] sm:$0xff] }
 0x25c   : > { %v901_v42 = vmul.f32 %v3075_v19, %v885_v10 }
 0x25d   : > { %971 = vst.msk [vmem:[#allocation4] sm:$0xff] %vm970_vm3, %v954_v17  ;;  %v886_v17 = vld [vmem:[#allocation4 + $0x60] sm:$0xff] }
 0x25e   : > { %v911_v61 = vpop.xlane.xlu0 %910  ;;  %v902_v5 = vmul.f32 %v3111_v49, %v886_v17 }
 0x25f   : > { %v955_v28 = vadd.f32 %v911_v61, %v891_v20 }
 0x261   : > { %972 = vst.msk [vmem:[#allocation4 + $0x8] sm:$0xff] %vm970_vm3, %v955_v28 }
 0x262   : > { %v914_v22 = vpop.xlane.xlu1 %913 }
 0x263   : > { %v956_v30 = vadd.f32 %v914_v22, %v892_v37  ;;  %v888_v22 = vld [vmem:[#allocation4 + $0x70] sm:$0xff] }
 0x264   : > { %v904_v19 = vmul.f32 %v3160_v3, %v888_v22 }
 0x265   : > { %973 = vst.msk [vmem:[#allocation4 + $0x10] sm:$0xff] %vm970_vm3, %v956_v30 }
 0x266   : > { %v917_v34 = vpop.xlane.xlu1 %916 }
 0x267   : > { %v957_v44 = vadd.f32 %v917_v34, %v893_v13  ;;  %v889_v13 = vld [vmem:[#allocation4 + $0x78] sm:$0xff] }
 0x268   : > { %v905_v49 = vmul.f32 %v3162_v4, %v889_v13  ;;  %v1084_v4 = vmul.f32 %v3166_v31, %v988_v25 }
 0x269   : > { %974 = vst.msk [vmem:[#allocation4 + $0x18] sm:$0xff] %vm970_vm3, %v957_v44 }
 0x26a   : > { %v920_v24 = vpop.xlane.xlu1 %919 }
 0x26b   : > { %v958_v46 = vadd.f32 %v920_v24, %v894_v12  ;;  %v989_v12 = vld [vmem:[#allocation2 + $0x10] sm:$0xff]  ;;  %v990_v24 = vld [vmem:[#allocation2 + $0x18] sm:$0xff] }
 0x26d   : > { %975 = vst.msk [vmem:[#allocation4 + $0x20] sm:$0xff] %vm970_vm3, %v958_v46  ;;  %v1085_v46 = vmul.f32 %v3168_v6, %v989_v12  ;;  %v993_v6 = vld [vmem:[#allocation2 + $0x30] sm:$0xff] }
 0x26e   : > { %v923_v51 = vpop.xlane.xlu1 %922  ;;  %v1089_v59 = vmul.f32 %v3174_v56, %v993_v6  ;;  %v995_v56 = vld [vmem:[#allocation2 + $0x40] sm:$0xff] }
 0x26f   : > { %v959_v55 = vadd.f32 %v923_v51, %v895_v40  ;;  %v1083_v40 = vmul.f32 %v3172_v53, %v987_v36  ;;  %v1086_v51 = vmul.f32 %v3176_v15, %v990_v24  ;;  %v991_v53 = vld [vmem:[#allocation2 + $0x20] sm:$0xff]  ;;  %v994_v15 = vld [vmem:[#allocation2 + $0x38] sm:$0xff] }
 0x270   : > { %v1087_v31 = vmul.f32 %v3170_v8, %v991_v53  ;;  %v997_v8 = vld [vmem:[#allocation2 + $0x50] sm:$0xff] }
 0x271   : > { %976 = vst.msk [vmem:[#allocation4 + $0x28] sm:$0xff] %vm970_vm3, %v959_v55  ;;  %v1093_v10 = vmul.f32 %v3184_v14, %v997_v8 }
 0x272   : > { %v926_v57 = vpop.xlane.xlu0 %925 }
 0x273   : > { %v960_v43 = vadd.f32 %v926_v57, %v896_v21 }
 0x275   : > { %977 = vst.msk [vmem:[#allocation4 + $0x30] sm:$0xff] %vm970_vm3, %v960_v43 }
 0x276   : > { %v929_v58 = vpop.xlane.xlu1 %928 }
 0x277   : > { %v961_v60 = vadd.f32 %v929_v58, %v897_v32  ;;  %v992_v58 = vld [vmem:[#allocation2 + $0x28] sm:$0xff] }
 0x279   : > { %978 = vst.msk [vmem:[#allocation4 + $0x38] sm:$0xff] %vm970_vm3, %v961_v60 }
 0x27a   : > { %v932_v62 = vpop.xlane.xlu0 %931 }
 0x27b   : > { %v962_v63 = vadd.f32 %v932_v62, %v898_v38  ;;  %v1090_v38 = vmul.f32 %v3182_v50, %v994_v15  ;;  %v998_v50 = vld [vmem:[#allocation2 + $0x58] sm:$0xff] }
 0x27d   : > { %979 = vst.msk [vmem:[#allocation4 + $0x40] sm:$0xff] %vm970_vm3, %v962_v63  ;;  %v1088_v63 = vmul.f32 %v3178_v23, %v992_v58  ;;  %v1091_v23 = vmul.f32 %v3180_v26, %v995_v56  ;;  %v1001_v26 = vld [vmem:[#allocation2 + $0x70] sm:$0xff]  ;;  %v2702_v58 = vld [vmem:[%s3595_s2 + $0x8] sm:$0xff] (%p1309_p6)  }
 0x27e   : > { %v935_v29 = vpop.xlane.xlu1 %934 }
 0x27f   : > { %v963_v1 = vadd.f32 %v935_v29, %v899_v47 }
 0x281   : > { %980 = vst.msk [vmem:[#allocation4 + $0x48] sm:$0xff] %vm970_vm3, %v963_v1 }
 0x282   : > { %v938_v9 = vpop.xlane.xlu0 %937 }
 0x283   : > { %v964_v18 = vadd.f32 %v938_v9, %v900_v54  ;;  %v996_v9 = vld [vmem:[#allocation2 + $0x48] sm:$0xff] }
 0x284   : > { %v1338_v6 = vld [vmem:[#allocation4 + $0x40] sm:$0xff] (%p1309_p6) }
 0x285   : > { %981 = vst.msk [vmem:[#allocation4 + $0x50] sm:$0xff] %vm970_vm3, %v964_v18 }
 0x286   : > { %v941_v35 = vpop.xlane.xlu1 %940 }
 0x287   : > { %v965_v20 = vadd.f32 %v941_v35, %v901_v42  ;;  %v1094_v42 = vmul.f32 %v3188_v16, %v998_v50  ;;  %v999_v16 = vld [vmem:[#allocation2 + $0x60] sm:$0xff] }
 0x289   : > { %982 = vst.msk [vmem:[#allocation4 + $0x58] sm:$0xff] %vm970_vm3, %v965_v20  ;;  %v1092_v20 = vmul.f32 %v3186_v52, %v996_v9 }
 0x28a   : > { %v944_v61 = vpop.xlane.xlu0 %943 }
 0x28b   : > { %v966_v28 = vadd.f32 %v944_v61, %v902_v5 }
 0x28d   : > { %983 = vst.msk [vmem:[#allocation4 + $0x60] sm:$0xff] %vm970_vm3, %v966_v28 }
 0x28e   : > { %v947_v37 = vpop.xlane.xlu1 %946 }
 0x28f   : > { %v967_v7 = vadd.f32 %v947_v37, %v903_v48  ;;  %v1002_v37 = vld [vmem:[#allocation2 + $0x78] sm:$0xff] }
 0x290   : > { %v1341_v15 = vld [vmem:[#allocation4 + $0x58] sm:$0xff] (%p1309_p6) }
 0x291   : > { %984 = vst.msk [vmem:[#allocation4 + $0x68] sm:$0xff] %vm970_vm3, %v967_v7  ;;  %v1000_v7 = vld [vmem:[#allocation2 + $0x68] sm:$0xff] }
 0x292   : > { %v950_v30 = vpop.xlane.xlu0 %949 }
 0x293   : > { %v968_v34 = vadd.f32 %v950_v30, %v904_v19  ;;  %v1095_v19 = vmul.f32 %v3190_v33, %v999_v16  ;;  %v1332_v33 = vld [vmem:[#allocation4 + $0x10] sm:$0xff] (%p1309_p6) }
 0x294   : > { %2706 = vrcp.f32 (%p1309_p6), %v1332_v33 }
 0x295   : > { %985 = vst.msk [vmem:[#allocation4 + $0x70] sm:$0xff] %vm970_vm3, %v968_v34 }
 0x296   : > { %v953_v39 = vpop.xlane.xlu1 %952 }
 0x297   : > { %v969_v44 = vadd.f32 %v953_v39, %v905_v49  ;;  %v1096_v39 = vmul.f32 %v3193_v11, %v1000_v7  ;;  %v2765_v11 = vmov (%p1309_p6), 0  }
 0x298   : > { %2700 = vset.pattern.permute.xlu1 (%p1309_p6), %v2765_v11  ;;  %2699 = vset.pattern.permute.xlu0 (%p1309_p6), %v2765_v11 }
 0x299   : > { %986 = vst.msk [vmem:[#allocation4 + $0x78] sm:$0xff] %vm970_vm3, %v969_v44 }
 0x29a   : > { %v1076_v14 = vpop.permute.xlu1 %1075  ;;  %v1081_v22 = vpop.permute.xlu0 %1080 }
 0x29b   : > { %v1097_v52 = vmul.f32 %v1076_v14, %v1001_v26  ;;  %v1098_v13 = vmul.f32 %v1081_v22, %v1002_v37 }
 0x2ad   : > { %v2518_v3 = vpop.f32.mrb[0].mxu0 }
 0x2ae   : > { %v1262_v41 = vadd.f32 %v2518_v3, %v1085_v46  ;;  %v1197_v55 = vpop.f32.mrb[1].mxu0  ;;  %v1330_v46 = vld [vmem:[#allocation4] sm:$0xff] (%p1309_p6)  ;;  %v1331_v3 = vld [vmem:[#allocation4 + $0x8] sm:$0xff] (%p1309_p6) }
 0x2af   : > { %v1260_v21 = vadd.f32 %v1197_v55, %v1083_v40  ;;  %v2519_v57 = vpop.f32.mrb[2].mxu0  ;;  %v1333_v40 = vld [vmem:[#allocation4 + $0x18] sm:$0xff] (%p1309_p6)  ;;  %2708 = vrcp.f32 (%p1309_p6), %v1330_v46 }
 0x2b0   : > { %1279 = vst.msk [vmem:[#allocation2 + $0x10] sm:$0xff] %vm1276_vm4, %v1262_v41  ;;  %v1263_v27 = vadd.f32 %v2519_v57, %v1086_v51  ;;  %v1200_v43 = vpop.f32.mrb[3].mxu0  ;;  %2710 = vrcp.f32 (%p1309_p6), %v1333_v40  ;;  %v1335_v51 = vld [vmem:[#allocation4 + $0x28] sm:$0xff] (%p1309_p6)  ;;  %v1334_v41 = vld [vmem:[#allocation4 + $0x20] sm:$0xff] (%p1309_p6)  ;;  %v1337_v55 = vld [vmem:[#allocation4 + $0x38] sm:$0xff] (%p1309_p6) }
 0x2b1   : > { %1277 = vst.msk [vmem:[#allocation2] sm:$0xff] %vm1276_vm4, %v1260_v21  ;;  %v1261_v32 = vadd.f32 %v1200_v43, %v1084_v4  ;;  %2712 = vrcp.f32 (%p1309_p6), %v1331_v3  ;;  %v1336_v4 = vld [vmem:[#allocation4 + $0x30] sm:$0xff] (%p1309_p6)  ;;  %v2707_v21 = vpop.eup (%p1309_p6), %2706  ;;  %v2701_v43 = vld [vmem:[%s3595_s2] sm:$0xff] (%p1309_p6)  }
 0x2b2   : > { %1280 = vst.msk [vmem:[#allocation2 + $0x18] sm:$0xff] %vm1276_vm4, %v1263_v27  ;;  %2714 = vrcp.f32 (%p1309_p6), %v1335_v51  ;;  %1374 = vperm.xlu1 (%p1309_p6), %2700, %v2707_v21   ;;  %v1339_v27 = vld [vmem:[#allocation4 + $0x48] sm:$0xff] (%p1309_p6)  ;;  %2532 = vmatprep.subr.bf16.mxu0 (%p1309_p6), %v2701_v43 }
 0x2b3   : > { %1278 = vst.msk [vmem:[#allocation2 + $0x8] sm:$0xff] %vm1276_vm4, %v1261_v32  ;;  %2716 = vrcp.f32 (%p1309_p6), %v1334_v41  ;;  %2533 = vmatpush3.bf16.msra.mxu0 (%p1309_p6), %v2701_v43 }
 0x2b4   : > { %2718 = vrcp.f32 (%p1309_p6), %v1337_v55  ;;  %2534 = vmatprep.subr.bf16.mxu0 (%p1309_p6), %v2702_v58 }
 0x2b5   : > { %2720 = vrcp.f32 (%p1309_p6), %v1336_v4 }
 0x2b6   : > { %2722 = vrcp.f32 (%p1309_p6), %v1339_v27 }
 0x2b7   : > { %2724 = vrcp.f32 (%p1309_p6), %v1338_v6  ;;  %2535 = vmatpush3.bf16.msra.mxu0 (%p1309_p6), %v2702_v58 }
 0x2b8   : > { %2726 = vrcp.f32 (%p1309_p6), %v1341_v15 }
 0x2b9   : > { %v2709_v57 = vpop.eup (%p1309_p6), %2708 }
 0x2ba   : > { %v2711_v32 = vpop.eup (%p1309_p6), %2710  ;;  %1364 = vperm.xlu0 (%p1309_p6), %2699, %v2709_v57  }
 0x2bb   : > { %v2713_v53 = vpop.eup (%p1309_p6), %2712  ;;  %1379 = vperm.xlu1 (%p1309_p6), %2700, %v2711_v32  }
 0x2bd   : > { %v2522_v60 = vpop.f32.mrb[4].mxu0 }
 0x2be   : > { %v1266_v62 = vadd.f32 %v2522_v60, %v1089_v59  ;;  %v1213_v45 = vpop.f32.mrb[5].mxu0  ;;  %v2715_v59 = vpop.eup (%p1309_p6), %2714  ;;  %1369 = vperm.xlu0 (%p1309_p6), %2699, %v2713_v53  }
 0x2bf   : > { %v1264_v47 = vadd.f32 %v1213_v45, %v1087_v31  ;;  %v2523_v29 = vpop.f32.mrb[6].mxu0  ;;  %v1340_v31 = vld [vmem:[#allocation4 + $0x50] sm:$0xff] (%p1309_p6)  ;;  %v2717_v60 = vpop.eup (%p1309_p6), %2716  ;;  %1389 = vperm.xlu1 (%p1309_p6), %2700, %v2715_v59   ;;  %v1342_v45 = vld [vmem:[#allocation4 + $0x60] sm:$0xff] (%p1309_p6) }
 0x2c0   : > { %1283 = vst.msk [vmem:[#allocation2 + $0x30] sm:$0xff] %vm1276_vm4, %v1266_v62  ;;  %v1267_v0 = vadd.f32 %v2523_v29, %v1090_v38  ;;  %v1216_v1 = vpop.f32.mrb[7].mxu0  ;;  %2728 = vrcp.f32 (%p1309_p6), %v1340_v31  ;;  %v1343_v38 = vld [vmem:[#allocation4 + $0x68] sm:$0xff] (%p1309_p6)  ;;  %v2719_v62 = vpop.eup (%p1309_p6), %2718 }
 0x2c1   : > { %1281 = vst.msk [vmem:[#allocation2 + $0x20] sm:$0xff] %vm1276_vm4, %v1264_v47  ;;  %v1265_v54 = vadd.f32 %v1216_v1, %v1088_v63  ;;  %v2721_v63 = vpop.eup (%p1309_p6), %2720  ;;  %2730 = vrcp.f32 (%p1309_p6), %v1343_v38  ;;  %v1345_v47 = vld [vmem:[#allocation4 + $0x78] sm:$0xff] (%p1309_p6) }
 0x2c2   : > { %1284 = vst.msk [vmem:[#allocation2 + $0x38] sm:$0xff] %vm1276_vm4, %v1267_v0  ;;  %1384 = vperm.xlu0 (%p1309_p6), %2699, %v2717_v60   ;;  %2732 = vrcp.f32 (%p1309_p6), %v1342_v45  ;;  %v2723_v29 = vpop.eup (%p1309_p6), %2722  ;;  %v1344_v0 = vld [vmem:[#allocation4 + $0x70] sm:$0xff] (%p1309_p6) }
 0x2c3   : > { %1282 = vst.msk [vmem:[#allocation2 + $0x28] sm:$0xff] %vm1276_vm4, %v1265_v54  ;;  %1399 = vperm.xlu1 (%p1309_p6), %2700, %v2719_v62   ;;  %v2725_v1 = vpop.eup (%p1309_p6), %2724  ;;  %2734 = vrcp.f32 (%p1309_p6), %v1345_v47 }
 0x2c4   : > { %2736 = vrcp.f32 (%p1309_p6), %v1344_v0  ;;  %v2727_v54 = vpop.eup (%p1309_p6), %2726  ;;  %v2703_v0 = vld [vmem:[%s3598_s5] sm:$0xff] (%p1309_p6)  }
 0x2c5   : > { %2552 = vmatprep.subr.bf16.mxu0 (%p1309_p6), %v2703_v0  ;;  %2598 = vmatprep.subr.bf16.mxu1 (%p1309_p6), %v2703_v0 }
 0x2c6   : > { %1394 = vperm.xlu0 (%p1309_p6), %2699, %v2721_v63   ;;  %2599 = vmatpush3.bf16.msra.mxu1 (%p1309_p6), %v2703_v0 }
 0x2c7   : > { %1409 = vperm.xlu1 (%p1309_p6), %2700, %v2723_v29  }
 0x2c8   : > { %v1318_v37 = vld [vmem:[#allocation2 + $0x20] sm:$0xff] (%p1309_p6) }
 0x2ca   : > { %1404 = vperm.xlu0 (%p1309_p6), %2699, %v2725_v1   ;;  %v2729_v8 = vpop.eup (%p1309_p6), %2728  ;;  %v1319_v14 = vld [vmem:[#allocation2 + $0x28] sm:$0xff] (%p1309_p6)  ;;  %v2704_v1 = vld [vmem:[%s3601_s8] sm:$0xff] (%p1309_p6)  }
 0x2cb   : > { %1419 = vperm.xlu1 (%p1309_p6), %2700, %v2727_v54   ;;  %v2731_v56 = vpop.eup (%p1309_p6), %2730  ;;  %2570 = vmatprep.subr.bf16.mxu1 (%p1309_p6), %v2704_v1  ;;  %v3306_v54 = vld [vmem:[%s3596_s3] ss:$0 sm:$0xff] (%p1309_p6) }
 0x2cc   : > { %v2733_v50 = vpop.eup (%p1309_p6), %2732 }
 0x2cd   : > { %v2526_v18 = vpop.f32.mrb[0].mxu1  ;;  %v2735_v9 = vpop.eup (%p1309_p6), %2734 }
 0x2ce   : > { %v1270_v35 = vadd.f32 %v2526_v18, %v1093_v10  ;;  %v1229_v17 = vpop.f32.mrb[1].mxu1  ;;  %1414 = vperm.xlu0 (%p1309_p6), %2699, %v2729_v8   ;;  %v2737_v10 = vpop.eup (%p1309_p6), %2736 }
 0x2cf   : > { %v1268_v5 = vadd.f32 %v1229_v17, %v1091_v23  ;;  %v2527_v61 = vpop.f32.mrb[2].mxu1  ;;  %1429 = vperm.xlu1 (%p1309_p6), %2700, %v2731_v56   ;;  %v1314_v17 = vld [vmem:[#allocation2] sm:$0xff] (%p1309_p6) }
 0x2d0   : > { %1287 = vst.msk [vmem:[#allocation2 + $0x50] sm:$0xff] %vm1276_vm4, %v1270_v35  ;;  %v1271_v2 = vadd.f32 %v2527_v61, %v1094_v42  ;;  %v1232_v28 = vpop.f32.mrb[3].mxu1  ;;  %v1316_v42 = vld [vmem:[#allocation2 + $0x10] sm:$0xff] (%p1309_p6)  ;;  %v1317_v35 = vld [vmem:[#allocation2 + $0x18] sm:$0xff] (%p1309_p6)  ;;  %v3311_v56 = vld [vmem:[%s3597_s4] ss:$0 sm:$0xff] (%p1309_p6) }
 0x2d1   : > { %1285 = vst.msk [vmem:[#allocation2 + $0x40] sm:$0xff] %vm1276_vm4, %v1268_v5  ;;  %v1269_v48 = vadd.f32 %v1232_v28, %v1092_v20  ;;  %v1315_v20 = vld [vmem:[#allocation2 + $0x8] sm:$0xff] (%p1309_p6) }
 0x2d2   : > { %1288 = vst.msk [vmem:[#allocation2 + $0x58] sm:$0xff] %vm1276_vm4, %v1271_v2  ;;  %1424 = vperm.xlu0 (%p1309_p6), %2699, %v2733_v50  }
 0x2d3   : > { %1286 = vst.msk [vmem:[#allocation2 + $0x48] sm:$0xff] %vm1276_vm4, %v1269_v48  ;;  %1439 = vperm.xlu1 (%p1309_p6), %2700, %v2735_v9  }
 0x2d6   : > { %1434 = vperm.xlu0 (%p1309_p6), %2699, %v2737_v10  }
 0x2d7   : > { %v1324_v41 = vld [vmem:[#allocation2 + $0x50] sm:$0xff] (%p1309_p6) }
 0x2d9   : > { %v1325_v51 = vld [vmem:[#allocation2 + $0x58] sm:$0xff] (%p1309_p6) }
 0x2dd   : > { %v2530_v30 = vpop.f32.mrb[4].mxu1  ;;  %1313 = sbr.rel (!%p1309_p6) target bundleno = 1339 (0x53b), region = 72 }
 0x2de   : > { %v1274_v34 = vadd.f32 %v2530_v30, %v1097_v52  ;;  %v1245_v49 = vpop.f32.mrb[5].mxu1 }
 0x2df   : > { %v1272_v44 = vadd.f32 %v1245_v49, %v1095_v19  ;;  %v2531_v12 = vpop.f32.mrb[6].mxu1 }
 0x2e0   : > { %1291 = vst.msk [vmem:[#allocation2 + $0x70] sm:$0xff] %vm1276_vm4, %v1274_v34  ;;  %v1275_v36 = vadd.f32 %v2531_v12, %v1098_v13  ;;  %v1248_v24 = vpop.f32.mrb[7].mxu1  ;;  %v1321_v13 = vld [vmem:[#allocation2 + $0x38] sm:$0xff] (%p1309_p6)  ;;  %v1320_v34 = vld [vmem:[#allocation2 + $0x30] sm:$0xff] (%p1309_p6) }
 0x2e1   : > { %1289 = vst.msk [vmem:[#allocation2 + $0x60] sm:$0xff] %vm1276_vm4, %v1272_v44  ;;  %v1273_v25 = vadd.f32 %v1248_v24, %v1096_v39  ;;  %v1323_v24 = vld [vmem:[#allocation2 + $0x48] sm:$0xff] (%p1309_p6) }
 0x2e2   : > { %1292 = vst.msk [vmem:[#allocation2 + $0x78] sm:$0xff] %vm1276_vm4, %v1275_v36 }
 0x2e3   : > { %1290 = vst.msk [vmem:[#allocation2 + $0x68] sm:$0xff] %vm1276_vm4, %v1273_v25  ;;  %v1322_v25 = vld [vmem:[#allocation2 + $0x40] sm:$0xff] (%p1309_p6) }
 0x2e7   : > { %v1328_v60 = vld [vmem:[#allocation2 + $0x70] sm:$0xff] }
 0x2e8   : > { %v1326_v32 = vld [vmem:[#allocation2 + $0x60] sm:$0xff] }
 0x2e9   : > { %v1329_v31 = vld [vmem:[#allocation2 + $0x78] sm:$0xff] }
 0x2ea   : > { %v1327_v43 = vld [vmem:[#allocation2 + $0x68] sm:$0xff] }
 0x331   : > { %v1375_v23 = vpop.permute.xlu1 %1374 }
 0x332   : > { %v1444_v61 = vmul.f32 %v1375_v23, %v1316_v42 }
 0x339   : > { %v1365_v18 = vpop.permute.xlu0 %1364 }
 0x33a   : > { %v1380_v5 = vpop.permute.xlu1 %1379  ;;  %v1442_v48 = vmul.f32 %v1365_v18, %v1314_v17 }
 0x33b   : > { %v1445_v2 = vmul.f32 %v1380_v5, %v1317_v35 }
 0x33d   : > { %v1370_v28 = vpop.permute.xlu0 %1369  ;;  %v3265_v16 = vpack.c.bf16 %v1445_v2, %v1444_v61 }
 0x33e   : > { %v1443_v26 = vmul.f32 %v1370_v28, %v1315_v20  ;;  %v1390_v22 = vpop.permute.xlu1 %1389 }
 0x33f   : > { %v1447_v52 = vmul.f32 %v1390_v22, %v1319_v14 }
 0x340   : > { %v3267_v7 = vpack.c.bf16 %v1443_v26, %v1442_v48 }
 0x341   : > { %v1385_v19 = vpop.permute.xlu0 %1384 }
 0x342   : > { %v1446_v30 = vmul.f32 %v1385_v19, %v1318_v37  ;;  %2536 = vmatprep.mubr.msk.bf16.mxu0 %vm1276_vm4, %v3267_v7  ;;  %v1400_v39 = vpop.permute.xlu1 %1399 }
 0x343   : > { %2537 = vmatmul.mubr.msk.bf16.vlgmr.msra.gmra.mrb[0].mxu0 %vm1276_vm4, %v3265_v16  ;;  %v1449_v44 = vmul.f32 %v1400_v39, %v1321_v13 }
 0x344   : > { %v3273_v49 = vpack.c.bf16 %v1447_v52, %v1446_v30  ;;  %2553 = vmatpush3.bf16.msra.mxu0 %v2703_v0 }
 0x345   : > { %v1395_v12 = vpop.permute.xlu0 %1394 }
 0x346   : > { %v1448_v36 = vmul.f32 %v1395_v12, %v1320_v34  ;;  %2540 = vmatprep.mubr.msk.bf16.mxu0 %vm1276_vm4, %v3273_v49  ;;  %v1410_v46 = vpop.permute.xlu1 %1409 }
 0x347   : > { %v1451_v40 = vmul.f32 %v1410_v46, %v1323_v24 }
 0x348   : > { %v3277_v33 = vpack.c.bf16 %v1449_v44, %v1448_v36 }
 0x349   : > { %v1405_v11 = vpop.permute.xlu0 %1404 }
 0x34a   : > { %v1450_v3 = vmul.f32 %v1405_v11, %v1322_v25  ;;  %v1420_v4 = vpop.permute.xlu1 %1419 }
 0x34b   : > { %2541 = vmatmul.mubr.msk.bf16.gmra.mrb[4].mxu0 %vm1276_vm4, %v3277_v33  ;;  %v1453_v21 = vmul.f32 %v1420_v4, %v1325_v51 }
 0x34c   : > { %v3281_v55 = vpack.c.bf16 %v1451_v40, %v1450_v3 }
 0x34d   : > { %v1415_v57 = vpop.permute.xlu0 %1414 }
 0x34e   : > { %v1452_v27 = vmul.f32 %v1415_v57, %v1324_v41  ;;  %2544 = vmatprep.mubr.msk.bf16.mxu0 %vm1276_vm4, %v3281_v55  ;;  %v1430_v53 = vpop.permute.xlu1 %1429 }
 0x34f   : > { %v1455_v15 = vmul.f32 %v1430_v53, %v1327_v43 }
 0x350   : > { %v3285_v6 = vpack.c.bf16 %v1453_v21, %v1452_v27 }
 0x351   : > { %v1425_v58 = vpop.permute.xlu0 %1424 }
 0x352   : > { %v1454_v59 = vmul.f32 %v1425_v58, %v1326_v32  ;;  %v1440_v62 = vpop.permute.xlu1 %1439  ;;  %v2705_v58 = vld [vmem:[%s3601_s8 + $0x8] sm:$0xff]  }
 0x353   : > { %2545 = vmatmul.mubr.msk.bf16.gmra.mrb[8].mxu0 %vm1276_vm4, %v3285_v6  ;;  %v1457_v45 = vmul.f32 %v1440_v62, %v1329_v31 }
 0x354   : > { %v3289_v38 = vpack.c.bf16 %v1455_v15, %v1454_v59 }
 0x355   : > { %v1435_v63 = vpop.permute.xlu0 %1434 }
 0x356   : > { %v1456_v47 = vmul.f32 %v1435_v63, %v1328_v60  ;;  %2548 = vmatprep.mubr.msk.bf16.mxu0 %vm1276_vm4, %v3289_v38 }
 0x358   : > { %v3293_v29 = vpack.c.bf16 %v1457_v45, %v1456_v47 }
 0x35b   : > { %2549 = vmatmul.mubr.msk.bf16.gmra.mrb[12].mxu0 %vm1276_vm4, %v3293_v29 }
 0x416   : > { %v2538_v8 = vpop.f32.mrb[0].mxu0 }
 0x417   : > { %v1612_v50 = vmul.f32 %v2538_v8, %v3306_v54  ;;  %v1540_v9 = vpop.f32.mrb[1].mxu0 }
 0x418   : > { %v1610_v10 = vmul.f32 %v3306_v54, %v1540_v9  ;;  %v2539_v23 = vpop.f32.mrb[2].mxu0 }
 0x419   : > { %v1635_v18 = vadd.f32 %v3311_v56, %v1612_v50  ;;  %v1613_v42 = vmul.f32 %v2539_v23, %v3306_v54  ;;  %v1543_v35 = vpop.f32.mrb[3].mxu0 }
 0x41a   : > { %v1633_v17 = vadd.f32 %v3311_v56, %v1610_v10  ;;  %v1611_v20 = vmul.f32 %v3306_v54, %v1543_v35 }
 0x41b   : > { %v1636_v5 = vadd.f32 %v3311_v56, %v1613_v42  ;;  %v1651_v2 = vmax.f32 %v1635_v18, 0.0 }
 0x41c   : > { %v1634_v61 = vadd.f32 %v3311_v56, %v1611_v20  ;;  %v1649_v48 = vmax.f32 %v1633_v17, 0.0 }
 0x41d   : > { %v1652_v28 = vmax.f32 %v1636_v5, 0.0 }
 0x41e   : > { %v1650_v26 = vmax.f32 %v1634_v61, 0.0  ;;  %v2542_v14 = vpop.f32.mrb[4].mxu0 }
 0x41f   : > { %v1666_v37 = vpack.c.bf16 %v1652_v28, %v1651_v2  ;;  %v1616_v22 = vmul.f32 %v2542_v14, %v3306_v54  ;;  %v1556_v52 = vpop.f32.mrb[5].mxu0 }
 0x420   : > { %v1665_v19 = vpack.c.bf16 %v1650_v26, %v1649_v48  ;;  %v1614_v30 = vmul.f32 %v3306_v54, %v1556_v52  ;;  %v2543_v13 = vpop.f32.mrb[6].mxu0 }
 0x421   : > { %v1639_v34 = vadd.f32 %v3311_v56, %v1616_v22  ;;  %v1617_v39 = vmul.f32 %v2543_v13, %v3306_v54  ;;  %v1559_v44 = vpop.f32.mrb[7].mxu0 }
 0x422   : > { %v1637_v12 = vadd.f32 %v3311_v56, %v1614_v30  ;;  %v1615_v36 = vmul.f32 %v3306_v54, %v1559_v44  ;;  %2554 = vmatprep.mubr.msk.bf16.mxu0 %vm1681_vm5, %v1665_v19 }
 0x423   : > { %v1640_v24 = vadd.f32 %v3311_v56, %v1617_v39  ;;  %2555 = vmatmul.mubr.msk.bf16.vlgmr.msra.gmra.mrb[16].mxu0 %vm1681_vm5, %v1666_v37  ;;  %v1655_v46 = vmax.f32 %v1639_v34, 0.0 }
 0x424   : > { %v1638_v25 = vadd.f32 %v3311_v56, %v1615_v36  ;;  %v1653_v11 = vmax.f32 %v1637_v12, 0.0 }
 0x425   : > { %v1656_v40 = vmax.f32 %v1640_v24, 0.0 }
 0x426   : > { %v1654_v3 = vmax.f32 %v1638_v25, 0.0  ;;  %v2546_v51 = vpop.f32.mrb[8].mxu0 }
 0x427   : > { %v1668_v41 = vpack.c.bf16 %v1656_v40, %v1655_v46  ;;  %v1620_v4 = vmul.f32 %v2546_v51, %v3306_v54  ;;  %v1572_v21 = vpop.f32.mrb[9].mxu0 }
 0x428   : > { %v1618_v57 = vmul.f32 %v3306_v54, %v1572_v21  ;;  %v2547_v27 = vpop.f32.mrb[10].mxu0  ;;  %v1667_v43 = vpack.c.bf16 %v1654_v3, %v1653_v11 }
 0x429   : > { %v1643_v32 = vadd.f32 %v3311_v56, %v1620_v4  ;;  %v1621_v53 = vmul.f32 %v2547_v27, %v3306_v54  ;;  %v1575_v15 = vpop.f32.mrb[11].mxu0 }
 0x42a   : > { %v1641_v59 = vadd.f32 %v3311_v56, %v1618_v57  ;;  %v1619_v31 = vmul.f32 %v3306_v54, %v1575_v15  ;;  %2558 = vmatprep.mubr.msk.bf16.mxu1 %vm1681_vm5, %v1667_v43 }
 0x42b   : > { %v1644_v60 = vadd.f32 %v3311_v56, %v1621_v53  ;;  %2559 = vmatmul.mubr.msk.bf16.vlgmr.msra.gmra.mrb[0].mxu1 %vm1681_vm5, %v1668_v41  ;;  %v1659_v45 = vmax.f32 %v1643_v32, 0.0 }
 0x42c   : > { %v1642_v62 = vadd.f32 %v3311_v56, %v1619_v31  ;;  %2571 = vmatpush3.bf16.msra.mxu1 %v2704_v1  ;;  %v1657_v47 = vmax.f32 %v1641_v59, 0.0 }
 0x42d   : > { %v1660_v63 = vmax.f32 %v1644_v60, 0.0  ;;  %2572 = vmatprep.subr.bf16.mxu1 %v2705_v58 }
 0x42e   : > { %v1658_v0 = vmax.f32 %v1642_v62, 0.0  ;;  %v2550_v8 = vpop.f32.mrb[12].mxu0 }
 0x42f   : > { %v1670_v50 = vpack.c.bf16 %v1660_v63, %v1659_v45  ;;  %v1624_v9 = vmul.f32 %v2550_v8, %v3306_v54  ;;  %v1588_v10 = vpop.f32.mrb[13].mxu0 }
 0x430   : > { %v1669_v23 = vpack.c.bf16 %v1658_v0, %v1657_v47  ;;  %v1622_v18 = vmul.f32 %v3306_v54, %v1588_v10  ;;  %v2551_v42 = vpop.f32.mrb[14].mxu0  ;;  %2573 = vmatpush3.bf16.msra.mxu1 %v2705_v58 }
 0x431   : > { %v1647_v35 = vadd.f32 %v3311_v56, %v1624_v9  ;;  %v1625_v17 = vmul.f32 %v2551_v42, %v3306_v54  ;;  %v1591_v1 = vpop.f32.mrb[15].mxu0 }
 0x432   : > { %v1645_v20 = vadd.f32 %v3311_v56, %v1622_v18  ;;  %v1623_v5 = vmul.f32 %v3306_v54, %v1591_v1  ;;  %2562 = vmatprep.mubr.msk.bf16.mxu1 %vm1681_vm5, %v1669_v23 }
 0x433   : > { %v1648_v61 = vadd.f32 %v3311_v56, %v1625_v17  ;;  %2563 = vmatmul.mubr.msk.bf16.gmra.mrb[4].mxu1 %vm1681_vm5, %v1670_v50  ;;  %v1663_v28 = vmax.f32 %v1647_v35, 0.0 }
 0x434   : > { %v1646_v2 = vadd.f32 %v3311_v56, %v1623_v5  ;;  %v1661_v26 = vmax.f32 %v1645_v20, 0.0 }
 0x435   : > { %v1664_v48 = vmax.f32 %v1648_v61, 0.0 }
 0x436   : > { %v1662_v14 = vmax.f32 %v1646_v2, 0.0 }
 0x437   : > { %v1672_v37 = vpack.c.bf16 %v1664_v48, %v1663_v28 }
 0x438   : > { %v1671_v22 = vpack.c.bf16 %v1662_v14, %v1661_v26 }
 0x43a   : > { %2566 = vmatprep.mubr.msk.bf16.mxu1 %vm1681_vm5, %v1671_v22 }
 0x43b   : > { %2567 = vmatmul.mubr.msk.bf16.gmra.mrb[8].mxu1 %vm1681_vm5, %v1672_v37 }
 0x43c   : > { %2574 = vmatprep.mubr.msk.bf16.mxu1 %vm1276_vm4, %v3267_v7 }
 0x443   : > { %2575 = vmatmul.mubr.msk.bf16.vlgmr.msra.gmra.mrb[12].mxu1 %vm1276_vm4, %v3265_v16  ;;  %v3375_v16 = vld [vmem:[%s3599_s6] ss:$0 sm:$0xff] }
 0x444   : > { %2578 = vmatprep.mubr.msk.bf16.mxu1 %vm1276_vm4, %v3273_v49  ;;  %v3380_v49 = vld [vmem:[%s3600_s7] ss:$0 sm:$0xff] }
 0x44b   : > { %2579 = vmatmul.mubr.msk.bf16.gmra.mrb[16].mxu1 %vm1276_vm4, %v3277_v33 }
 0x44c   : > { %2582 = vmatprep.mubr.msk.bf16.mxu1 %vm1276_vm4, %v3281_v55 }
 0x453   : > { %2583 = vmatmul.mubr.msk.bf16.gmra.mrb[20].mxu1 %vm1276_vm4, %v3285_v6 }
 0x454   : > { %2586 = vmatprep.mubr.msk.bf16.mxu1 %vm1276_vm4, %v3289_v38 }
 0x45b   : > { %2587 = vmatmul.mubr.msk.bf16.gmra.mrb[24].mxu1 %vm1276_vm4, %v3293_v29 }
 0x4f6   : > { %v2556_v7 = vpop.f32.mrb[16].mxu0 }
 0x4f7   : > { %v1812_v33 = vmul.f32 %v2556_v7, %v3375_v16  ;;  %v1740_v55 = vpop.f32.mrb[17].mxu0 }
 0x4f8   : > { %v1810_v6 = vmul.f32 %v3375_v16, %v1740_v55  ;;  %v2557_v38 = vpop.f32.mrb[18].mxu0 }
 0x4f9   : > { %v1835_v54 = vadd.f32 %v3380_v49, %v1812_v33  ;;  %v1813_v29 = vmul.f32 %v2557_v38, %v3375_v16  ;;  %v1743_v56 = vpop.f32.mrb[19].mxu0 }
 0x4fa   : > { %v1833_v52 = vadd.f32 %v3380_v49, %v1810_v6  ;;  %v1811_v19 = vmul.f32 %v3375_v16, %v1743_v56 }
 0x4fb   : > { %v1851_v30 = vmax.f32 %v1835_v54, 0.0  ;;  %v1836_v13 = vadd.f32 %v3380_v49, %v1813_v29 }
 0x4fc   : > { %v1849_v34 = vmax.f32 %v1833_v52, 0.0  ;;  %v1834_v39 = vadd.f32 %v3380_v49, %v1811_v19 }
 0x4fd   : > { %v2418_v44 = vpack.c.bf16 %v1851_v30, %v1851_v30  ;;  %v1852_v12 = vmax.f32 %v1836_v13, 0.0 }
 0x4fe   : > { %v2416_v36 = vpack.c.bf16 %v1849_v34, %v1849_v34  ;;  %v1850_v24 = vmax.f32 %v1834_v39, 0.0  ;;  %v2560_v25 = vpop.f32.mrb[0].mxu1  ;;  %v3465_v34 = vld [vmem:[%s3602_s9] ss:$0 sm:$0xff] }
 0x4ff   : > { %2107 = vst.msk [vmem:[%s3604_s11 + $0x8] sm:$0xf] %vm2104_vm6, %v2418_v44  ;;  %v2419_v46 = vpack.c.bf16 %v1852_v12, %v1852_v12  ;;  %v1816_v40 = vmul.f32 %v2560_v25, %v3375_v16  ;;  %v1756_v11 = vpop.f32.mrb[1].mxu1 }
 0x500   : > { %2105 = vst.msk [vmem:[%s3604_s11] sm:$0xf] %vm2104_vm6, %v2416_v36  ;;  %v2417_v3 = vpack.c.bf16 %v1850_v24, %v1850_v24  ;;  %v1814_v51 = vmul.f32 %v3375_v16, %v1756_v11  ;;  %v2561_v41 = vpop.f32.mrb[2].mxu1 }
 0x501   : > { %2108 = vst.msk [vmem:[%s3604_s11 + $0xc] sm:$0xf] %vm2104_vm6, %v2419_v46  ;;  %v1839_v4 = vadd.f32 %v3380_v49, %v1816_v40  ;;  %v1817_v21 = vmul.f32 %v2561_v41, %v3375_v16  ;;  %v1759_v57 = vpop.f32.mrb[3].mxu1 }
 0x502   : > { %2106 = vst.msk [vmem:[%s3604_s11 + $0x4] sm:$0xf] %vm2104_vm6, %v2417_v3  ;;  %v1837_v27 = vadd.f32 %v3380_v49, %v1814_v51  ;;  %v1815_v43 = vmul.f32 %v3375_v16, %v1759_v57 }
 0x503   : > { %v1855_v32 = vmax.f32 %v1839_v4, 0.0  ;;  %v1840_v53 = vadd.f32 %v3380_v49, %v1817_v21 }
 0x504   : > { %v1853_v15 = vmax.f32 %v1837_v27, 0.0  ;;  %v1838_v58 = vadd.f32 %v3380_v49, %v1815_v43 }
 0x505   : > { %v2422_v59 = vpack.c.bf16 %v1855_v32, %v1855_v32  ;;  %v1856_v31 = vmax.f32 %v1840_v53, 0.0 }
 0x506   : > { %v2420_v60 = vpack.c.bf16 %v1853_v15, %v1853_v15  ;;  %v1854_v62 = vmax.f32 %v1838_v58, 0.0  ;;  %v2564_v45 = vpop.f32.mrb[4].mxu1 }
 0x507   : > { %2111 = vst.msk [vmem:[%s3604_s11 + $0x18] sm:$0xf] %vm2104_vm6, %v2422_v59  ;;  %v2423_v63 = vpack.c.bf16 %v1856_v31, %v1856_v31  ;;  %v1820_v47 = vmul.f32 %v2564_v45, %v3375_v16  ;;  %v1772_v0 = vpop.f32.mrb[5].mxu1 }
 0x508   : > { %2109 = vst.msk [vmem:[%s3604_s11 + $0x10] sm:$0xf] %vm2104_vm6, %v2420_v60  ;;  %v2421_v8 = vpack.c.bf16 %v1854_v62, %v1854_v62  ;;  %v1818_v50 = vmul.f32 %v3375_v16, %v1772_v0  ;;  %v2565_v9 = vpop.f32.mrb[6].mxu1 }
 0x509   : > { %2112 = vst.msk [vmem:[%s3604_s11 + $0x1c] sm:$0xf] %vm2104_vm6, %v2423_v63  ;;  %v1843_v10 = vadd.f32 %v3380_v49, %v1820_v47  ;;  %v1821_v23 = vmul.f32 %v2565_v9, %v3375_v16  ;;  %v1775_v18 = vpop.f32.mrb[7].mxu1 }
 0x50a   : > { %2110 = vst.msk [vmem:[%s3604_s11 + $0x14] sm:$0xf] %vm2104_vm6, %v2421_v8  ;;  %v1841_v42 = vadd.f32 %v3380_v49, %v1818_v50  ;;  %v1819_v35 = vmul.f32 %v3375_v16, %v1775_v18 }
 0x50b   : > { %v1859_v17 = vmax.f32 %v1843_v10, 0.0  ;;  %v1844_v1 = vadd.f32 %v3380_v49, %v1821_v23 }
 0x50c   : > { %v1857_v20 = vmax.f32 %v1841_v42, 0.0  ;;  %v1842_v5 = vadd.f32 %v3380_v49, %v1819_v35 }
 0x50d   : > { %v2426_v61 = vpack.c.bf16 %v1859_v17, %v1859_v17  ;;  %v1860_v2 = vmax.f32 %v1844_v1, 0.0 }
 0x50e   : > { %v2424_v28 = vpack.c.bf16 %v1857_v20, %v1857_v20  ;;  %v1858_v48 = vmax.f32 %v1842_v5, 0.0  ;;  %v2568_v26 = vpop.f32.mrb[8].mxu1 }
 0x50f   : > { %2115 = vst.msk [vmem:[%s3604_s11 + $0x28] sm:$0xf] %vm2104_vm6, %v2426_v61  ;;  %v2427_v14 = vpack.c.bf16 %v1860_v2, %v1860_v2  ;;  %v1824_v37 = vmul.f32 %v2568_v26, %v3375_v16  ;;  %v1788_v22 = vpop.f32.mrb[9].mxu1 }
 0x510   : > { %2113 = vst.msk [vmem:[%s3604_s11 + $0x20] sm:$0xf] %vm2104_vm6, %v2424_v28  ;;  %v2425_v7 = vpack.c.bf16 %v1858_v48, %v1858_v48  ;;  %v1822_v33 = vmul.f32 %v3375_v16, %v1788_v22  ;;  %v2569_v55 = vpop.f32.mrb[10].mxu1 }
 0x511   : > { %2116 = vst.msk [vmem:[%s3604_s11 + $0x2c] sm:$0xf] %vm2104_vm6, %v2427_v14  ;;  %v1847_v6 = vadd.f32 %v3380_v49, %v1824_v37  ;;  %v1825_v38 = vmul.f32 %v2569_v55, %v3375_v16  ;;  %v1791_v54 = vpop.f32.mrb[11].mxu1 }
 0x512   : > { %2114 = vst.msk [vmem:[%s3604_s11 + $0x24] sm:$0xf] %vm2104_vm6, %v2425_v7  ;;  %v1845_v29 = vadd.f32 %v3380_v49, %v1822_v33  ;;  %v1823_v56 = vmul.f32 %v3375_v16, %v1791_v54  ;;  %v3470_v16 = vld [vmem:[%s3603_s10] ss:$0 sm:$0xff] }
 0x513   : > { %v1863_v52 = vmax.f32 %v1847_v6, 0.0  ;;  %v1848_v19 = vadd.f32 %v3380_v49, %v1825_v38 }
 0x514   : > { %v1861_v30 = vmax.f32 %v1845_v29, 0.0  ;;  %v1846_v13 = vadd.f32 %v3380_v49, %v1823_v56 }
 0x515   : > { %v2430_v39 = vpack.c.bf16 %v1863_v52, %v1863_v52  ;;  %v1864_v44 = vmax.f32 %v1848_v19, 0.0 }
 0x516   : > { %v2428_v12 = vpack.c.bf16 %v1861_v30, %v1861_v30  ;;  %v1862_v36 = vmax.f32 %v1846_v13, 0.0  ;;  %v2576_v24 = vpop.f32.mrb[12].mxu1 }
 0x517   : > { %2119 = vst.msk [vmem:[%s3604_s11 + $0x38] sm:$0xf] %vm2104_vm6, %v2430_v39  ;;  %v2431_v49 = vpack.c.bf16 %v1864_v44, %v1864_v44  ;;  %v1987_v25 = vmul.f32 %v2576_v24, %v3465_v34  ;;  %v1915_v46 = vpop.f32.mrb[13].mxu1 }
 0x518   : > { %2117 = vst.msk [vmem:[%s3604_s11 + $0x30] sm:$0xf] %vm2104_vm6, %v2428_v12  ;;  %v2429_v40 = vpack.c.bf16 %v1862_v36, %v1862_v36  ;;  %v1985_v11 = vmul.f32 %v3465_v34, %v1915_v46  ;;  %v2577_v3 = vpop.f32.mrb[14].mxu1 }
 0x519   : > { %2120 = vst.msk [vmem:[%s3604_s11 + $0x3c] sm:$0xf] %vm2104_vm6, %v2431_v49  ;;  %v2010_v51 = vadd.f32 %v3470_v16, %v1987_v25  ;;  %v1988_v41 = vmul.f32 %v2577_v3, %v3465_v34  ;;  %v1918_v4 = vpop.f32.mrb[15].mxu1 }
 0x51a   : > { %2118 = vst.msk [vmem:[%s3604_s11 + $0x34] sm:$0xf] %vm2104_vm6, %v2429_v40  ;;  %v2008_v21 = vadd.f32 %v3470_v16, %v1985_v11  ;;  %v1986_v57 = vmul.f32 %v3465_v34, %v1918_v4 }
 0x51b   : > { %v2026_v27 = vmax.f32 %v2010_v51, 0.0  ;;  %v2011_v43 = vadd.f32 %v3470_v16, %v1988_v41 }
 0x51c   : > { %v2024_v32 = vmax.f32 %v2008_v21, 0.0  ;;  %v2009_v53 = vadd.f32 %v3470_v16, %v1986_v57 }
 0x51d   : > { %v2434_v15 = vpack.c.bf16 %v2026_v27, %v2026_v27  ;;  %v2027_v58 = vmax.f32 %v2011_v43, 0.0 }
 0x51e   : > { %v2432_v59 = vpack.c.bf16 %v2024_v32, %v2024_v32  ;;  %v2025_v31 = vmax.f32 %v2009_v53, 0.0  ;;  %v2580_v60 = vpop.f32.mrb[16].mxu1 }
 0x51f   : > { %2187 = vst.msk [vmem:[%s3605_s12 + $0x8] sm:$0xf] %vm2104_vm6, %v2434_v15  ;;  %v2435_v62 = vpack.c.bf16 %v2027_v58, %v2027_v58  ;;  %v1991_v45 = vmul.f32 %v2580_v60, %v3465_v34  ;;  %v1931_v63 = vpop.f32.mrb[17].mxu1 }
 0x520   : > { %2185 = vst.msk [vmem:[%s3605_s12] sm:$0xf] %vm2104_vm6, %v2432_v59  ;;  %v2433_v47 = vpack.c.bf16 %v2025_v31, %v2025_v31  ;;  %v1989_v0 = vmul.f32 %v3465_v34, %v1931_v63  ;;  %v2581_v8 = vpop.f32.mrb[18].mxu1 }
 0x521   : > { %2188 = vst.msk [vmem:[%s3605_s12 + $0xc] sm:$0xf] %vm2104_vm6, %v2435_v62  ;;  %v2014_v50 = vadd.f32 %v3470_v16, %v1991_v45  ;;  %v1992_v9 = vmul.f32 %v2581_v8, %v3465_v34  ;;  %v1934_v10 = vpop.f32.mrb[19].mxu1 }
 0x522   : > { %2186 = vst.msk [vmem:[%s3605_s12 + $0x4] sm:$0xf] %vm2104_vm6, %v2433_v47  ;;  %v2012_v23 = vadd.f32 %v3470_v16, %v1989_v0  ;;  %v1990_v18 = vmul.f32 %v3465_v34, %v1934_v10 }
 0x523   : > { %v2030_v42 = vmax.f32 %v2014_v50, 0.0  ;;  %v2015_v35 = vadd.f32 %v3470_v16, %v1992_v9 }
 0x524   : > { %v2028_v17 = vmax.f32 %v2012_v23, 0.0  ;;  %v2013_v1 = vadd.f32 %v3470_v16, %v1990_v18 }
 0x525   : > { %v2438_v20 = vpack.c.bf16 %v2030_v42, %v2030_v42  ;;  %v2031_v5 = vmax.f32 %v2015_v35, 0.0 }
 0x526   : > { %v2436_v61 = vpack.c.bf16 %v2028_v17, %v2028_v17  ;;  %v2029_v2 = vmax.f32 %v2013_v1, 0.0  ;;  %v2584_v28 = vpop.f32.mrb[20].mxu1 }
 0x527   : > { %2191 = vst.msk [vmem:[%s3605_s12 + $0x18] sm:$0xf] %vm2104_vm6, %v2438_v20  ;;  %v2439_v48 = vpack.c.bf16 %v2031_v5, %v2031_v5  ;;  %v1995_v26 = vmul.f32 %v2584_v28, %v3465_v34  ;;  %v1947_v14 = vpop.f32.mrb[21].mxu1 }
 0x528   : > { %2189 = vst.msk [vmem:[%s3605_s12 + $0x10] sm:$0xf] %vm2104_vm6, %v2436_v61  ;;  %v2437_v37 = vpack.c.bf16 %v2029_v2, %v2029_v2  ;;  %v1993_v22 = vmul.f32 %v3465_v34, %v1947_v14  ;;  %v2585_v7 = vpop.f32.mrb[22].mxu1 }
 0x529   : > { %2192 = vst.msk [vmem:[%s3605_s12 + $0x1c] sm:$0xf] %vm2104_vm6, %v2439_v48  ;;  %v2018_v33 = vadd.f32 %v3470_v16, %v1995_v26  ;;  %v1996_v55 = vmul.f32 %v2585_v7, %v3465_v34  ;;  %v1950_v6 = vpop.f32.mrb[23].mxu1 }
 0x52a   : > { %2190 = vst.msk [vmem:[%s3605_s12 + $0x14] sm:$0xf] %vm2104_vm6, %v2437_v37  ;;  %v2016_v38 = vadd.f32 %v3470_v16, %v1993_v22  ;;  %v1994_v54 = vmul.f32 %v3465_v34, %v1950_v6 }
 0x52b   : > { %v2034_v29 = vmax.f32 %v2018_v33, 0.0  ;;  %v2019_v56 = vadd.f32 %v3470_v16, %v1996_v55 }
 0x52c   : > { %v2032_v52 = vmax.f32 %v2016_v38, 0.0  ;;  %v2017_v19 = vadd.f32 %v3470_v16, %v1994_v54 }
 0x52d   : > { %v2442_v30 = vpack.c.bf16 %v2034_v29, %v2034_v29  ;;  %v2035_v13 = vmax.f32 %v2019_v56, 0.0 }
 0x52e   : > { %v2440_v39 = vpack.c.bf16 %v2032_v52, %v2032_v52  ;;  %v2033_v44 = vmax.f32 %v2017_v19, 0.0  ;;  %v2588_v12 = vpop.f32.mrb[24].mxu1 }
 0x52f   : > { %2195 = vst.msk [vmem:[%s3605_s12 + $0x28] sm:$0xf] %vm2104_vm6, %v2442_v30  ;;  %v2443_v36 = vpack.c.bf16 %v2035_v13, %v2035_v13  ;;  %v1999_v24 = vmul.f32 %v2588_v12, %v3465_v34  ;;  %v1963_v49 = vpop.f32.mrb[25].mxu1 }
 0x530   : > { %2193 = vst.msk [vmem:[%s3605_s12 + $0x20] sm:$0xf] %vm2104_vm6, %v2440_v39  ;;  %v2441_v25 = vpack.c.bf16 %v2033_v44, %v2033_v44  ;;  %v1997_v46 = vmul.f32 %v3465_v34, %v1963_v49  ;;  %v2589_v40 = vpop.f32.mrb[26].mxu1 }
 0x531   : > { %2196 = vst.msk [vmem:[%s3605_s12 + $0x2c] sm:$0xf] %vm2104_vm6, %v2443_v36  ;;  %v2022_v11 = vadd.f32 %v3470_v16, %v1999_v24  ;;  %v2000_v3 = vmul.f32 %v2589_v40, %v3465_v34  ;;  %v1966_v51 = vpop.f32.mrb[27].mxu1 }
 0x532   : > { %2194 = vst.msk [vmem:[%s3605_s12 + $0x24] sm:$0xf] %vm2104_vm6, %v2441_v25  ;;  %v2020_v41 = vadd.f32 %v3470_v16, %v1997_v46  ;;  %v1998_v4 = vmul.f32 %v3465_v34, %v1966_v51 }
 0x533   : > { %v2038_v21 = vmax.f32 %v2022_v11, 0.0  ;;  %v2023_v57 = vadd.f32 %v3470_v16, %v2000_v3 }
 0x534   : > { %v2036_v27 = vmax.f32 %v2020_v41, 0.0  ;;  %v2021_v43 = vadd.f32 %v3470_v16, %v1998_v4 }
 0x535   : > { %v2446_v32 = vpack.c.bf16 %v2038_v21, %v2038_v21  ;;  %v2039_v53 = vmax.f32 %v2023_v57, 0.0 }
 0x536   : > { %v2444_v15 = vpack.c.bf16 %v2036_v27, %v2036_v27  ;;  %v2037_v58 = vmax.f32 %v2021_v43, 0.0 }
 0x537   : > { %2199 = vst.msk [vmem:[%s3605_s12 + $0x38] sm:$0xf] %vm2104_vm6, %v2446_v32  ;;  %v2447_v59 = vpack.c.bf16 %v2039_v53, %v2039_v53 }
 0x538   : > { %2197 = vst.msk [vmem:[%s3605_s12 + $0x30] sm:$0xf] %vm2104_vm6, %v2444_v15  ;;  %v2445_v34 = vpack.c.bf16 %v2037_v58, %v2037_v58 }
 0x539   : > { %2200 = vst.msk [vmem:[%s3605_s12 + $0x3c] sm:$0xf] %vm2104_vm6, %v2447_v59 }
 0x53a   : > { %2198 = vst.msk [vmem:[%s3605_s12 + $0x34] sm:$0xf] %vm2104_vm6, %v2445_v34 }
 0x53b PF: > { %s23_s23 = sadd.s32 1, %s2760_s23   ;;  %s3606_s21 = smov %s2756_s22 }
 0x53c   : > { %p20_p7 = scmp.ge.s32.totalorder %s23_s23, 5   ;;  %s3607_s22 = smov %s3609_s24 }
 0x53e   :  { %22 = sbr.rel (!%p20_p7) target bundleno = 2 (0x2), region = 117 }

// kernel: clip_ocr_forward.6
= control target key start
LH: loop header
LB: loop body
LE: loop exit
PB: predicated region body
PF: predicated region fallthrough
CT: control target
= control target key end

     0   :  { %s3013_s15 = smov 0   ;;  %s3015_s16 = smov 0   ;;  %s3590_s0 = inlined_call_operand.vmem [shape: bf16[3,10,10,64], index: 0, kind: input, shape index: {}]   ;;  %s3591_s1 = inlined_call_operand.vmem [shape: bf16[9,64,32], index: 1, kind: input, shape index: {}]   ;;  %s3592_s2 = inlined_call_operand.vmem [shape: f32[1,32], index: 2, kind: input, shape index: {}]   ;;  %s3593_s3 = inlined_call_operand.vmem [shape: f32[1,32], index: 3, kind: input, shape index: {}]   ;;  %s3594_s4 = inlined_call_operand.vmem [shape: bf16[3,64,32], index: 4, kind: output, shape index: {}]  }
   0x1   :  { %s3017_s17 = smov 0  }
   0x2 LB: > { %s33_s18 = sadd.s32 1, %s2981_s16  ;;  %p2316_p0 = scmp.ge.s32.totalorder %s2985_s17, 1  ;;  %s2985_s17 = sphi %s3017_s17, %s14_s17   ;;  %s2981_s16 = sphi %s3015_s16, %s3600_s16   ;;  %s2977_s15 = sphi %s3013_s15, %s3599_s15  }
   0x3   : > { %p35_p1 = scmp.ge.s32.totalorder %s33_s18, 3  ;;  %p220_p2 = scmp.lt.s32.totalorder %s2985_s17, 4 }
   0x5   : > { %s3602_s18 = smov (%p35_p1, %s33_s18), 0  ;;  %p221_p3 = pnand %p2316_p0, %p220_p2 }
   0x6   : > { %v2915_v0 = vld [vmem:[%s3591_s1 + $0x20] sm:$0xff] (!%p221_p3)   ;;  %p266_p4 = scmp.lt.s32.totalorder (!%p221_p3), %s2977_s15, 2  ;;  %v2917_v2 = vld [vmem:[%s3591_s1 + $0x28] sm:$0xff] (!%p221_p3)   ;;  %v2919_v4 = vld [vmem:[%s3591_s1 + $0x30] sm:$0xff] (!%p221_p3)   ;;  %vm343_vm0 = vsmask.f32 (!%p221_p3), 3328 }
   0x7   : > { %224 = sbr.rel (%p221_p3) target bundleno = 356 (0x164), region = 36  ;;  %v2916_v1 = vld [vmem:[%s3591_s1 + $0x80] sm:$0xff] (!%p221_p3)   ;;  %2673 = vmatprep.subr.bf16.mxu1 (!%p221_p3), %v2915_v0  ;;  %v2918_v3 = vld [vmem:[%s3591_s1 + $0x88] sm:$0xff] (!%p221_p3)   ;;  %v2920_v5 = vld [vmem:[%s3591_s1 + $0x90] sm:$0xff] (!%p221_p3)   ;;  %vm344_vm1 = vsmask.f32 (!%p221_p3), 7440 }
   0x8   : > { %2737 = vmatprep.subr.bf16.mxu0 (!%p221_p3), %v2916_v1  ;;  %2674 = vmatpush3.bf16.msra.mxu1 (!%p221_p3), %v2915_v0  ;;  %v2921_v6 = vld [vmem:[%s3591_s1 + $0x38] sm:$0xff] (!%p221_p3)   ;;  %v3084_v22 = vld [vmem:[%s3591_s1] sm:$0xff] (!%p221_p3)   ;;  %vm3101_vm2 = vmor (!%p221_p3), %vm343_vm0, %vm344_vm1  ;;  %vm503_vm3 = vcmask (!%p221_p3), 523264   ;;  %vm726_vm4 = vcmask (!%p221_p3), 1042432   ;;  %vm727_vm5 = vcmask (!%p221_p3), 1046532   ;;  %vm302_vm7 = vcmask (!%p221_p3), 261120  }
   0x9   : > { %2738 = vmatpush3.bf16.msra.mxu0 (!%p221_p3), %v2916_v1  ;;  %2675 = vmatprep.subr.bf16.mxu1 (!%p221_p3), %v2917_v2  ;;  %v2922_v10 = vld [vmem:[%s3591_s1 + $0x98] sm:$0xff] (!%p221_p3)   ;;  %v3089_v23 = vld [vmem:[%s3591_s1 + $0xa0] sm:$0xff] (!%p221_p3)   ;;  %vm3262_vm6 = vmor (!%p221_p3), %vm726_vm4, %vm727_vm5  ;;  %vm2171_vm8 = vcmask (!%p221_p3), 257024  }
   0xa   : > { %2739 = vmatprep.subr.bf16.mxu0 (!%p221_p3), %v2918_v3 }
   0xc   : > { %2676 = vmatpush3.bf16.msra.mxu1 (!%p221_p3), %v2917_v2 }
   0xd   : > { %2740 = vmatpush3.bf16.msra.mxu0 (!%p221_p3), %v2918_v3  ;;  %2677 = vmatprep.subr.bf16.mxu1 (!%p221_p3), %v2919_v4 }
   0xe   : > { %s3604_s15 = smov (!%p266_p4, %s2977_s15), 2  ;;  %2741 = vmatprep.subr.bf16.mxu0 %v2920_v5 }
   0xf   : > { %s2889_s29 = smul.u32 80, %s3604_s15  ;;  %s2592_s9 = sshll.u32 %s3604_s15, 5 }
  0x10   : > { %2678 = vmatpush3.bf16.msra.mxu1 %v2919_v4  ;;  %s3563_s12 = scalar_lea.vmem %s3594_s4, %s2592_s9 }
  0x11   : > { %s3055_s8 = scalar_lea.vmem %s3590_s0, %s2889_s29  ;;  %2742 = vmatpush3.bf16.msra.mxu0 %v2920_v5  ;;  %2679 = vmatprep.subr.bf16.mxu1 %v2921_v6 }
  0x12   : > { %v3061_v7 = vld [vmem:[%s3055_s8] sm:$0xf]  ;;  %v3064_v8 = vld [vmem:[%s3055_s8 + $0x8] sm:$0xf]  ;;  %v3067_v9 = vld [vmem:[%s3055_s8 + $0x4] sm:$0x1]  ;;  %2743 = vmatprep.subr.bf16.mxu0 %v2922_v10 }
  0x13   : > { %v3073_v11 = vld [vmem:[%s3055_s8 + $0xc] sm:$0x1]  ;;  %v347_v12 = vshrl.u32 %v3061_v7, 16  ;;  %v350_v13 = vshll.u32 %v3061_v7, 16  ;;  %v356_v14 = vshll.u32 %v3067_v9, 16  ;;  %v361_v15 = vshrl.u32 %v3064_v8, 16 }
  0x14   : > { %v364_v16 = vshll.u32 %v3064_v8, 16  ;;  %v370_v17 = vshll.u32 %v3073_v11, 16  ;;  %v2408_v26 = vld [vmem:[%s3055_s8 + $0x8] sm:$0xf]  ;;  %v3093_v27 = vld [vmem:[%s3055_s8 + $0xc] sm:$0x1]  ;;  %2680 = vmatpush3.bf16.msra.mxu1 %v2921_v6 }
  0x15   : > { %v349_v18 = vrot.slane %v347_v12, 4  ;;  %v352_v19 = vrot.slane %v350_v13, 5  ;;  %v358_v20 = vrot.slane %v356_v14, 5  ;;  %v363_v21 = vrot.slane %v361_v15, 4  ;;  %v2410_v29 = vld [vmem:[%s3055_s8 + $0x10] sm:$0xf]  ;;  %2744 = vmatpush3.bf16.msra.mxu0 %v2922_v10  ;;  %2689 = vmatprep.subr.bf16.mxu1 %v3084_v22 }
  0x16   : > { %v366_v24 = vrot.slane %v364_v16, 5  ;;  %v372_v25 = vrot.slane %v370_v17, 5  ;;  %v3097_v30 = vld [vmem:[%s3055_s8 + $0x14] sm:$0x1]  ;;  %v1055_v31 = vshrl.u32 %v2408_v26, 16  ;;  %v1058_v32 = vshll.u32 %v2408_v26, 16  ;;  %2753 = vmatprep.subr.bf16.mxu0 %v3089_v23 }
  0x17   : > { %v353_v28 = vor.u32 %v352_v19, %v349_v18  ;;  %v1064_v35 = vshll.u32 %v3093_v27, 16  ;;  %v1069_v36 = vshrl.u32 %v2410_v29, 16  ;;  %v1072_v37 = vshll.u32 %v2410_v29, 16  ;;  %v3110_v45 = vld [vmem:[%s3055_s8 + $0x10] sm:$0xf] }
  0x18   : > { %v367_v34 = vor.u32 %v366_v24, %v363_v21  ;;  %v1057_v39 = vrot.slane %v1055_v31, 4  ;;  %v1060_v40 = vrot.slane %v1058_v32, 5  ;;  %v1078_v41 = vshll.u32 %v3097_v30, 16  ;;  %v3115_v49 = vld [vmem:[%s3055_s8 + $0x18] sm:$0xf] }
  0x19   : > { %v354_v38 = vrot.slane %v353_v28, 4  ;;  %v1071_v43 = vrot.slane %v1069_v36, 4  ;;  %v1074_v44 = vrot.slane %v1072_v37, 5  ;;  %v1066_v48 = vrot.slane %v1064_v35, 5  ;;  %v3118_v50 = vld [vmem:[%s3055_s8 + $0x14] sm:$0x1] }
  0x1a   : > { %v368_v42 = vrot.slane %v367_v34, 4  ;;  %v1061_v47 = vor.u32 %v1060_v40, %v1057_v39  ;;  %v1080_v53 = vrot.slane %v1078_v41, 5  ;;  %v3123_v54 = vld [vmem:[%s3055_s8 + $0x1c] sm:$0x1]  ;;  %v375_v55 = vshrl.u32 %v3110_v45, 16  ;;  %v2925_v39 = vld [vmem:[%s3591_s1 + $0x8] sm:$0xff]  }
  0x1b   : > { %v359_v46 = vsel %vm3101_vm2, %v354_v38, %v358_v20  ;;  %v1075_v52 = vor.u32 %v1074_v44, %v1071_v43  ;;  %v378_v58 = vshll.u32 %v3110_v45, 16  ;;  %v384_v59 = vshll.u32 %v3118_v50, 16  ;;  %v2412_v0 = vld [vmem:[%s3055_s8 + $0x18] sm:$0xf]  ;;  %v3136_v4 = vld [vmem:[%s3055_s8 + $0x1c] sm:$0x1] }
  0x1c   : > { %v373_v51 = vsel %vm3101_vm2, %v368_v42, %v372_v25  ;;  %v1062_v57 = vrot.slane %v1061_v47, 4  ;;  %v377_v61 = vrot.slane %v375_v55, 4  ;;  %v389_v62 = vshrl.u32 %v3115_v49, 16  ;;  %v2414_v5 = vld [vmem:[%s3055_s8 + $0x20] sm:$0xf] }
  0x1d   : > { %v2328_v56 = vcombine.low %v359_v46, %v373_v51  ;;  %v1076_v60 = vrot.slane %v1075_v52, 4  ;;  %v392_v63 = vshll.u32 %v3115_v49, 16  ;;  %v380_v2 = vrot.slane %v378_v58, 5  ;;  %v3142_v13 = vld [vmem:[%s3055_s8 + $0x24] sm:$0x1] }
  0x1e   : > { %v1067_v1 = vsel %vm3101_vm2, %v1062_v57, %v1066_v48  ;;  %v398_v3 = vshll.u32 %v3123_v54, 16  ;;  %v391_v10 = vrot.slane %v389_v62, 4  ;;  %v386_v16 = vrot.slane %v384_v59, 5  ;;  %v3149_v35 = vld [vmem:[%s3055_s8 + $0x20] sm:$0xf] }
  0x1f   : > { %2681 = vmatprep.mubr.msk.bf16.mxu1 %vm503_vm3, %v2328_v56  ;;  %v1081_v6 = vsel %vm3101_vm2, %v1076_v60, %v1080_v53  ;;  %v394_v12 = vrot.slane %v392_v63, 5  ;;  %v381_v15 = vor.u32 %v380_v2, %v377_v61  ;;  %v1083_v19 = vshrl.u32 %v2412_v0, 16  ;;  %v3157_v40 = vld [vmem:[%s3055_s8 + $0x28] sm:$0xf]  ;;  %v3160_v41 = vld [vmem:[%s3055_s8 + $0x24] sm:$0x1] }
  0x20   : > { %v2432_v14 = vcombine.low %v1067_v1, %v1081_v6  ;;  %v400_v17 = vrot.slane %v398_v3, 5  ;;  %v1086_v20 = vshll.u32 %v2412_v0, 16  ;;  %v1092_v21 = vshll.u32 %v3136_v4, 16  ;;  %v3165_v47 = vld [vmem:[%s3055_s8 + $0x2c] sm:$0x1] }
  0x21   : > { %v395_v18 = vor.u32 %v394_v12, %v391_v10  ;;  %v382_v24 = vrot.slane %v381_v15, 4  ;;  %v1097_v25 = vshrl.u32 %v2414_v5, 16  ;;  %v1100_v26 = vshll.u32 %v2414_v5, 16  ;;  %v2416_v55 = vld [vmem:[%s3055_s8 + $0x28] sm:$0xf]  ;;  %v2927_v10 = vld [vmem:[%s3591_s1 + $0x10] sm:$0xff]  }
  0x22   : > { %2745 = vmatprep.mubr.msk.bf16.mxu0 %vm503_vm3, %v2432_v14  ;;  %v1106_v28 = vshll.u32 %v3142_v13, 16  ;;  %v1322_v29 = vrot.slane %v3093_v27, 5  ;;  %v1085_v32 = vrot.slane %v1083_v19, 4  ;;  %v1088_v34 = vrot.slane %v1086_v20, 5  ;;  %v3174_v60 = vld [vmem:[%s3055_s8 + $0x2c] sm:$0x1] }
  0x23   : > { %v396_v31 = vrot.slane %v395_v18, 4  ;;  %v387_v36 = vsel %vm3101_vm2, %v382_v24, %v386_v16  ;;  %v1099_v37 = vrot.slane %v1097_v25, 4  ;;  %v1102_v38 = vrot.slane %v1100_v26, 5  ;;  %v2418_v1 = vld [vmem:[%s3055_s8 + $0x30] sm:$0xf]  ;;  %v2926_v18 = vld [vmem:[%s3591_s1 + $0xa8] sm:$0xff]  }
  0x24   : > { %v1089_v43 = vor.u32 %v1088_v34, %v1085_v32  ;;  %v1094_v44 = vrot.slane %v1092_v21, 5  ;;  %v1108_v46 = vrot.slane %v1106_v28, 5  ;;  %v403_v52 = vshrl.u32 %v3149_v35, 16  ;;  %v3186_v12 = vld [vmem:[%s3055_s8 + $0x34] sm:$0x1] }
  0x25   : > { %v401_v42 = vsel %vm3101_vm2, %v396_v31, %v400_v17  ;;  %v1103_v51 = vor.u32 %v1102_v38, %v1099_v37  ;;  %v406_v53 = vshll.u32 %v3149_v35, 16  ;;  %v412_v57 = vshll.u32 %v3160_v41, 16  ;;  %v3195_v24 = vld [vmem:[%s3055_s8 + $0x30] sm:$0xf] }
  0x26   : > { %v2329_v48 = vcombine.low %v387_v36, %v401_v42  ;;  %v1090_v56 = vrot.slane %v1089_v43, 4  ;;  %v417_v58 = vshrl.u32 %v3157_v40, 16  ;;  %v420_v59 = vshll.u32 %v3157_v40, 16  ;;  %v2928_v38 = vld [vmem:[%s3591_s1 + $0xb0] sm:$0xff]  }
  0x27   : > { %v1104_v61 = vrot.slane %v1103_v51, 4  ;;  %v405_v62 = vrot.slane %v403_v52, 4  ;;  %v408_v63 = vrot.slane %v406_v53, 5  ;;  %v426_v0 = vshll.u32 %v3165_v47, 16  ;;  %v3203_v42 = vld [vmem:[%s3055_s8 + $0x34] sm:$0x1] }
  0x28   : > { %2682 = vmatmul.mubr.msk.bf16.vlgmr.msra.gmra.mrb[0].mxu1 %vm503_vm3, %v2329_v48  ;;  %v1095_v2 = vsel %vm3101_vm2, %v1090_v56, %v1094_v44  ;;  %v414_v3 = vrot.slane %v412_v57, 5  ;;  %v419_v5 = vrot.slane %v417_v58, 4  ;;  %v422_v6 = vrot.slane %v420_v59, 5  ;;  %v2929_v51 = vld [vmem:[%s3591_s1 + $0x18] sm:$0xff]  }
  0x29   : > { %2690 = vmatpush3.bf16.msra.mxu1 %v3084_v22  ;;  %v1109_v14 = vsel %vm3101_vm2, %v1104_v61, %v1108_v46  ;;  %v409_v15 = vor.u32 %v408_v63, %v405_v62  ;;  %v428_v16 = vrot.slane %v426_v0, 5  ;;  %v1111_v22 = vshrl.u32 %v2416_v55, 16  ;;  %v3209_v46 = vld [vmem:[%s3055_s8 + $0x38] sm:$0xf]  ;;  %v3224_v63 = vld [vmem:[%s3055_s8 + $0x3c] sm:$0x1] }
  0x2a   : > { %2691 = vmatprep.subr.bf16.mxu1 %v2925_v39  ;;  %v2433_v17 = vcombine.low %v1095_v2, %v1109_v14  ;;  %v423_v19 = vor.u32 %v422_v6, %v419_v5  ;;  %v1114_v20 = vshll.u32 %v2416_v55, 16  ;;  %v1120_v21 = vshll.u32 %v3174_v60, 16  ;;  %v3218_v55 = vld [vmem:[%s3055_s8 + $0x3c] sm:$0x1]  ;;  %v2420_v57 = vld [vmem:[%s3055_s8 + $0x38] sm:$0xf] }
  0x2b   : > { %v410_v25 = vrot.slane %v409_v15, 4  ;;  %v1113_v26 = vrot.slane %v1111_v22, 4  ;;  %v1125_v28 = vshrl.u32 %v2418_v1, 16  ;;  %v1128_v31 = vshll.u32 %v2418_v1, 16  ;;  %v3229_v0 = vld [vmem:[%s3591_s1 + $0x40] sm:$0xff]   ;;  %v2930_v15 = vld [vmem:[%s3591_s1 + $0xb8] sm:$0xff]  }
  0x2c   : > { %2746 = vmatmul.mubr.msk.bf16.vlgmr.msra.gmra.mrb[0].mxu0 %vm503_vm3, %v2433_v17  ;;  %v424_v32 = vrot.slane %v423_v19, 4  ;;  %v1116_v34 = vrot.slane %v1114_v20, 5  ;;  %v1122_v36 = vrot.slane %v1120_v21, 5  ;;  %v1134_v37 = vshll.u32 %v3186_v12, 16  ;;  %v2422_v6 = vld [vmem:[%s3055_s8 + $0x40] sm:$0xf] }
  0x2d   : > { %2692 = vmatpush3.bf16.msra.mxu1 %v2925_v39  ;;  %2754 = vmatpush3.bf16.msra.mxu0 %v3089_v23  ;;  %v415_v39 = vsel %vm3101_vm2, %v410_v25, %v414_v3  ;;  %v1127_v43 = vrot.slane %v1125_v28, 4  ;;  %v1130_v44 = vrot.slane %v1128_v31, 5  ;;  %v431_v48 = vshrl.u32 %v3195_v24, 16  ;;  %v3235_v14 = vld [vmem:[%s3055_s8 + $0x44] sm:$0x1] }
  0x2e   : > { %2693 = vmatprep.subr.bf16.mxu1 %v2927_v10  ;;  %2755 = vmatprep.subr.bf16.mxu0 %v2926_v18  ;;  %v429_v52 = vsel %vm3101_vm2, %v424_v32, %v428_v16  ;;  %v1117_v23 = vor.u32 %v1116_v34, %v1113_v26  ;;  %v1136_v53 = vrot.slane %v1134_v37, 5  ;;  %v434_v56 = vshll.u32 %v3195_v24, 16 }
  0x2f   : > { %v2330_v58 = vcombine.low %v415_v39, %v429_v52  ;;  %v1131_v59 = vor.u32 %v1130_v44, %v1127_v43  ;;  %v433_v61 = vrot.slane %v431_v48, 4  ;;  %v440_v62 = vshll.u32 %v3203_v42, 16  ;;  %v2444_v43 = vld [vmem:[%s3055_s8 + $0x8] sm:$0xe] }
  0x30   : > { %v1118_v1 = vrot.slane %v1117_v23, 4  ;;  %v436_v2 = vrot.slane %v434_v56, 5  ;;  %v445_v3 = vshrl.u32 %v3209_v46, 16  ;;  %v448_v5 = vshll.u32 %v3209_v46, 16 }
  0x31   : > { %2694 = vmatpush3.bf16.msra.mxu1 %v2927_v10  ;;  %2756 = vmatpush3.bf16.msra.mxu0 %v2926_v18  ;;  %v1132_v16 = vrot.slane %v1131_v59, 4  ;;  %v442_v22 = vrot.slane %v440_v62, 5  ;;  %v454_v17 = vshll.u32 %v3218_v55, 16  ;;  %v1139_v19 = vshrl.u32 %v2420_v57, 16 }
  0x32   : > { %2685 = vmatprep.mubr.msk.bf16.mxu1 %vm503_vm3, %v2330_v58  ;;  %v1123_v20 = vsel %vm3101_vm2, %v1118_v1, %v1122_v36  ;;  %2757 = vmatprep.subr.bf16.mxu0 %v2928_v38  ;;  %v437_v10 = vor.u32 %v436_v2, %v433_v61  ;;  %v447_v21 = vrot.slane %v445_v3, 4  ;;  %v450_v25 = vrot.slane %v448_v5, 5  ;;  %v2445_v36 = vld [vmem:[%s3055_s8 + $0x10] sm:$0xe]  ;;  %v3258_v58 = vld [vmem:[%s3591_s1 + $0xc0] sm:$0xff]  }
  0x33   : > { %2695 = vmatprep.subr.bf16.mxu1 %v2929_v51  ;;  %v1137_v18 = vsel %vm3101_vm2, %v1132_v16, %v1136_v53  ;;  %v456_v26 = vrot.slane %v454_v17, 5  ;;  %v1141_v28 = vrot.slane %v1139_v19, 4  ;;  %v1142_v31 = vshll.u32 %v2420_v57, 16  ;;  %v2446_v1 = vld [vmem:[%s3055_s8 + $0x18] sm:$0xe] }
  0x34   : > { %v2434_v32 = vcombine.low %v1123_v20, %v1137_v18  ;;  %v438_v34 = vrot.slane %v437_v10, 4  ;;  %v451_v37 = vor.u32 %v450_v25, %v447_v21  ;;  %v1148_v39 = vshll.u32 %v3224_v63, 16  ;;  %v2449_v25 = vld [vmem:[%s3055_s8 + $0x30] sm:$0xe] }
  0x35   : > { %2696 = vmatpush3.bf16.msra.mxu1 %v2929_v51  ;;  %v1144_v44 = vrot.slane %v1142_v31, 5  ;;  %v1153_v48 = vshrl.u32 %v2422_v6, 16  ;;  %v1156_v52 = vshll.u32 %v2422_v6, 16  ;;  %v1162_v23 = vshll.u32 %v3235_v14, 16  ;;  %2758 = vmatpush3.bf16.msra.mxu0 %v2928_v38  ;;  %v2447_v6 = vld [vmem:[%s3055_s8 + $0x20] sm:$0xe] }
  0x36   : > { %2705 = vmatprep.subr.bf16.mxu1 %v3229_v0  ;;  %v1326_v53 = vrot.slane %v3097_v30, 5  ;;  %2749 = vmatprep.mubr.msk.bf16.mxu0 %vm503_vm3, %v2434_v32  ;;  %v443_v56 = vsel %vm3101_vm2, %v438_v34, %v442_v22  ;;  %v452_v51 = vrot.slane %v451_v37, 4  ;;  %v2452_v57 = vrot.slane %v2444_v43, 9  ;;  %v2450_v43 = vld [vmem:[%s3055_s8 + $0x38] sm:$0xe] }
  0x37   : > { %2759 = vmatprep.subr.bf16.mxu0 %v2930_v15  ;;  %v1145_v59 = vor.u32 %v1144_v44, %v1141_v28  ;;  %v1150_v38 = vrot.slane %v1148_v39, 5  ;;  %v1155_v61 = vrot.slane %v1153_v48, 4  ;;  %v1158_v62 = vrot.slane %v1156_v52, 5  ;;  %v702_v48 = vld [vmem:[%s3055_s8] sm:$0xe] }
  0x38   : > { %v457_v2 = vsel %vm3101_vm2, %v452_v51, %v456_v26  ;;  %v2340_v3 = vcombine.low %v3061_v7, %v3064_v8  ;;  %v2453_v5 = vrot.slane %v2445_v36, 9  ;;  %v1164_v19 = vrot.slane %v1162_v23, 5  ;;  %v2451_v36 = vld [vmem:[%s3055_s8 + $0x40] sm:$0xe]  ;;  %v703_v52 = vld [vmem:[%s3055_s8 + $0x8] sm:$0xe] }
  0x39   : > { %v2331_v16 = vcombine.low %v443_v56, %v457_v2  ;;  %v1146_v22 = vrot.slane %v1145_v59, 4  ;;  %v1159_v17 = vor.u32 %v1158_v62, %v1155_v61  ;;  %2760 = vmatpush3.bf16.msra.mxu0 %v2930_v15  ;;  %v731_v20 = vrot.slane %v3067_v9, 5  ;;  %v2938_v56 = vld [vmem:[%s3591_s1 + $0x50] sm:$0xff]  }
  0x3a   : > { %v1330_v10 = vrot.slane %v3136_v4, 5  ;;  %v1323_v21 = vsel %vm3262_vm6, %v2452_v57, %v1322_v29  ;;  %v1327_v7 = vsel %vm3262_vm6, %v2453_v5, %v1326_v53  ;;  %2769 = vmatprep.subr.bf16.mxu0 %v3258_v58  ;;  %v1334_v8 = vrot.slane %v3142_v13, 5  ;;  %v2448_v4 = vld [vmem:[%s3055_s8 + $0x28] sm:$0xe] }
  0x3b   : > { %2686 = vmatmul.mubr.msk.bf16.gmra.mrb[4].mxu1 %vm503_vm3, %v2331_v16  ;;  %v1151_v15 = vsel %vm3101_vm2, %v1146_v22, %v1150_v38  ;;  %v1160_v9 = vrot.slane %v1159_v17, 4  ;;  %v2454_v27 = vrot.slane %v2446_v1, 9  ;;  %v2455_v29 = vrot.slane %v2447_v6, 9  ;;  %v704_v38 = vld [vmem:[%s3055_s8 + $0x10] sm:$0xe] }
  0x3c   : > { %2697 = vmatprep.mubr.msk.bf16.mxu1 %vm503_vm3, %v2340_v3  ;;  %v735_v18 = vrot.slane %v3073_v11, 5  ;;  %v2468_v26 = vcombine.low %v1323_v21, %v1327_v7  ;;  %v1338_v28 = vrot.slane %v3174_v60, 5  ;;  %v2456_v32 = vrot.slane %v2448_v4, 9  ;;  %v2935_v11 = vld [vmem:[%s3591_s1 + $0x48] sm:$0xff]   ;;  %v705_v1 = vld [vmem:[%s3055_s8 + $0x18] sm:$0xe] }
  0x3d   : > { %v1165_v13 = vsel %vm3101_vm2, %v1160_v9, %v1164_v19  ;;  %v2457_v34 = vrot.slane %v2449_v25, 9  ;;  %v1342_v37 = vrot.slane %v3186_v12, 5  ;;  %v2341_v39 = vcombine.low %v3110_v45, %v3115_v49  ;;  %v2941_v3 = vld [vmem:[%s3591_s1 + $0x58] sm:$0xff]   ;;  %v706_v17 = vld [vmem:[%s3055_s8 + $0x20] sm:$0xe] }
  0x3e   : > { %v2435_v31 = vcombine.low %v1151_v15, %v1165_v13  ;;  %v1331_v44 = vsel %vm3262_vm6, %v2454_v27, %v1330_v10  ;;  %v1335_v60 = vsel %vm3262_vm6, %v2455_v29, %v1334_v8  ;;  %v2342_v12 = vcombine.low %v3149_v35, %v3157_v40  ;;  %v707_v19 = vld [vmem:[%s3055_s8 + $0x28] sm:$0xe]  ;;  %v2942_v10 = vld [vmem:[%s3591_s1 + $0xd8] sm:$0xff]   ;;  %v2943_v21 = vld [vmem:[%s3591_s1 + $0x60] sm:$0xff]  }
  0x3f   : > { %v2352_v45 = vrot.slane %v702_v48, 9  ;;  %v2353_v49 = vrot.slane %v703_v52, 9  ;;  %v739_v23 = vrot.slane %v3118_v50, 5  ;;  %v2469_v53 = vcombine.low %v1331_v44, %v1335_v60  ;;  %v708_v15 = vld [vmem:[%s3055_s8 + $0x30] sm:$0xe]  ;;  %v2948_v52 = vld [vmem:[%s3591_s1 + $0xe8] sm:$0xff]  }
  0x40   : > { %2750 = vmatmul.mubr.msk.bf16.gmra.mrb[4].mxu0 %vm503_vm3, %v2435_v31  ;;  %v1339_v35 = vsel %vm3262_vm6, %v2456_v32, %v1338_v28  ;;  %v1343_v40 = vsel %vm3262_vm6, %v2457_v34, %v1342_v37  ;;  %v2458_v51 = vrot.slane %v2450_v43, 9  ;;  %v1346_v50 = vrot.slane %v3224_v63, 5  ;;  %v2936_v63 = vld [vmem:[%s3591_s1 + $0xc8] sm:$0xff]   ;;  %v709_v27 = vld [vmem:[%s3055_s8 + $0x38] sm:$0xe] }
  0x41   : > { %2761 = vmatprep.mubr.msk.bf16.mxu0 %vm503_vm3, %v2468_v26  ;;  %v2459_v57 = vrot.slane %v2451_v36, 9  ;;  %v1350_v59 = vrot.slane %v3235_v14, 5  ;;  %v732_v61 = vsel %vm3262_vm6, %v2352_v45, %v731_v20  ;;  %v736_v62 = vsel %vm3262_vm6, %v2353_v49, %v735_v18  ;;  %v2939_v20 = vld [vmem:[%s3591_s1 + $0xd0] sm:$0xff]   ;;  %v2945_v26 = vld [vmem:[%s3591_s1 + $0xe0] sm:$0xff]  }
  0x42   : > { %v2470_v2 = vcombine.low %v1339_v35, %v1343_v40  ;;  %v2343_v14 = vcombine.low %v3195_v24, %v3209_v46  ;;  %v747_v5 = vrot.slane %v3160_v41, 5  ;;  %v751_v6 = vrot.slane %v3165_v47, 5  ;;  %v2944_v29 = vld [vmem:[%s3055_s8 + $0x10] ss:$8 sps:$4 sm:$0xff]   ;;  %v3382_v37 = vld [vmem:[%s3055_s8 + $0x14] sm:$0x1] }
  0x43   : > { %2698 = vmatmul.mubr.msk.bf16.vlgmr.msra.gmra.mrb[0].mxu1 %vm503_vm3, %v2341_v39  ;;  %v2354_v16 = vrot.slane %v704_v38, 9  ;;  %v2355_v22 = vrot.slane %v705_v1, 9  ;;  %v1347_v24 = vsel %vm3262_vm6, %v2458_v51, %v1346_v50  ;;  %v1351_v41 = vsel %vm3262_vm6, %v2459_v57, %v1350_v59  ;;  %v2508_v34 = vld [vmem:[%s3055_s8 + $0x10] sm:$0xf]  ;;  %v2510_v39 = vld [vmem:[%s3055_s8 + $0x18] sm:$0xf] }
  0x44   : > { %2706 = vmatpush3.bf16.msra.mxu1 %v3229_v0  ;;  %2701 = vmatprep.mubr.msk.bf16.mxu1 %vm503_vm3, %v2342_v12  ;;  %v743_v0 = vrot.slane %v3123_v54, 5  ;;  %v2368_v54 = vcombine.low %v732_v61, %v736_v62  ;;  %v2356_v46 = vrot.slane %v706_v17, 9  ;;  %v2357_v47 = vrot.slane %v707_v19, 9  ;;  %v2949_v45 = vld [vmem:[%s3591_s1 + $0x70] sm:$0xff]   ;;  %v2512_v61 = vld [vmem:[%s3055_s8 + $0x20] sm:$0xf] }
  0x45   : > { %2707 = vmatprep.subr.bf16.mxu1 %v2935_v11  ;;  %v740_v7 = vsel %vm3262_vm6, %v2354_v16, %v739_v23  ;;  %v755_v18 = vrot.slane %v3203_v42, 5  ;;  %v759_v13 = vrot.slane %v3218_v55, 5  ;;  %v2358_v31 = vrot.slane %v708_v15, 9  ;;  %v2947_v42 = vld [vmem:[%s3591_s1 + $0x68] sm:$0xff]   ;;  %v2950_v35 = vld [vmem:[%s3055_s8 + $0x30] ss:$8 sps:$4 sm:$0xff]  }
  0x46   : > { %v744_v8 = vsel %vm3262_vm6, %v2355_v22, %v743_v0  ;;  %v748_v9 = vsel %vm3262_vm6, %v2356_v46, %v747_v5  ;;  %v752_v4 = vsel %vm3262_vm6, %v2357_v47, %v751_v6  ;;  %v2359_v32 = vrot.slane %v709_v27, 9  ;;  %v2946_v55 = vld [vmem:[%s3055_s8 + $0x20] ss:$8 sps:$4 sm:$0xff]   ;;  %v2953_v1 = vld [vmem:[%s3591_s1 + $0x78] sm:$0xff]   ;;  %v2516_v27 = vld [vmem:[%s3055_s8 + $0x30] sm:$0xf] }
  0x47   : > { %v2369_v25 = vcombine.low %v740_v7, %v744_v8  ;;  %v2370_v28 = vcombine.low %v748_v9, %v752_v4  ;;  %v1646_v43 = vshrl.u32 %v2508_v34, 16  ;;  %v1649_v36 = vshll.u32 %v2508_v34, 16  ;;  %v2955_v50 = vld [vmem:[%s3055_s8 + $0x8] ss:$8 sps:$4 sm:$0xff]   ;;  %v2954_v7 = vld [vmem:[%s3591_s1 + $0xf8] sm:$0xff]   ;;  %v3437_v8 = vld [vmem:[%s3591_s1 + $0x100] sm:$0xff]  }
  0x48   : > { %2762 = vmatmul.mubr.msk.bf16.vlgmr.msra.gmra.mrb[0].mxu0 %vm503_vm3, %v2469_v53  ;;  %2708 = vmatpush3.bf16.msra.mxu1 %v2935_v11  ;;  %v3388_v11 = vld [vmem:[%s3055_s8 + $0x1c] sm:$0x1]  ;;  %v1655_v44 = vshll.u32 %v3382_v37, 16  ;;  %v1660_v60 = vshrl.u32 %v2510_v39, 16  ;;  %v1663_v12 = vshll.u32 %v2510_v39, 16  ;;  %v756_v49 = vsel %vm3262_vm6, %v2358_v31, %v755_v18 }
  0x49   : > { %2770 = vmatpush3.bf16.msra.mxu0 %v3258_v58  ;;  %2709 = vmatprep.subr.bf16.mxu1 %v2938_v56  ;;  %v2471_v58 = vcombine.low %v1347_v24, %v1351_v41  ;;  %v1669_v48 = vshll.u32 %v3388_v11, 16  ;;  %v760_v23 = vsel %vm3262_vm6, %v2359_v32, %v759_v13  ;;  %v1648_v53 = vrot.slane %v1646_v43, 4  ;;  %v2951_v24 = vld [vmem:[%s3591_s1 + $0xf0] sm:$0xff]   ;;  %v2957_v18 = vld [vmem:[%s3055_s8 + $0x18] ss:$8 sps:$4 sm:$0xff]  }
  0x4a   : > { %2771 = vmatprep.subr.bf16.mxu0 %v2936_v63  ;;  %2765 = vmatprep.mubr.msk.bf16.mxu0 %vm503_vm3, %v2470_v2  ;;  %v1662_v40 = vrot.slane %v1660_v60, 4  ;;  %v1665_v51 = vrot.slane %v1663_v12, 5  ;;  %v1657_v59 = vrot.slane %v1655_v44, 5  ;;  %v2371_v62 = vcombine.low %v756_v49, %v760_v23  ;;  %v2514_v2 = vld [vmem:[%s3055_s8 + $0x28] sm:$0xf] }
  0x4b   : > { %2702 = vmatmul.mubr.msk.bf16.gmra.mrb[4].mxu1 %vm503_vm3, %v2343_v14  ;;  %v1671_v38 = vrot.slane %v1669_v48, 5  ;;  %v3415_v14 = vld [vmem:[%s3055_s8 + $0x2c] sm:$0x1]  ;;  %v1674_v5 = vshrl.u32 %v2512_v61, 16  ;;  %v1677_v6 = vshll.u32 %v2512_v61, 16  ;;  %v1688_v22 = vshrl.u32 %v2514_v2, 16 }
  0x4c   : > { %2710 = vmatpush3.bf16.msra.mxu1 %v2938_v56  ;;  %2713 = vmatprep.mubr.msk.bf16.mxu1 %vm503_vm3, %v2368_v54  ;;  %v1651_v56 = vrot.slane %v1649_v36, 5  ;;  %v1666_v0 = vor.u32 %v1665_v51, %v1662_v40  ;;  %v1691_v17 = vshll.u32 %v2514_v2, 16  ;;  %v1697_v19 = vshll.u32 %v3415_v14, 16  ;;  %v2959_v34 = vld [vmem:[%s3055_s8 + $0x28] ss:$8 sps:$4 sm:$0xff]  }
  0x4d   : > { %2772 = vmatpush3.bf16.msra.mxu0 %v2936_v63  ;;  %2711 = vmatprep.subr.bf16.mxu1 %v2941_v3  ;;  %v3411_v63 = vld [vmem:[%s3055_s8 + $0x24] sm:$0x1]  ;;  %v1676_v46 = vrot.slane %v1674_v5, 4  ;;  %v1679_v47 = vrot.slane %v1677_v6, 5  ;;  %v1702_v31 = vshrl.u32 %v2516_v27, 16  ;;  %v1705_v32 = vshll.u32 %v2516_v27, 16 }
  0x4e   : > { %2773 = vmatprep.subr.bf16.mxu0 %v2939_v20  ;;  %v1652_v57 = vor.u32 %v1651_v56, %v1648_v53  ;;  %v1683_v54 = vshll.u32 %v3411_v63, 16  ;;  %v1667_v16 = vrot.slane %v1666_v0, 4  ;;  %v1699_v4 = vrot.slane %v1697_v19, 5  ;;  %v3460_v53 = vld [vmem:[%s3591_s1 + $0x108] sm:$0xff]  }
  0x4f   : > { %v1680_v15 = vor.u32 %v1679_v47, %v1676_v46  ;;  %v1704_v44 = vrot.slane %v1702_v31, 4  ;;  %v1707_v60 = vrot.slane %v1705_v32, 5  ;;  %v1913_v40 = vrot.slane %v3382_v37, 5  ;;  %v2549_v31 = vld [vmem:[%s3055_s8 + $0x38] sm:$0xe] }
  0x50   : > { %2766 = vmatmul.mubr.msk.bf16.gmra.mrb[4].mxu0 %vm503_vm3, %v2471_v58  ;;  %2712 = vmatpush3.bf16.msra.mxu1 %v2941_v3  ;;  %v1653_v3 = vrot.slane %v1652_v57, 4  ;;  %v1672_v58 = vsel %vm3101_vm2, %v1667_v16, %v1671_v38  ;;  %v1685_v9 = vrot.slane %v1683_v54, 5  ;;  %v2520_v57 = vld [vmem:[%s3055_s8 + $0x40] sm:$0xf]  ;;  %v2522_v38 = vld [vmem:[%s3055_s8 + $0x48] sm:$0xf] }
  0x51   : > { %2774 = vmatpush3.bf16.msra.mxu0 %v2939_v20  ;;  %2721 = vmatprep.subr.bf16.mxu1 %v2943_v21  ;;  %v2952_v20 = vld [vmem:[%s3055_s8 + $0x40] ss:$8 sps:$4 sm:$0xff]   ;;  %v1708_v56 = vor.u32 %v1707_v60, %v1704_v44  ;;  %v1733_v0 = vshll.u32 %v2520_v57, 16  ;;  %v1747_v5 = vshll.u32 %v2522_v38, 16 }
  0x52   : > { %2775 = vmatprep.subr.bf16.mxu0 %v2942_v10  ;;  %2777 = vmatprep.mubr.msk.bf16.mxu0 %vm503_vm3, %v2944_v29  ;;  %v1658_v41 = vsel %vm3101_vm2, %v1653_v3, %v1657_v59  ;;  %v3441_v29 = vld [vmem:[%s3055_s8 + $0x34] sm:$0x1]  ;;  %v3466_v59 = vld [vmem:[%s3055_s8 + $0x44] sm:$0x1]  ;;  %v1744_v3 = vshrl.u32 %v2522_v38, 16 }
  0x53   : > { %2714 = vmatmul.mubr.msk.bf16.vlgmr.msra.gmra.mrb[0].mxu1 %vm503_vm3, %v2369_v25  ;;  %v2532_v25 = vcombine.low %v1658_v41, %v1672_v58  ;;  %v1709_v61 = vrot.slane %v1708_v56, 4  ;;  %v1739_v2 = vshll.u32 %v3466_v59, 16  ;;  %v2961_v16 = vld [vmem:[%s3055_s8 + $0x38] ss:$8 sps:$4 sm:$0xff]   ;;  %v2960_v41 = vld [vmem:[%s3591_s1 + $0x110] sm:$0xff]   ;;  %v1749_v47 = vrot.slane %v1747_v5, 5 }
  0x54   : > { %2722 = vmatpush3.bf16.msra.mxu1 %v2943_v21  ;;  %2717 = vmatprep.mubr.msk.bf16.mxu1 %vm503_vm3, %v2370_v28  ;;  %v1693_v21 = vrot.slane %v1691_v17, 5  ;;  %v3446_v28 = vld [vmem:[%s3055_s8 + $0x3c] sm:$0x1]  ;;  %v1735_v17 = vrot.slane %v1733_v0, 5  ;;  %v1746_v46 = vrot.slane %v1744_v3, 4 }
  0x55   : > { %2776 = vmatpush3.bf16.msra.mxu0 %v2942_v10  ;;  %2723 = vmatprep.subr.bf16.mxu1 %v2947_v42  ;;  %v1690_v10 = vrot.slane %v1688_v22, 4  ;;  %v1725_v12 = vshll.u32 %v3446_v28, 16  ;;  %v1741_v19 = vrot.slane %v1739_v2, 5  ;;  %v2544_v58 = vld [vmem:[%s3055_s8 + $0x10] sm:$0xe] }
  0x56   : > { %2785 = vmatprep.subr.bf16.mxu0 %v2945_v26  ;;  %v1750_v27 = vor.u32 %v1749_v47, %v1746_v46  ;;  %v2547_v44 = vld [vmem:[%s3055_s8 + $0x28] sm:$0xe]  ;;  %v2550_v60 = vld [vmem:[%s3055_s8 + $0x40] sm:$0xe] }
  0x57   : > { %v1694_v13 = vor.u32 %v1693_v21, %v1690_v10  ;;  %v2555_v56 = vrot.slane %v2547_v44, 9 }
  0x58   : > { %2778 = vmatmul.mubr.msk.bf16.vlgmr.msra.gmra.mrb[0].mxu0 %vm503_vm3, %v2946_v55  ;;  %2724 = vmatpush3.bf16.msra.mxu1 %v2947_v42  ;;  %v1681_v42 = vrot.slane %v1680_v15, 4  ;;  %v1711_v55 = vshll.u32 %v3441_v29, 16 }
  0x59   : > { %2786 = vmatpush3.bf16.msra.mxu0 %v2945_v26  ;;  %2725 = vmatprep.subr.bf16.mxu1 %v2949_v45  ;;  %v2518_v26 = vld [vmem:[%s3055_s8 + $0x38] sm:$0xf]  ;;  %v1695_v36 = vrot.slane %v1694_v13, 4 }
  0x5a   : > { %2787 = vmatprep.subr.bf16.mxu0 %v2948_v52  ;;  %2781 = vmatprep.mubr.msk.bf16.mxu0 %vm503_vm3, %v2950_v35  ;;  %v1716_v39 = vshrl.u32 %v2518_v26, 16  ;;  %v1719_v43 = vshll.u32 %v2518_v26, 16  ;;  %v1686_v48 = vsel %vm3101_vm2, %v1681_v42, %v1685_v9  ;;  %v1727_v35 = vrot.slane %v1725_v12, 5  ;;  %v2545_v9 = vld [vmem:[%s3055_s8 + $0x18] sm:$0xe] }
  0x5b   : > { %2718 = vmatmul.mubr.msk.bf16.gmra.mrb[4].mxu1 %vm503_vm3, %v2371_v62  ;;  %v1700_v23 = vsel %vm3101_vm2, %v1695_v36, %v1699_v4  ;;  %v3471_v62 = vld [vmem:[%s3055_s8 + $0x4c] sm:$0x1]  ;;  %v2548_v4 = vld [vmem:[%s3055_s8 + $0x30] sm:$0xe]  ;;  %v2553_v13 = vrot.slane %v2545_v9, 9  ;;  %v1917_v26 = vrot.slane %v3388_v11, 5 }
  0x5c   : > { %2726 = vmatpush3.bf16.msra.mxu1 %v2949_v45  ;;  %2729 = vmatprep.mubr.msk.bf16.mxu1 %vm503_vm3, %v2955_v50  ;;  %v1718_v45 = vrot.slane %v1716_v39, 4  ;;  %v1721_v49 = vrot.slane %v1719_v43, 5  ;;  %v2533_v51 = vcombine.low %v1686_v48, %v1700_v23  ;;  %v1753_v6 = vshll.u32 %v3471_v62, 16  ;;  %v2546_v39 = vld [vmem:[%s3055_s8 + $0x20] sm:$0xe] }
  0x5d   : > { %2788 = vmatpush3.bf16.msra.mxu0 %v2948_v52  ;;  %2727 = vmatprep.subr.bf16.mxu1 %v2953_v1  ;;  %v1713_v52 = vrot.slane %v1711_v55, 5  ;;  %v1941_v15 = vrot.slane %v3471_v62, 5  ;;  %v2556_v42 = vrot.slane %v2548_v4, 9  ;;  %v2557_v55 = vrot.slane %v2549_v31, 9 }
  0x5e   : > { %2789 = vmatprep.subr.bf16.mxu0 %v2951_v24  ;;  %v1722_v50 = vor.u32 %v1721_v49, %v1718_v45  ;;  %v1751_v43 = vrot.slane %v1750_v27, 4  ;;  %v1918_v36 = vsel %vm3262_vm6, %v2553_v13, %v1917_v26  ;;  %v2551_v45 = vld [vmem:[%s3055_s8 + $0x48] sm:$0xe]  ;;  %v1921_v23 = vrot.slane %v3411_v63, 5 }
  0x5f   : > { %v1714_v54 = vsel %vm3101_vm2, %v1709_v61, %v1713_v52  ;;  %v2554_v52 = vrot.slane %v2546_v39, 9  ;;  %v2987_v61 = vmov 0.0  }
  0x60   : > { %2782 = vmatmul.mubr.msk.bf16.gmra.mrb[4].mxu0 %vm503_vm3, %v2952_v20  ;;  %2728 = vmatpush3.bf16.msra.mxu1 %v2953_v1  ;;  %v1730_v1 = vshrl.u32 %v2520_v57, 16  ;;  %v1723_v37 = vrot.slane %v1722_v50, 4  ;;  %v1755_v20 = vrot.slane %v1753_v6, 5  ;;  %v2558_v50 = vrot.slane %v2550_v60, 9  ;;  %305 = vst.msk [vmem:[#allocation2 + $0x10] sm:$0xff] %vm302_vm7, %v2987_v61  ;;  %303 = vst.msk [vmem:[#allocation2] sm:$0xff] %vm302_vm7, %v2987_v61 }
  0x61   : > { %2790 = vmatpush3.bf16.msra.mxu0 %v2951_v24  ;;  %2793 = vmatprep.mubr.msk.bf16.mxu0 %vm503_vm3, %v2532_v25  ;;  %v2962_v25 = vld [vmem:[%s3591_s1 + $0x118] sm:$0xff]   ;;  %v2559_v57 = vrot.slane %v2551_v45, 9  ;;  %304 = vst.msk [vmem:[#allocation2 + $0x8] sm:$0xff] %vm302_vm7, %v2987_v61  ;;  %306 = vst.msk [vmem:[#allocation2 + $0x18] sm:$0xff] %vm302_vm7, %v2987_v61 }
  0x62   : > { %2791 = vmatprep.subr.bf16.mxu0 %v2954_v7  ;;  %2817 = vmatprep.subr.bf16.mxu1 %v3437_v8  ;;  %v1732_v22 = vrot.slane %v1730_v1, 4  ;;  %v1728_v24 = vsel %vm3101_vm2, %v1723_v37, %v1727_v35  ;;  %v1756_v49 = vsel %vm3101_vm2, %v1751_v43, %v1755_v20  ;;  %307 = vst.msk [vmem:[#allocation2 + $0x20] sm:$0xff] %vm302_vm7, %v2987_v61  ;;  %308 = vst.msk [vmem:[#allocation2 + $0x28] sm:$0xff] %vm302_vm7, %v2987_v61 }
  0x63   : > { %2730 = vmatmul.mubr.msk.bf16.vlgmr.msra.gmra.mrb[0].mxu1 %vm503_vm3, %v2957_v18  ;;  %v2534_v10 = vcombine.low %v1714_v54, %v1728_v24  ;;  %v2552_v18 = vrot.slane %v2544_v58, 9  ;;  %v1942_v63 = vsel %vm3262_vm6, %v2559_v57, %v1941_v15  ;;  %309 = vst.msk [vmem:[#allocation2 + $0x30] sm:$0xff] %vm302_vm7, %v2987_v61  ;;  %310 = vst.msk [vmem:[#allocation2 + $0x38] sm:$0xff] %vm302_vm7, %v2987_v61 }
  0x64   : > { %2821 = vmatpush3.bf16.msra.mxu1 %v3437_v8  ;;  %2733 = vmatprep.mubr.msk.bf16.mxu1 %vm503_vm3, %v2959_v34  ;;  %v1736_v21 = vor.u32 %v1735_v17, %v1732_v22  ;;  %v1929_v34 = vrot.slane %v3441_v29, 5 }
  0x65   : > { %2792 = vmatpush3.bf16.msra.mxu0 %v2954_v7  ;;  %2818 = vmatprep.subr.bf16.mxu1 %v3460_v53  ;;  %v1937_v7 = vrot.slane %v3466_v59, 5  ;;  %v1914_v11 = vsel %vm3262_vm6, %v2552_v18, %v1913_v40 }
  0x66   : > { %2801 = vmatprep.subr.bf16.mxu0 %v3437_v8  ;;  %v1737_v32 = vrot.slane %v1736_v21, 4  ;;  %v2568_v12 = vcombine.low %v1914_v11, %v1918_v36  ;;  %v1930_v48 = vsel %vm3262_vm6, %v2556_v42, %v1929_v34 }
  0x67   : > { %v1938_v33 = vsel %vm3262_vm6, %v2558_v50, %v1937_v7  ;;  %v313_v26 = vld [vmem:[#allocation2 + $0x10] sm:$0xff]  ;;  %v311_v34 = vld [vmem:[#allocation2] sm:$0xff] }
  0x68   : > { %2794 = vmatmul.mubr.msk.bf16.vlgmr.msra.gmra.mrb[0].mxu0 %vm503_vm3, %v2533_v51  ;;  %2822 = vmatpush3.bf16.msra.mxu1 %v3460_v53  ;;  %v1742_v29 = vsel %vm3101_vm2, %v1737_v32, %v1741_v19  ;;  %v1925_v51 = vrot.slane %v3415_v14, 5  ;;  %v1922_v14 = vsel %vm3262_vm6, %v2554_v52, %v1921_v23  ;;  %v2571_v59 = vcombine.low %v1938_v33, %v1942_v63  ;;  %v314_v11 = vld [vmem:[#allocation2 + $0x18] sm:$0xff]  ;;  %v312_v60 = vld [vmem:[#allocation2 + $0x8] sm:$0xff]  ;;  %v2580_v52 = vld [vmem:[%s3592_s2] ss:$0 sm:$0xff] }
  0x69   : > { %2802 = vmatpush3.bf16.msra.mxu0 %v3437_v8  ;;  %2797 = vmatprep.mubr.msk.bf16.mxu0 %vm503_vm3, %v2534_v10  ;;  %v1933_v8 = vrot.slane %v3446_v28, 5  ;;  %v2535_v35 = vcombine.low %v1742_v29, %v1756_v49  ;;  %v315_v58 = vld [vmem:[#allocation2 + $0x20] sm:$0xff]  ;;  %v316_v27 = vld [vmem:[#allocation2 + $0x28] sm:$0xff] }
  0x6a   : > { %2803 = vmatprep.subr.bf16.mxu0 %v3460_v53  ;;  %2819 = vmatprep.subr.bf16.mxu1 %v2960_v41  ;;  %v318_v7 = vld [vmem:[#allocation2 + $0x38] sm:$0xff] }
  0x6b   : > { %2734 = vmatmul.mubr.msk.bf16.gmra.mrb[4].mxu1 %vm503_vm3, %v2961_v16  ;;  %v1934_v28 = vsel %vm3262_vm6, %v2557_v55, %v1933_v8 }
  0x6c   : > { %2823 = vmatpush3.bf16.msra.mxu1 %v2960_v41  ;;  %v2570_v40 = vcombine.low %v1930_v48, %v1934_v28  ;;  %v2581_v28 = vld [vmem:[%s3593_s3] ss:$0 sm:$0xff] }
  0x6d   : > { %2804 = vmatpush3.bf16.msra.mxu0 %v3460_v53  ;;  %2820 = vmatprep.subr.bf16.mxu1 %v2962_v25  ;;  %v1926_v53 = vsel %vm3262_vm6, %v2555_v56, %v1925_v51 }
  0x6e   : > { %2805 = vmatprep.subr.bf16.mxu0 %v2960_v41  ;;  %2813 = vmatprep.mubr.msk.bf16.mxu1 %vm503_vm3, %v2570_v40  ;;  %v2569_v38 = vcombine.low %v1922_v14, %v1926_v53 }
  0x70   : > { %2798 = vmatmul.mubr.msk.bf16.gmra.mrb[4].mxu0 %vm503_vm3, %v2535_v35  ;;  %2824 = vmatpush3.bf16.msra.mxu1 %v2962_v25 }
  0x71   : > { %2806 = vmatpush3.bf16.msra.mxu0 %v2960_v41  ;;  %2809 = vmatprep.mubr.msk.bf16.mxu0 %vm503_vm3, %v2568_v12  ;;  %v317_v41 = vld [vmem:[#allocation2 + $0x30] sm:$0xff] }
  0x72   : > { %2807 = vmatprep.subr.bf16.mxu0 %v2962_v25 }
  0x73   : > { %2814 = vmatmul.mubr.msk.bf16.vlgmr.msra.gmra.mrb[8].mxu1 %vm503_vm3, %v2571_v59 }
  0x75   : > { %2808 = vmatpush3.bf16.msra.mxu0 %v2962_v25 }
  0x78   : > { %2810 = vmatmul.mubr.msk.bf16.vlgmr.msra.gmra.mrb[0].mxu0 %vm503_vm3, %v2569_v38 }
 0x136   : > { %v2731_v30 = vpop.f32.mrb[0].mxu1 }
 0x137   : > { %v999_v62 = vpop.f32.mrb[1].mxu1 }
 0x138   : > { %v2732_v1 = vpop.f32.mrb[2].mxu1 }
 0x139   : > { %v1002_v0 = vpop.f32.mrb[3].mxu1 }
 0x13e   : > { %v2735_v2 = vpop.f32.mrb[4].mxu1 }
 0x13f   : > { %v1015_v37 = vpop.f32.mrb[5].mxu1 }
 0x140   : > { %v2736_v3 = vpop.f32.mrb[6].mxu1 }
 0x141   : > { %v1018_v5 = vpop.f32.mrb[7].mxu1 }
 0x143   : > { %v2799_v6 = vpop.f32.mrb[4].mxu0 }
 0x144   : > { %v2829_v54 = vadd.f32 %v2799_v6, %v2735_v2  ;;  %v1864_v16 = vpop.f32.mrb[5].mxu0 }
 0x145   : > { %v2831_v22 = vadd.f32 %v1864_v16, %v1015_v37  ;;  %v2800_v17 = vpop.f32.mrb[6].mxu0 }
 0x146   : > { %v2833_v19 = vadd.f32 %v2800_v17, %v2736_v3  ;;  %v1867_v24 = vpop.f32.mrb[7].mxu0  ;;  %v2815_v46 = vpop.f32.mrb[8].mxu1 }
 0x147   : > { %v2835_v47 = vadd.f32 %v1867_v24, %v1018_v5  ;;  %v2830_v20 = vadd.f32 %v2829_v54, %v2815_v46  ;;  %v2050_v10 = vpop.f32.mrb[9].mxu1 }
 0x148   : > { %v2832_v21 = vadd.f32 %v2831_v22, %v2050_v10  ;;  %v2816_v15 = vpop.f32.mrb[10].mxu1 }
 0x149   : > { %v2079_v9 = vadd.f32 %v2830_v20, %v317_v41  ;;  %v2834_v4 = vadd.f32 %v2833_v19, %v2816_v15  ;;  %v2053_v25 = vpop.f32.mrb[11].mxu1 }
 0x14a   : > { %v2077_v18 = vadd.f32 %v2832_v21, %v315_v58  ;;  %v2836_v13 = vadd.f32 %v2835_v47, %v2053_v25 }
 0x14b   : > { %v2811_v31 = vpop.f32.mrb[0].mxu0  ;;  %2088 = vst.msk [vmem:[#allocation2 + $0x30] sm:$0xff] %vm302_vm7, %v2079_v9  ;;  %v2080_v32 = vadd.f32 %v2834_v4, %v318_v7 }
 0x14c   : > { %v2825_v42 = vadd.f32 %v2811_v31, %v2731_v30  ;;  %v2034_v55 = vpop.f32.mrb[1].mxu0  ;;  %2086 = vst.msk [vmem:[#allocation2 + $0x20] sm:$0xff] %vm302_vm7, %v2077_v18  ;;  %v2078_v39 = vadd.f32 %v2836_v13, %v316_v27 }
 0x14d   : > { %v2826_v43 = vadd.f32 %v2034_v55, %v999_v62  ;;  %v2812_v36 = vpop.f32.mrb[2].mxu0  ;;  %2089 = vst.msk [vmem:[#allocation2 + $0x38] sm:$0xff] %vm302_vm7, %v2080_v32 }
 0x14e   : > { %v2075_v8 = vadd.f32 %v2825_v42, %v313_v26  ;;  %v2827_v44 = vadd.f32 %v2812_v36, %v2732_v1  ;;  %v2037_v29 = vpop.f32.mrb[3].mxu0  ;;  %2087 = vst.msk [vmem:[#allocation2 + $0x28] sm:$0xff] %vm302_vm7, %v2078_v39 }
 0x14f   : > { %v2073_v12 = vadd.f32 %v2826_v43, %v311_v34  ;;  %v2828_v48 = vadd.f32 %v2037_v29, %v1002_v0 }
 0x150   : > { %2084 = vst.msk [vmem:[#allocation2 + $0x10] sm:$0xff] %vm302_vm7, %v2075_v8  ;;  %v2076_v45 = vadd.f32 %v2827_v44, %v314_v11 }
 0x151   : > { %2082 = vst.msk [vmem:[#allocation2] sm:$0xff] %vm302_vm7, %v2073_v12  ;;  %v2074_v49 = vadd.f32 %v2828_v48, %v312_v60 }
 0x152   : > { %v2099_v23 = vld [vmem:[#allocation2 + $0x30] sm:$0xff]  ;;  %2085 = vst.msk [vmem:[#allocation2 + $0x18] sm:$0xff] %vm302_vm7, %v2076_v45 }
 0x153   : > { %v2114_v56 = vmul.f32 %v2580_v52, %v2099_v23  ;;  %v2097_v35 = vld [vmem:[#allocation2 + $0x20] sm:$0xff]  ;;  %2083 = vst.msk [vmem:[#allocation2 + $0x8] sm:$0xff] %vm302_vm7, %v2074_v49 }
 0x154   : > { %v2112_v40 = vmul.f32 %v2580_v52, %v2097_v35  ;;  %v2100_v51 = vld [vmem:[#allocation2 + $0x38] sm:$0xff] }
 0x155   : > { %v2129_v50 = vadd.f32 %v2581_v28, %v2114_v56  ;;  %v2115_v57 = vmul.f32 %v2580_v52, %v2100_v51  ;;  %v2098_v33 = vld [vmem:[#allocation2 + $0x28] sm:$0xff] }
 0x156   : > { %v2127_v63 = vadd.f32 %v2581_v28, %v2112_v40  ;;  %v2113_v14 = vmul.f32 %v2580_v52, %v2098_v33 }
 0x157   : > { %v2095_v53 = vld [vmem:[#allocation2 + $0x10] sm:$0xff]  ;;  %v2137_v59 = vmax.f32 %v2129_v50, 0.0  ;;  %v2130_v38 = vadd.f32 %v2581_v28, %v2115_v57 }
 0x158   : > { %v2110_v61 = vmul.f32 %v2580_v52, %v2095_v53  ;;  %v2093_v30 = vld [vmem:[#allocation2] sm:$0xff]  ;;  %v2135_v62 = vmax.f32 %v2127_v63, 0.0  ;;  %v2128_v1 = vadd.f32 %v2581_v28, %v2113_v14 }
 0x159   : > { %v2599_v0 = vpack.c.bf16 %v2137_v59, %v2137_v59  ;;  %v2108_v2 = vmul.f32 %v2580_v52, %v2093_v30  ;;  %v2096_v37 = vld [vmem:[#allocation2 + $0x18] sm:$0xff]  ;;  %v2138_v3 = vmax.f32 %v2130_v38, 0.0 }
 0x15a   : > { %v2125_v5 = vadd.f32 %v2581_v28, %v2110_v61  ;;  %v2597_v6 = vpack.c.bf16 %v2135_v62, %v2135_v62  ;;  %v2111_v54 = vmul.f32 %v2580_v52, %v2096_v37  ;;  %v2094_v16 = vld [vmem:[#allocation2 + $0x8] sm:$0xff]  ;;  %v2136_v22 = vmax.f32 %v2128_v1, 0.0 }
 0x15b   : > { %2178 = vst.msk [vmem:[%s3563_s12 + $0x18] sm:$0xf] %vm2171_vm8, %v2599_v0  ;;  %v2123_v17 = vadd.f32 %v2581_v28, %v2108_v2  ;;  %v2600_v19 = vpack.c.bf16 %v2138_v3, %v2138_v3  ;;  %v2109_v24 = vmul.f32 %v2580_v52, %v2094_v16 }
 0x15c   : > { %v2133_v41 = vmax.f32 %v2125_v5, 0.0  ;;  %2176 = vst.msk [vmem:[%s3563_s12 + $0x10] sm:$0xf] %vm2171_vm8, %v2597_v6  ;;  %v2126_v46 = vadd.f32 %v2581_v28, %v2111_v54  ;;  %v2598_v47 = vpack.c.bf16 %v2136_v22, %v2136_v22 }
 0x15d   : > { %v2131_v20 = vmax.f32 %v2123_v17, 0.0  ;;  %2179 = vst.msk [vmem:[%s3563_s12 + $0x1c] sm:$0xf] %vm2171_vm8, %v2600_v19  ;;  %v2124_v58 = vadd.f32 %v2581_v28, %v2109_v24 }
 0x15e   : > { %v2595_v10 = vpack.c.bf16 %v2133_v41, %v2133_v41  ;;  %v2134_v21 = vmax.f32 %v2126_v46, 0.0  ;;  %2177 = vst.msk [vmem:[%s3563_s12 + $0x14] sm:$0xf] %vm2171_vm8, %v2598_v47 }
 0x15f   : > { %v2593_v7 = vpack.c.bf16 %v2131_v20, %v2131_v20  ;;  %v2132_v15 = vmax.f32 %v2124_v58, 0.0 }
 0x160   : > { %2174 = vst.msk [vmem:[%s3563_s12 + $0x8] sm:$0xf] %vm2171_vm8, %v2595_v10  ;;  %v2596_v9 = vpack.c.bf16 %v2134_v21, %v2134_v21 }
 0x161   : > { %2172 = vst.msk [vmem:[%s3563_s12] sm:$0xf] %vm2171_vm8, %v2593_v7  ;;  %v2594_v4 = vpack.c.bf16 %v2132_v15, %v2132_v15 }
 0x162   : > { %2175 = vst.msk [vmem:[%s3563_s12 + $0xc] sm:$0xf] %vm2171_vm8, %v2596_v9 }
 0x163   : > { %2173 = vst.msk [vmem:[%s3563_s12 + $0x4] sm:$0xf] %vm2171_vm8, %v2594_v4 }
 0x164 PF: > { %s14_s17 = sadd.s32 1, %s2985_s17   ;;  %s3599_s15 = smov %s2981_s16 }
 0x165   : > { %p11_p5 = scmp.ge.s32.totalorder %s14_s17, 5   ;;  %s3600_s16 = smov %s3602_s18 }
 0x167   :  { %13 = sbr.rel (!%p11_p5) target bundleno = 2 (0x2), region = 93 }

// kernel: clip_ocr_forward.7
= control target key start
LH: loop header
LB: loop body
LE: loop exit
PB: predicated region body
PF: predicated region fallthrough
CT: control target
= control target key end

     0   :  { %s3026_s21 = smov 0   ;;  %s3028_s22 = smov 0   ;;  %s3542_s0 = inlined_call_operand.vmem [shape: bf16[3,10,10,32], index: 0, kind: input, shape index: {}]   ;;  %s3543_s1 = inlined_call_operand.vmem [shape: bf16[9,32,32], index: 1, kind: input, shape index: {}]   ;;  %s3544_s2 = inlined_call_operand.vmem [shape: f32[1,32], index: 2, kind: input, shape index: {}]   ;;  %s3545_s3 = inlined_call_operand.vmem [shape: f32[1,32], index: 3, kind: input, shape index: {}]   ;;  %s3546_s4 = inlined_call_operand.vmem [shape: bf16[32,128], index: 4, kind: input, shape index: {}]   ;;  %s3547_s5 = inlined_call_operand.vmem [shape: f32[1,128], index: 5, kind: input, shape index: {}]   ;;  %s3548_s6 = inlined_call_operand.vmem [shape: bf16[3,64,128], index: 6, kind: output, shape index: {}]  }
   0x1   :  { %s3030_s23 = smov 0  }
   0x2 LB: > { %s35_s24 = sadd.s32 1, %s2984_s22  ;;  %p2399_p0 = scmp.ge.s32.totalorder %s2988_s23, 1  ;;  %s2988_s23 = sphi %s3030_s23, %s16_s23   ;;  %s2984_s22 = sphi %s3028_s22, %s3554_s22   ;;  %s2980_s21 = sphi %s3026_s21, %s3553_s21  }
   0x3   : > { %p37_p1 = scmp.ge.s32.totalorder %s35_s24, 3  ;;  %p279_p2 = scmp.lt.s32.totalorder %s2988_s23, 4 }
   0x5   : > { %s3556_s24 = smov (%p37_p1, %s35_s24), 0  ;;  %p280_p3 = pnand %p2399_p0, %p279_p2 }
   0x6   : > { %v2934_v0 = vld [vmem:[%s3543_s1 + $0x40] sm:$0xff] (!%p280_p3)   ;;  %p331_p4 = scmp.lt.s32.totalorder (!%p280_p3), %s2980_s21, 2  ;;  %v2935_v1 = vld [vmem:[%s3543_s1 + $0x10] sm:$0xff] (!%p280_p3)   ;;  %v2936_v2 = vld [vmem:[%s3543_s1 + $0x48] sm:$0xff] (!%p280_p3)   ;;  %vm420_vm0 = vsmask.f32 (!%p280_p3), 3328 }
   0x7   : > { %283 = sbr.rel (%p280_p3) target bundleno = 584 (0x248), region = 44  ;;  %2772 = vmatprep.subr.bf16.mxu0 (!%p280_p3), %v2934_v0  ;;  %2724 = vmatprep.subr.bf16.mxu1 (!%p280_p3), %v2935_v1  ;;  %v2937_v3 = vld [vmem:[%s3543_s1 + $0x18] sm:$0xff] (!%p280_p3)   ;;  %v3062_v4 = vld [vmem:[%s3543_s1 + $0x50] sm:$0xff] (!%p280_p3)   ;;  %vm421_vm1 = vsmask.f32 (!%p280_p3), 7440  ;;  %v3100_v29 = vld [vmem:[%s3543_s1] sm:$0xff] (!%p280_p3)  }
   0x8   : > { %2773 = vmatpush3.bf16.msra.mxu0 (!%p280_p3), %v2934_v0  ;;  %2725 = vmatpush3.bf16.msra.mxu1 (!%p280_p3), %v2935_v1  ;;  %vm3104_vm2 = vmor (!%p280_p3), %vm420_vm0, %vm421_vm1  ;;  %vm370_vm3 = vcmask (!%p280_p3), 261120   ;;  %vm775_vm4 = vcmask (!%p280_p3), 1042432   ;;  %vm776_vm5 = vcmask (!%p280_p3), 1046532  }
   0x9   : > { %2774 = vmatprep.subr.bf16.mxu0 (!%p280_p3), %v2936_v2  ;;  %2726 = vmatprep.subr.bf16.mxu1 (!%p280_p3), %v2937_v3  ;;  %vm3252_vm6 = vmor (!%p280_p3), %vm775_vm4, %vm776_vm5 }
   0xc   : > { %2775 = vmatpush3.bf16.msra.mxu0 (!%p280_p3), %v2936_v2  ;;  %2727 = vmatpush3.bf16.msra.mxu1 (!%p280_p3), %v2937_v3 }
   0xd   : > { %2784 = vmatprep.subr.bf16.mxu0 (!%p280_p3), %v3062_v4  ;;  %2736 = vmatprep.subr.bf16.mxu1 (!%p280_p3), %v3100_v29 }
   0xe   : > { %s3558_s21 = smov (!%p331_p4, %s2980_s21), 2 }
   0xf   : > { %s2908_s9 = smul.u32 80, %s3558_s21  ;;  %s2632_s11 = sshll.u32 %s3558_s21, 5 }
  0x10   : > { %s364_s15 = scalar_lea.vmem %s3548_s6, %s2632_s11 }
  0x11   : > { %s3067_s14 = scalar_lea.vmem %s3542_s0, %s2908_s9 }
  0x12   : > { %v3070_v5 = vld [vmem:[%s3067_s14] sm:$0xf]  ;;  %v3073_v6 = vld [vmem:[%s3067_s14 + $0x8] sm:$0xf]  ;;  %v3076_v7 = vld [vmem:[%s3067_s14 + $0x4] sm:$0x1] }
  0x13   : > { %v3079_v8 = vld [vmem:[%s3067_s14 + $0xc] sm:$0x1]  ;;  %v424_v9 = vshrl.u32 %v3070_v5, 16  ;;  %v427_v10 = vshll.u32 %v3070_v5, 16  ;;  %v433_v11 = vshll.u32 %v3076_v7, 16  ;;  %v438_v12 = vshrl.u32 %v3073_v6, 16 }
  0x14   : > { %v441_v13 = vshll.u32 %v3073_v6, 16  ;;  %v447_v14 = vshll.u32 %v3079_v8, 16  ;;  %v2471_v15 = vld [vmem:[%s3067_s14 + $0x8] sm:$0xf]  ;;  %v3090_v20 = vld [vmem:[%s3067_s14 + $0xc] sm:$0x1] }
  0x15   : > { %v426_v16 = vrot.slane %v424_v9, 4  ;;  %v429_v17 = vrot.slane %v427_v10, 5  ;;  %v435_v18 = vrot.slane %v433_v11, 5  ;;  %v440_v19 = vrot.slane %v438_v12, 4  ;;  %v2473_v23 = vld [vmem:[%s3067_s14 + $0x10] sm:$0xf] }
  0x16   : > { %v443_v21 = vrot.slane %v441_v13, 5  ;;  %v449_v22 = vrot.slane %v447_v14, 5  ;;  %v3094_v24 = vld [vmem:[%s3067_s14 + $0x14] sm:$0x1]  ;;  %v1072_v26 = vshrl.u32 %v2471_v15, 16  ;;  %v1075_v27 = vshll.u32 %v2471_v15, 16 }
  0x17   : > { %v430_v25 = vor.u32 %v429_v17, %v426_v16  ;;  %v1081_v28 = vshll.u32 %v3090_v20, 16  ;;  %v1086_v32 = vshrl.u32 %v2473_v23, 16  ;;  %v1089_v33 = vshll.u32 %v2473_v23, 16  ;;  %v3110_v35 = vld [vmem:[%s3067_s14 + $0x10] sm:$0xf] }
  0x18   : > { %v444_v31 = vor.u32 %v443_v21, %v440_v19  ;;  %v1095_v34 = vshll.u32 %v3094_v24, 16  ;;  %v1074_v37 = vrot.slane %v1072_v26, 4  ;;  %v1077_v38 = vrot.slane %v1075_v27, 5  ;;  %v3113_v39 = vld [vmem:[%s3067_s14 + $0x18] sm:$0xf] }
  0x19   : > { %v431_v36 = vrot.slane %v430_v25, 4  ;;  %v1088_v41 = vrot.slane %v1086_v32, 4  ;;  %v1091_v42 = vrot.slane %v1089_v33, 5  ;;  %v3117_v43 = vld [vmem:[%s3067_s14 + $0x14] sm:$0x1]  ;;  %v1083_v46 = vrot.slane %v1081_v28, 5 }
  0x1a   : > { %v445_v40 = vrot.slane %v444_v31, 4  ;;  %v1078_v45 = vor.u32 %v1077_v38, %v1074_v37  ;;  %v1097_v47 = vrot.slane %v1095_v34, 5  ;;  %v3124_v50 = vld [vmem:[%s3067_s14 + $0x1c] sm:$0x1]  ;;  %v452_v51 = vshrl.u32 %v3110_v35, 16 }
  0x1b   : > { %v436_v44 = vsel %vm3104_vm2, %v431_v36, %v435_v18  ;;  %v1092_v49 = vor.u32 %v1091_v42, %v1088_v41  ;;  %v455_v52 = vshll.u32 %v3110_v35, 16  ;;  %v461_v55 = vshll.u32 %v3117_v43, 16  ;;  %v2475_v61 = vld [vmem:[%s3067_s14 + $0x18] sm:$0xf]  ;;  %v3137_v1 = vld [vmem:[%s3067_s14 + $0x1c] sm:$0x1] }
  0x1c   : > { %v450_v48 = vsel %vm3104_vm2, %v445_v40, %v449_v22  ;;  %v1079_v54 = vrot.slane %v1078_v45, 4  ;;  %v466_v56 = vshrl.u32 %v3113_v39, 16  ;;  %v454_v58 = vrot.slane %v452_v51, 4  ;;  %v2477_v11 = vld [vmem:[%s3067_s14 + $0x20] sm:$0xf]  ;;  %v2941_v40 = vld [vmem:[%s3543_s1 + $0x8] sm:$0xff]  }
  0x1d   : > { %v2407_v53 = vcombine.low %v436_v44, %v450_v48  ;;  %v1093_v57 = vrot.slane %v1092_v49, 4  ;;  %v457_v59 = vrot.slane %v455_v52, 5  ;;  %v469_v60 = vshll.u32 %v3113_v39, 16  ;;  %v3143_v12 = vld [vmem:[%s3067_s14 + $0x24] sm:$0x1] }
  0x1e   : > { %v1084_v62 = vsel %vm3104_vm2, %v1079_v54, %v1083_v46  ;;  %v468_v63 = vrot.slane %v466_v56, 4  ;;  %v475_v0 = vshll.u32 %v3124_v50, 16  ;;  %v463_v9 = vrot.slane %v461_v55, 5  ;;  %v3149_v26 = vld [vmem:[%s3067_s14 + $0x20] sm:$0xf] }
  0x1f   : > { %2728 = vmatprep.mubr.msk.bf16.mxu1 %vm370_vm3, %v2407_v53  ;;  %v1098_v2 = vsel %vm3104_vm2, %v1093_v57, %v1097_v47  ;;  %v458_v3 = vor.u32 %v457_v59, %v454_v58  ;;  %v471_v10 = vrot.slane %v469_v60, 5  ;;  %v1100_v15 = vshrl.u32 %v2475_v61, 16  ;;  %v3154_v32 = vld [vmem:[%s3067_s14 + $0x24] sm:$0x1]  ;;  %v3158_v38 = vld [vmem:[%s3067_s14 + $0x28] sm:$0xf] }
  0x20   : > { %v2491_v13 = vcombine.low %v1084_v62, %v1098_v2  ;;  %v477_v14 = vrot.slane %v475_v0, 5  ;;  %v1103_v18 = vshll.u32 %v2475_v61, 16  ;;  %v1109_v19 = vshll.u32 %v3137_v1, 16  ;;  %v3166_v45 = vld [vmem:[%s3067_s14 + $0x2c] sm:$0x1] }
  0x21   : > { %v459_v16 = vrot.slane %v458_v3, 4  ;;  %v472_v17 = vor.u32 %v471_v10, %v468_v63  ;;  %v1102_v21 = vrot.slane %v1100_v15, 4  ;;  %v1114_v22 = vshrl.u32 %v2477_v11, 16  ;;  %v2479_v47 = vld [vmem:[%s3067_s14 + $0x28] sm:$0xf]  ;;  %v3189_v10 = vld [vmem:[%s3543_s1 + $0x20] sm:$0xff]  }
  0x22   : > { %2776 = vmatprep.mubr.msk.bf16.mxu0 %vm370_vm3, %v2491_v13  ;;  %v1117_v23 = vshll.u32 %v2477_v11, 16  ;;  %v1123_v25 = vshll.u32 %v3143_v12, 16  ;;  %v1105_v31 = vrot.slane %v1103_v18, 5  ;;  %v1323_v33 = vrot.slane %v3090_v20, 5  ;;  %v3175_v57 = vld [vmem:[%s3067_s14 + $0x2c] sm:$0x1] }
  0x23   : > { %v464_v27 = vsel %vm3104_vm2, %v459_v16, %v463_v9  ;;  %v473_v28 = vrot.slane %v472_v17, 4  ;;  %v1111_v34 = vrot.slane %v1109_v19, 5  ;;  %v1116_v36 = vrot.slane %v1114_v22, 4  ;;  %v2481_v62 = vld [vmem:[%s3067_s14 + $0x30] sm:$0xf] }
  0x24   : > { %v1119_v37 = vrot.slane %v1117_v23, 5  ;;  %v1106_v42 = vor.u32 %v1105_v31, %v1102_v21  ;;  %v1125_v44 = vrot.slane %v1123_v25, 5  ;;  %v480_v46 = vshrl.u32 %v3149_v26, 16  ;;  %v3183_v3 = vld [vmem:[%s3067_s14 + $0x34] sm:$0x1]  ;;  %v2939_v21 = vld [vmem:[%s3543_s1 + $0x58] sm:$0xff]  }
  0x25   : > { %v478_v41 = vsel %vm3104_vm2, %v473_v28, %v477_v14  ;;  %v483_v51 = vshll.u32 %v3149_v26, 16  ;;  %v489_v52 = vshll.u32 %v3154_v32, 16  ;;  %v494_v55 = vshrl.u32 %v3158_v38, 16  ;;  %v3194_v16 = vld [vmem:[%s3067_s14 + $0x30] sm:$0xf] }
  0x26   : > { %v2408_v48 = vcombine.low %v464_v27, %v478_v41  ;;  %v1120_v49 = vor.u32 %v1119_v37, %v1116_v36  ;;  %v1107_v53 = vrot.slane %v1106_v42, 4  ;;  %v482_v54 = vrot.slane %v480_v46, 4  ;;  %v3201_v28 = vld [vmem:[%s3067_s14 + $0x38] sm:$0xf]  ;;  %v3204_v31 = vld [vmem:[%s3067_s14 + $0x34] sm:$0x1] }
  0x27   : > { %v497_v56 = vshll.u32 %v3158_v38, 16  ;;  %v485_v59 = vrot.slane %v483_v51, 5  ;;  %v491_v60 = vrot.slane %v489_v52, 5  ;;  %v503_v61 = vshll.u32 %v3166_v45, 16  ;;  %v2483_v52 = vld [vmem:[%s3067_s14 + $0x38] sm:$0xf] }
  0x28   : > { %2729 = vmatmul.mubr.msk.bf16.vlgmr.msra.gmra.mrb[0].mxu1 %vm370_vm3, %v2408_v48  ;;  %v1121_v58 = vrot.slane %v1120_v49, 4  ;;  %v1112_v63 = vsel %vm3104_vm2, %v1107_v53, %v1111_v34  ;;  %v496_v0 = vrot.slane %v494_v55, 4  ;;  %v1128_v9 = vshrl.u32 %v2479_v47, 16  ;;  %v3213_v48 = vld [vmem:[%s3067_s14 + $0x3c] sm:$0x1]  ;;  %v3223_v53 = vld [vmem:[%s3543_s1 + $0x60] sm:$0xff]  }
  0x29   : > { %v499_v2 = vrot.slane %v497_v56, 5  ;;  %2737 = vmatpush3.bf16.msra.mxu1 %v3100_v29  ;;  %v486_v13 = vor.u32 %v485_v59, %v482_v54  ;;  %v505_v14 = vrot.slane %v503_v61, 5  ;;  %v1131_v15 = vshll.u32 %v2479_v47, 16  ;;  %v3227_v59 = vld [vmem:[%s3067_s14 + $0x3c] sm:$0x1] }
  0x2a   : > { %v1126_v11 = vsel %vm3104_vm2, %v1121_v58, %v1125_v44  ;;  %2738 = vmatprep.subr.bf16.mxu1 %v2941_v40  ;;  %v1130_v19 = vrot.slane %v1128_v9, 4  ;;  %v1137_v29 = vshll.u32 %v3175_v57, 16  ;;  %v1142_v25 = vshrl.u32 %v2481_v62, 16 }
  0x2b   : > { %v2492_v17 = vcombine.low %v1112_v63, %v1126_v11  ;;  %v500_v18 = vor.u32 %v499_v2, %v496_v0  ;;  %v487_v22 = vrot.slane %v486_v13, 4  ;;  %v1133_v23 = vrot.slane %v1131_v15, 5  ;;  %v3234_v2 = vld [vmem:[%s3067_s14 + $0x44] sm:$0x1]  ;;  %v2501_v15 = vld [vmem:[%s3067_s14 + $0x8] sm:$0xe] }
  0x2c   : > { %v1145_v27 = vshll.u32 %v2481_v62, 16  ;;  %v1139_v36 = vrot.slane %v1137_v29, 5  ;;  %v1151_v37 = vshll.u32 %v3183_v3, 16  ;;  %v508_v41 = vshrl.u32 %v3194_v16, 16 }
  0x2d   : > { %2777 = vmatmul.mubr.msk.bf16.vlgmr.msra.gmra.mrb[0].mxu0 %vm370_vm3, %v2492_v17  ;;  %v501_v34 = vrot.slane %v500_v18, 4  ;;  %2739 = vmatpush3.bf16.msra.mxu1 %v2941_v40  ;;  %v492_v42 = vsel %vm3104_vm2, %v487_v22, %v491_v60  ;;  %v1134_v44 = vor.u32 %v1133_v23, %v1130_v19  ;;  %v1144_v46 = vrot.slane %v1142_v25, 4  ;;  %v2485_v60 = vld [vmem:[%s3067_s14 + $0x40] sm:$0xf] }
  0x2e   : > { %2785 = vmatpush3.bf16.msra.mxu0 %v3062_v4  ;;  %v1147_v47 = vrot.slane %v1145_v27, 5  ;;  %2748 = vmatprep.subr.bf16.mxu1 %v3189_v10  ;;  %v1153_v40 = vrot.slane %v1151_v37, 5  ;;  %v510_v51 = vrot.slane %v508_v41, 4  ;;  %v511_v4 = vshll.u32 %v3194_v16, 16 }
  0x2f   : > { %v506_v49 = vsel %vm3104_vm2, %v501_v34, %v505_v14  ;;  %2786 = vmatprep.subr.bf16.mxu0 %v2939_v21  ;;  %v1135_v55 = vrot.slane %v1134_v44, 4  ;;  %v517_v58 = vshll.u32 %v3204_v31, 16  ;;  %v522_v62 = vshrl.u32 %v3201_v28, 16 }
  0x30   : > { %v2409_v54 = vcombine.low %v492_v42, %v506_v49  ;;  %v1148_v56 = vor.u32 %v1147_v47, %v1144_v46  ;;  %v513_v61 = vrot.slane %v511_v4, 5  ;;  %v525_v63 = vshll.u32 %v3201_v28, 16  ;;  %v2502_v42 = vld [vmem:[%s3067_s14 + $0x10] sm:$0xe] }
  0x31   : > { %v531_v0 = vshll.u32 %v3213_v48, 16  ;;  %v1140_v9 = vsel %vm3104_vm2, %v1135_v55, %v1139_v36  ;;  %v519_v13 = vrot.slane %v517_v58, 5  ;;  %v1156_v14 = vshrl.u32 %v2483_v52, 16 }
  0x32   : > { %2732 = vmatprep.mubr.msk.bf16.mxu1 %vm370_vm3, %v2409_v54  ;;  %v1149_v11 = vrot.slane %v1148_v56, 4  ;;  %2787 = vmatpush3.bf16.msra.mxu0 %v2939_v21  ;;  %v514_v17 = vor.u32 %v513_v61, %v510_v51  ;;  %v524_v18 = vrot.slane %v522_v62, 4  ;;  %v527_v19 = vrot.slane %v525_v63, 5  ;;  %v2503_v61 = vld [vmem:[%s3067_s14 + $0x18] sm:$0xe] }
  0x33   : > { %v533_v29 = vrot.slane %v531_v0, 5  ;;  %2796 = vmatprep.subr.bf16.mxu0 %v3223_v53  ;;  %v1158_v23 = vrot.slane %v1156_v14, 4  ;;  %v1159_v25 = vshll.u32 %v2483_v52, 16  ;;  %v1165_v27 = vshll.u32 %v3227_v59, 16 }
  0x34   : > { %v1154_v22 = vsel %vm3104_vm2, %v1149_v11, %v1153_v40  ;;  %v515_v36 = vrot.slane %v514_v17, 4  ;;  %v528_v37 = vor.u32 %v527_v19, %v524_v18  ;;  %v1170_v41 = vshrl.u32 %v2485_v60, 16  ;;  %v2504_v11 = vld [vmem:[%s3067_s14 + $0x20] sm:$0xe]  ;;  %v2506_v19 = vld [vmem:[%s3067_s14 + $0x30] sm:$0xe] }
  0x35   : > { %v2493_v34 = vcombine.low %v1140_v9, %v1154_v22  ;;  %v1327_v21 = vrot.slane %v3094_v24, 5  ;;  %v1161_v44 = vrot.slane %v1159_v25, 5  ;;  %v1173_v46 = vshll.u32 %v2485_v60, 16  ;;  %v752_v25 = vld [vmem:[%s3067_s14 + $0x8] sm:$0xe]  ;;  %v2964_v24 = vld [vmem:[%s3546_s4] sm:$0xff]  }
  0x36   : > { %v1179_v47 = vshll.u32 %v3234_v2, 16  ;;  %v520_v49 = vsel %vm3104_vm2, %v515_v36, %v519_v13  ;;  %v529_v40 = vrot.slane %v528_v37, 4  ;;  %v1172_v51 = vrot.slane %v1170_v41, 4 }
  0x37   : > { %2780 = vmatprep.mubr.msk.bf16.mxu0 %vm370_vm3, %v2493_v34  ;;  %v2509_v4 = vrot.slane %v2501_v15, 9  ;;  %v1162_v52 = vor.u32 %v1161_v44, %v1158_v23  ;;  %v1167_v54 = vrot.slane %v1165_v27, 5  ;;  %v1175_v55 = vrot.slane %v1173_v46, 5  ;;  %v2505_v15 = vld [vmem:[%s3067_s14 + $0x28] sm:$0xe] }
  0x38   : > { %v2510_v56 = vrot.slane %v2502_v42, 9  ;;  %v534_v58 = vsel %vm3104_vm2, %v529_v40, %v533_v29  ;;  %v2417_v60 = vcombine.low %v3070_v5, %v3073_v6  ;;  %v1181_v9 = vrot.slane %v1179_v47, 5  ;;  %v751_v29 = vld [vmem:[%s3067_s14] sm:$0xe] }
  0x39   : > { %v2410_v62 = vcombine.low %v520_v49, %v534_v58  ;;  %v1163_v63 = vrot.slane %v1162_v52, 4  ;;  %v1176_v0 = vor.u32 %v1175_v55, %v1172_v51  ;;  %v1324_v13 = vsel %vm3252_vm6, %v2509_v4, %v1323_v33  ;;  %v2508_v46 = vld [vmem:[%s3067_s14 + $0x40] sm:$0xe]  ;;  %v754_v51 = vld [vmem:[%s3067_s14 + $0x18] sm:$0xe]  ;;  %v2946_v55 = vld [vmem:[%s3543_s1 + $0x68] sm:$0xff]  }
  0x3a   : > { %v1328_v14 = vsel %vm3252_vm6, %v2510_v56, %v1327_v21  ;;  %v780_v17 = vrot.slane %v3076_v7, 5  ;;  %v1331_v5 = vrot.slane %v3137_v1, 5  ;;  %v1335_v20 = vrot.slane %v3143_v12, 5  ;;  %v2507_v21 = vld [vmem:[%s3067_s14 + $0x38] sm:$0xe] }
  0x3b   : > { %2733 = vmatmul.mubr.msk.bf16.gmra.mrb[4].mxu1 %vm370_vm3, %v2410_v62  ;;  %v1168_v6 = vsel %vm3104_vm2, %v1163_v63, %v1167_v54  ;;  %v1177_v18 = vrot.slane %v1176_v0, 4  ;;  %v2511_v33 = vrot.slane %v2503_v61, 9  ;;  %v2521_v22 = vcombine.low %v1324_v13, %v1328_v14  ;;  %v755_v58 = vld [vmem:[%s3067_s14 + $0x20] sm:$0xe] }
  0x3c   : > { %2740 = vmatprep.mubr.msk.bf16.mxu1 %vm370_vm3, %v2417_v60  ;;  %v2512_v1 = vrot.slane %v2504_v11, 9  ;;  %v2513_v23 = vrot.slane %v2505_v15, 9  ;;  %v1339_v34 = vrot.slane %v3175_v57, 5  ;;  %v2514_v36 = vrot.slane %v2506_v19, 9  ;;  %v756_v60 = vld [vmem:[%s3067_s14 + $0x28] sm:$0xe] }
  0x3d   : > { %v1182_v7 = vsel %vm3104_vm2, %v1177_v18, %v1181_v9  ;;  %v1343_v12 = vrot.slane %v3183_v3, 5  ;;  %v784_v37 = vrot.slane %v3079_v8, 5  ;;  %v788_v41 = vrot.slane %v3117_v43, 5  ;;  %v753_v3 = vld [vmem:[%s3067_s14 + $0x10] sm:$0xe] }
  0x3e   : > { %v2494_v27 = vcombine.low %v1168_v6, %v1182_v7  ;;  %v2418_v42 = vcombine.low %v3110_v35, %v3113_v39  ;;  %v2419_v44 = vcombine.low %v3149_v26, %v3158_v38  ;;  %v2427_v57 = vrot.slane %v751_v29, 9  ;;  %v2949_v39 = vld [vmem:[%s3543_s1 + $0x28] sm:$0xff]   ;;  %v2553_v15 = vld [vmem:[%s3067_s14 + $0x10] sm:$0xf]  ;;  %v758_v19 = vld [vmem:[%s3067_s14 + $0x38] sm:$0xe] }
  0x3f   : > { %v2428_v47 = vrot.slane %v752_v25, 9  ;;  %v792_v49 = vrot.slane %v3124_v50, 5  ;;  %v1332_v8 = vsel %vm3252_vm6, %v2511_v33, %v1331_v5  ;;  %v1336_v35 = vsel %vm3252_vm6, %v2512_v1, %v1335_v20  ;;  %v2555_v5 = vld [vmem:[%s3067_s14 + $0x18] sm:$0xf]  ;;  %v3347_v20 = vld [vmem:[%s3067_s14 + $0x14] sm:$0x1] }
  0x40   : > { %2781 = vmatmul.mubr.msk.bf16.gmra.mrb[4].mxu0 %vm370_vm3, %v2494_v27  ;;  %v1340_v26 = vsel %vm3252_vm6, %v2513_v23, %v1339_v34  ;;  %v1344_v50 = vsel %vm3252_vm6, %v2514_v36, %v1343_v12  ;;  %v2515_v38 = vrot.slane %v2507_v21, 9  ;;  %v1347_v40 = vrot.slane %v3227_v59, 5  ;;  %v2950_v25 = vld [vmem:[%s3067_s14 + $0x10] ss:$8 sps:$4 sm:$0xff]   ;;  %v2557_v21 = vld [vmem:[%s3067_s14 + $0x20] sm:$0xf] }
  0x41   : > { %2788 = vmatprep.mubr.msk.bf16.mxu0 %vm370_vm3, %v2521_v22  ;;  %v2516_v4 = vrot.slane %v2508_v46, 9  ;;  %v1351_v52 = vrot.slane %v3234_v2, 5  ;;  %v2522_v54 = vcombine.low %v1332_v8, %v1336_v35  ;;  %v781_v56 = vsel %vm3252_vm6, %v2427_v57, %v780_v17  ;;  %v3324_v2 = vld [vmem:[%s3543_s1 + $0x30] sm:$0xff]  }
  0x42   : > { %v785_v59 = vsel %vm3252_vm6, %v2428_v47, %v784_v37  ;;  %v2523_v61 = vcombine.low %v1340_v26, %v1344_v50  ;;  %v2429_v62 = vrot.slane %v753_v3, 9  ;;  %v2430_v63 = vrot.slane %v754_v51, 9  ;;  %v2952_v51 = vld [vmem:[%s3067_s14 + $0x20] ss:$8 sps:$4 sm:$0xff]  }
  0x43   : > { %2741 = vmatmul.mubr.msk.bf16.vlgmr.msra.gmra.mrb[0].mxu1 %vm370_vm3, %v2418_v42  ;;  %v1348_v0 = vsel %vm3252_vm6, %v2515_v38, %v1347_v40  ;;  %v1352_v9 = vsel %vm3252_vm6, %v2516_v4, %v1351_v52  ;;  %v2439_v11 = vcombine.low %v781_v56, %v785_v59  ;;  %v2431_v13 = vrot.slane %v755_v58, 9  ;;  %v2561_v40 = vld [vmem:[%s3067_s14 + $0x30] sm:$0xf] }
  0x44   : > { %2744 = vmatprep.mubr.msk.bf16.mxu1 %vm370_vm3, %v2419_v44  ;;  %2749 = vmatpush3.bf16.msra.mxu1 %v3189_v10  ;;  %v2420_v10 = vcombine.low %v3194_v16, %v3201_v28  ;;  %v796_v14 = vrot.slane %v3154_v32, 5  ;;  %v3338_v16 = vld [vmem:[%s3543_s1 + $0x70] sm:$0xff]   ;;  %v2432_v28 = vrot.slane %v756_v60, 9  ;;  %v800_v17 = vrot.slane %v3166_v45, 5  ;;  %v3351_v45 = vld [vmem:[%s3067_s14 + $0x1c] sm:$0x1] }
  0x45   : > { %2750 = vmatprep.subr.bf16.mxu1 %v2949_v39  ;;  %v1615_v6 = vshrl.u32 %v2553_v15, 16  ;;  %v1618_v18 = vshll.u32 %v2553_v15, 16  ;;  %v757_v32 = vld [vmem:[%s3067_s14 + $0x30] sm:$0xe]  ;;  %v1629_v33 = vshrl.u32 %v2555_v5, 16  ;;  %v1632_v29 = vshll.u32 %v2555_v5, 16 }
  0x46   : > { %v2524_v7 = vcombine.low %v1348_v0, %v1352_v9  ;;  %v789_v27 = vsel %vm3252_vm6, %v2429_v62, %v788_v41  ;;  %v793_v34 = vsel %vm3252_vm6, %v2430_v63, %v792_v49  ;;  %v797_v36 = vsel %vm3252_vm6, %v2431_v13, %v796_v14  ;;  %v2559_v44 = vld [vmem:[%s3067_s14 + $0x28] sm:$0xf]  ;;  %v2953_v58 = vld [vmem:[%s3067_s14 + $0x30] ss:$8 sps:$4 sm:$0xff]   ;;  %v3391_v62 = vld [vmem:[%s3067_s14 + $0x2c] sm:$0x1] }
  0x47   : > { %v1620_v22 = vrot.slane %v1618_v18, 5  ;;  %v1631_v1 = vrot.slane %v1629_v33, 4  ;;  %v1634_v23 = vrot.slane %v1632_v29, 5  ;;  %v801_v12 = vsel %vm3252_vm6, %v2432_v28, %v800_v17  ;;  %v2954_v14 = vld [vmem:[%s3543_s1 + $0x78] sm:$0xff]   ;;  %v3400_v28 = vld [vmem:[%s3067_s14 + $0x34] sm:$0x1] }
  0x48   : > { %2789 = vmatmul.mubr.msk.bf16.vlgmr.msra.gmra.mrb[0].mxu0 %vm370_vm3, %v2522_v54  ;;  %2751 = vmatpush3.bf16.msra.mxu1 %v2949_v39  ;;  %v1624_v37 = vshll.u32 %v3347_v20, 16  ;;  %v1638_v42 = vshll.u32 %v3351_v45, 16  ;;  %v2433_v43 = vrot.slane %v757_v32, 9  ;;  %v804_v41 = vrot.slane %v3204_v31, 5  ;;  %v2957_v31 = vld [vmem:[%s3543_s1 + $0x38] sm:$0xff]  }
  0x49   : > { %2797 = vmatpush3.bf16.msra.mxu0 %v3223_v53  ;;  %2792 = vmatprep.mubr.msk.bf16.mxu0 %vm370_vm3, %v2523_v61  ;;  %v1617_v53 = vrot.slane %v1615_v6, 4  ;;  %v2434_v46 = vrot.slane %v758_v19, 9  ;;  %v808_v57 = vrot.slane %v3213_v48, 5  ;;  %v2440_v47 = vcombine.low %v789_v27, %v793_v34  ;;  %v3385_v54 = vld [vmem:[%s3067_s14 + $0x24] sm:$0x1] }
  0x4a   : > { %2798 = vmatprep.subr.bf16.mxu0 %v2946_v55  ;;  %2760 = vmatprep.subr.bf16.mxu1 %v3324_v2  ;;  %v2441_v49 = vcombine.low %v797_v36, %v801_v12  ;;  %v1635_v35 = vor.u32 %v1634_v23, %v1631_v1  ;;  %v1643_v39 = vshrl.u32 %v2557_v21, 16  ;;  %v1646_v3 = vshll.u32 %v2557_v21, 16  ;;  %v3405_v19 = vld [vmem:[%s3067_s14 + $0x3c] sm:$0x1]  ;;  %v2565_v33 = vld [vmem:[%s3067_s14 + $0x40] sm:$0xf] }
  0x4b   : > { %2745 = vmatmul.mubr.msk.bf16.gmra.mrb[4].mxu1 %vm370_vm3, %v2420_v10  ;;  %v1621_v8 = vor.u32 %v1620_v22, %v1617_v53  ;;  %v1657_v26 = vshrl.u32 %v2559_v44, 16  ;;  %v1660_v50 = vshll.u32 %v2559_v44, 16  ;;  %v1626_v48 = vrot.slane %v1624_v37, 5  ;;  %v2567_v29 = vld [vmem:[%s3067_s14 + $0x48] sm:$0xf]  ;;  %v2959_v12 = vld [vmem:[%s3543_s1 + $0x80] sm:$0xff]  }
  0x4c   : > { %2752 = vmatprep.mubr.msk.bf16.mxu1 %vm370_vm3, %v2439_v11  ;;  %v1640_v38 = vrot.slane %v1638_v42, 5  ;;  %v805_v4 = vsel %vm3252_vm6, %v2433_v43, %v804_v41  ;;  %v809_v52 = vsel %vm3252_vm6, %v2434_v46, %v808_v57  ;;  %v1671_v56 = vshrl.u32 %v2561_v40, 16  ;;  %v2956_v43 = vld [vmem:[%s3067_s14 + $0x40] ss:$8 sps:$4 sm:$0xff]  }
  0x4d   : > { %2799 = vmatpush3.bf16.msra.mxu0 %v2946_v55  ;;  %v2563_v55 = vld [vmem:[%s3067_s14 + $0x38] sm:$0xf]  ;;  %v1674_v59 = vshll.u32 %v2561_v40, 16  ;;  %v1622_v60 = vrot.slane %v1621_v8, 4  ;;  %v1636_v61 = vrot.slane %v1635_v35, 4  ;;  %v1645_v0 = vrot.slane %v1643_v39, 4 }
  0x4e   : > { %2808 = vmatprep.subr.bf16.mxu0 %v3338_v16  ;;  %v1685_v63 = vshrl.u32 %v2563_v55, 16  ;;  %v1688_v10 = vshll.u32 %v2563_v55, 16  ;;  %v1648_v9 = vrot.slane %v1646_v3, 5  ;;  %v1659_v11 = vrot.slane %v1657_v26, 4  ;;  %v3426_v8 = vld [vmem:[%s3067_s14 + $0x44] sm:$0x1] }
  0x4f   : > { %v1662_v13 = vrot.slane %v1660_v50, 5  ;;  %v1652_v15 = vshll.u32 %v3385_v54, 16  ;;  %v1673_v17 = vrot.slane %v1671_v56, 4  ;;  %v1676_v5 = vrot.slane %v1674_v59, 5  ;;  %v3429_v40 = vld [vmem:[%s3067_s14 + $0x4c] sm:$0x1] }
  0x50   : > { %2793 = vmatmul.mubr.msk.bf16.gmra.mrb[4].mxu0 %vm370_vm3, %v2524_v7  ;;  %v1687_v6 = vrot.slane %v1685_v63, 4  ;;  %v2442_v18 = vcombine.low %v805_v4, %v809_v52  ;;  %v1627_v32 = vsel %vm3104_vm2, %v1622_v60, %v1626_v48  ;;  %v2958_v7 = vld [vmem:[%s3067_s14 + $0x8] ss:$8 sps:$4 sm:$0xff]   ;;  %v1641_v53 = vsel %vm3104_vm2, %v1636_v61, %v1640_v38 }
  0x51   : > { %2800 = vmatprep.mubr.msk.bf16.mxu0 %vm370_vm3, %v2950_v25  ;;  %v1649_v22 = vor.u32 %v1648_v9, %v1645_v0  ;;  %v1663_v1 = vor.u32 %v1662_v13, %v1659_v11  ;;  %v1666_v23 = vshll.u32 %v3391_v62, 16  ;;  %v1699_v25 = vshrl.u32 %v2565_v33, 16  ;;  %v2583_v63 = vld [vmem:[%s3067_s14 + $0x10] sm:$0xe] }
  0x52   : > { %v1702_v27 = vshll.u32 %v2565_v33, 16  ;;  %v1713_v34 = vshrl.u32 %v2567_v29, 16  ;;  %v1716_v36 = vshll.u32 %v2567_v29, 16  ;;  %v1677_v37 = vor.u32 %v1676_v5, %v1673_v17  ;;  %v2962_v17 = vld [vmem:[%s3543_s1 + $0x88] sm:$0xff]  }
  0x53   : > { %2753 = vmatmul.mubr.msk.bf16.vlgmr.msra.gmra.mrb[0].mxu1 %vm370_vm3, %v2440_v47  ;;  %v1680_v42 = vshll.u32 %v3400_v28, 16  ;;  %v1694_v44 = vshll.u32 %v3405_v19, 16  ;;  %v2573_v41 = vcombine.low %v1627_v32, %v1641_v53  ;;  %v1650_v46 = vrot.slane %v1649_v22, 4  ;;  %v2963_v32 = vld [vmem:[%s3067_s14 + $0x38] ss:$8 sps:$4 sm:$0xff]  }
  0x54   : > { %2756 = vmatprep.mubr.msk.bf16.mxu1 %vm370_vm3, %v2441_v49  ;;  %2761 = vmatpush3.bf16.msra.mxu1 %v3324_v2  ;;  %v1690_v2 = vrot.slane %v1688_v10, 5  ;;  %v1664_v57 = vrot.slane %v1663_v1, 4  ;;  %v1668_v47 = vrot.slane %v1666_v23, 5  ;;  %v2960_v49 = vld [vmem:[%s3067_s14 + $0x18] ss:$8 sps:$4 sm:$0xff]   ;;  %v1701_v35 = vrot.slane %v1699_v25, 4 }
  0x55   : > { %2762 = vmatprep.subr.bf16.mxu1 %v2957_v31  ;;  %v1704_v39 = vrot.slane %v1702_v27, 5  ;;  %v1715_v3 = vrot.slane %v1713_v34, 4  ;;  %v1718_v26 = vrot.slane %v1716_v36, 5  ;;  %v1678_v50 = vrot.slane %v1677_v37, 4  ;;  %v2584_v10 = vld [vmem:[%s3067_s14 + $0x18] sm:$0xe] }
  0x56   : > { %v1691_v21 = vor.u32 %v1690_v2, %v1687_v6  ;;  %v1696_v38 = vrot.slane %v1694_v44, 5  ;;  %v1708_v52 = vshll.u32 %v3426_v8, 16  ;;  %v1669_v55 = vsel %vm3104_vm2, %v1664_v57, %v1668_v47  ;;  %v2586_v53 = vld [vmem:[%s3067_s14 + $0x28] sm:$0xe]  ;;  %v2587_v22 = vld [vmem:[%s3067_s14 + $0x30] sm:$0xe] }
  0x57   : > { %v1705_v56 = vor.u32 %v1704_v39, %v1701_v35  ;;  %v1719_v59 = vor.u32 %v1718_v26, %v1715_v3  ;;  %v2591_v5 = vrot.slane %v2583_v63, 9  ;;  %v1866_v6 = vrot.slane %v3347_v20, 5  ;;  %v2588_v1 = vld [vmem:[%s3067_s14 + $0x38] sm:$0xe] }
  0x58   : > { %2801 = vmatmul.mubr.msk.bf16.vlgmr.msra.gmra.mrb[0].mxu0 %vm370_vm3, %v2952_v51  ;;  %2763 = vmatpush3.bf16.msra.mxu1 %v2957_v31  ;;  %v1682_v31 = vrot.slane %v1680_v42, 5  ;;  %v1692_v48 = vrot.slane %v1691_v21, 4  ;;  %v2961_v51 = vld [vmem:[%s3067_s14 + $0x28] ss:$8 sps:$4 sm:$0xff]   ;;  %v1710_v9 = vrot.slane %v1708_v52, 5  ;;  %v2592_v2 = vrot.slane %v2584_v10, 9 }
  0x59   : > { %2809 = vmatpush3.bf16.msra.mxu0 %v3338_v16  ;;  %2804 = vmatprep.mubr.msk.bf16.mxu0 %vm370_vm3, %v2953_v58  ;;  %v1654_v16 = vrot.slane %v1652_v15, 5  ;;  %v1722_v58 = vshll.u32 %v3429_v40, 16  ;;  %v1706_v13 = vrot.slane %v1705_v56, 4  ;;  %v1867_v20 = vsel %vm3252_vm6, %v2591_v5, %v1866_v6 }
  0x5a   : > { %2810 = vmatprep.subr.bf16.mxu0 %v2954_v14  ;;  %v1683_v60 = vsel %vm3104_vm2, %v1678_v50, %v1682_v31  ;;  %v1697_v61 = vsel %vm3104_vm2, %v1692_v48, %v1696_v38  ;;  %v1874_v27 = vrot.slane %v3385_v54, 5  ;;  %v2594_v34 = vrot.slane %v2586_v53, 9  ;;  %v2589_v54 = vld [vmem:[%s3067_s14 + $0x40] sm:$0xe]  ;;  %2832 = vmatprep.subr.bf16.mxu1 %v2964_v24 }
  0x5b   : > { %2757 = vmatmul.mubr.msk.bf16.gmra.mrb[4].mxu1 %vm370_vm3, %v2442_v18  ;;  %v1655_v4 = vsel %vm3104_vm2, %v1650_v46, %v1654_v16  ;;  %v2575_v11 = vcombine.low %v1683_v60, %v1697_v61  ;;  %v1724_v15 = vrot.slane %v1722_v58, 5  ;;  %v1870_v18 = vrot.slane %v3351_v45, 5 }
  0x5c   : > { %2764 = vmatprep.mubr.msk.bf16.mxu1 %vm370_vm3, %v2958_v7  ;;  %v2574_v0 = vcombine.low %v1655_v4, %v1669_v55  ;;  %v1711_v33 = vsel %vm3104_vm2, %v1706_v13, %v1710_v9  ;;  %v2585_v7 = vld [vmem:[%s3067_s14 + $0x20] sm:$0xe]  ;;  %v1878_v36 = vrot.slane %v3391_v62, 5  ;;  %v1882_v37 = vrot.slane %v3400_v28, 5 }
  0x5d   : > { %2811 = vmatpush3.bf16.msra.mxu0 %v2954_v14  ;;  %v1720_v14 = vrot.slane %v1719_v59, 4  ;;  %v1871_v45 = vsel %vm3252_vm6, %v2592_v2, %v1870_v18  ;;  %v2593_v25 = vrot.slane %v2585_v7, 9  ;;  %v2596_v42 = vrot.slane %v2588_v1, 9 }
  0x5e   : > { %2820 = vmatprep.subr.bf16.mxu0 %v2959_v12  ;;  %v2603_v30 = vcombine.low %v1867_v20, %v1871_v45  ;;  %v1886_v21 = vrot.slane %v3405_v19, 5  ;;  %v1879_v16 = vsel %vm3252_vm6, %v2594_v34, %v1878_v36  ;;  %v2597_v19 = vrot.slane %v2589_v54, 9  ;;  %v2613_v45 = vld [vmem:[%s3544_s2] ss:$0 sm:$0xff] }
  0x5f   : > { %v1725_v29 = vsel %vm3104_vm2, %v1720_v14, %v1724_v15  ;;  %v1875_v44 = vsel %vm3252_vm6, %v2593_v25, %v1874_v27  ;;  %v1890_v57 = vrot.slane %v3426_v8, 5  ;;  %v2990_v26 = vmov 0.0   ;;  %v2965_v8 = vld [vmem:[%s3546_s4 + $0x8] sm:$0xff]  }
  0x60   : > { %2805 = vmatmul.mubr.msk.bf16.gmra.mrb[4].mxu0 %vm370_vm3, %v2956_v43  ;;  %v2576_v23 = vcombine.low %v1711_v33, %v1725_v29  ;;  %v1887_v28 = vsel %vm3252_vm6, %v2596_v42, %v1886_v21  ;;  %v2590_v43 = vld [vmem:[%s3067_s14 + $0x48] sm:$0xe]  ;;  %373 = vst.msk [vmem:[#allocation2 + $0x10] sm:$0xff] %vm370_vm3, %v2990_v26  ;;  %371 = vst.msk [vmem:[#allocation2] sm:$0xff] %vm370_vm3, %v2990_v26 }
  0x61   : > { %2812 = vmatprep.mubr.msk.bf16.mxu0 %vm370_vm3, %v2573_v41  ;;  %v2604_v41 = vcombine.low %v1875_v44, %v1879_v16  ;;  %v2598_v47 = vrot.slane %v2590_v43, 9  ;;  %v1891_v35 = vsel %vm3252_vm6, %v2597_v19, %v1890_v57  ;;  %372 = vst.msk [vmem:[#allocation2 + $0x8] sm:$0xff] %vm370_vm3, %v2990_v26  ;;  %374 = vst.msk [vmem:[#allocation2 + $0x18] sm:$0xff] %vm370_vm3, %v2990_v26 }
  0x62   : > { %375 = vst.msk [vmem:[#allocation2 + $0x20] sm:$0xff] %vm370_vm3, %v2990_v26  ;;  %376 = vst.msk [vmem:[#allocation2 + $0x28] sm:$0xff] %vm370_vm3, %v2990_v26 }
  0x63   : > { %2765 = vmatmul.mubr.msk.bf16.vlgmr.msra.gmra.mrb[0].mxu1 %vm370_vm3, %v2960_v49  ;;  %v1894_v49 = vrot.slane %v3429_v40, 5  ;;  %377 = vst.msk [vmem:[#allocation2 + $0x30] sm:$0xff] %vm370_vm3, %v2990_v26  ;;  %378 = vst.msk [vmem:[#allocation2 + $0x38] sm:$0xff] %vm370_vm3, %v2990_v26 }
  0x64   : > { %2768 = vmatprep.mubr.msk.bf16.mxu1 %vm370_vm3, %v2961_v51  ;;  %2833 = vmatpush3.bf16.msra.mxu1 %v2964_v24 }
  0x65   : > { %v1895_v39 = vsel %vm3252_vm6, %v2598_v47, %v1894_v49  ;;  %2834 = vmatprep.subr.bf16.mxu1 %v2965_v8 }
  0x66   : > { %v2606_v3 = vcombine.low %v1891_v35, %v1895_v39 }
  0x67   : > { %v394_v55 = vld [vmem:[#allocation2 + $0x10] sm:$0xff]  ;;  %v392_v58 = vld [vmem:[#allocation2] sm:$0xff] }
  0x68   : > { %2813 = vmatmul.mubr.msk.bf16.vlgmr.msra.gmra.mrb[0].mxu0 %vm370_vm3, %v2574_v0  ;;  %2835 = vmatpush3.bf16.msra.mxu1 %v2965_v8  ;;  %v395_v63 = vld [vmem:[#allocation2 + $0x18] sm:$0xff] }
  0x69   : > { %2821 = vmatpush3.bf16.msra.mxu0 %v2959_v12  ;;  %2816 = vmatprep.mubr.msk.bf16.mxu0 %vm370_vm3, %v2575_v11  ;;  %v2595_v12 = vrot.slane %v2587_v22, 9  ;;  %v393_v11 = vld [vmem:[#allocation2 + $0x8] sm:$0xff] }
  0x6a   : > { %2822 = vmatprep.subr.bf16.mxu0 %v2962_v17  ;;  %v398_v6 = vld [vmem:[#allocation2 + $0x30] sm:$0xff]  ;;  %v399_v7 = vld [vmem:[#allocation2 + $0x38] sm:$0xff]  ;;  %v397_v1 = vld [vmem:[#allocation2 + $0x28] sm:$0xff] }
  0x6b   : > { %2769 = vmatmul.mubr.msk.bf16.gmra.mrb[4].mxu1 %vm370_vm3, %v2963_v32  ;;  %v1883_v62 = vsel %vm3252_vm6, %v2595_v12, %v1882_v37  ;;  %v396_v32 = vld [vmem:[#allocation2 + $0x20] sm:$0xff] }
  0x6c   : > { %v2605_v46 = vcombine.low %v1883_v62, %v1887_v28  ;;  %v2614_v12 = vld [vmem:[%s3545_s3] ss:$0 sm:$0xff] }
  0x6d   : > { %2823 = vmatpush3.bf16.msra.mxu0 %v2962_v17 }
  0x70   : > { %2817 = vmatmul.mubr.msk.bf16.gmra.mrb[4].mxu0 %vm370_vm3, %v2576_v23 }
  0x71   : > { %2824 = vmatprep.mubr.msk.bf16.mxu0 %vm370_vm3, %v2603_v30 }
  0x78   : > { %2825 = vmatmul.mubr.msk.bf16.vlgmr.msra.gmra.mrb[0].mxu0 %vm370_vm3, %v2604_v41 }
  0x79   : > { %2828 = vmatprep.mubr.msk.bf16.mxu0 %vm370_vm3, %v2605_v46 }
  0x80   : > { %2829 = vmatmul.mubr.msk.bf16.gmra.mrb[4].mxu0 %vm370_vm3, %v2606_v3 }
 0x136   : > { %v2766_v50 = vpop.f32.mrb[0].mxu1 }
 0x137   : > { %v1016_v31 = vpop.f32.mrb[1].mxu1 }
 0x138   : > { %v2767_v48 = vpop.f32.mrb[2].mxu1 }
 0x139   : > { %v1019_v38 = vpop.f32.mrb[3].mxu1 }
 0x13e   : > { %v2770_v40 = vpop.f32.mrb[4].mxu1 }
 0x13f   : > { %v1032_v51 = vpop.f32.mrb[5].mxu1 }
 0x140   : > { %v2771_v4 = vpop.f32.mrb[6].mxu1 }
 0x141   : > { %v1035_v52 = vpop.f32.mrb[7].mxu1 }
 0x14b   : > { %v2826_v56 = vpop.f32.mrb[0].mxu0 }
 0x14c   : > { %v2844_v59 = vadd.f32 %v2826_v56, %v2766_v50  ;;  %v1971_v60 = vpop.f32.mrb[1].mxu0 }
 0x14d   : > { %v2845_v61 = vadd.f32 %v1971_v60, %v1016_v31  ;;  %v2827_v10 = vpop.f32.mrb[2].mxu0 }
 0x14e   : > { %v2012_v0 = vadd.f32 %v2844_v59, %v394_v55  ;;  %v2846_v9 = vadd.f32 %v2827_v10, %v2767_v48  ;;  %v1974_v13 = vpop.f32.mrb[3].mxu0  ;;  %v2621_v10 = vld [vmem:[%s3547_s5] ss:$0 sm:$0xff] }
 0x14f   : > { %v2010_v14 = vadd.f32 %v2845_v61, %v392_v58  ;;  %v2847_v15 = vadd.f32 %v1974_v13, %v1019_v38 }
 0x150   : > { %2020 = vst.msk [vmem:[#allocation2 + $0x10] sm:$0xff] %vm370_vm3, %v2012_v0  ;;  %v2013_v17 = vadd.f32 %v2846_v9, %v395_v63 }
 0x151   : > { %2018 = vst.msk [vmem:[#allocation2] sm:$0xff] %vm370_vm3, %v2010_v14  ;;  %v2011_v5 = vadd.f32 %v2847_v15, %v393_v11 }
 0x152   : > { %2021 = vst.msk [vmem:[#allocation2 + $0x18] sm:$0xff] %vm370_vm3, %v2013_v17 }
 0x153   : > { %2019 = vst.msk [vmem:[#allocation2 + $0x8] sm:$0xff] %vm370_vm3, %v2011_v5  ;;  %v2830_v2 = vpop.f32.mrb[4].mxu0 }
 0x154   : > { %v2848_v18 = vadd.f32 %v2830_v2, %v2770_v40  ;;  %v1987_v33 = vpop.f32.mrb[5].mxu0 }
 0x155   : > { %v2849_v29 = vadd.f32 %v1987_v33, %v1032_v51  ;;  %v2831_v20 = vpop.f32.mrb[6].mxu0 }
 0x156   : > { %v2016_v53 = vadd.f32 %v2848_v18, %v398_v6  ;;  %v2850_v22 = vadd.f32 %v2831_v20, %v2771_v4  ;;  %v1990_v23 = vpop.f32.mrb[7].mxu0 }
 0x157   : > { %v2014_v25 = vadd.f32 %v2849_v29, %v396_v32  ;;  %v2851_v30 = vadd.f32 %v1990_v23, %v1035_v52  ;;  %v2031_v27 = vld [vmem:[#allocation2 + $0x10] sm:$0xff] }
 0x158   : > { %2024 = vst.msk [vmem:[#allocation2 + $0x30] sm:$0xff] %vm370_vm3, %v2016_v53  ;;  %v2017_v34 = vadd.f32 %v2850_v22, %v399_v7  ;;  %v2029_v36 = vld [vmem:[#allocation2] sm:$0xff]  ;;  %v2046_v37 = vmul.f32 %v2613_v45, %v2031_v27 }
 0x159   : > { %2022 = vst.msk [vmem:[#allocation2 + $0x20] sm:$0xff] %vm370_vm3, %v2014_v25  ;;  %v2015_v42 = vadd.f32 %v2851_v30, %v397_v1  ;;  %v2044_v21 = vmul.f32 %v2613_v45, %v2029_v36  ;;  %v2032_v44 = vld [vmem:[#allocation2 + $0x18] sm:$0xff] }
 0x15a   : > { %2025 = vst.msk [vmem:[#allocation2 + $0x38] sm:$0xff] %vm370_vm3, %v2017_v34  ;;  %v2030_v16 = vld [vmem:[#allocation2 + $0x8] sm:$0xff]  ;;  %v2047_v54 = vmul.f32 %v2613_v45, %v2032_v44  ;;  %v2061_v43 = vadd.f32 %v2614_v12, %v2046_v37 }
 0x15b   : > { %2023 = vst.msk [vmem:[#allocation2 + $0x28] sm:$0xff] %vm370_vm3, %v2015_v42  ;;  %v2045_v62 = vmul.f32 %v2613_v45, %v2030_v16  ;;  %v2059_v28 = vadd.f32 %v2614_v12, %v2044_v21 }
 0x15c   : > { %v2062_v41 = vadd.f32 %v2614_v12, %v2047_v54  ;;  %v2069_v35 = vmax.f32 %v2061_v43, 0.0 }
 0x15d   : > { %v2060_v19 = vadd.f32 %v2614_v12, %v2045_v62  ;;  %v2067_v57 = vmax.f32 %v2059_v28, 0.0 }
 0x15e   : > { %v2070_v46 = vmax.f32 %v2062_v41, 0.0 }
 0x15f   : > { %v2068_v47 = vmax.f32 %v2060_v19, 0.0  ;;  %v2035_v49 = vld [vmem:[#allocation2 + $0x30] sm:$0xff] }
 0x160   : > { %v2033_v39 = vld [vmem:[#allocation2 + $0x20] sm:$0xff]  ;;  %v2050_v3 = vmul.f32 %v2613_v45, %v2035_v49  ;;  %v2084_v50 = vpack.c.bf16 %v2070_v46, %v2069_v35 }
 0x161   : > { %v2083_v26 = vpack.c.bf16 %v2068_v47, %v2067_v57  ;;  %v2048_v24 = vmul.f32 %v2613_v45, %v2033_v39  ;;  %v2036_v8 = vld [vmem:[#allocation2 + $0x38] sm:$0xff] }
 0x162   : > { %v2034_v31 = vld [vmem:[#allocation2 + $0x28] sm:$0xff]  ;;  %v2051_v48 = vmul.f32 %v2613_v45, %v2036_v8  ;;  %v2065_v51 = vadd.f32 %v2614_v12, %v2050_v3 }
 0x163   : > { %2836 = vmatprep.mubr.msk.bf16.mxu1 %vm370_vm3, %v2083_v26  ;;  %v2049_v38 = vmul.f32 %v2613_v45, %v2034_v31  ;;  %v2063_v40 = vadd.f32 %v2614_v12, %v2048_v24 }
 0x164   : > { %2837 = vmatmul.mubr.msk.bf16.vlgmr.msra.gmra.mrb[8].mxu1 %vm370_vm3, %v2084_v50  ;;  %v2066_v4 = vadd.f32 %v2614_v12, %v2051_v48  ;;  %v2073_v58 = vmax.f32 %v2065_v51, 0.0 }
 0x165   : > { %v2064_v52 = vadd.f32 %v2614_v12, %v2049_v38  ;;  %v2071_v56 = vmax.f32 %v2063_v40, 0.0 }
 0x166   : > { %v2074_v55 = vmax.f32 %v2066_v4, 0.0 }
 0x167   : > { %v2072_v59 = vmax.f32 %v2064_v52, 0.0 }
 0x168   : > { %v2086_v61 = vpack.c.bf16 %v2074_v55, %v2073_v58 }
 0x169   : > { %v2085_v60 = vpack.c.bf16 %v2072_v59, %v2071_v56 }
 0x16b   : > { %2840 = vmatprep.mubr.msk.bf16.mxu1 %vm370_vm3, %v2085_v60 }
 0x16c   : > { %2841 = vmatmul.mubr.msk.bf16.gmra.mrb[12].mxu1 %vm370_vm3, %v2086_v61 }
 0x237   : > { %v2838_v63 = vpop.f32.mrb[8].mxu1 }
 0x238   : > { %v2149_v0 = vpop.f32.mrb[9].mxu1  ;;  %v2215_v11 = vadd.f32 %v2838_v63, %v2621_v10 }
 0x239   : > { %v2839_v9 = vpop.f32.mrb[10].mxu1  ;;  %v2213_v15 = vadd.f32 %v2621_v10, %v2149_v0 }
 0x23a   : > { %v2216_v13 = vadd.f32 %v2839_v9, %v2621_v10  ;;  %v2152_v14 = vpop.f32.mrb[11].mxu1 }
 0x23b   : > { %v2214_v17 = vadd.f32 %v2621_v10, %v2152_v14 }
 0x23c   : > { %v2649_v5 = vpack.c.bf16 %v2216_v13, %v2215_v11 }
 0x23d   : > { %v2644_v6 = vpack.c.bf16 %v2214_v17, %v2213_v15 }
 0x23e   : > { %2661 = vst [vmem:[%s364_s15 + $0x8] sm:$0xff] %v2649_v5  }
 0x23f   : > { %2645 = vst [vmem:[%s364_s15] sm:$0xff] %v2644_v6   ;;  %v2842_v2 = vpop.f32.mrb[12].mxu1 }
 0x240   : > { %v2165_v18 = vpop.f32.mrb[13].mxu1  ;;  %v2219_v33 = vadd.f32 %v2842_v2, %v2621_v10 }
 0x241   : > { %v2843_v32 = vpop.f32.mrb[14].mxu1  ;;  %v2217_v20 = vadd.f32 %v2621_v10, %v2165_v18 }
 0x242   : > { %v2220_v29 = vadd.f32 %v2843_v32, %v2621_v10  ;;  %v2168_v7 = vpop.f32.mrb[15].mxu1 }
 0x243   : > { %v2218_v45 = vadd.f32 %v2621_v10, %v2168_v7 }
 0x244   : > { %v2659_v53 = vpack.c.bf16 %v2220_v29, %v2219_v33 }
 0x245   : > { %v2654_v22 = vpack.c.bf16 %v2218_v45, %v2217_v20 }
 0x246   : > { %2663 = vst [vmem:[%s364_s15 + $0x18] sm:$0xff] %v2659_v53  }
 0x247   : > { %2662 = vst [vmem:[%s364_s15 + $0x10] sm:$0xff] %v2654_v22  }
 0x248 PF: > { %s16_s23 = sadd.s32 1, %s2988_s23   ;;  %s3553_s21 = smov %s2984_s22 }
 0x249   : > { %p13_p5 = scmp.ge.s32.totalorder %s16_s23, 5   ;;  %s3554_s22 = smov %s3556_s24 }
 0x24b   :  { %15 = sbr.rel (!%p13_p5) target bundleno = 2 (0x2), region = 112 }

// kernel: clip_ocr_forward.10
= control target key start
LH: loop header
LB: loop body
LE: loop exit
PB: predicated region body
PF: predicated region fallthrough
CT: control target
= control target key end

     0   :  { %s556_s9 = smov 0   ;;  %s558_s10 = smov 0   ;;  %s628_s0 = inlined_call_operand.vmem [shape: bf16[16,8], index: 0, kind: input, shape index: {}]   ;;  %s629_s1 = inlined_call_operand.vmem [shape: bf16[1,8,1024], index: 1, kind: input, shape index: {}]   ;;  %s630_s2 = inlined_call_operand.vmem [shape: bf16[1,16,1024], index: 2, kind: output, shape index: {}]  }
   0x1   :  { %s560_s11 = smov 0   ;;  %s562_s12 = smov 0  }
   0x2   :  { %s564_s13 = smov 0  }
   0x3 LB: > { %s423_s14 = sadd.s32 4294967295, %s538_s13   ;;  %s21_s15 = sadd.s32 1, %s534_s12  ;;  %s538_s13 = sphi %s564_s13, %s12_s13   ;;  %s534_s12 = sphi %s562_s12, %s635_s12   ;;  %s530_s11 = sphi %s560_s11, %s634_s11   ;;  %s526_s10 = sphi %s558_s10, %s633_s10   ;;  %s522_s9 = sphi %s556_s9, %s632_s9  }
   0x4   : > { %p22_p0 = scmp.ge.s32.totalorder %s21_s15, 2  ;;  %s82_s16 = sadd.s32 1, %s526_s10 }
   0x5   : > { %p92_p1 = scmp.ne.s32.totalorder %s526_s10, %s522_s9  ;;  %p93_p2 = scmp.eq.s32.totalorder %s423_s14, 1 }
   0x6   : > { %s637_s15 = smov (%p22_p0, %s21_s15), 0  ;;  %p427_p4 = scmp.ge.s32.totalorder %s538_s13, 1 }
   0x7   : > { %p588_p3 = por %p93_p2, %p92_p1  ;;  %s78_s18 = ssub.s32 %s534_s12, %s637_s15 }
   0x8   : > { %p133_p5 = scmp.lt.s32.totalorder %s538_s13, 3  ;;  %p80_p6 = scmp.eq.s32.totalorder %s78_s18, 0 }
   0xa   : > { %p134_p7 = pnand %p427_p4, %p133_p5 }
   0xb   : > { %s597_s19 = scalar_select %p80_p6, %s526_s10, %s82_s16  }
   0xc   : > { %137 = sbr.rel (%p134_p7) target bundleno = 255 (0xff), region = 28  ;;  %s429_s20 = sshll.u32 (!%p134_p7), %s530_s11, 2  ;;  %v540_v0 = vmov (!%p134_p7), 0   ;;  %vm193_vm0 = vcmask (!%p134_p7), 1043456   ;;  %v499_v9 = vld [vmem:[%s628_s0] sm:$0xff] (!%p134_p7)   ;;  %vm189_vm1 = vcmask (!%p134_p7), 64512  }
   0xd   : > { %p161_p8 = scmp.lt.s32.totalorder (!%p134_p7), %s429_s20, 7  ;;  %238 = vmatprep.mubr.bf16.mxu0 (!%p134_p7), %v540_v0  ;;  %281 = vmatprep.mubr.bf16.mxu1 (!%p134_p7), %v540_v0  ;;  %s155_s27 = sand.u32 (!%p134_p7), 1, %s522_s9  }
   0xe   : > { %s428_s28 = sshll.u32 (!%p134_p7), %s155_s27, 5 }
   0xf   : > { %s157_s29 = scalar_lea.vmem (!%p134_p7), [#allocation2], %s428_s28 }
  0x13   : > { %s639_s20 = smov (!%p161_p8, %s429_s20), 7  ;;  %s453_s30 = sshll.u32 (%p588_p3), %s530_s11, 4 }
  0x14   : > { %s430_s21 = sshll.u32 %s639_s20, 2  ;;  %s331_s5 = scalar_lea.vmem (%p588_p3), %s630_s2, %s453_s30 }
  0x15   : > { %s166_s24 = scalar_lea.vmem %s629_s1, %s430_s21 }
  0x16   : > { %v172_v1 = vld [vmem:[%s166_s24] sm:$0xff]  ;;  %v173_v2 = vld [vmem:[%s166_s24 + $0x8] sm:$0xff] }
  0x17   : > { %v433_v3 = vcombine.high %v172_v1, %v172_v1  ;;  %v435_v4 = vcombine.high %v173_v2, %v173_v2  ;;  %v432_v5 = vcombine.low %v172_v1, %v172_v1  ;;  %v434_v6 = vcombine.low %v173_v2, %v173_v2 }
  0x19   : > { %436 = vmatprep.subr.msk.bf16.mxu0 %vm193_vm0, %v433_v3  ;;  %438 = vmatprep.subr.msk.bf16.mxu1 %vm193_vm0, %v435_v4  ;;  %v195_v7 = vsel %vm193_vm0, %v432_v5, 0  ;;  %v201_v8 = vsel %vm193_vm0, %v434_v6, 0 }
  0x1a   : > { %207 = vmatpush1.bf16.msra.mxu0 %v195_v7  ;;  %250 = vmatpush1.bf16.msra.mxu1 %v201_v8 }
  0x1d   : > { %437 = vmatmul.mubr.msk.bf16.vlgmr.msra.gmra.mrb[0].mxu0 %vm189_vm1, %v499_v9  ;;  %439 = vmatmul.mubr.msk.bf16.vlgmr.msra.gmra.mrb[0].mxu1 %vm189_vm1, %v499_v9 }
  0xf0   : > { %v240_v10 = vpop.f32.mrb[0].mxu0  ;;  %v283_v11 = vpop.f32.mrb[0].mxu1  ;;  %326 = sbr.rel (!%p588_p3) target bundleno = 255 (0xff), region = 32 }
  0xf1   : > { %v242_v12 = vpop.f32.mrb[1].mxu0  ;;  %v285_v13 = vpop.f32.mrb[1].mxu1 }
  0xf2   : > { %v449_v14 = vpack.c.bf16 %v242_v12, %v240_v10  ;;  %v450_v15 = vpack.c.bf16 %v285_v13, %v283_v11  ;;  %v244_v16 = vpop.f32.mrb[2].mxu0  ;;  %v287_v17 = vpop.f32.mrb[2].mxu1 }
  0xf3   : > { %v246_v18 = vpop.f32.mrb[3].mxu0  ;;  %v289_v19 = vpop.f32.mrb[3].mxu1 }
  0xf4   : > { %316 = vst [vmem:[%s157_s29] sm:$0xff] %v449_v14  ;;  %317 = vst [vmem:[%s157_s29 + $0x8] sm:$0xff] %v450_v15  ;;  %v451_v20 = vpack.c.bf16 %v246_v18, %v244_v16  ;;  %v452_v21 = vpack.c.bf16 %v289_v19, %v287_v17 }
  0xf6   : > { %318 = vst [vmem:[%s157_s29 + $0x10] sm:$0xff] %v451_v20  ;;  %319 = vst [vmem:[%s157_s29 + $0x18] sm:$0xff] %v452_v21 }
  0xfb   : > { %v344_v22 = vld [vmem:[%s157_s29] sm:$0xff]  ;;  %v346_v23 = vld [vmem:[%s157_s29 + $0x8] sm:$0xff] }
  0xfc   : > { %345 = vst [vmem:[%s331_s5] sm:$0xff] %v344_v22  ;;  %347 = vst [vmem:[%s331_s5 + $0x8] sm:$0xff] %v346_v23 }
  0xfd   : > { %v348_v24 = vld [vmem:[%s157_s29 + $0x10] sm:$0xff]  ;;  %v350_v25 = vld [vmem:[%s157_s29 + $0x18] sm:$0xff] }
  0xfe   : > { %349 = vst [vmem:[%s331_s5 + $0x20] sm:$0xff] %v348_v24  ;;  %351 = vst [vmem:[%s331_s5 + $0x28] sm:$0xff] %v350_v25 }
  0xff PF: > { %s12_s13 = sadd.s32 1, %s538_s13   ;;  %s632_s9 = smov %s526_s10 }
 0x100   : > { %p9_p9 = scmp.ge.s32.totalorder %s12_s13, 4   ;;  %s633_s10 = smov %s597_s19 }
 0x101   : > { %s634_s11 = smov %s534_s12  ;;  %s635_s12 = smov %s637_s15 }
 0x102   :  { %11 = sbr.rel (!%p9_p9) target bundleno = 3 (0x3), region = 81 }

// kernel: clip_ocr_forward.11
= control target key start
LH: loop header
LB: loop body
LE: loop exit
PB: predicated region body
PF: predicated region fallthrough
CT: control target
= control target key end

     0   :  { %s980_s9 = smov 0   ;;  %s1215_s0 = inlined_call_operand.vmem [shape: bf16[16,8], index: 0, kind: input, shape index: {}]   ;;  %s1216_s1 = inlined_call_operand.vmem [shape: bf16[16,8,128], index: 1, kind: input, shape index: {}]   ;;  %s1217_s2 = inlined_call_operand.vmem [shape: f32[16,16,128], index: 2, kind: output, shape index: {}]  }
   0x1 LB: > { %s773_s10 = sadd.s32 4294967295, %s961_s9   ;;  %p777_p0 = scmp.ge.s32.totalorder %s961_s9, 1  ;;  %s961_s9 = sphi %s980_s9, %s12_s9  }
   0x2   : > { %p113_p1 = scmp.lt.s32.totalorder %s961_s9, 3 }
   0x4   : > { %p114_p2 = pnand %p777_p0, %p113_p1 }
   0x5   : > { %s778_s11 = sshll.u32 (!%p114_p2), %s773_s10, 3  ;;  %v963_v0 = vmov (!%p114_p2), 0.0   ;;  %vm964_vm0 = vmmov (!%p114_p2), 0   ;;  %vm165_vm1 = vcmask (!%p114_p2), 1043456   ;;  %v890_v6 = vld [vmem:[%s1215_s0] sm:$0xff] (!%p114_p2)   ;;  %vm161_vm2 = vcmask (!%p114_p2), 64512  }
   0x6   : > { %117 = sbr.rel (%p114_p2) target bundleno = 580 (0x244), region = 28  ;;  %832 = vmatprep.subr.bf16.mxu0 (!%p114_p2), %v963_v0  ;;  %838 = vmatprep.subr.bf16.mxu1 (!%p114_p2), %v963_v0  ;;  %p137_p3 = scmp.lt.s32.totalorder (!%p114_p2), %s778_s11, 15  ;;  %v150_v18 = vlaneseq (!%p114_p2) }
   0x7   : > { %834 = vmatprep.mubr.msk.bf16.mxu0 (!%p114_p2), %vm964_vm0, %v963_v0  ;;  %840 = vmatprep.mubr.msk.bf16.mxu1 (!%p114_p2), %vm964_vm0, %v963_v0 }
   0x8   : > { %v1031_v19 = vand.u32 (!%p114_p2), 127, %v150_v18 }
   0xa   : > { %vm152_vm3 = vcmp.lt.s32.totalorder (!%p114_p2), %v1031_v19, 8 }
   0xd   : > { %s1219_s11 = smov (!%p137_p3, %s778_s11), 15 }
   0xe   : > { %s779_s12 = sshll.u32 %s1219_s11, 2  ;;  %s815_s18 = sshll.u32 %s1219_s11, 4 }
   0xf   : > { %s996_s15 = scalar_lea.vmem %s1216_s1, %s779_s12  ;;  %s1178_s21 = scalar_lea.vmem %s1217_s2, %s815_s18 }
  0x10   : > { %v155_v1 = vld [vmem:[%s996_s15] sm:$0xf]  ;;  %v785_v2 = vld [vmem:[%s996_s15 + $0x4] sm:$0xf]  ;;  %v789_v3 = vld [vmem:[%s996_s15 + $0x8] sm:$0xf] }
  0x11   : > { %v167_v4 = vsel %vm165_vm1, %v155_v1, 0  ;;  %v235_v5 = vsel %vm165_vm1, %v785_v2, 0  ;;  %v793_v7 = vld [vmem:[%s996_s15 + $0xc] sm:$0xf]  ;;  %v304_v8 = vsel %vm165_vm1, %v789_v3, 0 }
  0x12   : > { %833 = vmatpush3.bf16.msra.mxu0 %v167_v4  ;;  %839 = vmatpush3.bf16.msra.mxu1 %v235_v5  ;;  %v373_v9 = vsel %vm165_vm1, %v793_v7, 0  ;;  %v797_v10 = vld [vmem:[%s996_s15 + $0x10] sm:$0xf]  ;;  %v801_v11 = vld [vmem:[%s996_s15 + $0x14] sm:$0xf] }
  0x13   : > { %844 = vmatprep.subr.bf16.mxu0 %v963_v0  ;;  %850 = vmatprep.subr.bf16.mxu1 %v963_v0  ;;  %v442_v12 = vsel %vm165_vm1, %v797_v10, 0  ;;  %v511_v13 = vsel %vm165_vm1, %v801_v11, 0  ;;  %v805_v14 = vld [vmem:[%s996_s15 + $0x18] sm:$0xf]  ;;  %v809_v15 = vld [vmem:[%s996_s15 + $0x1c] sm:$0xf] }
  0x14   : > { %v580_v16 = vsel %vm165_vm1, %v805_v14, 0  ;;  %v649_v17 = vsel %vm165_vm1, %v809_v15, 0 }
  0x15   : > { %835 = vmatmul.mubr.msk.bf16.vlgmr.msra.gmra.mrb[0].mxu0 %vm161_vm2, %v890_v6  ;;  %841 = vmatmul.mubr.msk.bf16.vlgmr.msra.gmra.mrb[0].mxu1 %vm161_vm2, %v890_v6 }
  0x16   : > { %845 = vmatpush3.bf16.msra.mxu0 %v304_v8  ;;  %851 = vmatpush3.bf16.msra.mxu1 %v373_v9 }
  0x17   : > { %846 = vmatprep.mubr.msk.bf16.mxu0 %vm964_vm0, %v963_v0  ;;  %856 = vmatprep.subr.bf16.mxu0 %v963_v0 }
  0x18   : > { %852 = vmatprep.mubr.msk.bf16.mxu1 %vm964_vm0, %v963_v0  ;;  %862 = vmatprep.subr.bf16.mxu1 %v963_v0 }
  0x1d   : > { %847 = vmatmul.mubr.msk.bf16.vlgmr.msra.gmra.mrb[4].mxu0 %vm161_vm2, %v890_v6  ;;  %853 = vmatmul.mubr.msk.bf16.vlgmr.msra.gmra.mrb[4].mxu1 %vm161_vm2, %v890_v6 }
  0x1e   : > { %857 = vmatpush3.bf16.msra.mxu0 %v442_v12  ;;  %863 = vmatpush3.bf16.msra.mxu1 %v511_v13 }
  0x1f   : > { %858 = vmatprep.mubr.msk.bf16.mxu0 %vm964_vm0, %v963_v0  ;;  %868 = vmatprep.subr.bf16.mxu0 %v963_v0 }
  0x20   : > { %864 = vmatprep.mubr.msk.bf16.mxu1 %vm964_vm0, %v963_v0  ;;  %874 = vmatprep.subr.bf16.mxu1 %v963_v0 }
  0x25   : > { %859 = vmatmul.mubr.msk.bf16.vlgmr.msra.gmra.mrb[8].mxu0 %vm161_vm2, %v890_v6  ;;  %865 = vmatmul.mubr.msk.bf16.vlgmr.msra.gmra.mrb[8].mxu1 %vm161_vm2, %v890_v6 }
  0x26   : > { %869 = vmatpush3.bf16.msra.mxu0 %v580_v16  ;;  %875 = vmatpush3.bf16.msra.mxu1 %v649_v17 }
  0x27   : > { %870 = vmatprep.mubr.msk.bf16.mxu0 %vm964_vm0, %v963_v0  ;;  %876 = vmatprep.mubr.msk.bf16.mxu1 %vm964_vm0, %v963_v0 }
  0x2d   : > { %871 = vmatmul.mubr.msk.bf16.vlgmr.msra.gmra.mrb[12].mxu0 %vm161_vm2, %v890_v6  ;;  %877 = vmatmul.mubr.msk.bf16.vlgmr.msra.gmra.mrb[12].mxu1 %vm161_vm2, %v890_v6 }
  0xe8   : > { %v203_v20 = vpop.f32.mrb[0].mxu0  ;;  %v271_v21 = vpop.f32.mrb[0].mxu1 }
  0xe9   : > { %v836_v22 = vpop.f32.mrb[1].mxu0  ;;  %v1036_v23 = vsel %vm152_vm3, %v271_v21, -1e+30  ;;  %v842_v24 = vpop.f32.mrb[1].mxu1  ;;  %v1040_v25 = vsel %vm152_vm3, %v203_v20, -1e+30 }
  0xea   : > { %280 = vmax.xlane.f32.xlu1 %v1036_v23  ;;  %212 = vmax.xlane.f32.xlu0 %v1040_v25  ;;  %v206_v26 = vpop.f32.mrb[2].mxu0  ;;  %v274_v27 = vpop.f32.mrb[2].mxu1 }
  0xeb   : > { %v837_v28 = vpop.f32.mrb[3].mxu0  ;;  %v843_v29 = vpop.f32.mrb[3].mxu1  ;;  %v1046_v30 = vsel %vm152_vm3, %v274_v27, -1e+30  ;;  %v211_v31 = vsel %vm152_vm3, %v206_v26, -1e+30 }
  0xee   : > { %282 = vmax.xlane.f32.xlu1 %v1046_v30  ;;  %214 = vmax.xlane.f32.xlu0 %v211_v31 }
  0xf0   : > { %v340_v32 = vpop.f32.mrb[4].mxu0  ;;  %v409_v33 = vpop.f32.mrb[4].mxu1 }
  0xf1   : > { %v848_v34 = vpop.f32.mrb[5].mxu0  ;;  %v1053_v35 = vsel %vm152_vm3, %v340_v32, -1e+30  ;;  %v854_v36 = vpop.f32.mrb[5].mxu1  ;;  %v1062_v42 = vsel %vm152_vm3, %v409_v33, -1e+30 }
  0xf2   : > { %349 = vmax.xlane.f32.xlu0 %v1053_v35  ;;  %v343_v37 = vpop.f32.mrb[6].mxu0  ;;  %v412_v38 = vpop.f32.mrb[6].mxu1 }
  0xf3   : > { %v849_v39 = vpop.f32.mrb[7].mxu0  ;;  %v1058_v40 = vsel %vm152_vm3, %v343_v37, -1e+30  ;;  %v855_v41 = vpop.f32.mrb[7].mxu1  ;;  %v1067_v43 = vsel %vm152_vm3, %v412_v38, -1e+30 }
  0xf4   : > { %351 = vmax.xlane.f32.xlu1 %v1058_v40 }
  0xf6   : > { %418 = vmax.xlane.f32.xlu0 %v1062_v42 }
  0xf8   : > { %420 = vmax.xlane.f32.xlu1 %v1067_v43  ;;  %v478_v44 = vpop.f32.mrb[8].mxu0  ;;  %v547_v45 = vpop.f32.mrb[8].mxu1 }
  0xf9   : > { %v860_v46 = vpop.f32.mrb[9].mxu0  ;;  %v1073_v47 = vsel %vm152_vm3, %v478_v44, -1e+30  ;;  %v866_v48 = vpop.f32.mrb[9].mxu1  ;;  %v1082_v54 = vsel %vm152_vm3, %v547_v45, -1e+30 }
  0xfa   : > { %487 = vmax.xlane.f32.xlu0 %v1073_v47  ;;  %v481_v49 = vpop.f32.mrb[10].mxu0  ;;  %v550_v50 = vpop.f32.mrb[10].mxu1 }
  0xfb   : > { %v861_v51 = vpop.f32.mrb[11].mxu0  ;;  %v1078_v52 = vsel %vm152_vm3, %v481_v49, -1e+30  ;;  %v867_v53 = vpop.f32.mrb[11].mxu1  ;;  %v1087_v55 = vsel %vm152_vm3, %v550_v50, -1e+30 }
  0xfc   : > { %489 = vmax.xlane.f32.xlu1 %v1078_v52 }
  0xfe   : > { %556 = vmax.xlane.f32.xlu0 %v1082_v54 }
 0x100   : > { %558 = vmax.xlane.f32.xlu1 %v1087_v55  ;;  %v616_v56 = vpop.f32.mrb[12].mxu0  ;;  %v685_v57 = vpop.f32.mrb[12].mxu1 }
 0x101   : > { %v872_v58 = vpop.f32.mrb[13].mxu0  ;;  %v1093_v59 = vsel %vm152_vm3, %v616_v56, -1e+30  ;;  %v878_v60 = vpop.f32.mrb[13].mxu1  ;;  %v1102_v2 = vsel %vm152_vm3, %v685_v57, -1e+30 }
 0x102   : > { %625 = vmax.xlane.f32.xlu0 %v1093_v59  ;;  %v619_v61 = vpop.f32.mrb[14].mxu0  ;;  %v688_v62 = vpop.f32.mrb[14].mxu1 }
 0x103   : > { %v873_v63 = vpop.f32.mrb[15].mxu0  ;;  %v1098_v0 = vsel %vm152_vm3, %v619_v61, -1e+30  ;;  %v879_v1 = vpop.f32.mrb[15].mxu1  ;;  %v1107_v3 = vsel %vm152_vm3, %v688_v62, -1e+30 }
 0x104   : > { %627 = vmax.xlane.f32.xlu1 %v1098_v0 }
 0x106   : > { %694 = vmax.xlane.f32.xlu0 %v1102_v2 }
 0x108   : > { %696 = vmax.xlane.f32.xlu1 %v1107_v3 }
 0x177   : > { %v281_v4 = vpop.xlane.xlu1 %280  ;;  %v213_v5 = vpop.xlane.xlu0 %212 }
 0x178   : > { %v284_v6 = vsub.f32 %v1036_v23, %v281_v4  ;;  %v216_v7 = vsub.f32 %v1040_v25, %v213_v5 }
 0x17a   : > { %v218_v8 = vmul.f32 1.442695, %v216_v7  ;;  %v286_v11 = vmul.f32 1.442695, %v284_v6 }
 0x17b   : > { %v283_v9 = vpop.xlane.xlu1 %282  ;;  %v215_v10 = vpop.xlane.xlu0 %214 }
 0x17c   : > { %v217_v12 = vsub.f32 %v211_v31, %v215_v10  ;;  %891 = vpow2.f32 %v218_v8  ;;  %v285_v13 = vsub.f32 %v1046_v30, %v283_v9 }
 0x17d   : > { %893 = vpow2.f32 %v286_v11 }
 0x17e   : > { %v220_v14 = vmul.f32 1.442695, %v217_v12  ;;  %v288_v17 = vmul.f32 1.442695, %v285_v13 }
 0x17f   : > { %v350_v15 = vpop.xlane.xlu0 %349 }
 0x180   : > { %v353_v16 = vsub.f32 %v1053_v35, %v350_v15  ;;  %895 = vpow2.f32 %v220_v14 }
 0x181   : > { %v352_v18 = vpop.xlane.xlu1 %351 }
 0x182   : > { %v355_v19 = vmul.f32 1.442695, %v353_v16  ;;  %v354_v20 = vsub.f32 %v1058_v40, %v352_v18 }
 0x183   : > { %v419_v21 = vpop.xlane.xlu0 %418 }
 0x184   : > { %897 = vpow2.f32 %v355_v19  ;;  %v422_v22 = vsub.f32 %v1062_v42, %v419_v21  ;;  %v357_v23 = vmul.f32 1.442695, %v354_v20 }
 0x185   : > { %899 = vpow2.f32 %v288_v17  ;;  %v421_v24 = vpop.xlane.xlu1 %420 }
 0x186   : > { %v424_v25 = vmul.f32 1.442695, %v422_v22  ;;  %v423_v26 = vsub.f32 %v1067_v43, %v421_v24  ;;  %v1118_v27 = vpop.eup %891 }
 0x187   : > { %v488_v28 = vpop.xlane.xlu0 %487  ;;  %222 = vadd.xlane.f32.xlu0 %v1118_v27  ;;  %v1122_v32 = vpop.eup %893 }
 0x188   : > { %901 = vpow2.f32 %v424_v25  ;;  %v491_v29 = vsub.f32 %v1073_v47, %v488_v28  ;;  %v426_v30 = vmul.f32 1.442695, %v423_v26 }
 0x189   : > { %903 = vpow2.f32 %v357_v23  ;;  %v490_v31 = vpop.xlane.xlu1 %489 }
 0x18a   : > { %v493_v33 = vmul.f32 1.442695, %v491_v29  ;;  %v492_v34 = vsub.f32 %v1078_v52, %v490_v31  ;;  %v1125_v35 = vpop.eup %895 }
 0x18b   : > { %v557_v36 = vpop.xlane.xlu0 %556  ;;  %290 = vadd.xlane.f32.xlu0 %v1122_v32  ;;  %224 = vadd.xlane.f32.xlu1 %v1125_v35 }
 0x18c   : > { %905 = vpow2.f32 %v493_v33  ;;  %v560_v37 = vsub.f32 %v1082_v54, %v557_v36  ;;  %v495_v38 = vmul.f32 1.442695, %v492_v34 }
 0x18d   : > { %907 = vpow2.f32 %v426_v30  ;;  %v559_v39 = vpop.xlane.xlu1 %558 }
 0x18e   : > { %v1130_v40 = vpop.eup %897  ;;  %v562_v41 = vmul.f32 1.442695, %v560_v37  ;;  %v561_v42 = vsub.f32 %v1087_v55, %v559_v39 }
 0x18f   : > { %v1133_v43 = vpop.eup %899  ;;  %v626_v44 = vpop.xlane.xlu0 %625  ;;  %359 = vadd.xlane.f32.xlu0 %v1130_v40 }
 0x190   : > { %909 = vpow2.f32 %v562_v41  ;;  %v629_v45 = vsub.f32 %v1093_v59, %v626_v44  ;;  %292 = vadd.xlane.f32.xlu1 %v1133_v43  ;;  %v564_v46 = vmul.f32 1.442695, %v561_v42 }
 0x191   : > { %911 = vpow2.f32 %v495_v38  ;;  %v628_v47 = vpop.xlane.xlu1 %627 }
 0x192   : > { %v1138_v48 = vpop.eup %901  ;;  %v631_v49 = vmul.f32 1.442695, %v629_v45  ;;  %v630_v50 = vsub.f32 %v1098_v0, %v628_v47 }
 0x193   : > { %v1141_v51 = vpop.eup %903  ;;  %v695_v52 = vpop.xlane.xlu0 %694  ;;  %428 = vadd.xlane.f32.xlu0 %v1138_v48 }
 0x194   : > { %913 = vpow2.f32 %v631_v49  ;;  %v698_v53 = vsub.f32 %v1102_v2, %v695_v52  ;;  %361 = vadd.xlane.f32.xlu1 %v1141_v51  ;;  %v633_v54 = vmul.f32 1.442695, %v630_v50 }
 0x195   : > { %915 = vpow2.f32 %v564_v46  ;;  %v697_v55 = vpop.xlane.xlu1 %696 }
 0x196   : > { %v1146_v56 = vpop.eup %905  ;;  %v700_v57 = vmul.f32 1.442695, %v698_v53  ;;  %v699_v58 = vsub.f32 %v1107_v3, %v697_v55 }
 0x197   : > { %v1149_v59 = vpop.eup %907  ;;  %497 = vadd.xlane.f32.xlu0 %v1146_v56 }
 0x198   : > { %917 = vpow2.f32 %v700_v57  ;;  %430 = vadd.xlane.f32.xlu1 %v1149_v59  ;;  %v702_v60 = vmul.f32 1.442695, %v699_v58 }
 0x199   : > { %919 = vpow2.f32 %v633_v54 }
 0x19a   : > { %v1153_v61 = vpop.eup %909  ;;  %921 = vpow2.f32 %v702_v60 }
 0x19b   : > { %v1155_v62 = vpop.eup %911  ;;  %566 = vadd.xlane.f32.xlu0 %v1153_v61 }
 0x19c   : > { %499 = vadd.xlane.f32.xlu1 %v1155_v62 }
 0x19e   : > { %v1159_v63 = vpop.eup %913 }
 0x19f   : > { %v1161_v0 = vpop.eup %915  ;;  %635 = vadd.xlane.f32.xlu0 %v1159_v63 }
 0x1a0   : > { %568 = vadd.xlane.f32.xlu1 %v1161_v0 }
 0x1a2   : > { %v1165_v1 = vpop.eup %917 }
 0x1a3   : > { %v1167_v2 = vpop.eup %919  ;;  %704 = vadd.xlane.f32.xlu0 %v1165_v1 }
 0x1a4   : > { %637 = vadd.xlane.f32.xlu1 %v1167_v2  ;;  %v1171_v3 = vpop.eup %921 }
 0x1a8   : > { %706 = vadd.xlane.f32.xlu1 %v1171_v3 }
 0x214   : > { %v223_v4 = vpop.xlane.xlu0 %222 }
 0x215   : > { %923 = vrcp.f32 %v223_v4 }
 0x218   : > { %v291_v5 = vpop.xlane.xlu0 %290  ;;  %v225_v6 = vpop.xlane.xlu1 %224 }
 0x219   : > { %925 = vrcp.f32 %v291_v5 }
 0x21a   : > { %927 = vrcp.f32 %v225_v6 }
 0x21c   : > { %v360_v7 = vpop.xlane.xlu0 %359 }
 0x21d   : > { %v293_v8 = vpop.xlane.xlu1 %292  ;;  %929 = vrcp.f32 %v360_v7 }
 0x21e   : > { %931 = vrcp.f32 %v293_v8 }
 0x21f   : > { %v924_v9 = vpop.eup %923 }
 0x220   : > { %v227_v10 = vmul.f32 %v924_v9, %v1118_v27  ;;  %v429_v11 = vpop.xlane.xlu0 %428 }
 0x221   : > { %v362_v12 = vpop.xlane.xlu1 %361  ;;  %933 = vrcp.f32 %v429_v11 }
 0x222   : > { %230 = vst [vmem:[%s1178_s21] sm:$0xff] %v227_v10  ;;  %935 = vrcp.f32 %v362_v12 }
 0x223   : > { %v926_v13 = vpop.eup %925 }
 0x224   : > { %v928_v14 = vpop.eup %927  ;;  %v295_v15 = vmul.f32 %v926_v13, %v1122_v32  ;;  %v498_v16 = vpop.xlane.xlu0 %497 }
 0x225   : > { %v431_v17 = vpop.xlane.xlu1 %430  ;;  %v229_v18 = vmul.f32 %v928_v14, %v1125_v35  ;;  %937 = vrcp.f32 %v498_v16 }
 0x226   : > { %787 = vst [vmem:[%s1178_s21 + $0x10] sm:$0xff] %v295_v15  ;;  %939 = vrcp.f32 %v431_v17 }
 0x227   : > { %v930_v19 = vpop.eup %929  ;;  %231 = vst [vmem:[%s1178_s21 + $0x8] sm:$0xff] %v229_v18 }
 0x228   : > { %v932_v20 = vpop.eup %931  ;;  %v364_v21 = vmul.f32 %v930_v19, %v1130_v40  ;;  %v567_v22 = vpop.xlane.xlu0 %566 }
 0x229   : > { %v500_v23 = vpop.xlane.xlu1 %499  ;;  %v297_v24 = vmul.f32 %v932_v20, %v1133_v43  ;;  %941 = vrcp.f32 %v567_v22 }
 0x22a   : > { %791 = vst [vmem:[%s1178_s21 + $0x20] sm:$0xff] %v364_v21  ;;  %943 = vrcp.f32 %v500_v23 }
 0x22b   : > { %v934_v25 = vpop.eup %933  ;;  %788 = vst [vmem:[%s1178_s21 + $0x18] sm:$0xff] %v297_v24 }
 0x22c   : > { %v936_v26 = vpop.eup %935  ;;  %v433_v27 = vmul.f32 %v934_v25, %v1138_v48  ;;  %v636_v28 = vpop.xlane.xlu0 %635 }
 0x22d   : > { %v569_v29 = vpop.xlane.xlu1 %568  ;;  %v366_v30 = vmul.f32 %v936_v26, %v1141_v51  ;;  %945 = vrcp.f32 %v636_v28 }
 0x22e   : > { %795 = vst [vmem:[%s1178_s21 + $0x30] sm:$0xff] %v433_v27  ;;  %947 = vrcp.f32 %v569_v29 }
 0x22f   : > { %v938_v31 = vpop.eup %937  ;;  %792 = vst [vmem:[%s1178_s21 + $0x28] sm:$0xff] %v366_v30 }
 0x230   : > { %v940_v32 = vpop.eup %939  ;;  %v502_v33 = vmul.f32 %v938_v31, %v1146_v56  ;;  %v705_v34 = vpop.xlane.xlu0 %704 }
 0x231   : > { %v638_v35 = vpop.xlane.xlu1 %637  ;;  %v435_v36 = vmul.f32 %v940_v32, %v1149_v59  ;;  %949 = vrcp.f32 %v705_v34 }
 0x232   : > { %799 = vst [vmem:[%s1178_s21 + $0x40] sm:$0xff] %v502_v33  ;;  %951 = vrcp.f32 %v638_v35 }
 0x233   : > { %v942_v37 = vpop.eup %941  ;;  %796 = vst [vmem:[%s1178_s21 + $0x38] sm:$0xff] %v435_v36 }
 0x234   : > { %v944_v38 = vpop.eup %943  ;;  %v571_v39 = vmul.f32 %v942_v37, %v1153_v61 }
 0x235   : > { %v707_v40 = vpop.xlane.xlu1 %706  ;;  %v504_v41 = vmul.f32 %v944_v38, %v1155_v62 }
 0x236   : > { %953 = vrcp.f32 %v707_v40  ;;  %803 = vst [vmem:[%s1178_s21 + $0x50] sm:$0xff] %v571_v39 }
 0x237   : > { %v946_v42 = vpop.eup %945  ;;  %800 = vst [vmem:[%s1178_s21 + $0x48] sm:$0xff] %v504_v41 }
 0x238   : > { %v948_v43 = vpop.eup %947  ;;  %v640_v44 = vmul.f32 %v946_v42, %v1159_v63 }
 0x239   : > { %v573_v45 = vmul.f32 %v948_v43, %v1161_v0 }
 0x23a   : > { %807 = vst [vmem:[%s1178_s21 + $0x60] sm:$0xff] %v640_v44 }
 0x23b   : > { %v950_v46 = vpop.eup %949  ;;  %804 = vst [vmem:[%s1178_s21 + $0x58] sm:$0xff] %v573_v45 }
 0x23c   : > { %v952_v47 = vpop.eup %951  ;;  %v709_v48 = vmul.f32 %v950_v46, %v1165_v1 }
 0x23d   : > { %v642_v49 = vmul.f32 %v952_v47, %v1167_v2 }
 0x23e   : > { %811 = vst [vmem:[%s1178_s21 + $0x70] sm:$0xff] %v709_v48 }
 0x23f   : > { %808 = vst [vmem:[%s1178_s21 + $0x68] sm:$0xff] %v642_v49 }
 0x240   : > { %v954_v50 = vpop.eup %953 }
 0x241   : > { %v711_v51 = vmul.f32 %v954_v50, %v1171_v3 }
 0x243   : > { %812 = vst [vmem:[%s1178_s21 + $0x78] sm:$0xff] %v711_v51 }
 0x244 PF: > { %s12_s9 = sadd.s32 1, %s961_s9  }
 0x245   : > { %p9_p4 = scmp.ge.s32.totalorder %s12_s9, 4  }
 0x247   :  { %11 = sbr.rel (!%p9_p4) target bundleno = 1 (0x1), region = 72 }

</bundles_post_ra>
